<compile_context>
chip_gen: v7x
topology: tpu7x:2x2x1
jax: 0.10.0
libtpu: 0.0.40
codegen_flags: <defaults>
</compile_context>

<pallas_src>
import functools
import math

import jax
import jax.numpy as jnp
import numpy as np
from jax.experimental import pallas as pl
from jax.experimental.pallas import tpu as pltpu


# ConvTranspose2d(k=4, s=2, p=1): output row oy = 2*iy + ky - 1.
#   even output rows (oy = 2m)  : ky=1 (iy = m), ky=3 (iy = m-1)
#   odd  output rows (oy = 2m+1): ky=2 (iy = m), ky=0 (iy = m+1)


# --------------------------- weight packing (host) ---------------------------
def _band_matrix(w, ky, W):
    """Banded matrix B with B[(ix,ci),(ox,co)] = w[ci,co,ky,kx], kx = ox-2*ix+1.

    Folds the full horizontal structure of the transposed conv (incl. boundary
    zero padding) into the weights, so the kernel never shifts along x.
    w: (Cin, Cout, 4, 4) numpy f32.  Returns (W*Cin, 2*W*Cout) numpy f32.
    """
    Cin, Cout = w.shape[0], w.shape[1]
    B = np.zeros((W * Cin, 2 * W * Cout), dtype=np.float32)
    for ix in range(W):
        for kx in range(4):
            ox = 2 * ix + kx - 1
            if 0 <= ox < 2 * W:
                B[ix * Cin:(ix + 1) * Cin, ox * Cout:(ox + 1) * Cout] = w[:, :, ky, kx]
    return B


def pack_params(params, spatial=4):
    """One-time repack: per layer the 4 ky band matrices concatenated along the
    output axis (column group g == ky) as bf16, plus an f32 bias row."""
    packed = {}
    W = spatial
    for idx in (1, 2, 3):
        w = np.asarray(params[f"w{idx}"], np.float32)
        b = np.asarray(params[f"b{idx}"], np.float32)
        mats = [_band_matrix(w, ky, W) for ky in range(4)]
        packed[f"B{idx}"] = jnp.asarray(np.concatenate(mats, axis=1), jnp.bfloat16)
        packed[f"c{idx}"] = jnp.asarray(np.tile(b, 2 * W)[None, :], jnp.float32)
        W *= 2
    return packed


# --------------------------------- kernel ------------------------------------
def _decoder_kernel(x_ref, b1_ref, c1_ref, b2_ref, c2_ref, b3_ref, c3_ref,
                    out_ref, p2_ref, p3_ref, *, n_batch, hb):
    """Fused 3-layer transposed-conv decoder; whole batch folded into M.

    x_ref : (N*(hb+2), W1*C1) bf16  halo-padded, row-flattened (x, c) input
    bi    : (Ki, 4*Ncoli)     bf16  four ky band matrices, column group g = ky
    ci    : (1, Ncoli)        f32   bias row
    out   : (N, hb, 8*Ncol3)  f32   row-class-packed, lane-dense final image
    p2/p3 : bf16 VMEM scratch       row-class-split intermediates (with halos)
    """
    blk = hb + 2                      # rows per class block (incl. 2 halo rows)

    # Halo rows of the (uninitialised) intermediate buffers must be zero.
    p2_ref[...] = jnp.zeros_like(p2_ref)
    p3_ref[...] = jnp.zeros_like(p3_ref)

    def layer(lhs, b_ref, c_ref, n_cls_in, act, out_dtype):
        """One transposed-conv layer on a row-class-split LHS.

        Input class c holds true rows  n_cls_in*j + c  (block index j).
        Output class o = 2*c + p holds true rows (2*n_cls_in)*j + o.
        Returns {(batch, out_class): (hb, Ncol) activated block}.
        """
        ncol = b_ref.shape[1] // 4
        r = jnp.dot(lhs, b_ref[...], preferred_element_type=jnp.float32)
        bias = c_ref[...]                                    # (1, ncol) f32
        blocks = {}
        for n in range(n_batch):
            for c in range(n_cls_in):
                base_a = (n * n_cls_in + c) * blk
                for p in (0, 1):
                    if p == 0:                 # even rows: ky=1 (dy=0), ky=3 (dy=-1)
                        ky_a, ky_b = 1, 3
                        c_b, a_b = (c - 1, 0) if c >= 1 else (n_cls_in - 1, -1)
                    else:                      # odd rows:  ky=2 (dy=0), ky=0 (dy=+1)
                        ky_a, ky_b = 2, 0
                        c_b, a_b = (c + 1, 0) if c + 1 < n_cls_in else (0, 1)
                    base_b = (n * n_cls_in + c_b) * blk
                    ta = r[base_a + 1:base_a + 1 + hb,
                           ky_a * ncol:(ky_a + 1) * ncol]
                    tb = r[base_b + 1 + a_b:base_b + 1 + a_b + hb,
                           ky_b * ncol:(ky_b + 1) * ncol]
                    acc = ta + tb + bias
                    acc = jnp.maximum(acc, 0.0) if act == "relu" else jnp.tanh(acc)
                    blocks[(n, 2 * c + p)] = acc.astype(out_dtype)
        return blocks

    def store_blocks(dst_ref, blocks, n_cls_out):
        for (n, o), v in blocks.items():
            row0 = (n * n_cls_out + o) * blk + 1
            dst_ref[row0:row0 + hb, :] = v                   # one wide store each

    # layer 1: latent -> p2 (ReLU); 1 -> 2 row classes
    store_blocks(p2_ref,
                 layer(x_ref[...], b1_ref, c1_ref, 1, "relu", p2_ref.dtype), 2)
    # layer 2: p2 -> p3 (ReLU); 2 -> 4 row classes
    store_blocks(p3_ref,
                 layer(p2_ref[...], b2_ref, c2_ref, 2, "relu", p3_ref.dtype), 4)
    # layer 3: p3 -> out (Tanh); 4 -> 8 row classes, lane-concatenated per image
    blocks3 = layer(p3_ref[...], b3_ref, c3_ref, 4, "tanh", out_ref.dtype)
    for n in range(n_batch):
        out_ref[n] = jnp.concatenate([blocks3[(n, o)] for o in range(8)], axis=1)


# -------------------------------- wrapper ------------------------------------
def vae_decoder(z_nchw, packed):
    """VAEDecoder.forward: (N, latent, H, W) -> (N, channels, 8H, 8W)."""
    N, C1, H1, W1 = z_nchw.shape
    B1, c1 = packed["B1"], packed["c1"]
    B2, c2 = packed["B2"], packed["c2"]
    B3, c3 = packed["B3"], packed["c3"]

    W2, W3 = 2 * W1, 4 * W1
    hb = H1                                  # rows per class block (constant)
    blk = hb + 2
    D1 = B1.shape[1] // (8 * W1)
    D2 = B2.shape[1] // (8 * W2)
    D3 = B3.shape[1] // (8 * W3)
    assert B1.shape == (W1 * C1, 8 * W1 * D1)
    assert B2.shape == (2 * W1 * D1, 8 * W2 * D2)
    assert B3.shape == (2 * W2 * D2, 8 * W3 * D3)
    Ho, Wo = 8 * H1, 8 * W1
    ncol3 = 2 * W3 * D3                      # = Wo * D3

    # tiny glue: NCHW -> NHWC -> row-flattened (x, c), one halo row per element
    # above/below, batch folded into the matmul M dimension, bf16 for the MXU.
    x = jnp.transpose(z_nchw, (0, 2, 3, 1)).reshape(N, H1, W1 * C1)
    x = jnp.pad(x, ((0, 0), (1, 1), (0, 0)))
    x = x.reshape(N * blk, W1 * C1).astype(jnp.bfloat16)

    kernel = functools.partial(_decoder_kernel, n_batch=N, hb=hb)

    m1, m2, m3 = N * 1 * blk, N * 2 * blk, N * 4 * blk
    flops = 2 * (m1 * B1.shape[0] * B1.shape[1]
                 + m2 * B2.shape[0] * B2.shape[1]
                 + m3 * B3.shape[0] * B3.shape[1])
    bytes_accessed = (x.size * 2 + (B1.size + B2.size + B3.size) * 2
                      + (c1.size + c2.size + c3.size) * 4
                      + N * Ho * Wo * D3 * 4)

    vmem_spec = pl.BlockSpec(memory_space=pltpu.MemorySpace.VMEM)
    out_flat = pl.pallas_call(
        kernel,
        out_shape=jax.ShapeDtypeStruct((N, hb, 8 * ncol3), jnp.float32),
        in_specs=[vmem_spec] * 7,
        out_specs=vmem_spec,
        scratch_shapes=[
            pltpu.VMEM((N * 2 * blk, 2 * W1 * D1), jnp.bfloat16),   # layer-1 out
            pltpu.VMEM((N * 4 * blk, 2 * W2 * D2), jnp.bfloat16),   # layer-2 out
        ],
        compiler_params=pltpu.CompilerParams(vmem_limit_bytes=32 * 1024 * 1024),
        cost_estimate=pl.CostEstimate(flops=flops,
                                      transcendentals=N * Ho * Wo * D3,
                                      bytes_accessed=bytes_accessed),
    )(x, B1, c1, B2, c2, B3, c3)

    # Undo the row-class packing: (N, hb, 8*Wo*D3) is already row-major over
    # (row_block j, row_class o, x, c) with image row = 8*j + o.
    out = out_flat.reshape(N, Ho, Wo, D3)
    return jnp.transpose(out, (0, 3, 1, 2))                  # NHWC -> NCHW


def init_params(key, latent_dim=256, channels=1):
    # Deterministic init; same shapes as the nn.Module (decoder_size = 64).
    dims = [(latent_dim, 64), (64, 32), (32, channels)]
    params = {}
    for idx, (cin, cout) in enumerate(dims, start=1):
        key, kw, kb = jax.random.split(key, 3)
        bound = 1.0 / math.sqrt(cout * 4 * 4)
        params[f"w{idx}"] = jax.random.uniform(kw, (cin, cout, 4, 4),
                                               jnp.float32, -bound, bound)
        params[f"b{idx}"] = jax.random.uniform(kb, (cout,), jnp.float32,
                                               -bound, bound)
    return params


# ---------------- NumPy reference (independent scatter formulation) -----------
def _ref_convt(x, w, b):
    N, Cin, H, W = x.shape
    Cout = w.shape[1]
    out = np.zeros((N, Cout, 2 * H + 2, 2 * W + 2), dtype=x.dtype)
    for ky in range(4):
        for kx in range(4):
            contrib = np.einsum("nchw,cd->ndhw", x, w[:, :, ky, kx])
            out[:, :, ky:ky + 2 * H:2, kx:kx + 2 * W:2] += contrib
    return out[:, :, 1:1 + 2 * H, 1:1 + 2 * W] + b[None, :, None, None]


def _q_bf16(a):
    return np.asarray(jnp.asarray(a, jnp.float32).astype(jnp.bfloat16)
                      .astype(jnp.float32), np.float64)


def _ref_decoder(z, p):
    # Mirrors the kernel's bf16 storage of intermediate activations.
    h = _q_bf16(np.maximum(_ref_convt(z, p["w1"], p["b1"]), 0.0))
    h = _q_bf16(np.maximum(_ref_convt(h, p["w2"], p["b2"]), 0.0))
    return np.tanh(_ref_convt(h, p["w3"], p["b3"]))


if __name__ == "__main__":
    key = jax.random.PRNGKey(0)
    kp, kz = jax.random.split(key)
    params = init_params(kp, latent_dim=256, channels=1)
    z = jax.random.normal(kz, (2, 256, 4, 4), jnp.float32)      # NCHW latent

    packed = pack_params(params, spatial=4)                     # one-time host repack
    decode = jax.jit(vae_decoder)
    out = jax.block_until_ready(decode(z, packed))
    assert out.shape == (2, 1, 32, 32), out.shape

    # Reference in float64 using the same bf16-rounded input/weights (and bf16
    # intermediate rounding) the kernel sees, so the comparison isolates kernel
    # correctness from quantization.
    p64 = {f"w{i}": _q_bf16(params[f"w{i}"]) for i in (1, 2, 3)}
    p64.update({f"b{i}": np.asarray(params[f"b{i}"], np.float64) for i in (1, 2, 3)})
    ref = _ref_decoder(_q_bf16(z), p64)
    np.testing.assert_allclose(np.asarray(out, np.float64), ref,
                               rtol=2e-2, atol=2e-2)
    print("KERNEL_OK")
</pallas_src>

<mosaic_0001>
module attributes {stable_mosaic.version = 11 : i64} {
  func.func @_decoder_kernel(%arg0: memref<12x1024xbf16, #tpu.memory_space<vmem>>, %arg1: memref<1024x2048xbf16, #tpu.memory_space<vmem>>, %arg2: memref<1x512xf32, #tpu.memory_space<vmem>>, %arg3: memref<512x2048xbf16, #tpu.memory_space<vmem>>, %arg4: memref<1x512xf32, #tpu.memory_space<vmem>>, %arg5: memref<512x128xbf16, #tpu.memory_space<vmem>>, %arg6: memref<1x32xf32, #tpu.memory_space<vmem>>, %arg7: memref<2x4x256xf32, #tpu.memory_space<vmem>>, %arg8: memref<24x512xbf16, #tpu.memory_space<vmem>>, %arg9: memref<48x512xbf16, #tpu.memory_space<vmem>>) attributes {dimension_semantics = [], scalar_prefetch = 0 : i64, scratch_operands = 2 : i64, tpu.core_type = #tpu.core_type<tc>} {
    %cst = arith.constant 0.000000e+00 : bf16
    %0 = vector.broadcast %cst : bf16 to vector<24x512xbf16>
    %c0 = arith.constant 0 : index
    %c0_0 = arith.constant 0 : index
    %1 = vector.load %arg8[%c0, %c0_0] : memref<24x512xbf16, #tpu.memory_space<vmem>>, vector<24x512xbf16>
    tpu.vector_store %arg8[%c0, %c0_0], %0 {strides = array<i32>} : memref<24x512xbf16, #tpu.memory_space<vmem>>, vector<24x512xbf16>,
    %cst_1 = arith.constant 0.000000e+00 : bf16
    %2 = vector.broadcast %cst_1 : bf16 to vector<48x512xbf16>
    %c0_2 = arith.constant 0 : index
    %c0_3 = arith.constant 0 : index
    %3 = vector.load %arg9[%c0_2, %c0_3] : memref<48x512xbf16, #tpu.memory_space<vmem>>, vector<48x512xbf16>
    tpu.vector_store %arg9[%c0_2, %c0_3], %2 {strides = array<i32>} : memref<48x512xbf16, #tpu.memory_space<vmem>>, vector<48x512xbf16>,
    %c0_4 = arith.constant 0 : index
    %c0_5 = arith.constant 0 : index
    %4 = vector.load %arg0[%c0_4, %c0_5] : memref<12x1024xbf16, #tpu.memory_space<vmem>>, vector<12x1024xbf16>
    %c0_6 = arith.constant 0 : index
    %c0_7 = arith.constant 0 : index
    %5 = vector.load %arg1[%c0_6, %c0_7] : memref<1024x2048xbf16, #tpu.memory_space<vmem>>, vector<1024x2048xbf16>
    %cst_8 = arith.constant dense<0.000000e+00> : vector<12x2048xf32>
    %6 = tpu.matmul %4, %5, %cst_8 {dimension_numbers = #tpu.dot_dimension_numbers<[1], [0], [0], [1], [0, 0, 1, 1], [], []>} : vector<12x1024xbf16>, vector<1024x2048xbf16>, vector<12x2048xf32> -> vector<12x2048xf32>
    %c0_9 = arith.constant 0 : index
    %c0_10 = arith.constant 0 : index
    %7 = vector.load %arg2[%c0_9, %c0_10] : memref<1x512xf32, #tpu.memory_space<vmem>>, vector<1x512xf32>
    %8 = vector.extract_strided_slice %6 {offsets = [1, 512], sizes = [4, 512], strides = [1, 1]} : vector<12x2048xf32> to vector<4x512xf32>
    %9 = vector.extract_strided_slice %6 {offsets = [0, 1536], sizes = [4, 512], strides = [1, 1]} : vector<12x2048xf32> to vector<4x512xf32>
    %10 = arith.addf %8, %9 : vector<4x512xf32>
    %11 = vector.broadcast %7 : vector<1x512xf32> to vector<4x512xf32>
    %12 = arith.addf %10, %11 : vector<4x512xf32>
    %cst_11 = arith.constant 0.000000e+00 : f32
    %13 = vector.broadcast %cst_11 : f32 to vector<4x512xf32>
    %14 = arith.maximumf %12, %13 : vector<4x512xf32>
    %15 = arith.truncf %14 : vector<4x512xf32> to vector<4x512xbf16>
    %16 = vector.extract_strided_slice %6 {offsets = [1, 1024], sizes = [4, 512], strides = [1, 1]} : vector<12x2048xf32> to vector<4x512xf32>
    %17 = vector.extract_strided_slice %6 {offsets = [2, 0], sizes = [4, 512], strides = [1, 1]} : vector<12x2048xf32> to vector<4x512xf32>
    %18 = arith.addf %16, %17 : vector<4x512xf32>
    %19 = vector.broadcast %7 : vector<1x512xf32> to vector<4x512xf32>
    %20 = arith.addf %18, %19 : vector<4x512xf32>
    %cst_12 = arith.constant 0.000000e+00 : f32
    %21 = vector.broadcast %cst_12 : f32 to vector<4x512xf32>
    %22 = arith.maximumf %20, %21 : vector<4x512xf32>
    %23 = arith.truncf %22 : vector<4x512xf32> to vector<4x512xbf16>
    %24 = vector.extract_strided_slice %6 {offsets = [7, 512], sizes = [4, 512], strides = [1, 1]} : vector<12x2048xf32> to vector<4x512xf32>
    %25 = vector.extract_strided_slice %6 {offsets = [6, 1536], sizes = [4, 512], strides = [1, 1]} : vector<12x2048xf32> to vector<4x512xf32>
    %26 = arith.addf %24, %25 : vector<4x512xf32>
    %27 = vector.broadcast %7 : vector<1x512xf32> to vector<4x512xf32>
    %28 = arith.addf %26, %27 : vector<4x512xf32>
    %cst_13 = arith.constant 0.000000e+00 : f32
    %29 = vector.broadcast %cst_13 : f32 to vector<4x512xf32>
    %30 = arith.maximumf %28, %29 : vector<4x512xf32>
    %31 = arith.truncf %30 : vector<4x512xf32> to vector<4x512xbf16>
    %32 = vector.extract_strided_slice %6 {offsets = [7, 1024], sizes = [4, 512], strides = [1, 1]} : vector<12x2048xf32> to vector<4x512xf32>
    %33 = vector.extract_strided_slice %6 {offsets = [8, 0], sizes = [4, 512], strides = [1, 1]} : vector<12x2048xf32> to vector<4x512xf32>
    %34 = arith.addf %32, %33 : vector<4x512xf32>
    %35 = vector.broadcast %7 : vector<1x512xf32> to vector<4x512xf32>
    %36 = arith.addf %34, %35 : vector<4x512xf32>
    %cst_14 = arith.constant 0.000000e+00 : f32
    %37 = vector.broadcast %cst_14 : f32 to vector<4x512xf32>
    %38 = arith.maximumf %36, %37 : vector<4x512xf32>
    %39 = arith.truncf %38 : vector<4x512xf32> to vector<4x512xbf16>
    %c1 = arith.constant 1 : index
    %c0_15 = arith.constant 0 : index
    %40 = vector.load %arg8[%c1, %c0_15] : memref<24x512xbf16, #tpu.memory_space<vmem>>, vector<4x512xbf16>
    tpu.vector_store %arg8[%c1, %c0_15], %15 {strides = array<i32>} : memref<24x512xbf16, #tpu.memory_space<vmem>>, vector<4x512xbf16>,
    %c7 = arith.constant 7 : index
    %c0_16 = arith.constant 0 : index
    %41 = vector.load %arg8[%c7, %c0_16] : memref<24x512xbf16, #tpu.memory_space<vmem>>, vector<4x512xbf16>
    tpu.vector_store %arg8[%c7, %c0_16], %23 {strides = array<i32>} : memref<24x512xbf16, #tpu.memory_space<vmem>>, vector<4x512xbf16>,
    %c13 = arith.constant 13 : index
    %c0_17 = arith.constant 0 : index
    %42 = vector.load %arg8[%c13, %c0_17] : memref<24x512xbf16, #tpu.memory_space<vmem>>, vector<4x512xbf16>
    tpu.vector_store %arg8[%c13, %c0_17], %31 {strides = array<i32>} : memref<24x512xbf16, #tpu.memory_space<vmem>>, vector<4x512xbf16>,
    %c19 = arith.constant 19 : index
    %c0_18 = arith.constant 0 : index
    %43 = vector.load %arg8[%c19, %c0_18] : memref<24x512xbf16, #tpu.memory_space<vmem>>, vector<4x512xbf16>
    tpu.vector_store %arg8[%c19, %c0_18], %39 {strides = array<i32>} : memref<24x512xbf16, #tpu.memory_space<vmem>>, vector<4x512xbf16>,
    %c0_19 = arith.constant 0 : index
    %c0_20 = arith.constant 0 : index
    %44 = vector.load %arg8[%c0_19, %c0_20] : memref<24x512xbf16, #tpu.memory_space<vmem>>, vector<24x512xbf16>
    %c0_21 = arith.constant 0 : index
    %c0_22 = arith.constant 0 : index
    %45 = vector.load %arg3[%c0_21, %c0_22] : memref<512x2048xbf16, #tpu.memory_space<vmem>>, vector<512x2048xbf16>
    %cst_23 = arith.constant dense<0.000000e+00> : vector<24x2048xf32>
    %46 = tpu.matmul %44, %45, %cst_23 {dimension_numbers = #tpu.dot_dimension_numbers<[1], [0], [0], [1], [0, 0, 1, 1], [], []>} : vector<24x512xbf16>, vector<512x2048xbf16>, vector<24x2048xf32> -> vector<24x2048xf32>
    %c0_24 = arith.constant 0 : index
    %c0_25 = arith.constant 0 : index
    %47 = vector.load %arg4[%c0_24, %c0_25] : memref<1x512xf32, #tpu.memory_space<vmem>>, vector<1x512xf32>
    %48 = vector.extract_strided_slice %46 {offsets = [1, 512], sizes = [4, 512], strides = [1, 1]} : vector<24x2048xf32> to vector<4x512xf32>
    %49 = vector.extract_strided_slice %46 {offsets = [6, 1536], sizes = [4, 512], strides = [1, 1]} : vector<24x2048xf32> to vector<4x512xf32>
    %50 = arith.addf %48, %49 : vector<4x512xf32>
    %51 = vector.broadcast %47 : vector<1x512xf32> to vector<4x512xf32>
    %52 = arith.addf %50, %51 : vector<4x512xf32>
    %cst_26 = arith.constant 0.000000e+00 : f32
    %53 = vector.broadcast %cst_26 : f32 to vector<4x512xf32>
    %54 = arith.maximumf %52, %53 : vector<4x512xf32>
    %55 = arith.truncf %54 : vector<4x512xf32> to vector<4x512xbf16>
    %56 = vector.extract_strided_slice %46 {offsets = [1, 1024], sizes = [4, 512], strides = [1, 1]} : vector<24x2048xf32> to vector<4x512xf32>
    %57 = vector.extract_strided_slice %46 {offsets = [7, 0], sizes = [4, 512], strides = [1, 1]} : vector<24x2048xf32> to vector<4x512xf32>
    %58 = arith.addf %56, %57 : vector<4x512xf32>
    %59 = vector.broadcast %47 : vector<1x512xf32> to vector<4x512xf32>
    %60 = arith.addf %58, %59 : vector<4x512xf32>
    %cst_27 = arith.constant 0.000000e+00 : f32
    %61 = vector.broadcast %cst_27 : f32 to vector<4x512xf32>
    %62 = arith.maximumf %60, %61 : vector<4x512xf32>
    %63 = arith.truncf %62 : vector<4x512xf32> to vector<4x512xbf16>
    %64 = vector.extract_strided_slice %46 {offsets = [7, 512], sizes = [4, 512], strides = [1, 1]} : vector<24x2048xf32> to vector<4x512xf32>
    %65 = vector.extract_strided_slice %46 {offsets = [1, 1536], sizes = [4, 512], strides = [1, 1]} : vector<24x2048xf32> to vector<4x512xf32>
    %66 = arith.addf %64, %65 : vector<4x512xf32>
    %67 = vector.broadcast %47 : vector<1x512xf32> to vector<4x512xf32>
    %68 = arith.addf %66, %67 : vector<4x512xf32>
    %cst_28 = arith.constant 0.000000e+00 : f32
    %69 = vector.broadcast %cst_28 : f32 to vector<4x512xf32>
    %70 = arith.maximumf %68, %69 : vector<4x512xf32>
    %71 = arith.truncf %70 : vector<4x512xf32> to vector<4x512xbf16>
    %72 = vector.extract_strided_slice %46 {offsets = [7, 1024], sizes = [4, 512], strides = [1, 1]} : vector<24x2048xf32> to vector<4x512xf32>
    %73 = vector.extract_strided_slice %46 {offsets = [2, 0], sizes = [4, 512], strides = [1, 1]} : vector<24x2048xf32> to vector<4x512xf32>
    %74 = arith.addf %72, %73 : vector<4x512xf32>
    %75 = vector.broadcast %47 : vector<1x512xf32> to vector<4x512xf32>
    %76 = arith.addf %74, %75 : vector<4x512xf32>
    %cst_29 = arith.constant 0.000000e+00 : f32
    %77 = vector.broadcast %cst_29 : f32 to vector<4x512xf32>
    %78 = arith.maximumf %76, %77 : vector<4x512xf32>
    %79 = arith.truncf %78 : vector<4x512xf32> to vector<4x512xbf16>
    %80 = vector.extract_strided_slice %46 {offsets = [13, 512], sizes = [4, 512], strides = [1, 1]} : vector<24x2048xf32> to vector<4x512xf32>
    %81 = vector.extract_strided_slice %46 {offsets = [18, 1536], sizes = [4, 512], strides = [1, 1]} : vector<24x2048xf32> to vector<4x512xf32>
    %82 = arith.addf %80, %81 : vector<4x512xf32>
    %83 = vector.broadcast %47 : vector<1x512xf32> to vector<4x512xf32>
    %84 = arith.addf %82, %83 : vector<4x512xf32>
    %cst_30 = arith.constant 0.000000e+00 : f32
    %85 = vector.broadcast %cst_30 : f32 to vector<4x512xf32>
    %86 = arith.maximumf %84, %85 : vector<4x512xf32>
    %87 = arith.truncf %86 : vector<4x512xf32> to vector<4x512xbf16>
    %88 = vector.extract_strided_slice %46 {offsets = [13, 1024], sizes = [4, 512], strides = [1, 1]} : vector<24x2048xf32> to vector<4x512xf32>
    %89 = vector.extract_strided_slice %46 {offsets = [19, 0], sizes = [4, 512], strides = [1, 1]} : vector<24x2048xf32> to vector<4x512xf32>
    %90 = arith.addf %88, %89 : vector<4x512xf32>
    %91 = vector.broadcast %47 : vector<1x512xf32> to vector<4x512xf32>
    %92 = arith.addf %90, %91 : vector<4x512xf32>
    %cst_31 = arith.constant 0.000000e+00 : f32
    %93 = vector.broadcast %cst_31 : f32 to vector<4x512xf32>
    %94 = arith.maximumf %92, %93 : vector<4x512xf32>
    %95 = arith.truncf %94 : vector<4x512xf32> to vector<4x512xbf16>
    %96 = vector.extract_strided_slice %46 {offsets = [19, 512], sizes = [4, 512], strides = [1, 1]} : vector<24x2048xf32> to vector<4x512xf32>
    %97 = vector.extract_strided_slice %46 {offsets = [13, 1536], sizes = [4, 512], strides = [1, 1]} : vector<24x2048xf32> to vector<4x512xf32>
    %98 = arith.addf %96, %97 : vector<4x512xf32>
    %99 = vector.broadcast %47 : vector<1x512xf32> to vector<4x512xf32>
    %100 = arith.addf %98, %99 : vector<4x512xf32>
    %cst_32 = arith.constant 0.000000e+00 : f32
    %101 = vector.broadcast %cst_32 : f32 to vector<4x512xf32>
    %102 = arith.maximumf %100, %101 : vector<4x512xf32>
    %103 = arith.truncf %102 : vector<4x512xf32> to vector<4x512xbf16>
    %104 = vector.extract_strided_slice %46 {offsets = [19, 1024], sizes = [4, 512], strides = [1, 1]} : vector<24x2048xf32> to vector<4x512xf32>
    %105 = vector.extract_strided_slice %46 {offsets = [14, 0], sizes = [4, 512], strides = [1, 1]} : vector<24x2048xf32> to vector<4x512xf32>
    %106 = arith.addf %104, %105 : vector<4x512xf32>
    %107 = vector.broadcast %47 : vector<1x512xf32> to vector<4x512xf32>
    %108 = arith.addf %106, %107 : vector<4x512xf32>
    %cst_33 = arith.constant 0.000000e+00 : f32
    %109 = vector.broadcast %cst_33 : f32 to vector<4x512xf32>
    %110 = arith.maximumf %108, %109 : vector<4x512xf32>
    %111 = arith.truncf %110 : vector<4x512xf32> to vector<4x512xbf16>
    %c1_34 = arith.constant 1 : index
    %c0_35 = arith.constant 0 : index
    %112 = vector.load %arg9[%c1_34, %c0_35] : memref<48x512xbf16, #tpu.memory_space<vmem>>, vector<4x512xbf16>
    tpu.vector_store %arg9[%c1_34, %c0_35], %55 {strides = array<i32>} : memref<48x512xbf16, #tpu.memory_space<vmem>>, vector<4x512xbf16>,
    %c7_36 = arith.constant 7 : index
    %c0_37 = arith.constant 0 : index
    %113 = vector.load %arg9[%c7_36, %c0_37] : memref<48x512xbf16, #tpu.memory_space<vmem>>, vector<4x512xbf16>
    tpu.vector_store %arg9[%c7_36, %c0_37], %63 {strides = array<i32>} : memref<48x512xbf16, #tpu.memory_space<vmem>>, vector<4x512xbf16>,
    %c13_38 = arith.constant 13 : index
    %c0_39 = arith.constant 0 : index
    %114 = vector.load %arg9[%c13_38, %c0_39] : memref<48x512xbf16, #tpu.memory_space<vmem>>, vector<4x512xbf16>
    tpu.vector_store %arg9[%c13_38, %c0_39], %71 {strides = array<i32>} : memref<48x512xbf16, #tpu.memory_space<vmem>>, vector<4x512xbf16>,
    %c19_40 = arith.constant 19 : index
    %c0_41 = arith.constant 0 : index
    %115 = vector.load %arg9[%c19_40, %c0_41] : memref<48x512xbf16, #tpu.memory_space<vmem>>, vector<4x512xbf16>
    tpu.vector_store %arg9[%c19_40, %c0_41], %79 {strides = array<i32>} : memref<48x512xbf16, #tpu.memory_space<vmem>>, vector<4x512xbf16>,
    %c25 = arith.constant 25 : index
    %c0_42 = arith.constant 0 : index
    %116 = vector.load %arg9[%c25, %c0_42] : memref<48x512xbf16, #tpu.memory_space<vmem>>, vector<4x512xbf16>
    tpu.vector_store %arg9[%c25, %c0_42], %87 {strides = array<i32>} : memref<48x512xbf16, #tpu.memory_space<vmem>>, vector<4x512xbf16>,
    %c31 = arith.constant 31 : index
    %c0_43 = arith.constant 0 : index
    %117 = vector.load %arg9[%c31, %c0_43] : memref<48x512xbf16, #tpu.memory_space<vmem>>, vector<4x512xbf16>
    tpu.vector_store %arg9[%c31, %c0_43], %95 {strides = array<i32>} : memref<48x512xbf16, #tpu.memory_space<vmem>>, vector<4x512xbf16>,
    %c37 = arith.constant 37 : index
    %c0_44 = arith.constant 0 : index
    %118 = vector.load %arg9[%c37, %c0_44] : memref<48x512xbf16, #tpu.memory_space<vmem>>, vector<4x512xbf16>
    tpu.vector_store %arg9[%c37, %c0_44], %103 {strides = array<i32>} : memref<48x512xbf16, #tpu.memory_space<vmem>>, vector<4x512xbf16>,
    %c43 = arith.constant 43 : index
    %c0_45 = arith.constant 0 : index
    %119 = vector.load %arg9[%c43, %c0_45] : memref<48x512xbf16, #tpu.memory_space<vmem>>, vector<4x512xbf16>
    tpu.vector_store %arg9[%c43, %c0_45], %111 {strides = array<i32>} : memref<48x512xbf16, #tpu.memory_space<vmem>>, vector<4x512xbf16>,
    %c0_46 = arith.constant 0 : index
    %c0_47 = arith.constant 0 : index
    %120 = vector.load %arg9[%c0_46, %c0_47] : memref<48x512xbf16, #tpu.memory_space<vmem>>, vector<48x512xbf16>
    %c0_48 = arith.constant 0 : index
    %c0_49 = arith.constant 0 : index
    %121 = vector.load %arg5[%c0_48, %c0_49] : memref<512x128xbf16, #tpu.memory_space<vmem>>, vector<512x128xbf16>
    %cst_50 = arith.constant dense<0.000000e+00> : vector<48x128xf32>
    %122 = tpu.matmul %120, %121, %cst_50 {dimension_numbers = #tpu.dot_dimension_numbers<[1], [0], [0], [1], [0, 0, 1, 1], [], []>} : vector<48x512xbf16>, vector<512x128xbf16>, vector<48x128xf32> -> vector<48x128xf32>
    %c0_51 = arith.constant 0 : index
    %c0_52 = arith.constant 0 : index
    %123 = vector.load %arg6[%c0_51, %c0_52] : memref<1x32xf32, #tpu.memory_space<vmem>>, vector<1x32xf32>
    %124 = vector.extract_strided_slice %122 {offsets = [1, 32], sizes = [4, 32], strides = [1, 1]} : vector<48x128xf32> to vector<4x32xf32>
    %125 = vector.extract_strided_slice %122 {offsets = [18, 96], sizes = [4, 32], strides = [1, 1]} : vector<48x128xf32> to vector<4x32xf32>
    %126 = arith.addf %124, %125 : vector<4x32xf32>
    %127 = vector.broadcast %123 : vector<1x32xf32> to vector<4x32xf32>
    %128 = arith.addf %126, %127 : vector<4x32xf32>
    %129 = math.tanh %128 : vector<4x32xf32>
    %130 = vector.extract_strided_slice %122 {offsets = [1, 64], sizes = [4, 32], strides = [1, 1]} : vector<48x128xf32> to vector<4x32xf32>
    %131 = vector.extract_strided_slice %122 {offsets = [7, 0], sizes = [4, 32], strides = [1, 1]} : vector<48x128xf32> to vector<4x32xf32>
    %132 = arith.addf %130, %131 : vector<4x32xf32>
    %133 = vector.broadcast %123 : vector<1x32xf32> to vector<4x32xf32>
    %134 = arith.addf %132, %133 : vector<4x32xf32>
    %135 = math.tanh %134 : vector<4x32xf32>
    %136 = vector.extract_strided_slice %122 {offsets = [7, 32], sizes = [4, 32], strides = [1, 1]} : vector<48x128xf32> to vector<4x32xf32>
    %137 = vector.extract_strided_slice %122 {offsets = [1, 96], sizes = [4, 32], strides = [1, 1]} : vector<48x128xf32> to vector<4x32xf32>
    %138 = arith.addf %136, %137 : vector<4x32xf32>
    %139 = vector.broadcast %123 : vector<1x32xf32> to vector<4x32xf32>
    %140 = arith.addf %138, %139 : vector<4x32xf32>
    %141 = math.tanh %140 : vector<4x32xf32>
    %142 = vector.extract_strided_slice %122 {offsets = [7, 64], sizes = [4, 32], strides = [1, 1]} : vector<48x128xf32> to vector<4x32xf32>
    %143 = vector.extract_strided_slice %122 {offsets = [13, 0], sizes = [4, 32], strides = [1, 1]} : vector<48x128xf32> to vector<4x32xf32>
    %144 = arith.addf %142, %143 : vector<4x32xf32>
    %145 = vector.broadcast %123 : vector<1x32xf32> to vector<4x32xf32>
    %146 = arith.addf %144, %145 : vector<4x32xf32>
    %147 = math.tanh %146 : vector<4x32xf32>
    %148 = vector.extract_strided_slice %122 {offsets = [13, 32], sizes = [4, 32], strides = [1, 1]} : vector<48x128xf32> to vector<4x32xf32>
    %149 = vector.extract_strided_slice %122 {offsets = [7, 96], sizes = [4, 32], strides = [1, 1]} : vector<48x128xf32> to vector<4x32xf32>
    %150 = arith.addf %148, %149 : vector<4x32xf32>
    %151 = vector.broadcast %123 : vector<1x32xf32> to vector<4x32xf32>
    %152 = arith.addf %150, %151 : vector<4x32xf32>
    %153 = math.tanh %152 : vector<4x32xf32>
    %154 = vector.extract_strided_slice %122 {offsets = [13, 64], sizes = [4, 32], strides = [1, 1]} : vector<48x128xf32> to vector<4x32xf32>
    %155 = vector.extract_strided_slice %122 {offsets = [19, 0], sizes = [4, 32], strides = [1, 1]} : vector<48x128xf32> to vector<4x32xf32>
    %156 = arith.addf %154, %155 : vector<4x32xf32>
    %157 = vector.broadcast %123 : vector<1x32xf32> to vector<4x32xf32>
    %158 = arith.addf %156, %157 : vector<4x32xf32>
    %159 = math.tanh %158 : vector<4x32xf32>
    %160 = vector.extract_strided_slice %122 {offsets = [19, 32], sizes = [4, 32], strides = [1, 1]} : vector<48x128xf32> to vector<4x32xf32>
    %161 = vector.extract_strided_slice %122 {offsets = [13, 96], sizes = [4, 32], strides = [1, 1]} : vector<48x128xf32> to vector<4x32xf32>
    %162 = arith.addf %160, %161 : vector<4x32xf32>
    %163 = vector.broadcast %123 : vector<1x32xf32> to vector<4x32xf32>
    %164 = arith.addf %162, %163 : vector<4x32xf32>
    %165 = math.tanh %164 : vector<4x32xf32>
    %166 = vector.extract_strided_slice %122 {offsets = [19, 64], sizes = [4, 32], strides = [1, 1]} : vector<48x128xf32> to vector<4x32xf32>
    %167 = vector.extract_strided_slice %122 {offsets = [2, 0], sizes = [4, 32], strides = [1, 1]} : vector<48x128xf32> to vector<4x32xf32>
    %168 = arith.addf %166, %167 : vector<4x32xf32>
    %169 = vector.broadcast %123 : vector<1x32xf32> to vector<4x32xf32>
    %170 = arith.addf %168, %169 : vector<4x32xf32>
    %171 = math.tanh %170 : vector<4x32xf32>
    %172 = vector.extract_strided_slice %122 {offsets = [25, 32], sizes = [4, 32], strides = [1, 1]} : vector<48x128xf32> to vector<4x32xf32>
    %173 = vector.extract_strided_slice %122 {offsets = [42, 96], sizes = [4, 32], strides = [1, 1]} : vector<48x128xf32> to vector<4x32xf32>
    %174 = arith.addf %172, %173 : vector<4x32xf32>
    %175 = vector.broadcast %123 : vector<1x32xf32> to vector<4x32xf32>
    %176 = arith.addf %174, %175 : vector<4x32xf32>
    %177 = math.tanh %176 : vector<4x32xf32>
    %178 = vector.extract_strided_slice %122 {offsets = [25, 64], sizes = [4, 32], strides = [1, 1]} : vector<48x128xf32> to vector<4x32xf32>
    %179 = vector.extract_strided_slice %122 {offsets = [31, 0], sizes = [4, 32], strides = [1, 1]} : vector<48x128xf32> to vector<4x32xf32>
    %180 = arith.addf %178, %179 : vector<4x32xf32>
    %181 = vector.broadcast %123 : vector<1x32xf32> to vector<4x32xf32>
    %182 = arith.addf %180, %181 : vector<4x32xf32>
    %183 = math.tanh %182 : vector<4x32xf32>
    %184 = vector.extract_strided_slice %122 {offsets = [31, 32], sizes = [4, 32], strides = [1, 1]} : vector<48x128xf32> to vector<4x32xf32>
    %185 = vector.extract_strided_slice %122 {offsets = [25, 96], sizes = [4, 32], strides = [1, 1]} : vector<48x128xf32> to vector<4x32xf32>
    %186 = arith.addf %184, %185 : vector<4x32xf32>
    %187 = vector.broadcast %123 : vector<1x32xf32> to vector<4x32xf32>
    %188 = arith.addf %186, %187 : vector<4x32xf32>
    %189 = math.tanh %188 : vector<4x32xf32>
    %190 = vector.extract_strided_slice %122 {offsets = [31, 64], sizes = [4, 32], strides = [1, 1]} : vector<48x128xf32> to vector<4x32xf32>
    %191 = vector.extract_strided_slice %122 {offsets = [37, 0], sizes = [4, 32], strides = [1, 1]} : vector<48x128xf32> to vector<4x32xf32>
    %192 = arith.addf %190, %191 : vector<4x32xf32>
    %193 = vector.broadcast %123 : vector<1x32xf32> to vector<4x32xf32>
    %194 = arith.addf %192, %193 : vector<4x32xf32>
    %195 = math.tanh %194 : vector<4x32xf32>
    %196 = vector.extract_strided_slice %122 {offsets = [37, 32], sizes = [4, 32], strides = [1, 1]} : vector<48x128xf32> to vector<4x32xf32>
    %197 = vector.extract_strided_slice %122 {offsets = [31, 96], sizes = [4, 32], strides = [1, 1]} : vector<48x128xf32> to vector<4x32xf32>
    %198 = arith.addf %196, %197 : vector<4x32xf32>
    %199 = vector.broadcast %123 : vector<1x32xf32> to vector<4x32xf32>
    %200 = arith.addf %198, %199 : vector<4x32xf32>
    %201 = math.tanh %200 : vector<4x32xf32>
    %202 = vector.extract_strided_slice %122 {offsets = [37, 64], sizes = [4, 32], strides = [1, 1]} : vector<48x128xf32> to vector<4x32xf32>
    %203 = vector.extract_strided_slice %122 {offsets = [43, 0], sizes = [4, 32], strides = [1, 1]} : vector<48x128xf32> to vector<4x32xf32>
    %204 = arith.addf %202, %203 : vector<4x32xf32>
    %205 = vector.broadcast %123 : vector<1x32xf32> to vector<4x32xf32>
    %206 = arith.addf %204, %205 : vector<4x32xf32>
    %207 = math.tanh %206 : vector<4x32xf32>
    %208 = vector.extract_strided_slice %122 {offsets = [43, 32], sizes = [4, 32], strides = [1, 1]} : vector<48x128xf32> to vector<4x32xf32>
    %209 = vector.extract_strided_slice %122 {offsets = [37, 96], sizes = [4, 32], strides = [1, 1]} : vector<48x128xf32> to vector<4x32xf32>
    %210 = arith.addf %208, %209 : vector<4x32xf32>
    %211 = vector.broadcast %123 : vector<1x32xf32> to vector<4x32xf32>
    %212 = arith.addf %210, %211 : vector<4x32xf32>
    %213 = math.tanh %212 : vector<4x32xf32>
    %214 = vector.extract_strided_slice %122 {offsets = [43, 64], sizes = [4, 32], strides = [1, 1]} : vector<48x128xf32> to vector<4x32xf32>
    %215 = vector.extract_strided_slice %122 {offsets = [26, 0], sizes = [4, 32], strides = [1, 1]} : vector<48x128xf32> to vector<4x32xf32>
    %216 = arith.addf %214, %215 : vector<4x32xf32>
    %217 = vector.broadcast %123 : vector<1x32xf32> to vector<4x32xf32>
    %218 = arith.addf %216, %217 : vector<4x32xf32>
    %219 = math.tanh %218 : vector<4x32xf32>
    %220 = tpu.concatenate %129, %135, %141, %147, %153, %159, %165, %171 in 1 : vector<4x32xf32>, vector<4x32xf32>, vector<4x32xf32>, vector<4x32xf32>, vector<4x32xf32>, vector<4x32xf32>, vector<4x32xf32>, vector<4x32xf32> -> vector<4x256xf32>
    %c0_53 = arith.constant 0 : index
    %c0_54 = arith.constant 0 : index
    %c0_55 = arith.constant 0 : index
    %221 = vector.load %arg7[%c0_53, %c0_54, %c0_55] : memref<2x4x256xf32, #tpu.memory_space<vmem>>, vector<1x4x256xf32>
    %222 = vector.shape_cast %221 : vector<1x4x256xf32> to vector<4x256xf32>
    %223 = vector.shape_cast %220 : vector<4x256xf32> to vector<1x4x256xf32>
    tpu.vector_store %arg7[%c0_53, %c0_54, %c0_55], %223 {strides = array<i32>} : memref<2x4x256xf32, #tpu.memory_space<vmem>>, vector<1x4x256xf32>,
    %224 = tpu.concatenate %177, %183, %189, %195, %201, %207, %213, %219 in 1 : vector<4x32xf32>, vector<4x32xf32>, vector<4x32xf32>, vector<4x32xf32>, vector<4x32xf32>, vector<4x32xf32>, vector<4x32xf32>, vector<4x32xf32> -> vector<4x256xf32>
    %c1_56 = arith.constant 1 : index
    %c0_57 = arith.constant 0 : index
    %c0_58 = arith.constant 0 : index
    %225 = vector.load %arg7[%c1_56, %c0_57, %c0_58] : memref<2x4x256xf32, #tpu.memory_space<vmem>>, vector<1x4x256xf32>
    %226 = vector.shape_cast %225 : vector<1x4x256xf32> to vector<4x256xf32>
    %227 = vector.shape_cast %224 : vector<4x256xf32> to vector<1x4x256xf32>
    tpu.vector_store %arg7[%c1_56, %c0_57, %c0_58], %227 {strides = array<i32>} : memref<2x4x256xf32, #tpu.memory_space<vmem>>, vector<1x4x256xf32>,
    return
  }
}

</mosaic_0001>

<bundles_post_ra>
// kernel: vae_decoder.1
= control target key start
LH: loop header
LB: loop body
LE: loop exit
PB: predicated region body
PF: predicated region fallthrough
CT: control target
= control target key end

     0   :  { %12 = vsyncpa [#allocation5], 0  ;;  %s16569_s0 = inlined_call_operand.vmem [shape: bf16[12,1024], index: 0, kind: input, shape index: {}]   ;;  %s16570_s1 = inlined_call_operand.hbm [shape: bf16[1024,2048], index: 1, kind: input, shape index: {}]   ;;  %s16571_s2 = inlined_call_operand.hbm [shape: f32[1,512], index: 2, kind: input, shape index: {}]   ;;  %s16572_s3 = inlined_call_operand.hbm [shape: bf16[512,2048], index: 3, kind: input, shape index: {}]   ;;  %s16573_s4 = inlined_call_operand.hbm [shape: f32[1,512], index: 4, kind: input, shape index: {}]   ;;  %s16574_s5 = inlined_call_operand.hbm [shape: bf16[512,128], index: 5, kind: input, shape index: {}]   ;;  %s16575_s6 = inlined_call_operand.hbm [shape: f32[1,32], index: 6, kind: input, shape index: {}]   ;;  %s16576_s7 = inlined_call_operand.vmem [shape: f32[2,4,256], index: 7, kind: output, shape index: {}]  }
   0x1   :  { %13 = vsyncpa [#allocation7], 0 }
   0x2   :  { %14 = vsyncpa [#allocation10], 0 }
   0x3   :  { %15 = vsyncpa [#allocation13], 0  ;;  %s15259_s24 = smov [#allocation6]   ;;  %s15260_s26 = smov [#allocation9]  }
   0x4   :  { %s36_s25 = sshll.u32 %s15259_s24, 4  ;;  %s58_s27 = sshll.u32 %s15260_s26, 4  ;;  %s37_s25 = int_to_ptr.vmem [resolvable:$true] %s36_s25  ;;  %s59_s27 = int_to_ptr.vmem [resolvable:$true] %s58_s27 }
   0x5   :  { %s15119_s30 = scalar_lea.hbm %s16571_s2, 64 }
   0x6   :  { %p15120_p0 = scmp.ne.s32.totalorder %s16571_s2, %s15119_s30  ;;  %p15123_p1 = scmp.lt.u32.totalorder %s15119_s30, %s16571_s2 }
   0x8   :  { %p15125_p2 = pnand %p15123_p1, %p15120_p0 }
   0xa   :  { %15128 = shalt.err (!%p15125_p2)
}
   0xb   :  { %s15129_s12 = scalar_lea.vmem %s37_s25, 64  ;;  %p15134_p4 = scmp.lt.s32.totalorder %s37_s25, %s37_s25 }
   0xc   :  { %p15130_p3 = scmp.ne.s32.totalorder %s37_s25, %s15129_s12  ;;  %p15135_p5 = scmp.lt.s32.totalorder %s15129_s12, %s15129_s12 }
   0xe   :  { %p15136_p6 = por %p15135_p5, %p15134_p4 }
  0x10   :  { %p15137_p7 = pnand %p15136_p6, %p15130_p3 }
  0x12   :  { %15140 = shalt.err (!%p15137_p7)
}
  0x13   :  { %39 = dma.hbm_to_vmem [thread:$0]  %s16571_s2, 64, %s37_s25, [#allocation7]  }
  0x14   :  { %s15141_s17 = scalar_lea.hbm %s16573_s4, 64 }
  0x15   :  { %p15142_p8 = scmp.ne.s32.totalorder %s16573_s4, %s15141_s17  ;;  %p15145_p9 = scmp.lt.u32.totalorder %s15141_s17, %s16573_s4 }
  0x17   :  { %p15147_p10 = pnand %p15145_p9, %p15142_p8 }
  0x19   :  { %15150 = shalt.err (!%p15147_p10)
}
  0x1a   :  { %s15151_s22 = scalar_lea.vmem %s59_s27, 64  ;;  %p15156_p12 = scmp.lt.s32.totalorder %s59_s27, %s59_s27 }
  0x1b   :  { %p15152_p11 = scmp.ne.s32.totalorder %s59_s27, %s15151_s22  ;;  %p15157_p13 = scmp.lt.s32.totalorder %s15151_s22, %s15151_s22 }
  0x1d   :  { %p15158_p0 = por %p15157_p13, %p15156_p12 }
  0x1f   :  { %p15159_p1 = pnand %p15158_p0, %p15152_p11 }
  0x21   :  { %15162 = shalt.err (!%p15159_p1)
}
  0x22   :  { %61 = dma.hbm_to_vmem [thread:$0]  %s16573_s4, 64, %s59_s27, [#allocation10]  }
  0x23   :  { %s15261_s24 = smov [#allocation4]   ;;  %s15163_s29 = scalar_lea.hbm %s16570_s1, 131072 }
  0x24   :  { %s23_s25 = sshll.u32 %s15261_s24, 4  ;;  %p15164_p2 = scmp.ne.s32.totalorder %s16570_s1, %s15163_s29  ;;  %s24_s25 = int_to_ptr.vmem [resolvable:$true] %s23_s25 }
  0x25   :  { %p15167_p3 = scmp.lt.u32.totalorder %s15163_s29, %s16570_s1 }
  0x27   :  { %p15169_p4 = pnand %p15167_p3, %p15164_p2 }
  0x29   :  { %15172 = shalt.err (!%p15169_p4)
}
  0x2a   :  { %s15173_s11 = scalar_lea.vmem %s24_s25, 131072  ;;  %p15178_p6 = scmp.lt.s32.totalorder %s24_s25, %s24_s25 }
  0x2b   :  { %p15174_p5 = scmp.ne.s32.totalorder %s24_s25, %s15173_s11  ;;  %p15179_p7 = scmp.lt.s32.totalorder %s15173_s11, %s15173_s11 }
  0x2d   :  { %p15180_p8 = por %p15179_p7, %p15178_p6 }
  0x2f   :  { %p15181_p9 = pnand %p15180_p8, %p15174_p5 }
  0x31   :  { %15184 = shalt.err (!%p15181_p9)
}
  0x32   :  { %s15262_s4 = smov 1024   ;;  %s15263_s27 = smov 64  }
  0x33   :  { %29 = dma.hbm_to_vmem [thread:$0]  %s16570_s1, 131072, %s24_s25, [#allocation5], %s15262_s4, %s15262_s4, %s15263_s27  }
  0x34   :  { %s15264_s14 = smov [#allocation8]   ;;  %s15265_s16 = smov [#allocation11]  }
  0x35   :  { %s45_s15 = sshll.u32 %s15264_s14, 4  ;;  %s67_s17 = sshll.u32 %s15265_s16, 4  ;;  %s46_s15 = int_to_ptr.vmem [resolvable:$true] %s45_s15  ;;  %s68_s17 = int_to_ptr.vmem [resolvable:$true] %s67_s17 }
  0x36   :  { %s15185_s20 = scalar_lea.hbm %s16572_s3, 65536 }
  0x37   :  { %p15186_p10 = scmp.ne.s32.totalorder %s16572_s3, %s15185_s20  ;;  %p15189_p11 = scmp.lt.u32.totalorder %s15185_s20, %s16572_s3 }
  0x39   :  { %p15191_p12 = pnand %p15189_p11, %p15186_p10 }
  0x3b   :  { %15194 = shalt.err (!%p15191_p12)
}
  0x3c   :  { %s15195_s1 = scalar_lea.vmem %s46_s15, 65536  ;;  %p15200_p0 = scmp.lt.s32.totalorder %s46_s15, %s46_s15 }
  0x3d   :  { %p15196_p13 = scmp.ne.s32.totalorder %s46_s15, %s15195_s1  ;;  %p15201_p1 = scmp.lt.s32.totalorder %s15195_s1, %s15195_s1 }
  0x3f   :  { %p15202_p2 = por %p15201_p1, %p15200_p0 }
  0x41   :  { %p15203_p3 = pnand %p15202_p2, %p15196_p13 }
  0x43   :  { %15206 = shalt.err (!%p15203_p3)
}
  0x44   :  { %51 = dma.hbm_to_vmem [thread:$0]  %s16572_s3, 65536, %s46_s15, [#allocation7], %s15262_s4, %s15262_s4, %s15263_s27  }
  0x45   :  { %s15207_s29 = scalar_lea.hbm %s16574_s5, 4096 }
  0x46   :  { %p15208_p4 = scmp.ne.s32.totalorder %s16574_s5, %s15207_s29  ;;  %p15211_p5 = scmp.lt.u32.totalorder %s15207_s29, %s16574_s5 }
  0x48   :  { %p15213_p6 = pnand %p15211_p5, %p15208_p4 }
  0x4a   :  { %15216 = shalt.err (!%p15213_p6)
}
  0x4b   :  { %s15217_s11 = scalar_lea.vmem %s68_s17, 4096  ;;  %p15222_p8 = scmp.lt.s32.totalorder %s68_s17, %s68_s17 }
  0x4c   :  { %p15218_p7 = scmp.ne.s32.totalorder %s68_s17, %s15217_s11  ;;  %p15223_p9 = scmp.lt.s32.totalorder %s15217_s11, %s15217_s11 }
  0x4e   :  { %p15224_p10 = por %p15223_p9, %p15222_p8 }
  0x50   :  { %p15225_p11 = pnand %p15224_p10, %p15218_p7 }
  0x52   :  { %15228 = shalt.err (!%p15225_p11)
}
  0x53   :  { %s15266_s3 = smov 4   ;;  %s15267_s13 = smov [#allocation12]  }
  0x54   :  { %73 = dma.hbm_to_vmem [thread:$0]  %s16574_s5, 4096, %s68_s17, [#allocation10], %s15263_s27, %s15263_s27, %s15266_s3  }
  0x55   :  { %s80_s14 = sshll.u32 %s15267_s13, 4  ;;  %s15229_s18 = scalar_lea.hbm %s16575_s6, 16  ;;  %s81_s14 = int_to_ptr.vmem [resolvable:$true] %s80_s14 }
  0x56   :  { %p15230_p12 = scmp.ne.s32.totalorder %s16575_s6, %s15229_s18  ;;  %p15233_p13 = scmp.lt.u32.totalorder %s15229_s18, %s16575_s6 }
  0x58   :  { %p15235_p0 = pnand %p15233_p13, %p15230_p12 }
  0x5a   :  { %15238 = shalt.err (!%p15235_p0)
}
  0x5b   :  { %s15239_s2 = scalar_lea.vmem %s81_s14, 16  ;;  %s15243_s5 = scalar_lea.vmem %s81_s14, 32 }
  0x5c   :  { %p15240_p1 = scmp.ne.s32.totalorder %s81_s14, %s15239_s2  ;;  %p15244_p2 = scmp.lt.s32.totalorder %s81_s14, %s81_s14 }
  0x5d   :  { %p15245_p3 = scmp.lt.s32.totalorder %s15243_s5, %s15239_s2 }
  0x5f   :  { %p15246_p4 = por %p15245_p3, %p15244_p2 }
  0x61   :  { %p15247_p5 = pnand %p15246_p4, %p15240_p1 }
  0x63   :  { %15250 = shalt.err (!%p15247_p5)
}
  0x64   :  { %83 = dma.hbm_to_vmem [thread:$0]  %s16575_s6, 16, %s81_s14, [#allocation13]  }
  0x65   :  { %15251 = dma.done.wait [#allocation5], 131072  }
  0x66   :  { %15252 = vsyncadd [#allocation5], 4294836224 }
  0x67   :  { %15253 = dma.done.wait [#allocation7], 65600  }
  0x68   :  { %15254 = vsyncadd [#allocation7], 4294901696 }
  0x69   :  { %15255 = dma.done.wait [#allocation10], 4160  }
  0x6a   :  { %15256 = vsyncadd [#allocation10], 4294963136 }
  0x6b   :  { %15257 = dma.done.wait [#allocation13], 16  }
  0x6c   :  { %15258 = vsyncadd [#allocation13], 4294967280  ;;  %v129_v0 = vld [vmem:[#allocation4] sm:$0xff]  ;;  %v130_v2 = vld [vmem:[#allocation4 + $0x8] sm:$0xff]  ;;  %vm7884_vm0 = vsmask.f32 7950 }
  0x6d   :  { %v137_v1 = vld [vmem:[#allocation4 + $0x40] sm:$0xff]  ;;  %v138_v4 = vld [vmem:[#allocation4 + $0x48] sm:$0xff]  ;;  %v15390_v53 = vld [vmem:[%s16569_s0] sm:$0xff]  ;;  %vm7883_vm1 = vcmask 1043459   ;;  %vm7887_vm2 = vsmask.f32 7966 }
  0x6e   :  { %v13178_v3 = vcombine.high %v129_v0, %v137_v1  ;;  %v13177_v5 = vcombine.low %v129_v0, %v137_v1  ;;  %v145_v6 = vld [vmem:[#allocation4 + $0x80] sm:$0xff]  ;;  %v13180_v8 = vcombine.high %v130_v2, %v138_v4  ;;  %v13179_v9 = vcombine.low %v130_v2, %v138_v4  ;;  %v146_v11 = vld [vmem:[#allocation4 + $0x88] sm:$0xff]  ;;  %v15395_v54 = vld [vmem:[%s16569_s0 + $0x20] sm:$0x33] }
  0x6f   :  { %v153_v7 = vld [vmem:[#allocation4 + $0xc0] sm:$0xff]  ;;  %v154_v12 = vld [vmem:[#allocation4 + $0xc8] sm:$0xff]  ;;  %v15399_v58 = vcombine.high %v15390_v53, %v15395_v54  ;;  %vm7886_vm3 = vcmask 1047559   ;;  %vm16581_vm4 = vcmask 1041408   ;;  %vm7897_vm5 = vsmask.f32 1280  ;;  %vm15682_vm12 = vmand %vm7883_vm1, %vm7884_vm0 }
  0x70   :  { %v13194_v10 = vcombine.high %v145_v6, %v153_v7  ;;  %v161_v13 = vld [vmem:[#allocation4 + $0x100] sm:$0xff]  ;;  %6313 = vmatprep.subr.bf16.mxu0 %v13178_v3  ;;  %v13196_v14 = vcombine.high %v146_v11, %v154_v12  ;;  %v162_v16 = vld [vmem:[#allocation4 + $0x108] sm:$0xff]  ;;  %6485 = vmatprep.subr.bf16.mxu1 %v13180_v8  ;;  %v13193_v18 = vcombine.low %v145_v6, %v153_v7  ;;  %vm7899_vm6 = vcmask 1045508   ;;  %vm15688_vm13 = vmand %vm7886_vm3, %vm7887_vm2 }
  0x71   :  { %v169_v15 = vld [vmem:[#allocation4 + $0x140] sm:$0xff]  ;;  %v170_v17 = vld [vmem:[#allocation4 + $0x148] sm:$0xff]  ;;  %6314 = vmatpush1.bf16.msra.mxu0 %v13177_v5  ;;  %6486 = vmatpush1.bf16.msra.mxu1 %v13179_v9  ;;  %v13195_v19 = vcombine.low %v146_v11, %v154_v12  ;;  %vm7900_vm7 = vsmask.f32 5376  ;;  %vm7993_vm8 = vcmask 1043457   ;;  %vm7996_vm10 = vcmask 1047557   ;;  %vm15696_vm14 = vmand %vm16581_vm4, %vm7897_vm5 }
  0x72   :  { %6315 = vmatprep.subr.bf16.mxu0 %v13194_v10  ;;  %v13210_v20 = vcombine.high %v161_v13, %v169_v15  ;;  %6487 = vmatprep.subr.bf16.mxu1 %v13196_v14  ;;  %v13212_v21 = vcombine.high %v162_v16, %v170_v17  ;;  %v177_v22 = vld [vmem:[#allocation4 + $0x180] sm:$0xff]  ;;  %v178_v24 = vld [vmem:[#allocation4 + $0x188] sm:$0xff]  ;;  %v13209_v26 = vcombine.low %v161_v13, %v169_v15  ;;  %vm7994_vm9 = vsmask.f32 3334  ;;  %vm15705_vm15 = vmand %vm7899_vm6, %vm7900_vm7 }
  0x73   :  { %v185_v23 = vld [vmem:[#allocation4 + $0x1c0] sm:$0xff]  ;;  %v186_v25 = vld [vmem:[#allocation4 + $0x1c8] sm:$0xff]  ;;  %v13211_v27 = vcombine.low %v162_v16, %v170_v17  ;;  %6345 = vmatprep.mubr.bf16.mxu0 %v15399_v58  ;;  %6517 = vmatprep.mubr.bf16.mxu1 %v15399_v58  ;;  %vm7997_vm11 = vsmask.f32 7446  ;;  %vm7889_vm0 = vmor %vm15688_vm13, %vm15682_vm12  ;;  %vm16582_vm7 = vcmask 1042432  }
  0x74   :  { %v13226_v28 = vcombine.high %v177_v22, %v185_v23  ;;  %v13228_v29 = vcombine.high %v178_v24, %v186_v25  ;;  %v193_v30 = vld [vmem:[#allocation4 + $0x200] sm:$0xff]  ;;  %v194_v32 = vld [vmem:[#allocation4 + $0x208] sm:$0xff]  ;;  %v13225_v34 = vcombine.low %v177_v22, %v185_v23  ;;  %v13227_v35 = vcombine.low %v178_v24, %v186_v25  ;;  %vm7902_vm1 = vmor %vm15705_vm15, %vm15696_vm14 }
  0x75   :  { %6316 = vmatpush1.bf16.msra.mxu0 %v13193_v18  ;;  %6488 = vmatpush1.bf16.msra.mxu1 %v13195_v19  ;;  %v201_v31 = vld [vmem:[#allocation4 + $0x240] sm:$0xff]  ;;  %v202_v33 = vld [vmem:[#allocation4 + $0x248] sm:$0xff]  ;;  %vm15749_vm2 = vmand %vm7993_vm8, %vm7994_vm9  ;;  %vm7771_vm8 = vcmask 1040384   ;;  %vm7853_vm9 = vsmask.f32 2306  ;;  %vm7940_vm15 = vcmask 1043458  }
  0x76   :  { %6317 = vmatprep.subr.bf16.mxu0 %v13210_v20  ;;  %6489 = vmatprep.subr.bf16.mxu1 %v13212_v21  ;;  %v13242_v36 = vcombine.high %v193_v30, %v201_v31  ;;  %v13244_v37 = vcombine.high %v194_v32, %v202_v33  ;;  %v209_v38 = vld [vmem:[#allocation4 + $0x280] sm:$0xff]  ;;  %v210_v40 = vld [vmem:[#allocation4 + $0x288] sm:$0xff]  ;;  %v13241_v42 = vcombine.low %v193_v30, %v201_v31  ;;  %vm15776_vm3 = vmand %vm7996_vm10, %vm7997_vm11  ;;  %vm16583_vm10 = vcmask 1046532  }
  0x77   :  { %v217_v39 = vld [vmem:[#allocation4 + $0x2c0] sm:$0xff]  ;;  %v218_v41 = vld [vmem:[#allocation4 + $0x2c8] sm:$0xff]  ;;  %v13243_v43 = vcombine.low %v194_v32, %v202_v33  ;;  %vm15799_vm5 = vmor %vm16581_vm4, %vm7899_vm6  ;;  %vm7856_vm11 = vsmask.f32 6418  ;;  %vm7954_vm12 = vsmask.f32 256 }
  0x78   :  { %v13258_v44 = vcombine.high %v209_v38, %v217_v39  ;;  %v13260_v45 = vcombine.high %v210_v40, %v218_v41  ;;  %v225_v46 = vld [vmem:[#allocation4 + $0x300] sm:$0xff]  ;;  %v226_v48 = vld [vmem:[#allocation4 + $0x308] sm:$0xff]  ;;  %v13257_v50 = vcombine.low %v209_v38, %v217_v39  ;;  %v13259_v51 = vcombine.low %v210_v40, %v218_v41  ;;  %vm7999_vm6 = vmor %vm15776_vm3, %vm15749_vm2 }
  0x79   :  { %6318 = vmatpush1.bf16.msra.mxu0 %v13209_v26  ;;  %6490 = vmatpush1.bf16.msra.mxu1 %v13211_v27  ;;  %v233_v47 = vld [vmem:[#allocation4 + $0x340] sm:$0xff]  ;;  %v234_v49 = vld [vmem:[#allocation4 + $0x348] sm:$0xff]  ;;  %vm15870_vm4 = vmand %vm7771_vm8, %vm7954_vm12 }
  0x7a   :  { %6319 = vmatprep.subr.bf16.mxu0 %v13226_v28  ;;  %6491 = vmatprep.subr.bf16.mxu1 %v13228_v29  ;;  %v13274_v52 = vcombine.high %v225_v46, %v233_v47  ;;  %v13276_v55 = vcombine.high %v226_v48, %v234_v49  ;;  %v241_v56 = vld [vmem:[#allocation4 + $0x380] sm:$0xff]  ;;  %v242_v59 = vld [vmem:[#allocation4 + $0x388] sm:$0xff]  ;;  %v13273_v61 = vcombine.low %v225_v46, %v233_v47 }
  0x7b   :  { %v249_v57 = vld [vmem:[#allocation4 + $0x3c0] sm:$0xff]  ;;  %v250_v60 = vld [vmem:[#allocation4 + $0x3c8] sm:$0xff]  ;;  %v13275_v62 = vcombine.low %v226_v48, %v234_v49 }
  0x7c   :  { %v13290_v63 = vcombine.high %v241_v56, %v249_v57  ;;  %v13292_v0 = vcombine.high %v242_v59, %v250_v60  ;;  %v257_v1 = vld [vmem:[#allocation4 + $0x400] sm:$0xff]  ;;  %v258_v3 = vld [vmem:[#allocation4 + $0x408] sm:$0xff]  ;;  %v13289_v5 = vcombine.low %v241_v56, %v249_v57  ;;  %v13291_v6 = vcombine.low %v242_v59, %v250_v60 }
  0x7d   :  { %6320 = vmatpush1.bf16.msra.mxu0 %v13225_v34  ;;  %6492 = vmatpush1.bf16.msra.mxu1 %v13227_v35  ;;  %v265_v2 = vld [vmem:[#allocation4 + $0x440] sm:$0xff]  ;;  %v266_v4 = vld [vmem:[#allocation4 + $0x448] sm:$0xff] }
  0x7e   :  { %6321 = vmatprep.subr.bf16.mxu0 %v13242_v36  ;;  %6493 = vmatprep.subr.bf16.mxu1 %v13244_v37  ;;  %v13306_v7 = vcombine.high %v257_v1, %v265_v2  ;;  %v13308_v8 = vcombine.high %v258_v3, %v266_v4  ;;  %v273_v9 = vld [vmem:[#allocation4 + $0x480] sm:$0xff]  ;;  %v274_v11 = vld [vmem:[#allocation4 + $0x488] sm:$0xff]  ;;  %v13305_v13 = vcombine.low %v257_v1, %v265_v2 }
  0x7f   :  { %v281_v10 = vld [vmem:[#allocation4 + $0x4c0] sm:$0xff]  ;;  %v282_v12 = vld [vmem:[#allocation4 + $0x4c8] sm:$0xff]  ;;  %v13307_v14 = vcombine.low %v258_v3, %v266_v4 }
  0x80   :  { %v13322_v15 = vcombine.high %v273_v9, %v281_v10  ;;  %v13324_v16 = vcombine.high %v274_v11, %v282_v12  ;;  %v289_v17 = vld [vmem:[#allocation4 + $0x500] sm:$0xff]  ;;  %v290_v19 = vld [vmem:[#allocation4 + $0x508] sm:$0xff]  ;;  %v13321_v21 = vcombine.low %v273_v9, %v281_v10  ;;  %v13323_v22 = vcombine.low %v274_v11, %v282_v12 }
  0x81   :  { %6322 = vmatpush1.bf16.msra.mxu0 %v13241_v42  ;;  %6494 = vmatpush1.bf16.msra.mxu1 %v13243_v43  ;;  %v297_v18 = vld [vmem:[#allocation4 + $0x540] sm:$0xff]  ;;  %v298_v20 = vld [vmem:[#allocation4 + $0x548] sm:$0xff] }
  0x82   :  { %6323 = vmatprep.subr.bf16.mxu0 %v13258_v44  ;;  %6495 = vmatprep.subr.bf16.mxu1 %v13260_v45  ;;  %v13338_v23 = vcombine.high %v289_v17, %v297_v18  ;;  %v13340_v24 = vcombine.high %v290_v19, %v298_v20  ;;  %v305_v25 = vld [vmem:[#allocation4 + $0x580] sm:$0xff]  ;;  %v306_v27 = vld [vmem:[#allocation4 + $0x588] sm:$0xff]  ;;  %v13337_v29 = vcombine.low %v289_v17, %v297_v18  ;;  %v15410_v17 = vld [vmem:[%s16569_s0 + $0x8] sm:$0xff] }
  0x83   :  { %v313_v26 = vld [vmem:[#allocation4 + $0x5c0] sm:$0xff]  ;;  %v314_v28 = vld [vmem:[#allocation4 + $0x5c8] sm:$0xff]  ;;  %v13339_v30 = vcombine.low %v290_v19, %v298_v20  ;;  %v15415_v18 = vld [vmem:[%s16569_s0 + $0x28] sm:$0x33] }
  0x84   :  { %v13354_v31 = vcombine.high %v305_v25, %v313_v26  ;;  %v13356_v32 = vcombine.high %v306_v27, %v314_v28  ;;  %v321_v33 = vld [vmem:[#allocation4 + $0x600] sm:$0xff]  ;;  %v322_v35 = vld [vmem:[#allocation4 + $0x608] sm:$0xff]  ;;  %v13353_v37 = vcombine.low %v305_v25, %v313_v26  ;;  %v13355_v38 = vcombine.low %v306_v27, %v314_v28 }
  0x85   :  { %6324 = vmatpush1.bf16.msra.mxu0 %v13257_v50  ;;  %6496 = vmatpush1.bf16.msra.mxu1 %v13259_v51  ;;  %v329_v34 = vld [vmem:[#allocation4 + $0x640] sm:$0xff]  ;;  %v330_v36 = vld [vmem:[#allocation4 + $0x648] sm:$0xff] }
  0x86   :  { %6325 = vmatprep.subr.bf16.mxu0 %v13274_v52  ;;  %6497 = vmatprep.subr.bf16.mxu1 %v13276_v55  ;;  %v13370_v39 = vcombine.high %v321_v33, %v329_v34  ;;  %v13372_v40 = vcombine.high %v322_v35, %v330_v36  ;;  %v337_v41 = vld [vmem:[#allocation4 + $0x680] sm:$0xff]  ;;  %v338_v43 = vld [vmem:[#allocation4 + $0x688] sm:$0xff]  ;;  %v13369_v45 = vcombine.low %v321_v33, %v329_v34 }
  0x87   :  { %v345_v42 = vld [vmem:[#allocation4 + $0x6c0] sm:$0xff]  ;;  %v346_v44 = vld [vmem:[#allocation4 + $0x6c8] sm:$0xff]  ;;  %v13371_v46 = vcombine.low %v322_v35, %v330_v36 }
  0x88   :  { %v13386_v47 = vcombine.high %v337_v41, %v345_v42  ;;  %v13388_v48 = vcombine.high %v338_v43, %v346_v44  ;;  %v353_v49 = vld [vmem:[#allocation4 + $0x700] sm:$0xff]  ;;  %v354_v51 = vld [vmem:[#allocation4 + $0x708] sm:$0xff]  ;;  %v13385_v55 = vcombine.low %v337_v41, %v345_v42  ;;  %v13387_v56 = vcombine.low %v338_v43, %v346_v44 }
  0x89   :  { %6326 = vmatpush1.bf16.msra.mxu0 %v13273_v61  ;;  %6498 = vmatpush1.bf16.msra.mxu1 %v13275_v62  ;;  %v361_v50 = vld [vmem:[#allocation4 + $0x740] sm:$0xff]  ;;  %v362_v52 = vld [vmem:[#allocation4 + $0x748] sm:$0xff] }
  0x8a   :  { %6327 = vmatprep.subr.bf16.mxu0 %v13290_v63  ;;  %6499 = vmatprep.subr.bf16.mxu1 %v13292_v0  ;;  %v13402_v57 = vcombine.high %v353_v49, %v361_v50  ;;  %v13404_v59 = vcombine.high %v354_v51, %v362_v52  ;;  %v369_v60 = vld [vmem:[#allocation4 + $0x780] sm:$0xff]  ;;  %v370_v62 = vld [vmem:[#allocation4 + $0x788] sm:$0xff]  ;;  %v13401_v0 = vcombine.low %v353_v49, %v361_v50 }
  0x8b   :  { %v377_v61 = vld [vmem:[#allocation4 + $0x7c0] sm:$0xff]  ;;  %v378_v63 = vld [vmem:[#allocation4 + $0x7c8] sm:$0xff]  ;;  %v13403_v1 = vcombine.low %v354_v51, %v362_v52 }
  0x8c   :  { %v13418_v2 = vcombine.high %v369_v60, %v377_v61  ;;  %v13420_v3 = vcombine.high %v370_v62, %v378_v63  ;;  %v385_v4 = vld [vmem:[#allocation4 + $0x800] sm:$0xff]  ;;  %v13419_v9 = vcombine.low %v370_v62, %v378_v63  ;;  %v426_v25 = vld [vmem:[#allocation4 + $0x948] sm:$0xff] }
  0x8d   :  { %6328 = vmatpush1.bf16.msra.mxu0 %v13289_v5  ;;  %6500 = vmatpush1.bf16.msra.mxu1 %v13291_v6  ;;  %v393_v5 = vld [vmem:[#allocation4 + $0x840] sm:$0xff]  ;;  %v386_v6 = vld [vmem:[#allocation4 + $0x808] sm:$0xff] }
  0x8e   :  { %6329 = vmatprep.subr.bf16.mxu0 %v13306_v7  ;;  %6501 = vmatprep.subr.bf16.mxu1 %v13308_v8  ;;  %v394_v7 = vld [vmem:[#allocation4 + $0x848] sm:$0xff]  ;;  %v13417_v8 = vcombine.low %v369_v60, %v377_v61  ;;  %v13434_v10 = vcombine.high %v385_v4, %v393_v5  ;;  %v401_v12 = vld [vmem:[#allocation4 + $0x880] sm:$0xff]  ;;  %v13433_v19 = vcombine.low %v385_v4, %v393_v5 }
  0x8f   :  { %v13436_v11 = vcombine.high %v386_v6, %v394_v7  ;;  %v13435_v20 = vcombine.low %v386_v6, %v394_v7  ;;  %v442_v33 = vld [vmem:[#allocation4 + $0x9c8] sm:$0xff] }
  0x90   :  { %v458_v41 = vld [vmem:[#allocation4 + $0xa48] sm:$0xff] }
  0x91   :  { %6330 = vmatpush1.bf16.msra.mxu0 %v13305_v13  ;;  %6502 = vmatpush1.bf16.msra.mxu1 %v13307_v14  ;;  %v409_v13 = vld [vmem:[#allocation4 + $0x8c0] sm:$0xff]  ;;  %v402_v14 = vld [vmem:[#allocation4 + $0x888] sm:$0xff] }
  0x92   :  { %6331 = vmatprep.subr.bf16.mxu0 %v13322_v15  ;;  %6503 = vmatprep.subr.bf16.mxu1 %v13324_v16  ;;  %v15405_v15 = vcombine.low %v15390_v53, %v15395_v54  ;;  %v410_v16 = vld [vmem:[#allocation4 + $0x8c8] sm:$0xff]  ;;  %v417_v54 = vld [vmem:[#allocation4 + $0x900] sm:$0xff]  ;;  %v13449_v26 = vcombine.low %v401_v12, %v409_v13 }
  0x93   :  { %v13452_v53 = vcombine.high %v402_v14, %v410_v16  ;;  %v13451_v27 = vcombine.low %v402_v14, %v410_v16  ;;  %v474_v49 = vld [vmem:[#allocation4 + $0xac8] sm:$0xff] }
  0x94   :  { %v490_v60 = vld [vmem:[#allocation4 + $0xb48] sm:$0xff] }
  0x95   :  { %6332 = vmatpush1.bf16.msra.mxu0 %v13321_v21  ;;  %6504 = vmatpush1.bf16.msra.mxu1 %v13323_v22  ;;  %v13450_v21 = vcombine.high %v401_v12, %v409_v13  ;;  %v425_v22 = vld [vmem:[#allocation4 + $0x940] sm:$0xff]  ;;  %v506_v4 = vld [vmem:[#allocation4 + $0xbc8] sm:$0xff] }
  0x96   :  { %6333 = vmatprep.subr.bf16.mxu0 %v13338_v23  ;;  %6505 = vmatprep.subr.bf16.mxu1 %v13340_v24  ;;  %v418_v23 = vld [vmem:[#allocation4 + $0x908] sm:$0xff]  ;;  %v15419_v24 = vcombine.high %v15410_v17, %v15415_v18  ;;  %v13466_v28 = vcombine.high %v417_v54, %v425_v22  ;;  %v13465_v34 = vcombine.low %v417_v54, %v425_v22 }
  0x97   :  { %v13467_v35 = vcombine.low %v418_v23, %v426_v25  ;;  %v522_v12 = vld [vmem:[#allocation4 + $0xc48] sm:$0xff] }
  0x98   :  { %v538_v54 = vld [vmem:[#allocation4 + $0xcc8] sm:$0xff] }
  0x99   :  { %6334 = vmatpush1.bf16.msra.mxu0 %v13337_v29  ;;  %6506 = vmatpush1.bf16.msra.mxu1 %v13339_v30  ;;  %v433_v29 = vld [vmem:[#allocation4 + $0x980] sm:$0xff] }
  0x9a   :  { %6335 = vmatprep.subr.bf16.mxu0 %v13354_v31  ;;  %6507 = vmatprep.subr.bf16.mxu1 %v13356_v32  ;;  %v441_v30 = vld [vmem:[#allocation4 + $0x9c0] sm:$0xff]  ;;  %v434_v31 = vld [vmem:[#allocation4 + $0x988] sm:$0xff]  ;;  %v13468_v32 = vcombine.high %v418_v23, %v426_v25 }
  0x9b   :  { %v13482_v36 = vcombine.high %v433_v29, %v441_v30  ;;  %v13481_v42 = vcombine.low %v433_v29, %v441_v30  ;;  %v13483_v43 = vcombine.low %v434_v31, %v442_v33  ;;  %v546_v29 = vld [vmem:[#allocation4 + $0xd08] sm:$0xff] }
  0x9c   :  { %v554_v30 = vld [vmem:[#allocation4 + $0xd48] sm:$0xff] }
  0x9d   :  { %6336 = vmatpush1.bf16.msra.mxu0 %v13353_v37  ;;  %6508 = vmatpush1.bf16.msra.mxu1 %v13355_v38  ;;  %v449_v37 = vld [vmem:[#allocation4 + $0xa00] sm:$0xff] }
  0x9e   :  { %6337 = vmatprep.subr.bf16.mxu0 %v13370_v39  ;;  %6509 = vmatprep.subr.bf16.mxu1 %v13372_v40  ;;  %v457_v38 = vld [vmem:[#allocation4 + $0xa40] sm:$0xff]  ;;  %v450_v39 = vld [vmem:[#allocation4 + $0xa08] sm:$0xff]  ;;  %v13484_v40 = vcombine.high %v434_v31, %v442_v33 }
  0x9f   :  { %v13498_v44 = vcombine.high %v449_v37, %v457_v38  ;;  %v13497_v50 = vcombine.low %v449_v37, %v457_v38  ;;  %v13499_v51 = vcombine.low %v450_v39, %v458_v41  ;;  %v562_v37 = vld [vmem:[#allocation4 + $0xd88] sm:$0xff] }
  0xa0   :  { %v570_v38 = vld [vmem:[#allocation4 + $0xdc8] sm:$0xff] }
  0xa1   :  { %6338 = vmatpush1.bf16.msra.mxu0 %v13369_v45  ;;  %6510 = vmatpush1.bf16.msra.mxu1 %v13371_v46  ;;  %v465_v45 = vld [vmem:[#allocation4 + $0xa80] sm:$0xff] }
  0xa2   :  { %6339 = vmatprep.subr.bf16.mxu0 %v13386_v47  ;;  %6511 = vmatprep.subr.bf16.mxu1 %v13388_v48  ;;  %v473_v46 = vld [vmem:[#allocation4 + $0xac0] sm:$0xff]  ;;  %v466_v47 = vld [vmem:[#allocation4 + $0xa88] sm:$0xff]  ;;  %v13500_v48 = vcombine.high %v450_v39, %v458_v41 }
  0xa3   :  { %v13514_v52 = vcombine.high %v465_v45, %v473_v46  ;;  %v13513_v61 = vcombine.low %v465_v45, %v473_v46  ;;  %v13515_v62 = vcombine.low %v466_v47, %v474_v49  ;;  %v578_v45 = vld [vmem:[#allocation4 + $0xe08] sm:$0xff] }
  0xa4   :  { %v586_v46 = vld [vmem:[#allocation4 + $0xe48] sm:$0xff] }
  0xa5   :  { %6340 = vmatpush1.bf16.msra.mxu0 %v13385_v55  ;;  %6512 = vmatpush1.bf16.msra.mxu1 %v13387_v56  ;;  %v481_v55 = vld [vmem:[#allocation4 + $0xb00] sm:$0xff] }
  0xa6   :  { %6341 = vmatprep.subr.bf16.mxu0 %v13402_v57  ;;  %6513 = vmatprep.subr.bf16.mxu1 %v13404_v59  ;;  %v489_v56 = vld [vmem:[#allocation4 + $0xb40] sm:$0xff]  ;;  %v482_v57 = vld [vmem:[#allocation4 + $0xb08] sm:$0xff]  ;;  %v13516_v59 = vcombine.high %v466_v47, %v474_v49 }
  0xa7   :  { %v13530_v63 = vcombine.high %v481_v55, %v489_v56  ;;  %v13529_v5 = vcombine.low %v481_v55, %v489_v56  ;;  %v13531_v6 = vcombine.low %v482_v57, %v490_v60  ;;  %v594_v55 = vld [vmem:[#allocation4 + $0xe88] sm:$0xff] }
  0xa8   :  { %v602_v56 = vld [vmem:[#allocation4 + $0xec8] sm:$0xff] }
  0xa9   :  { %6342 = vmatpush1.bf16.msra.mxu0 %v13401_v0  ;;  %6514 = vmatpush1.bf16.msra.mxu1 %v13403_v1  ;;  %v497_v0 = vld [vmem:[#allocation4 + $0xb80] sm:$0xff] }
  0xaa   :  { %6343 = vmatprep.subr.bf16.mxu0 %v13418_v2  ;;  %6515 = vmatprep.subr.bf16.mxu1 %v13420_v3  ;;  %v505_v1 = vld [vmem:[#allocation4 + $0xbc0] sm:$0xff]  ;;  %v498_v2 = vld [vmem:[#allocation4 + $0xb88] sm:$0xff]  ;;  %v13532_v3 = vcombine.high %v482_v57, %v490_v60 }
  0xab   :  { %v13546_v7 = vcombine.high %v497_v0, %v505_v1  ;;  %v13545_v13 = vcombine.low %v497_v0, %v505_v1  ;;  %v13547_v14 = vcombine.low %v498_v2, %v506_v4  ;;  %v610_v0 = vld [vmem:[#allocation4 + $0xf08] sm:$0xff] }
  0xac   :  { %v618_v1 = vld [vmem:[#allocation4 + $0xf48] sm:$0xff] }
  0xad   :  { %6344 = vmatpush1.bf16.msra.mxu0 %v13417_v8  ;;  %6516 = vmatpush1.bf16.msra.mxu1 %v13419_v9  ;;  %v513_v8 = vld [vmem:[#allocation4 + $0xc00] sm:$0xff] }
  0xae   :  { %6356 = vmatprep.subr.bf16.mxu0 %v13434_v10  ;;  %6528 = vmatprep.subr.bf16.mxu1 %v13436_v11  ;;  %v521_v9 = vld [vmem:[#allocation4 + $0xc40] sm:$0xff]  ;;  %v514_v10 = vld [vmem:[#allocation4 + $0xc08] sm:$0xff]  ;;  %v13548_v11 = vcombine.high %v498_v2, %v506_v4 }
  0xaf   :  { %v13562_v16 = vcombine.high %v513_v8, %v521_v9  ;;  %v13561_v22 = vcombine.low %v513_v8, %v521_v9  ;;  %v13563_v23 = vcombine.low %v514_v10, %v522_v12  ;;  %v626_v8 = vld [vmem:[#allocation4 + $0xf88] sm:$0xff] }
  0xb0   :  { %6346 = vmatmul.mubr.bf16.vlgmr.msra.gmra.mrb[0].mxu0 %v15405_v15  ;;  %6518 = vmatmul.mubr.bf16.vlgmr.msra.gmra.mrb[0].mxu1 %v15405_v15  ;;  %v634_v9 = vld [vmem:[#allocation4 + $0xfc8] sm:$0xff] }
  0xb1   :  { %6357 = vmatpush1.bf16.msra.mxu0 %v13433_v19  ;;  %6529 = vmatpush1.bf16.msra.mxu1 %v13435_v20  ;;  %v529_v19 = vld [vmem:[#allocation4 + $0xc80] sm:$0xff] }
  0xb2   :  { %6358 = vmatprep.subr.bf16.mxu0 %v13450_v21  ;;  %6530 = vmatprep.subr.bf16.mxu1 %v13452_v53  ;;  %v537_v20 = vld [vmem:[#allocation4 + $0xcc0] sm:$0xff]  ;;  %v530_v21 = vld [vmem:[#allocation4 + $0xc88] sm:$0xff]  ;;  %v13564_v53 = vcombine.high %v514_v10, %v522_v12 }
  0xb3   :  { %6388 = vmatprep.mubr.bf16.mxu0 %v15419_v24  ;;  %6560 = vmatprep.mubr.bf16.mxu1 %v15419_v24  ;;  %v13578_v25 = vcombine.high %v529_v19, %v537_v20  ;;  %v13577_v31 = vcombine.low %v529_v19, %v537_v20  ;;  %v642_v19 = vld [vmem:[#allocation4 + $0x1008] sm:$0xff] }
  0xb4   :  { %v650_v20 = vld [vmem:[#allocation4 + $0x1048] sm:$0xff] }
  0xb5   :  { %6359 = vmatpush1.bf16.msra.mxu0 %v13449_v26  ;;  %6531 = vmatpush1.bf16.msra.mxu1 %v13451_v27  ;;  %v545_v26 = vld [vmem:[#allocation4 + $0xd00] sm:$0xff]  ;;  %v13580_v27 = vcombine.high %v530_v21, %v538_v54 }
  0xb6   :  { %6360 = vmatprep.subr.bf16.mxu0 %v13466_v28  ;;  %6532 = vmatprep.subr.bf16.mxu1 %v13468_v32  ;;  %v553_v28 = vld [vmem:[#allocation4 + $0xd40] sm:$0xff]  ;;  %v13579_v32 = vcombine.low %v530_v21, %v538_v54 }
  0xb7   :  { %v13594_v33 = vcombine.high %v545_v26, %v553_v28  ;;  %v13593_v39 = vcombine.low %v545_v26, %v553_v28  ;;  %v658_v26 = vld [vmem:[#allocation4 + $0x1088] sm:$0xff] }
  0xb8   :  { %v666_v28 = vld [vmem:[#allocation4 + $0x10c8] sm:$0xff] }
  0xb9   :  { %6361 = vmatpush1.bf16.msra.mxu0 %v13465_v34  ;;  %6533 = vmatpush1.bf16.msra.mxu1 %v13467_v35  ;;  %v13596_v34 = vcombine.high %v546_v29, %v554_v30  ;;  %v561_v35 = vld [vmem:[#allocation4 + $0xd80] sm:$0xff] }
  0xba   :  { %6362 = vmatprep.subr.bf16.mxu0 %v13482_v36  ;;  %6534 = vmatprep.subr.bf16.mxu1 %v13484_v40  ;;  %v569_v36 = vld [vmem:[#allocation4 + $0xdc0] sm:$0xff]  ;;  %v13595_v40 = vcombine.low %v546_v29, %v554_v30 }
  0xbb   :  { %v13610_v41 = vcombine.high %v561_v35, %v569_v36  ;;  %v13609_v47 = vcombine.low %v561_v35, %v569_v36  ;;  %v15432_v29 = vld [vmem:[%s16569_s0 + $0x10] sm:$0xff]  ;;  %v674_v36 = vld [vmem:[#allocation4 + $0x1108] sm:$0xff] }
  0xbc   :  { %v15437_v30 = vld [vmem:[%s16569_s0 + $0x30] sm:$0x33] }
  0xbd   :  { %6363 = vmatpush1.bf16.msra.mxu0 %v13481_v42  ;;  %6535 = vmatpush1.bf16.msra.mxu1 %v13483_v43  ;;  %v13612_v42 = vcombine.high %v562_v37, %v570_v38  ;;  %v577_v43 = vld [vmem:[#allocation4 + $0xe00] sm:$0xff]  ;;  %v15441_v35 = vcombine.high %v15432_v29, %v15437_v30 }
  0xbe   :  { %6364 = vmatprep.subr.bf16.mxu0 %v13498_v44  ;;  %6536 = vmatprep.subr.bf16.mxu1 %v13500_v48  ;;  %v585_v44 = vld [vmem:[#allocation4 + $0xe40] sm:$0xff]  ;;  %v13611_v48 = vcombine.low %v562_v37, %v570_v38  ;;  %v682_v37 = vld [vmem:[#allocation4 + $0x1148] sm:$0xff] }
  0xbf   :  { %v13626_v49 = vcombine.high %v577_v43, %v585_v44  ;;  %v13625_v57 = vcombine.low %v577_v43, %v585_v44  ;;  %v697_v43 = vld [vmem:[#allocation4 + $0x11c0] sm:$0xff]  ;;  %v690_v44 = vld [vmem:[#allocation4 + $0x1188] sm:$0xff] }
  0xc1   :  { %6365 = vmatpush1.bf16.msra.mxu0 %v13497_v50  ;;  %6537 = vmatpush1.bf16.msra.mxu1 %v13499_v51  ;;  %v13628_v50 = vcombine.high %v578_v45, %v586_v46  ;;  %v593_v51 = vld [vmem:[#allocation4 + $0xe80] sm:$0xff] }
  0xc2   :  { %6366 = vmatprep.subr.bf16.mxu0 %v13514_v52  ;;  %6538 = vmatprep.subr.bf16.mxu1 %v13516_v59  ;;  %v601_v52 = vld [vmem:[#allocation4 + $0xec0] sm:$0xff]  ;;  %v13627_v59 = vcombine.low %v578_v45, %v586_v46  ;;  %v698_v45 = vld [vmem:[#allocation4 + $0x11c8] sm:$0xff] }
  0xc3   :  { %v13642_v60 = vcombine.high %v593_v51, %v601_v52  ;;  %v13641_v2 = vcombine.low %v593_v51, %v601_v52  ;;  %v713_v51 = vld [vmem:[#allocation4 + $0x1240] sm:$0xff]  ;;  %v706_v52 = vld [vmem:[#allocation4 + $0x1208] sm:$0xff] }
  0xc5   :  { %6367 = vmatpush1.bf16.msra.mxu0 %v13513_v61  ;;  %6539 = vmatpush1.bf16.msra.mxu1 %v13515_v62  ;;  %v13644_v61 = vcombine.high %v594_v55, %v602_v56  ;;  %v609_v62 = vld [vmem:[#allocation4 + $0xf00] sm:$0xff] }
  0xc6   :  { %6368 = vmatprep.subr.bf16.mxu0 %v13530_v63  ;;  %6540 = vmatprep.subr.bf16.mxu1 %v13532_v3  ;;  %v617_v63 = vld [vmem:[#allocation4 + $0xf40] sm:$0xff]  ;;  %v13643_v3 = vcombine.low %v594_v55, %v602_v56  ;;  %v714_v55 = vld [vmem:[#allocation4 + $0x1248] sm:$0xff] }
  0xc7   :  { %v13658_v4 = vcombine.high %v609_v62, %v617_v63  ;;  %v13657_v10 = vcombine.low %v609_v62, %v617_v63  ;;  %v729_v62 = vld [vmem:[#allocation4 + $0x12c0] sm:$0xff]  ;;  %v722_v63 = vld [vmem:[#allocation4 + $0x1288] sm:$0xff] }
  0xc9   :  { %6369 = vmatpush1.bf16.msra.mxu0 %v13529_v5  ;;  %6541 = vmatpush1.bf16.msra.mxu1 %v13531_v6  ;;  %v13660_v5 = vcombine.high %v610_v0, %v618_v1  ;;  %v625_v6 = vld [vmem:[#allocation4 + $0xf80] sm:$0xff] }
  0xca   :  { %6370 = vmatprep.subr.bf16.mxu0 %v13546_v7  ;;  %6542 = vmatprep.subr.bf16.mxu1 %v13548_v11  ;;  %v633_v7 = vld [vmem:[#allocation4 + $0xfc0] sm:$0xff]  ;;  %v13659_v11 = vcombine.low %v610_v0, %v618_v1  ;;  %v730_v0 = vld [vmem:[#allocation4 + $0x12c8] sm:$0xff] }
  0xcb   :  { %v13674_v12 = vcombine.high %v625_v6, %v633_v7  ;;  %v13673_v21 = vcombine.low %v625_v6, %v633_v7  ;;  %v745_v6 = vld [vmem:[#allocation4 + $0x1340] sm:$0xff]  ;;  %v738_v7 = vld [vmem:[#allocation4 + $0x1308] sm:$0xff] }
  0xcd   :  { %6371 = vmatpush1.bf16.msra.mxu0 %v13545_v13  ;;  %6543 = vmatpush1.bf16.msra.mxu1 %v13547_v14  ;;  %v13676_v13 = vcombine.high %v626_v8, %v634_v9  ;;  %v641_v14 = vld [vmem:[#allocation4 + $0x1000] sm:$0xff] }
  0xce   :  { %6372 = vmatprep.subr.bf16.mxu0 %v13562_v16  ;;  %6544 = vmatprep.subr.bf16.mxu1 %v13564_v53  ;;  %v649_v16 = vld [vmem:[#allocation4 + $0x1040] sm:$0xff]  ;;  %v13675_v53 = vcombine.low %v626_v8, %v634_v9  ;;  %v746_v8 = vld [vmem:[#allocation4 + $0x1348] sm:$0xff] }
  0xcf   :  { %v13690_v54 = vcombine.high %v641_v14, %v649_v16 }
  0xd1   :  { %6373 = vmatpush1.bf16.msra.mxu0 %v13561_v22  ;;  %6545 = vmatpush1.bf16.msra.mxu1 %v13563_v23  ;;  %v13692_v22 = vcombine.high %v642_v19, %v650_v20  ;;  %v657_v23 = vld [vmem:[#allocation4 + $0x1080] sm:$0xff] }
  0xd2   :  { %6374 = vmatprep.subr.bf16.mxu0 %v13578_v25  ;;  %6546 = vmatprep.subr.bf16.mxu1 %v13580_v27  ;;  %v665_v25 = vld [vmem:[#allocation4 + $0x10c0] sm:$0xff]  ;;  %v15427_v27 = vcombine.low %v15410_v17, %v15415_v18  ;;  %v13708_v17 = vcombine.high %v658_v26, %v666_v28 }
  0xd3   :  { %v673_v18 = vld [vmem:[#allocation4 + $0x1100] sm:$0xff]  ;;  %v13705_v38 = vcombine.low %v657_v23, %v665_v25 }
  0xd5   :  { %6375 = vmatpush1.bf16.msra.mxu0 %v13577_v31  ;;  %6547 = vmatpush1.bf16.msra.mxu1 %v13579_v32  ;;  %v13689_v31 = vcombine.low %v641_v14, %v649_v16  ;;  %v13691_v32 = vcombine.low %v642_v19, %v650_v20  ;;  %v761_v14 = vld [vmem:[#allocation4 + $0x13c0] sm:$0xff]  ;;  %v754_v16 = vld [vmem:[#allocation4 + $0x1388] sm:$0xff] }
  0xd6   :  { %6376 = vmatprep.subr.bf16.mxu0 %v13594_v33  ;;  %6548 = vmatprep.subr.bf16.mxu1 %v13596_v34  ;;  %v13706_v33 = vcombine.high %v657_v23, %v665_v25  ;;  %v681_v34 = vld [vmem:[#allocation4 + $0x1140] sm:$0xff]  ;;  %v762_v19 = vld [vmem:[#allocation4 + $0x13c8] sm:$0xff] }
  0xd7   :  { %v13721_v46 = vcombine.low %v673_v18, %v681_v34  ;;  %v777_v23 = vld [vmem:[#allocation4 + $0x1440] sm:$0xff]  ;;  %v770_v25 = vld [vmem:[#allocation4 + $0x1408] sm:$0xff] }
  0xd9   :  { %6377 = vmatpush1.bf16.msra.mxu0 %v13593_v39  ;;  %6549 = vmatpush1.bf16.msra.mxu1 %v13595_v40  ;;  %v13707_v39 = vcombine.low %v658_v26, %v666_v28  ;;  %v13722_v40 = vcombine.high %v673_v18, %v681_v34  ;;  %v778_v26 = vld [vmem:[#allocation4 + $0x1448] sm:$0xff]  ;;  %v793_v18 = vld [vmem:[#allocation4 + $0x14c0] sm:$0xff] }
  0xda   :  { %6378 = vmatprep.subr.bf16.mxu0 %v13610_v41  ;;  %6550 = vmatprep.subr.bf16.mxu1 %v13612_v42  ;;  %v13724_v41 = vcombine.high %v674_v36, %v682_v37  ;;  %v689_v42 = vld [vmem:[#allocation4 + $0x1180] sm:$0xff]  ;;  %v786_v34 = vld [vmem:[#allocation4 + $0x1488] sm:$0xff] }
  0xdb   :  { %v13737_v56 = vcombine.low %v689_v42, %v697_v43 }
  0xdd   :  { %6379 = vmatpush1.bf16.msra.mxu0 %v13609_v47  ;;  %6551 = vmatpush1.bf16.msra.mxu1 %v13611_v48  ;;  %v13723_v47 = vcombine.low %v674_v36, %v682_v37  ;;  %v13738_v48 = vcombine.high %v689_v42, %v697_v43  ;;  %v794_v36 = vld [vmem:[#allocation4 + $0x14c8] sm:$0xff]  ;;  %v809_v42 = vld [vmem:[#allocation4 + $0x1540] sm:$0xff] }
  0xde   :  { %6380 = vmatprep.subr.bf16.mxu0 %v13626_v49  ;;  %6552 = vmatprep.subr.bf16.mxu1 %v13628_v50  ;;  %v13740_v49 = vcombine.high %v690_v44, %v698_v45  ;;  %v705_v50 = vld [vmem:[#allocation4 + $0x1200] sm:$0xff]  ;;  %v802_v43 = vld [vmem:[#allocation4 + $0x1508] sm:$0xff] }
  0xdf   :  { %v13753_v1 = vcombine.low %v705_v50, %v713_v51 }
  0xe1   :  { %6381 = vmatpush1.bf16.msra.mxu0 %v13625_v57  ;;  %6553 = vmatpush1.bf16.msra.mxu1 %v13627_v59  ;;  %v13739_v57 = vcombine.low %v690_v44, %v698_v45  ;;  %v13754_v59 = vcombine.high %v705_v50, %v713_v51  ;;  %v810_v44 = vld [vmem:[#allocation4 + $0x1548] sm:$0xff]  ;;  %v825_v50 = vld [vmem:[#allocation4 + $0x15c0] sm:$0xff] }
  0xe2   :  { %6382 = vmatprep.subr.bf16.mxu0 %v13642_v60  ;;  %6554 = vmatprep.subr.bf16.mxu1 %v13644_v61  ;;  %v13756_v60 = vcombine.high %v706_v52, %v714_v55  ;;  %v721_v61 = vld [vmem:[#allocation4 + $0x1280] sm:$0xff]  ;;  %v818_v51 = vld [vmem:[#allocation4 + $0x1588] sm:$0xff] }
  0xe3   :  { %v13769_v9 = vcombine.low %v721_v61, %v729_v62 }
  0xe5   :  { %6383 = vmatpush1.bf16.msra.mxu0 %v13641_v2  ;;  %6555 = vmatpush1.bf16.msra.mxu1 %v13643_v3  ;;  %v13755_v2 = vcombine.low %v706_v52, %v714_v55  ;;  %v13770_v3 = vcombine.high %v721_v61, %v729_v62  ;;  %v826_v52 = vld [vmem:[#allocation4 + $0x15c8] sm:$0xff]  ;;  %v841_v61 = vld [vmem:[#allocation4 + $0x1640] sm:$0xff] }
  0xe6   :  { %6384 = vmatprep.subr.bf16.mxu0 %v13658_v4  ;;  %6556 = vmatprep.subr.bf16.mxu1 %v13660_v5  ;;  %v13772_v4 = vcombine.high %v722_v63, %v730_v0  ;;  %v737_v5 = vld [vmem:[#allocation4 + $0x1300] sm:$0xff]  ;;  %v834_v62 = vld [vmem:[#allocation4 + $0x1608] sm:$0xff] }
  0xe7   :  { %v13785_v20 = vcombine.low %v737_v5, %v745_v6 }
  0xe9   :  { %6385 = vmatpush1.bf16.msra.mxu0 %v13657_v10  ;;  %6557 = vmatpush1.bf16.msra.mxu1 %v13659_v11  ;;  %v13771_v10 = vcombine.low %v722_v63, %v730_v0  ;;  %v13786_v11 = vcombine.high %v737_v5, %v745_v6  ;;  %v842_v63 = vld [vmem:[#allocation4 + $0x1648] sm:$0xff]  ;;  %v857_v5 = vld [vmem:[#allocation4 + $0x16c0] sm:$0xff] }
  0xea   :  { %6386 = vmatprep.subr.bf16.mxu0 %v13674_v12  ;;  %6558 = vmatprep.subr.bf16.mxu1 %v13676_v13  ;;  %v13788_v12 = vcombine.high %v738_v7, %v746_v8  ;;  %v753_v13 = vld [vmem:[#allocation4 + $0x1380] sm:$0xff]  ;;  %v850_v6 = vld [vmem:[#allocation4 + $0x1688] sm:$0xff] }
  0xeb   :  { %v13801_v28 = vcombine.low %v753_v13, %v761_v14 }
  0xed   :  { %6387 = vmatpush1.bf16.msra.mxu0 %v13673_v21  ;;  %6559 = vmatpush1.bf16.msra.mxu1 %v13675_v53  ;;  %v13787_v21 = vcombine.low %v738_v7, %v746_v8  ;;  %v13802_v53 = vcombine.high %v753_v13, %v761_v14  ;;  %v858_v7 = vld [vmem:[#allocation4 + $0x16c8] sm:$0xff]  ;;  %v873_v13 = vld [vmem:[#allocation4 + $0x1740] sm:$0xff] }
  0xee   :  { %6399 = vmatprep.subr.bf16.mxu0 %v13690_v54  ;;  %6571 = vmatprep.subr.bf16.mxu1 %v13692_v22  ;;  %v13804_v54 = vcombine.high %v754_v16, %v762_v19  ;;  %v769_v22 = vld [vmem:[#allocation4 + $0x1400] sm:$0xff]  ;;  %v866_v14 = vld [vmem:[#allocation4 + $0x1708] sm:$0xff] }
  0xef   :  { %v13817_v37 = vcombine.low %v769_v22, %v777_v23 }
  0xf0   :  { %6389 = vmatmul.mubr.bf16.vlgmr.msra.gmra.mrb[0].mxu0 %v15427_v27  ;;  %6561 = vmatmul.mubr.bf16.vlgmr.msra.gmra.mrb[0].mxu1 %v15427_v27 }
  0xf1   :  { %6400 = vmatpush1.bf16.msra.mxu0 %v13689_v31  ;;  %6572 = vmatpush1.bf16.msra.mxu1 %v13691_v32  ;;  %v13803_v31 = vcombine.low %v754_v16, %v762_v19  ;;  %v13818_v32 = vcombine.high %v769_v22, %v777_v23  ;;  %v874_v16 = vld [vmem:[#allocation4 + $0x1748] sm:$0xff]  ;;  %v889_v22 = vld [vmem:[#allocation4 + $0x17c0] sm:$0xff] }
  0xf2   :  { %6401 = vmatprep.subr.bf16.mxu0 %v13706_v33  ;;  %6573 = vmatprep.subr.bf16.mxu1 %v13708_v17  ;;  %v13820_v33 = vcombine.high %v770_v25, %v778_v26  ;;  %v785_v17 = vld [vmem:[#allocation4 + $0x1480] sm:$0xff]  ;;  %v882_v23 = vld [vmem:[#allocation4 + $0x1788] sm:$0xff] }
  0xf3   :  { %6431 = vmatprep.mubr.bf16.mxu0 %v15441_v35  ;;  %6603 = vmatprep.mubr.bf16.mxu1 %v15441_v35  ;;  %v13833_v45 = vcombine.low %v785_v17, %v793_v18 }
  0xf5   :  { %6402 = vmatpush1.bf16.msra.mxu0 %v13705_v38  ;;  %6574 = vmatpush1.bf16.msra.mxu1 %v13707_v39  ;;  %v13819_v38 = vcombine.low %v770_v25, %v778_v26  ;;  %v13834_v39 = vcombine.high %v785_v17, %v793_v18  ;;  %v890_v25 = vld [vmem:[#allocation4 + $0x17c8] sm:$0xff]  ;;  %v905_v17 = vld [vmem:[#allocation4 + $0x1840] sm:$0xff] }
  0xf6   :  { %6403 = vmatprep.subr.bf16.mxu0 %v13722_v40  ;;  %6575 = vmatprep.subr.bf16.mxu1 %v13724_v41  ;;  %v13836_v40 = vcombine.high %v786_v34, %v794_v36  ;;  %v801_v41 = vld [vmem:[#allocation4 + $0x1500] sm:$0xff]  ;;  %v898_v18 = vld [vmem:[#allocation4 + $0x1808] sm:$0xff] }
  0xf7   :  { %v13849_v55 = vcombine.low %v801_v41, %v809_v42 }
  0xf9   :  { %6404 = vmatpush1.bf16.msra.mxu0 %v13721_v46  ;;  %6576 = vmatpush1.bf16.msra.mxu1 %v13723_v47  ;;  %v13835_v46 = vcombine.low %v786_v34, %v794_v36  ;;  %v13850_v47 = vcombine.high %v801_v41, %v809_v42  ;;  %v906_v34 = vld [vmem:[#allocation4 + $0x1848] sm:$0xff]  ;;  %v921_v41 = vld [vmem:[#allocation4 + $0x18c0] sm:$0xff] }
  0xfa   :  { %6405 = vmatprep.subr.bf16.mxu0 %v13738_v48  ;;  %6577 = vmatprep.subr.bf16.mxu1 %v13740_v49  ;;  %v13852_v48 = vcombine.high %v802_v43, %v810_v44  ;;  %v817_v49 = vld [vmem:[#allocation4 + $0x1580] sm:$0xff]  ;;  %v914_v42 = vld [vmem:[#allocation4 + $0x1888] sm:$0xff] }
  0xfb   :  { %v13865_v0 = vcombine.low %v817_v49, %v825_v50 }
  0xfd   :  { %6406 = vmatpush1.bf16.msra.mxu0 %v13737_v56  ;;  %6578 = vmatpush1.bf16.msra.mxu1 %v13739_v57  ;;  %v13851_v56 = vcombine.low %v802_v43, %v810_v44  ;;  %v13866_v57 = vcombine.high %v817_v49, %v825_v50  ;;  %v15449_v43 = vcombine.low %v15432_v29, %v15437_v30  ;;  %v922_v44 = vld [vmem:[#allocation4 + $0x18c8] sm:$0xff]  ;;  %v929_v30 = vld [vmem:[#allocation4 + $0x1900] sm:$0xff] }
  0xfe   :  { %6407 = vmatprep.subr.bf16.mxu0 %v13754_v59  ;;  %6579 = vmatprep.subr.bf16.mxu1 %v13756_v60  ;;  %v13868_v59 = vcombine.high %v818_v51, %v826_v52  ;;  %v833_v60 = vld [vmem:[#allocation4 + $0x1600] sm:$0xff]  ;;  %v13964_v29 = vcombine.high %v914_v42, %v922_v44 }
  0xff   :  { %v13881_v8 = vcombine.low %v833_v60, %v841_v61  ;;  %v937_v50 = vld [vmem:[#allocation4 + $0x1940] sm:$0xff] }
 0x101   :  { %6408 = vmatpush1.bf16.msra.mxu0 %v13753_v1  ;;  %6580 = vmatpush1.bf16.msra.mxu1 %v13755_v2  ;;  %v13867_v1 = vcombine.low %v818_v51, %v826_v52  ;;  %v13882_v2 = vcombine.high %v833_v60, %v841_v61  ;;  %v930_v52 = vld [vmem:[#allocation4 + $0x1908] sm:$0xff]  ;;  %v945_v61 = vld [vmem:[#allocation4 + $0x1980] sm:$0xff] }
 0x102   :  { %6409 = vmatprep.subr.bf16.mxu0 %v13770_v3  ;;  %6581 = vmatprep.subr.bf16.mxu1 %v13772_v4  ;;  %v13884_v3 = vcombine.high %v834_v62, %v842_v63  ;;  %v849_v4 = vld [vmem:[#allocation4 + $0x1680] sm:$0xff] }
 0x103   :  { %v13897_v19 = vcombine.low %v849_v4, %v857_v5 }
 0x105   :  { %6410 = vmatpush1.bf16.msra.mxu0 %v13769_v9  ;;  %6582 = vmatpush1.bf16.msra.mxu1 %v13771_v10  ;;  %v13883_v9 = vcombine.low %v834_v62, %v842_v63  ;;  %v13898_v10 = vcombine.high %v849_v4, %v857_v5  ;;  %v953_v62 = vld [vmem:[#allocation4 + $0x19c0] sm:$0xff]  ;;  %v946_v63 = vld [vmem:[#allocation4 + $0x1988] sm:$0xff] }
 0x106   :  { %6411 = vmatprep.subr.bf16.mxu0 %v13786_v11  ;;  %6583 = vmatprep.subr.bf16.mxu1 %v13788_v12  ;;  %v13900_v11 = vcombine.high %v850_v6, %v858_v7  ;;  %v865_v12 = vld [vmem:[#allocation4 + $0x1700] sm:$0xff] }
 0x107   :  { %v13913_v26 = vcombine.low %v865_v12, %v873_v13  ;;  %v961_v5 = vld [vmem:[#allocation4 + $0x1a00] sm:$0xff] }
 0x109   :  { %6412 = vmatpush1.bf16.msra.mxu0 %v13785_v20  ;;  %6584 = vmatpush1.bf16.msra.mxu1 %v13787_v21  ;;  %v13899_v20 = vcombine.low %v850_v6, %v858_v7  ;;  %v13914_v21 = vcombine.high %v865_v12, %v873_v13  ;;  %v969_v6 = vld [vmem:[#allocation4 + $0x1a40] sm:$0xff]  ;;  %v962_v7 = vld [vmem:[#allocation4 + $0x1a08] sm:$0xff] }
 0x10a   :  { %6413 = vmatprep.subr.bf16.mxu0 %v13802_v53  ;;  %6585 = vmatprep.subr.bf16.mxu1 %v13804_v54  ;;  %v13916_v53 = vcombine.high %v866_v14, %v874_v16  ;;  %v881_v54 = vld [vmem:[#allocation4 + $0x1780] sm:$0xff] }
 0x10b   :  { %v13929_v36 = vcombine.low %v881_v54, %v889_v22  ;;  %v977_v13 = vld [vmem:[#allocation4 + $0x1a80] sm:$0xff] }
 0x10d   :  { %6414 = vmatpush1.bf16.msra.mxu0 %v13801_v28  ;;  %6586 = vmatpush1.bf16.msra.mxu1 %v13803_v31  ;;  %v13915_v28 = vcombine.low %v866_v14, %v874_v16  ;;  %v13930_v31 = vcombine.high %v881_v54, %v889_v22  ;;  %v985_v14 = vld [vmem:[#allocation4 + $0x1ac0] sm:$0xff]  ;;  %v978_v16 = vld [vmem:[#allocation4 + $0x1a88] sm:$0xff] }
 0x10e   :  { %6415 = vmatprep.subr.bf16.mxu0 %v13818_v32  ;;  %6587 = vmatprep.subr.bf16.mxu1 %v13820_v33  ;;  %v13932_v32 = vcombine.high %v882_v23, %v890_v25  ;;  %v897_v33 = vld [vmem:[#allocation4 + $0x1800] sm:$0xff] }
 0x10f   :  { %v993_v22 = vld [vmem:[#allocation4 + $0x1b00] sm:$0xff] }
 0x111   :  { %6416 = vmatpush1.bf16.msra.mxu0 %v13817_v37  ;;  %6588 = vmatpush1.bf16.msra.mxu1 %v13819_v38  ;;  %v13931_v37 = vcombine.low %v882_v23, %v890_v25  ;;  %v13946_v38 = vcombine.high %v897_v33, %v905_v17  ;;  %v1001_v23 = vld [vmem:[#allocation4 + $0x1b40] sm:$0xff]  ;;  %v994_v25 = vld [vmem:[#allocation4 + $0x1b08] sm:$0xff] }
 0x112   :  { %6417 = vmatprep.subr.bf16.mxu0 %v13834_v39  ;;  %6589 = vmatprep.subr.bf16.mxu1 %v13836_v40  ;;  %v13948_v39 = vcombine.high %v898_v18, %v906_v34  ;;  %v913_v40 = vld [vmem:[#allocation4 + $0x1880] sm:$0xff] }
 0x113   :  { %v13962_v49 = vcombine.high %v913_v40, %v921_v41 }
 0x115   :  { %6418 = vmatpush1.bf16.msra.mxu0 %v13833_v45  ;;  %6590 = vmatpush1.bf16.msra.mxu1 %v13835_v46  ;;  %v15454_v45 = vld [vmem:[%s16569_s0 + $0x18] sm:$0xff] }
 0x116   :  { %6419 = vmatprep.subr.bf16.mxu0 %v13850_v47  ;;  %6591 = vmatprep.subr.bf16.mxu1 %v13852_v48  ;;  %v15459_v46 = vld [vmem:[%s16569_s0 + $0x38] sm:$0x33]  ;;  %v13945_v47 = vcombine.low %v897_v33, %v905_v17  ;;  %v13947_v48 = vcombine.low %v898_v18, %v906_v34  ;;  %v1009_v17 = vld [vmem:[#allocation4 + $0x1b80] sm:$0xff]  ;;  %s15269_s0 = smov 32  }
 0x117   :  { %v15463_v51 = vcombine.high %v15454_v45, %v15459_v46  ;;  %v1017_v18 = vld [vmem:[#allocation4 + $0x1bc0] sm:$0xff]  ;;  %v1010_v34 = vld [vmem:[#allocation4 + $0x1b88] sm:$0xff] }
 0x119   :  { %6420 = vmatpush1.bf16.msra.mxu0 %v13849_v55  ;;  %6592 = vmatpush1.bf16.msra.mxu1 %v13851_v56  ;;  %v938_v55 = vld [vmem:[#allocation4 + $0x1948] sm:$0xff]  ;;  %v13961_v56 = vcombine.low %v913_v40, %v921_v41  ;;  %v1025_v41 = vld [vmem:[#allocation4 + $0x1c00] sm:$0xff] }
 0x11a   :  { %6421 = vmatprep.subr.bf16.mxu0 %v13866_v57  ;;  %6593 = vmatprep.subr.bf16.mxu1 %v13868_v59  ;;  %v13963_v57 = vcombine.low %v914_v42, %v922_v44  ;;  %v13978_v59 = vcombine.high %v929_v30, %v937_v50  ;;  %v13980_v60 = vcombine.high %v930_v52, %v938_v55  ;;  %v1033_v42 = vld [vmem:[#allocation4 + $0x1c40] sm:$0xff]  ;;  %v1026_v44 = vld [vmem:[#allocation4 + $0x1c08] sm:$0xff] }
 0x11d   :  { %6422 = vmatpush1.bf16.msra.mxu0 %v13865_v0  ;;  %6594 = vmatpush1.bf16.msra.mxu1 %v13867_v1  ;;  %v954_v0 = vld [vmem:[#allocation4 + $0x19c8] sm:$0xff]  ;;  %v13977_v1 = vcombine.low %v929_v30, %v937_v50  ;;  %v1041_v50 = vld [vmem:[#allocation4 + $0x1c80] sm:$0xff] }
 0x11e   :  { %6423 = vmatprep.subr.bf16.mxu0 %v13882_v2  ;;  %6595 = vmatprep.subr.bf16.mxu1 %v13884_v3  ;;  %v13979_v2 = vcombine.low %v930_v52, %v938_v55  ;;  %v13994_v3 = vcombine.high %v945_v61, %v953_v62  ;;  %v13996_v4 = vcombine.high %v946_v63, %v954_v0  ;;  %v1049_v52 = vld [vmem:[#allocation4 + $0x1cc0] sm:$0xff]  ;;  %v1042_v55 = vld [vmem:[#allocation4 + $0x1c88] sm:$0xff] }
 0x121   :  { %6424 = vmatpush1.bf16.msra.mxu0 %v13881_v8  ;;  %6596 = vmatpush1.bf16.msra.mxu1 %v13883_v9  ;;  %v970_v8 = vld [vmem:[#allocation4 + $0x1a48] sm:$0xff]  ;;  %v13993_v9 = vcombine.low %v945_v61, %v953_v62  ;;  %v1057_v62 = vld [vmem:[#allocation4 + $0x1d00] sm:$0xff] }
 0x122   :  { %6425 = vmatprep.subr.bf16.mxu0 %v13898_v10  ;;  %6597 = vmatprep.subr.bf16.mxu1 %v13900_v11  ;;  %v13995_v10 = vcombine.low %v946_v63, %v954_v0  ;;  %v14010_v11 = vcombine.high %v961_v5, %v969_v6  ;;  %v14012_v12 = vcombine.high %v962_v7, %v970_v8  ;;  %v1065_v63 = vld [vmem:[#allocation4 + $0x1d40] sm:$0xff]  ;;  %v1058_v0 = vld [vmem:[#allocation4 + $0x1d08] sm:$0xff] }
 0x125   :  { %6426 = vmatpush1.bf16.msra.mxu0 %v13897_v19  ;;  %6598 = vmatpush1.bf16.msra.mxu1 %v13899_v20  ;;  %v986_v19 = vld [vmem:[#allocation4 + $0x1ac8] sm:$0xff]  ;;  %v14009_v20 = vcombine.low %v961_v5, %v969_v6  ;;  %v1073_v6 = vld [vmem:[#allocation4 + $0x1d80] sm:$0xff] }
 0x126   :  { %6427 = vmatprep.subr.bf16.mxu0 %v13914_v21  ;;  %6599 = vmatprep.subr.bf16.mxu1 %v13916_v53  ;;  %v14011_v21 = vcombine.low %v962_v7, %v970_v8  ;;  %v14026_v53 = vcombine.high %v977_v13, %v985_v14  ;;  %v14028_v54 = vcombine.high %v978_v16, %v986_v19  ;;  %v1081_v7 = vld [vmem:[#allocation4 + $0x1dc0] sm:$0xff]  ;;  %v1074_v8 = vld [vmem:[#allocation4 + $0x1d88] sm:$0xff] }
 0x129   :  { %6428 = vmatpush1.bf16.msra.mxu0 %v13913_v26  ;;  %6600 = vmatpush1.bf16.msra.mxu1 %v13915_v28  ;;  %v1002_v26 = vld [vmem:[#allocation4 + $0x1b48] sm:$0xff]  ;;  %v14025_v28 = vcombine.low %v977_v13, %v985_v14  ;;  %v1089_v14 = vld [vmem:[#allocation4 + $0x1e00] sm:$0xff] }
 0x12a   :  { %6429 = vmatprep.subr.bf16.mxu0 %v13930_v31  ;;  %6601 = vmatprep.subr.bf16.mxu1 %v13932_v32  ;;  %v14027_v31 = vcombine.low %v978_v16, %v986_v19  ;;  %v14042_v32 = vcombine.high %v993_v22, %v1001_v23  ;;  %v14044_v33 = vcombine.high %v994_v25, %v1002_v26  ;;  %v1097_v16 = vld [vmem:[#allocation4 + $0x1e40] sm:$0xff]  ;;  %v1090_v19 = vld [vmem:[#allocation4 + $0x1e08] sm:$0xff] }
 0x12d   :  { %6430 = vmatpush1.bf16.msra.mxu0 %v13929_v36  ;;  %6602 = vmatpush1.bf16.msra.mxu1 %v13931_v37  ;;  %v1018_v36 = vld [vmem:[#allocation4 + $0x1bc8] sm:$0xff]  ;;  %v14041_v37 = vcombine.low %v993_v22, %v1001_v23  ;;  %v1105_v23 = vld [vmem:[#allocation4 + $0x1e80] sm:$0xff] }
 0x12e   :  { %6442 = vmatprep.subr.bf16.mxu0 %v13946_v38  ;;  %6614 = vmatprep.subr.bf16.mxu1 %v13948_v39  ;;  %v14043_v38 = vcombine.low %v994_v25, %v1002_v26  ;;  %v14058_v39 = vcombine.high %v1009_v17, %v1017_v18  ;;  %v14060_v40 = vcombine.high %v1010_v34, %v1018_v36  ;;  %v1113_v25 = vld [vmem:[#allocation4 + $0x1ec0] sm:$0xff]  ;;  %v1106_v26 = vld [vmem:[#allocation4 + $0x1e88] sm:$0xff] }
 0x130   :  { %6432 = vmatmul.mubr.bf16.vlgmr.msra.gmra.mrb[0].mxu0 %v15449_v43  ;;  %6604 = vmatmul.mubr.bf16.vlgmr.msra.gmra.mrb[0].mxu1 %v15449_v43 }
 0x131   :  { %6443 = vmatpush1.bf16.msra.mxu0 %v13945_v47  ;;  %6615 = vmatpush1.bf16.msra.mxu1 %v13947_v48  ;;  %v1034_v47 = vld [vmem:[#allocation4 + $0x1c48] sm:$0xff]  ;;  %v14057_v48 = vcombine.low %v1009_v17, %v1017_v18  ;;  %v1121_v18 = vld [vmem:[#allocation4 + $0x1f00] sm:$0xff] }
 0x132   :  { %6444 = vmatprep.subr.bf16.mxu0 %v13962_v49  ;;  %6616 = vmatprep.subr.bf16.mxu1 %v13964_v29  ;;  %v14059_v49 = vcombine.low %v1010_v34, %v1018_v36  ;;  %v14074_v29 = vcombine.high %v1025_v41, %v1033_v42  ;;  %v14076_v30 = vcombine.high %v1026_v44, %v1034_v47  ;;  %v1129_v34 = vld [vmem:[#allocation4 + $0x1f40] sm:$0xff]  ;;  %v1122_v36 = vld [vmem:[#allocation4 + $0x1f08] sm:$0xff] }
 0x133   :  { %6474 = vmatprep.mubr.bf16.mxu0 %v15463_v51  ;;  %6646 = vmatprep.mubr.bf16.mxu1 %v15463_v51 }
 0x135   :  { %6445 = vmatpush1.bf16.msra.mxu0 %v13961_v56  ;;  %6617 = vmatpush1.bf16.msra.mxu1 %v13963_v57  ;;  %v1050_v56 = vld [vmem:[#allocation4 + $0x1cc8] sm:$0xff]  ;;  %v14073_v57 = vcombine.low %v1025_v41, %v1033_v42  ;;  %v1137_v42 = vld [vmem:[#allocation4 + $0x1f80] sm:$0xff] }
 0x136   :  { %6446 = vmatprep.subr.bf16.mxu0 %v13978_v59  ;;  %6618 = vmatprep.subr.bf16.mxu1 %v13980_v60  ;;  %v14075_v59 = vcombine.low %v1026_v44, %v1034_v47  ;;  %v14090_v60 = vcombine.high %v1041_v50, %v1049_v52  ;;  %v14092_v61 = vcombine.high %v1042_v55, %v1050_v56  ;;  %v1145_v44 = vld [vmem:[#allocation4 + $0x1fc0] sm:$0xff]  ;;  %v1138_v47 = vld [vmem:[#allocation4 + $0x1f88] sm:$0xff] }
 0x139   :  { %6447 = vmatpush1.bf16.msra.mxu0 %v13977_v1  ;;  %6619 = vmatpush1.bf16.msra.mxu1 %v13979_v2  ;;  %v1066_v1 = vld [vmem:[#allocation4 + $0x1d48] sm:$0xff]  ;;  %v14089_v2 = vcombine.low %v1041_v50, %v1049_v52  ;;  %v131_v52 = vld [vmem:[#allocation4 + $0x10] sm:$0xff] }
 0x13a   :  { %6448 = vmatprep.subr.bf16.mxu0 %v13994_v3  ;;  %6620 = vmatprep.subr.bf16.mxu1 %v13996_v4  ;;  %v14091_v3 = vcombine.low %v1042_v55, %v1050_v56  ;;  %v14106_v4 = vcombine.high %v1057_v62, %v1065_v63  ;;  %v14108_v5 = vcombine.high %v1058_v0, %v1066_v1  ;;  %v139_v55 = vld [vmem:[#allocation4 + $0x50] sm:$0xff]  ;;  %v132_v56 = vld [vmem:[#allocation4 + $0x18] sm:$0xff] }
 0x13d   :  { %6449 = vmatpush1.bf16.msra.mxu0 %v13993_v9  ;;  %6621 = vmatpush1.bf16.msra.mxu1 %v13995_v10  ;;  %v1082_v9 = vld [vmem:[#allocation4 + $0x1dc8] sm:$0xff]  ;;  %v14105_v10 = vcombine.low %v1057_v62, %v1065_v63  ;;  %v147_v63 = vld [vmem:[#allocation4 + $0x90] sm:$0xff] }
 0x13e   :  { %6450 = vmatprep.subr.bf16.mxu0 %v14010_v11  ;;  %6622 = vmatprep.subr.bf16.mxu1 %v14012_v12  ;;  %v14107_v11 = vcombine.low %v1058_v0, %v1066_v1  ;;  %v14122_v12 = vcombine.high %v1073_v6, %v1081_v7  ;;  %v14124_v13 = vcombine.high %v1074_v8, %v1082_v9  ;;  %v155_v0 = vld [vmem:[#allocation4 + $0xd0] sm:$0xff] }
 0x13f   :  { %v15471_v1 = vcombine.low %v15454_v45, %v15459_v46  ;;  %v13197_v45 = vcombine.low %v147_v63, %v155_v0 }
 0x141   :  { %6451 = vmatpush1.bf16.msra.mxu0 %v14009_v20  ;;  %6623 = vmatpush1.bf16.msra.mxu1 %v14011_v21  ;;  %v1098_v20 = vld [vmem:[#allocation4 + $0x1e48] sm:$0xff]  ;;  %v14121_v21 = vcombine.low %v1073_v6, %v1081_v7  ;;  %v13198_v6 = vcombine.high %v147_v63, %v155_v0  ;;  %v259_v63 = vld [vmem:[#allocation4 + $0x410] sm:$0xff] }
 0x142   :  { %6452 = vmatprep.subr.bf16.mxu0 %v14026_v53  ;;  %6624 = vmatprep.subr.bf16.mxu1 %v14028_v54  ;;  %v14123_v53 = vcombine.low %v1074_v8, %v1082_v9  ;;  %v14138_v54 = vcombine.high %v1089_v14, %v1097_v16  ;;  %v14140_v22 = vcombine.high %v1090_v19, %v1098_v20  ;;  %v163_v8 = vld [vmem:[#allocation4 + $0x110] sm:$0xff] }
 0x143   :  { %v171_v9 = vld [vmem:[#allocation4 + $0x150] sm:$0xff] }
 0x144   :  { %v267_v0 = vld [vmem:[#allocation4 + $0x450] sm:$0xff] }
 0x145   :  { %6453 = vmatpush1.bf16.msra.mxu0 %v14025_v28  ;;  %6625 = vmatpush1.bf16.msra.mxu1 %v14027_v31  ;;  %v1114_v28 = vld [vmem:[#allocation4 + $0x1ec8] sm:$0xff]  ;;  %v14137_v31 = vcombine.low %v1089_v14, %v1097_v16  ;;  %v179_v14 = vld [vmem:[#allocation4 + $0x190] sm:$0xff] }
 0x146   :  { %6454 = vmatprep.subr.bf16.mxu0 %v14042_v32  ;;  %6626 = vmatprep.subr.bf16.mxu1 %v14044_v33  ;;  %v14139_v32 = vcombine.low %v1090_v19, %v1098_v20  ;;  %v14154_v33 = vcombine.high %v1105_v23, %v1113_v25  ;;  %v14156_v17 = vcombine.high %v1106_v26, %v1114_v28  ;;  %v187_v16 = vld [vmem:[#allocation4 + $0x1d0] sm:$0xff]  ;;  %v180_v19 = vld [vmem:[#allocation4 + $0x198] sm:$0xff] }
 0x147   :  { %v188_v20 = vld [vmem:[#allocation4 + $0x1d8] sm:$0xff] }
 0x149   :  { %6455 = vmatpush1.bf16.msra.mxu0 %v14041_v37  ;;  %6627 = vmatpush1.bf16.msra.mxu1 %v14043_v38  ;;  %v1130_v37 = vld [vmem:[#allocation4 + $0x1f48] sm:$0xff]  ;;  %v14153_v38 = vcombine.low %v1105_v23, %v1113_v25  ;;  %v195_v23 = vld [vmem:[#allocation4 + $0x210] sm:$0xff] }
 0x14a   :  { %6456 = vmatprep.subr.bf16.mxu0 %v14058_v39  ;;  %6628 = vmatprep.subr.bf16.mxu1 %v14060_v40  ;;  %v14155_v39 = vcombine.low %v1106_v26, %v1114_v28  ;;  %v14170_v40 = vcombine.high %v1121_v18, %v1129_v34  ;;  %v14172_v41 = vcombine.high %v1122_v36, %v1130_v37  ;;  %v203_v25 = vld [vmem:[#allocation4 + $0x250] sm:$0xff]  ;;  %v196_v26 = vld [vmem:[#allocation4 + $0x218] sm:$0xff] }
 0x14b   :  { %v204_v28 = vld [vmem:[#allocation4 + $0x258] sm:$0xff] }
 0x14d   :  { %6457 = vmatpush1.bf16.msra.mxu0 %v14057_v48  ;;  %6629 = vmatpush1.bf16.msra.mxu1 %v14059_v49  ;;  %v1146_v48 = vld [vmem:[#allocation4 + $0x1fc8] sm:$0xff]  ;;  %v14169_v49 = vcombine.low %v1121_v18, %v1129_v34  ;;  %v211_v18 = vld [vmem:[#allocation4 + $0x290] sm:$0xff] }
 0x14e   :  { %6458 = vmatprep.subr.bf16.mxu0 %v14074_v29  ;;  %6630 = vmatprep.subr.bf16.mxu1 %v14076_v30  ;;  %v14171_v29 = vcombine.low %v1122_v36, %v1130_v37  ;;  %v14186_v30 = vcombine.high %v1137_v42, %v1145_v44  ;;  %v14188_v50 = vcombine.high %v1138_v47, %v1146_v48  ;;  %v219_v34 = vld [vmem:[#allocation4 + $0x2d0] sm:$0xff]  ;;  %v212_v36 = vld [vmem:[#allocation4 + $0x298] sm:$0xff] }
 0x14f   :  { %v220_v37 = vld [vmem:[#allocation4 + $0x2d8] sm:$0xff] }
 0x151   :  { %6459 = vmatpush1.bf16.msra.mxu0 %v14073_v57  ;;  %6631 = vmatpush1.bf16.msra.mxu1 %v14075_v59  ;;  %v140_v57 = vld [vmem:[#allocation4 + $0x58] sm:$0xff]  ;;  %v14185_v59 = vcombine.low %v1137_v42, %v1145_v44  ;;  %v227_v42 = vld [vmem:[#allocation4 + $0x310] sm:$0xff] }
 0x152   :  { %6460 = vmatprep.subr.bf16.mxu0 %v14090_v60  ;;  %6632 = vmatprep.subr.bf16.mxu1 %v14092_v61  ;;  %v14187_v60 = vcombine.low %v1138_v47, %v1146_v48  ;;  %v13182_v61 = vcombine.high %v131_v52, %v139_v55  ;;  %v13184_v62 = vcombine.high %v132_v56, %v140_v57  ;;  %v235_v44 = vld [vmem:[#allocation4 + $0x350] sm:$0xff]  ;;  %v228_v47 = vld [vmem:[#allocation4 + $0x318] sm:$0xff] }
 0x153   :  { %v236_v48 = vld [vmem:[#allocation4 + $0x358] sm:$0xff] }
 0x155   :  { %6461 = vmatpush1.bf16.msra.mxu0 %v14089_v2  ;;  %6633 = vmatpush1.bf16.msra.mxu1 %v14091_v3  ;;  %v148_v2 = vld [vmem:[#allocation4 + $0x98] sm:$0xff] }
 0x156   :  { %6462 = vmatprep.subr.bf16.mxu0 %v14106_v4  ;;  %6634 = vmatprep.subr.bf16.mxu1 %v14108_v5  ;;  %v156_v3 = vld [vmem:[#allocation4 + $0xd8] sm:$0xff]  ;;  %v13181_v4 = vcombine.low %v131_v52, %v139_v55  ;;  %v13183_v5 = vcombine.low %v132_v56, %v140_v57  ;;  %v243_v52 = vld [vmem:[#allocation4 + $0x390] sm:$0xff] }
 0x157   :  { %v13200_v7 = vcombine.high %v148_v2, %v156_v3  ;;  %v13199_v46 = vcombine.low %v148_v2, %v156_v3  ;;  %v251_v55 = vld [vmem:[#allocation4 + $0x3d0] sm:$0xff]  ;;  %v244_v56 = vld [vmem:[#allocation4 + $0x398] sm:$0xff] }
 0x158   :  { %v252_v57 = vld [vmem:[#allocation4 + $0x3d8] sm:$0xff] }
 0x159   :  { %6463 = vmatpush1.bf16.msra.mxu0 %v14105_v10  ;;  %6635 = vmatpush1.bf16.msra.mxu1 %v14107_v11  ;;  %v164_v10 = vld [vmem:[#allocation4 + $0x118] sm:$0xff] }
 0x15a   :  { %6464 = vmatprep.subr.bf16.mxu0 %v14122_v12  ;;  %6636 = vmatprep.subr.bf16.mxu1 %v14124_v13  ;;  %v172_v11 = vld [vmem:[#allocation4 + $0x158] sm:$0xff]  ;;  %v13214_v12 = vcombine.high %v163_v8, %v171_v9 }
 0x15b   :  { %v13216_v13 = vcombine.high %v164_v10, %v172_v11  ;;  %v260_v2 = vld [vmem:[#allocation4 + $0x418] sm:$0xff] }
 0x15c   :  { %v268_v3 = vld [vmem:[#allocation4 + $0x458] sm:$0xff] }
 0x15d   :  { %6465 = vmatpush1.bf16.msra.mxu0 %v14121_v21  ;;  %6637 = vmatpush1.bf16.msra.mxu1 %v14123_v53  ;;  %v13213_v21 = vcombine.low %v163_v8, %v171_v9  ;;  %v13215_v53 = vcombine.low %v164_v10, %v172_v11  ;;  %v275_v8 = vld [vmem:[#allocation4 + $0x490] sm:$0xff]  ;;  %v276_v10 = vld [vmem:[#allocation4 + $0x498] sm:$0xff] }
 0x15e   :  { %6466 = vmatprep.subr.bf16.mxu0 %v14138_v54  ;;  %6638 = vmatprep.subr.bf16.mxu1 %v14140_v22  ;;  %v13230_v54 = vcombine.high %v179_v14, %v187_v16  ;;  %v13232_v22 = vcombine.high %v180_v19, %v188_v20  ;;  %v283_v9 = vld [vmem:[#allocation4 + $0x4d0] sm:$0xff]  ;;  %v284_v11 = vld [vmem:[#allocation4 + $0x4d8] sm:$0xff] }
 0x161   :  { %6467 = vmatpush1.bf16.msra.mxu0 %v14137_v31  ;;  %6639 = vmatpush1.bf16.msra.mxu1 %v14139_v32  ;;  %v13229_v31 = vcombine.low %v179_v14, %v187_v16  ;;  %v13231_v32 = vcombine.low %v180_v19, %v188_v20  ;;  %v291_v14 = vld [vmem:[#allocation4 + $0x510] sm:$0xff]  ;;  %v292_v19 = vld [vmem:[#allocation4 + $0x518] sm:$0xff] }
 0x162   :  { %6468 = vmatprep.subr.bf16.mxu0 %v14154_v33  ;;  %6640 = vmatprep.subr.bf16.mxu1 %v14156_v17  ;;  %v13246_v33 = vcombine.high %v195_v23, %v203_v25  ;;  %v13248_v17 = vcombine.high %v196_v26, %v204_v28  ;;  %v299_v16 = vld [vmem:[#allocation4 + $0x550] sm:$0xff]  ;;  %v300_v20 = vld [vmem:[#allocation4 + $0x558] sm:$0xff] }
 0x165   :  { %6469 = vmatpush1.bf16.msra.mxu0 %v14153_v38  ;;  %6641 = vmatpush1.bf16.msra.mxu1 %v14155_v39  ;;  %v13245_v38 = vcombine.low %v195_v23, %v203_v25  ;;  %v13247_v39 = vcombine.low %v196_v26, %v204_v28  ;;  %v307_v23 = vld [vmem:[#allocation4 + $0x590] sm:$0xff]  ;;  %v308_v26 = vld [vmem:[#allocation4 + $0x598] sm:$0xff] }
 0x166   :  { %6470 = vmatprep.subr.bf16.mxu0 %v14170_v40  ;;  %6642 = vmatprep.subr.bf16.mxu1 %v14172_v41  ;;  %v13262_v40 = vcombine.high %v211_v18, %v219_v34  ;;  %v13264_v41 = vcombine.high %v212_v36, %v220_v37  ;;  %v315_v25 = vld [vmem:[#allocation4 + $0x5d0] sm:$0xff]  ;;  %v316_v28 = vld [vmem:[#allocation4 + $0x5d8] sm:$0xff] }
 0x169   :  { %6471 = vmatpush1.bf16.msra.mxu0 %v14169_v49  ;;  %6643 = vmatpush1.bf16.msra.mxu1 %v14171_v29  ;;  %v13261_v49 = vcombine.low %v211_v18, %v219_v34  ;;  %v13263_v29 = vcombine.low %v212_v36, %v220_v37  ;;  %v323_v18 = vld [vmem:[#allocation4 + $0x610] sm:$0xff]  ;;  %v324_v36 = vld [vmem:[#allocation4 + $0x618] sm:$0xff] }
 0x16a   :  { %6472 = vmatprep.subr.bf16.mxu0 %v14186_v30  ;;  %6644 = vmatprep.subr.bf16.mxu1 %v14188_v50  ;;  %v13278_v30 = vcombine.high %v227_v42, %v235_v44  ;;  %v13280_v50 = vcombine.high %v228_v47, %v236_v48  ;;  %v331_v34 = vld [vmem:[#allocation4 + $0x650] sm:$0xff]  ;;  %v332_v37 = vld [vmem:[#allocation4 + $0x658] sm:$0xff] }
 0x16d   :  { %6473 = vmatpush1.bf16.msra.mxu0 %v14185_v59  ;;  %6645 = vmatpush1.bf16.msra.mxu1 %v14187_v60  ;;  %v13277_v59 = vcombine.low %v227_v42, %v235_v44  ;;  %v13279_v60 = vcombine.low %v228_v47, %v236_v48  ;;  %v339_v42 = vld [vmem:[#allocation4 + $0x690] sm:$0xff]  ;;  %v340_v47 = vld [vmem:[#allocation4 + $0x698] sm:$0xff] }
 0x16e   :  { %6657 = vmatprep.subr.bf16.mxu0 %v13182_v61  ;;  %6829 = vmatprep.subr.bf16.mxu1 %v13184_v62  ;;  %v13294_v61 = vcombine.high %v243_v52, %v251_v55  ;;  %v13296_v62 = vcombine.high %v244_v56, %v252_v57  ;;  %v347_v44 = vld [vmem:[#allocation4 + $0x6d0] sm:$0xff]  ;;  %v348_v48 = vld [vmem:[#allocation4 + $0x6d8] sm:$0xff] }
 0x170   :  { %6475 = vmatmul.mubr.bf16.vlgmr.msra.gmra.mrb[0].mxu0 %v15471_v1  ;;  %6647 = vmatmul.mubr.bf16.vlgmr.msra.gmra.mrb[0].mxu1 %v15471_v1 }
 0x171   :  { %6658 = vmatpush1.bf16.msra.mxu0 %v13181_v4  ;;  %6830 = vmatpush1.bf16.msra.mxu1 %v13183_v5  ;;  %v13293_v4 = vcombine.low %v243_v52, %v251_v55  ;;  %v13295_v5 = vcombine.low %v244_v56, %v252_v57  ;;  %v355_v52 = vld [vmem:[#allocation4 + $0x710] sm:$0xff]  ;;  %v356_v56 = vld [vmem:[#allocation4 + $0x718] sm:$0xff] }
 0x172   :  { %6659 = vmatprep.subr.bf16.mxu0 %v13198_v6  ;;  %6831 = vmatprep.subr.bf16.mxu1 %v13200_v7  ;;  %v13310_v6 = vcombine.high %v259_v63, %v267_v0  ;;  %v13312_v7 = vcombine.high %v260_v2, %v268_v3  ;;  %v363_v55 = vld [vmem:[#allocation4 + $0x750] sm:$0xff]  ;;  %v364_v57 = vld [vmem:[#allocation4 + $0x758] sm:$0xff] }
 0x173   :  { %6689 = vmatprep.mubr.bf16.mxu0 %v15399_v58  ;;  %6861 = vmatprep.mubr.bf16.mxu1 %v15399_v58 }
 0x175   :  { %6660 = vmatpush1.bf16.msra.mxu0 %v13197_v45  ;;  %6832 = vmatpush1.bf16.msra.mxu1 %v13199_v46  ;;  %v13309_v45 = vcombine.low %v259_v63, %v267_v0  ;;  %v13311_v46 = vcombine.low %v260_v2, %v268_v3  ;;  %v371_v63 = vld [vmem:[#allocation4 + $0x790] sm:$0xff]  ;;  %v372_v2 = vld [vmem:[#allocation4 + $0x798] sm:$0xff] }
 0x176   :  { %6661 = vmatprep.subr.bf16.mxu0 %v13214_v12  ;;  %6833 = vmatprep.subr.bf16.mxu1 %v13216_v13  ;;  %v13326_v12 = vcombine.high %v275_v8, %v283_v9  ;;  %v13328_v13 = vcombine.high %v276_v10, %v284_v11  ;;  %v379_v0 = vld [vmem:[#allocation4 + $0x7d0] sm:$0xff]  ;;  %v380_v3 = vld [vmem:[#allocation4 + $0x7d8] sm:$0xff] }
 0x179   :  { %6662 = vmatpush1.bf16.msra.mxu0 %v13213_v21  ;;  %6834 = vmatpush1.bf16.msra.mxu1 %v13215_v53  ;;  %v13325_v21 = vcombine.low %v275_v8, %v283_v9  ;;  %v13327_v53 = vcombine.low %v276_v10, %v284_v11  ;;  %v387_v8 = vld [vmem:[#allocation4 + $0x810] sm:$0xff]  ;;  %v388_v10 = vld [vmem:[#allocation4 + $0x818] sm:$0xff] }
 0x17a   :  { %6663 = vmatprep.subr.bf16.mxu0 %v13230_v54  ;;  %6835 = vmatprep.subr.bf16.mxu1 %v13232_v22  ;;  %v13342_v54 = vcombine.high %v291_v14, %v299_v16  ;;  %v13344_v22 = vcombine.high %v292_v19, %v300_v20  ;;  %v395_v9 = vld [vmem:[#allocation4 + $0x850] sm:$0xff]  ;;  %v396_v11 = vld [vmem:[#allocation4 + $0x858] sm:$0xff] }
 0x17d   :  { %6664 = vmatpush1.bf16.msra.mxu0 %v13229_v31  ;;  %6836 = vmatpush1.bf16.msra.mxu1 %v13231_v32  ;;  %v13341_v31 = vcombine.low %v291_v14, %v299_v16  ;;  %v13343_v32 = vcombine.low %v292_v19, %v300_v20  ;;  %v403_v14 = vld [vmem:[#allocation4 + $0x890] sm:$0xff]  ;;  %v404_v19 = vld [vmem:[#allocation4 + $0x898] sm:$0xff] }
 0x17e   :  { %6665 = vmatprep.subr.bf16.mxu0 %v13246_v33  ;;  %6837 = vmatprep.subr.bf16.mxu1 %v13248_v17  ;;  %v13358_v33 = vcombine.high %v307_v23, %v315_v25  ;;  %v13360_v17 = vcombine.high %v308_v26, %v316_v28  ;;  %v411_v16 = vld [vmem:[#allocation4 + $0x8d0] sm:$0xff]  ;;  %v412_v20 = vld [vmem:[#allocation4 + $0x8d8] sm:$0xff] }
 0x181   :  { %6666 = vmatpush1.bf16.msra.mxu0 %v13245_v38  ;;  %6838 = vmatpush1.bf16.msra.mxu1 %v13247_v39  ;;  %v13357_v38 = vcombine.low %v307_v23, %v315_v25  ;;  %v13359_v39 = vcombine.low %v308_v26, %v316_v28  ;;  %v419_v23 = vld [vmem:[#allocation4 + $0x910] sm:$0xff]  ;;  %v420_v26 = vld [vmem:[#allocation4 + $0x918] sm:$0xff] }
 0x182   :  { %6667 = vmatprep.subr.bf16.mxu0 %v13262_v40  ;;  %6839 = vmatprep.subr.bf16.mxu1 %v13264_v41  ;;  %v13374_v40 = vcombine.high %v323_v18, %v331_v34  ;;  %v13376_v41 = vcombine.high %v324_v36, %v332_v37  ;;  %v427_v25 = vld [vmem:[#allocation4 + $0x950] sm:$0xff]  ;;  %v428_v28 = vld [vmem:[#allocation4 + $0x958] sm:$0xff] }
 0x185   :  { %6668 = vmatpush1.bf16.msra.mxu0 %v13261_v49  ;;  %6840 = vmatpush1.bf16.msra.mxu1 %v13263_v29  ;;  %v13373_v49 = vcombine.low %v323_v18, %v331_v34  ;;  %v13375_v29 = vcombine.low %v324_v36, %v332_v37  ;;  %v435_v18 = vld [vmem:[#allocation4 + $0x990] sm:$0xff]  ;;  %v436_v36 = vld [vmem:[#allocation4 + $0x998] sm:$0xff] }
 0x186   :  { %6669 = vmatprep.subr.bf16.mxu0 %v13278_v30  ;;  %6841 = vmatprep.subr.bf16.mxu1 %v13280_v50  ;;  %v13390_v30 = vcombine.high %v339_v42, %v347_v44  ;;  %v13392_v50 = vcombine.high %v340_v47, %v348_v48  ;;  %v443_v34 = vld [vmem:[#allocation4 + $0x9d0] sm:$0xff]  ;;  %v444_v37 = vld [vmem:[#allocation4 + $0x9d8] sm:$0xff] }
 0x189   :  { %6670 = vmatpush1.bf16.msra.mxu0 %v13277_v59  ;;  %6842 = vmatpush1.bf16.msra.mxu1 %v13279_v60  ;;  %v13389_v59 = vcombine.low %v339_v42, %v347_v44  ;;  %v13391_v60 = vcombine.low %v340_v47, %v348_v48  ;;  %v451_v42 = vld [vmem:[#allocation4 + $0xa10] sm:$0xff]  ;;  %v452_v47 = vld [vmem:[#allocation4 + $0xa18] sm:$0xff] }
 0x18a   :  { %6671 = vmatprep.subr.bf16.mxu0 %v13294_v61  ;;  %6843 = vmatprep.subr.bf16.mxu1 %v13296_v62  ;;  %v13406_v61 = vcombine.high %v355_v52, %v363_v55  ;;  %v13408_v62 = vcombine.high %v356_v56, %v364_v57  ;;  %v459_v44 = vld [vmem:[#allocation4 + $0xa50] sm:$0xff]  ;;  %v460_v48 = vld [vmem:[#allocation4 + $0xa58] sm:$0xff] }
 0x18d   :  { %6672 = vmatpush1.bf16.msra.mxu0 %v13293_v4  ;;  %6844 = vmatpush1.bf16.msra.mxu1 %v13295_v5  ;;  %v13405_v4 = vcombine.low %v355_v52, %v363_v55  ;;  %v13407_v5 = vcombine.low %v356_v56, %v364_v57  ;;  %v467_v52 = vld [vmem:[#allocation4 + $0xa90] sm:$0xff]  ;;  %v468_v56 = vld [vmem:[#allocation4 + $0xa98] sm:$0xff] }
 0x18e   :  { %6673 = vmatprep.subr.bf16.mxu0 %v13310_v6  ;;  %6845 = vmatprep.subr.bf16.mxu1 %v13312_v7  ;;  %v13422_v6 = vcombine.high %v371_v63, %v379_v0  ;;  %v13424_v7 = vcombine.high %v372_v2, %v380_v3  ;;  %v475_v55 = vld [vmem:[#allocation4 + $0xad0] sm:$0xff]  ;;  %v476_v57 = vld [vmem:[#allocation4 + $0xad8] sm:$0xff] }
 0x191   :  { %6674 = vmatpush1.bf16.msra.mxu0 %v13309_v45  ;;  %6846 = vmatpush1.bf16.msra.mxu1 %v13311_v46  ;;  %v13421_v45 = vcombine.low %v371_v63, %v379_v0  ;;  %v13423_v46 = vcombine.low %v372_v2, %v380_v3  ;;  %v483_v63 = vld [vmem:[#allocation4 + $0xb10] sm:$0xff]  ;;  %v484_v2 = vld [vmem:[#allocation4 + $0xb18] sm:$0xff] }
 0x192   :  { %6675 = vmatprep.subr.bf16.mxu0 %v13326_v12  ;;  %6847 = vmatprep.subr.bf16.mxu1 %v13328_v13  ;;  %v13438_v12 = vcombine.high %v387_v8, %v395_v9  ;;  %v13440_v13 = vcombine.high %v388_v10, %v396_v11  ;;  %v491_v0 = vld [vmem:[#allocation4 + $0xb50] sm:$0xff]  ;;  %v492_v3 = vld [vmem:[#allocation4 + $0xb58] sm:$0xff] }
 0x195   :  { %6676 = vmatpush1.bf16.msra.mxu0 %v13325_v21  ;;  %6848 = vmatpush1.bf16.msra.mxu1 %v13327_v53  ;;  %v13437_v21 = vcombine.low %v387_v8, %v395_v9  ;;  %v13439_v53 = vcombine.low %v388_v10, %v396_v11  ;;  %v499_v8 = vld [vmem:[#allocation4 + $0xb90] sm:$0xff]  ;;  %v500_v10 = vld [vmem:[#allocation4 + $0xb98] sm:$0xff] }
 0x196   :  { %6677 = vmatprep.subr.bf16.mxu0 %v13342_v54  ;;  %6849 = vmatprep.subr.bf16.mxu1 %v13344_v22  ;;  %v13454_v54 = vcombine.high %v403_v14, %v411_v16  ;;  %v13456_v22 = vcombine.high %v404_v19, %v412_v20  ;;  %v507_v9 = vld [vmem:[#allocation4 + $0xbd0] sm:$0xff]  ;;  %v508_v11 = vld [vmem:[#allocation4 + $0xbd8] sm:$0xff] }
 0x199   :  { %6678 = vmatpush1.bf16.msra.mxu0 %v13341_v31  ;;  %6850 = vmatpush1.bf16.msra.mxu1 %v13343_v32  ;;  %v13453_v31 = vcombine.low %v403_v14, %v411_v16  ;;  %v13455_v32 = vcombine.low %v404_v19, %v412_v20  ;;  %v515_v14 = vld [vmem:[#allocation4 + $0xc10] sm:$0xff]  ;;  %v516_v19 = vld [vmem:[#allocation4 + $0xc18] sm:$0xff] }
 0x19a   :  { %6679 = vmatprep.subr.bf16.mxu0 %v13358_v33  ;;  %6851 = vmatprep.subr.bf16.mxu1 %v13360_v17  ;;  %v13470_v33 = vcombine.high %v419_v23, %v427_v25  ;;  %v13472_v17 = vcombine.high %v420_v26, %v428_v28  ;;  %v523_v16 = vld [vmem:[#allocation4 + $0xc50] sm:$0xff]  ;;  %v524_v20 = vld [vmem:[#allocation4 + $0xc58] sm:$0xff] }
 0x19d   :  { %6680 = vmatpush1.bf16.msra.mxu0 %v13357_v38  ;;  %6852 = vmatpush1.bf16.msra.mxu1 %v13359_v39  ;;  %v13469_v38 = vcombine.low %v419_v23, %v427_v25  ;;  %v13471_v39 = vcombine.low %v420_v26, %v428_v28  ;;  %v531_v23 = vld [vmem:[#allocation4 + $0xc90] sm:$0xff]  ;;  %v532_v26 = vld [vmem:[#allocation4 + $0xc98] sm:$0xff] }
 0x19e   :  { %6681 = vmatprep.subr.bf16.mxu0 %v13374_v40  ;;  %6853 = vmatprep.subr.bf16.mxu1 %v13376_v41  ;;  %v13486_v40 = vcombine.high %v435_v18, %v443_v34  ;;  %v13488_v41 = vcombine.high %v436_v36, %v444_v37  ;;  %v539_v25 = vld [vmem:[#allocation4 + $0xcd0] sm:$0xff]  ;;  %v540_v28 = vld [vmem:[#allocation4 + $0xcd8] sm:$0xff] }
 0x1a1   :  { %6682 = vmatpush1.bf16.msra.mxu0 %v13373_v49  ;;  %6854 = vmatpush1.bf16.msra.mxu1 %v13375_v29  ;;  %v13485_v49 = vcombine.low %v435_v18, %v443_v34  ;;  %v13487_v29 = vcombine.low %v436_v36, %v444_v37  ;;  %v547_v18 = vld [vmem:[#allocation4 + $0xd10] sm:$0xff]  ;;  %v548_v36 = vld [vmem:[#allocation4 + $0xd18] sm:$0xff] }
 0x1a2   :  { %6683 = vmatprep.subr.bf16.mxu0 %v13390_v30  ;;  %6855 = vmatprep.subr.bf16.mxu1 %v13392_v50  ;;  %v13502_v30 = vcombine.high %v451_v42, %v459_v44  ;;  %v13504_v50 = vcombine.high %v452_v47, %v460_v48  ;;  %v555_v34 = vld [vmem:[#allocation4 + $0xd50] sm:$0xff]  ;;  %v556_v37 = vld [vmem:[#allocation4 + $0xd58] sm:$0xff] }
 0x1a5   :  { %6684 = vmatpush1.bf16.msra.mxu0 %v13389_v59  ;;  %6856 = vmatpush1.bf16.msra.mxu1 %v13391_v60  ;;  %v13501_v59 = vcombine.low %v451_v42, %v459_v44  ;;  %v13503_v60 = vcombine.low %v452_v47, %v460_v48  ;;  %v563_v42 = vld [vmem:[#allocation4 + $0xd90] sm:$0xff]  ;;  %v564_v47 = vld [vmem:[#allocation4 + $0xd98] sm:$0xff] }
 0x1a6   :  { %6685 = vmatprep.subr.bf16.mxu0 %v13406_v61  ;;  %6857 = vmatprep.subr.bf16.mxu1 %v13408_v62  ;;  %v13518_v61 = vcombine.high %v467_v52, %v475_v55  ;;  %v13520_v62 = vcombine.high %v468_v56, %v476_v57  ;;  %v571_v44 = vld [vmem:[#allocation4 + $0xdd0] sm:$0xff]  ;;  %v572_v48 = vld [vmem:[#allocation4 + $0xdd8] sm:$0xff] }
 0x1a9   :  { %6686 = vmatpush1.bf16.msra.mxu0 %v13405_v4  ;;  %6858 = vmatpush1.bf16.msra.mxu1 %v13407_v5  ;;  %v13517_v4 = vcombine.low %v467_v52, %v475_v55  ;;  %v13519_v5 = vcombine.low %v468_v56, %v476_v57  ;;  %v579_v52 = vld [vmem:[#allocation4 + $0xe10] sm:$0xff]  ;;  %v580_v56 = vld [vmem:[#allocation4 + $0xe18] sm:$0xff] }
 0x1aa   :  { %6687 = vmatprep.subr.bf16.mxu0 %v13422_v6  ;;  %6859 = vmatprep.subr.bf16.mxu1 %v13424_v7  ;;  %v13534_v6 = vcombine.high %v483_v63, %v491_v0  ;;  %v13536_v7 = vcombine.high %v484_v2, %v492_v3  ;;  %v587_v55 = vld [vmem:[#allocation4 + $0xe50] sm:$0xff]  ;;  %v588_v57 = vld [vmem:[#allocation4 + $0xe58] sm:$0xff] }
 0x1ad   :  { %6688 = vmatpush1.bf16.msra.mxu0 %v13421_v45  ;;  %6860 = vmatpush1.bf16.msra.mxu1 %v13423_v46  ;;  %v13533_v45 = vcombine.low %v483_v63, %v491_v0  ;;  %v13535_v46 = vcombine.low %v484_v2, %v492_v3  ;;  %v595_v63 = vld [vmem:[#allocation4 + $0xe90] sm:$0xff]  ;;  %v596_v2 = vld [vmem:[#allocation4 + $0xe98] sm:$0xff] }
 0x1ae   :  { %6700 = vmatprep.subr.bf16.mxu0 %v13438_v12  ;;  %6872 = vmatprep.subr.bf16.mxu1 %v13440_v13  ;;  %v13550_v12 = vcombine.high %v499_v8, %v507_v9  ;;  %v13552_v13 = vcombine.high %v500_v10, %v508_v11  ;;  %v603_v0 = vld [vmem:[#allocation4 + $0xed0] sm:$0xff]  ;;  %v604_v3 = vld [vmem:[#allocation4 + $0xed8] sm:$0xff] }
 0x1b0   :  { %6690 = vmatmul.mubr.bf16.vlgmr.msra.gmra.mrb[4].mxu0 %v15405_v15  ;;  %6862 = vmatmul.mubr.bf16.vlgmr.msra.gmra.mrb[4].mxu1 %v15405_v15 }
 0x1b1   :  { %6701 = vmatpush1.bf16.msra.mxu0 %v13437_v21  ;;  %6873 = vmatpush1.bf16.msra.mxu1 %v13439_v53  ;;  %v13549_v21 = vcombine.low %v499_v8, %v507_v9  ;;  %v13551_v53 = vcombine.low %v500_v10, %v508_v11  ;;  %v611_v8 = vld [vmem:[#allocation4 + $0xf10] sm:$0xff]  ;;  %v612_v10 = vld [vmem:[#allocation4 + $0xf18] sm:$0xff] }
 0x1b2   :  { %6702 = vmatprep.subr.bf16.mxu0 %v13454_v54  ;;  %6874 = vmatprep.subr.bf16.mxu1 %v13456_v22  ;;  %v13566_v54 = vcombine.high %v515_v14, %v523_v16  ;;  %v13568_v22 = vcombine.high %v516_v19, %v524_v20  ;;  %v619_v9 = vld [vmem:[#allocation4 + $0xf50] sm:$0xff]  ;;  %v620_v11 = vld [vmem:[#allocation4 + $0xf58] sm:$0xff] }
 0x1b3   :  { %6732 = vmatprep.mubr.bf16.mxu0 %v15419_v24  ;;  %6904 = vmatprep.mubr.bf16.mxu1 %v15419_v24 }
 0x1b5   :  { %6703 = vmatpush1.bf16.msra.mxu0 %v13453_v31  ;;  %6875 = vmatpush1.bf16.msra.mxu1 %v13455_v32  ;;  %v13565_v31 = vcombine.low %v515_v14, %v523_v16  ;;  %v13567_v32 = vcombine.low %v516_v19, %v524_v20  ;;  %v627_v14 = vld [vmem:[#allocation4 + $0xf90] sm:$0xff]  ;;  %v628_v19 = vld [vmem:[#allocation4 + $0xf98] sm:$0xff] }
 0x1b6   :  { %6704 = vmatprep.subr.bf16.mxu0 %v13470_v33  ;;  %6876 = vmatprep.subr.bf16.mxu1 %v13472_v17  ;;  %v13582_v33 = vcombine.high %v531_v23, %v539_v25  ;;  %v13584_v17 = vcombine.high %v532_v26, %v540_v28  ;;  %v635_v16 = vld [vmem:[#allocation4 + $0xfd0] sm:$0xff]  ;;  %v636_v20 = vld [vmem:[#allocation4 + $0xfd8] sm:$0xff] }
 0x1b9   :  { %6705 = vmatpush1.bf16.msra.mxu0 %v13469_v38  ;;  %6877 = vmatpush1.bf16.msra.mxu1 %v13471_v39  ;;  %v13581_v38 = vcombine.low %v531_v23, %v539_v25  ;;  %v13583_v39 = vcombine.low %v532_v26, %v540_v28  ;;  %v643_v23 = vld [vmem:[#allocation4 + $0x1010] sm:$0xff]  ;;  %v644_v26 = vld [vmem:[#allocation4 + $0x1018] sm:$0xff] }
 0x1ba   :  { %6706 = vmatprep.subr.bf16.mxu0 %v13486_v40  ;;  %6878 = vmatprep.subr.bf16.mxu1 %v13488_v41  ;;  %v13598_v40 = vcombine.high %v547_v18, %v555_v34  ;;  %v13600_v41 = vcombine.high %v548_v36, %v556_v37  ;;  %v651_v25 = vld [vmem:[#allocation4 + $0x1050] sm:$0xff]  ;;  %v652_v28 = vld [vmem:[#allocation4 + $0x1058] sm:$0xff] }
 0x1bd   :  { %6707 = vmatpush1.bf16.msra.mxu0 %v13485_v49  ;;  %6879 = vmatpush1.bf16.msra.mxu1 %v13487_v29  ;;  %v13597_v49 = vcombine.low %v547_v18, %v555_v34  ;;  %v13599_v29 = vcombine.low %v548_v36, %v556_v37  ;;  %v659_v18 = vld [vmem:[#allocation4 + $0x1090] sm:$0xff]  ;;  %v660_v36 = vld [vmem:[#allocation4 + $0x1098] sm:$0xff] }
 0x1be   :  { %6708 = vmatprep.subr.bf16.mxu0 %v13502_v30  ;;  %6880 = vmatprep.subr.bf16.mxu1 %v13504_v50  ;;  %v13614_v30 = vcombine.high %v563_v42, %v571_v44  ;;  %v13616_v50 = vcombine.high %v564_v47, %v572_v48  ;;  %v667_v34 = vld [vmem:[#allocation4 + $0x10d0] sm:$0xff]  ;;  %v668_v37 = vld [vmem:[#allocation4 + $0x10d8] sm:$0xff] }
 0x1c1   :  { %6709 = vmatpush1.bf16.msra.mxu0 %v13501_v59  ;;  %6881 = vmatpush1.bf16.msra.mxu1 %v13503_v60  ;;  %v13613_v59 = vcombine.low %v563_v42, %v571_v44  ;;  %v13615_v60 = vcombine.low %v564_v47, %v572_v48  ;;  %v675_v42 = vld [vmem:[#allocation4 + $0x1110] sm:$0xff]  ;;  %v676_v47 = vld [vmem:[#allocation4 + $0x1118] sm:$0xff] }
 0x1c2   :  { %6710 = vmatprep.subr.bf16.mxu0 %v13518_v61  ;;  %6882 = vmatprep.subr.bf16.mxu1 %v13520_v62  ;;  %v13630_v61 = vcombine.high %v579_v52, %v587_v55  ;;  %v13632_v62 = vcombine.high %v580_v56, %v588_v57  ;;  %v683_v44 = vld [vmem:[#allocation4 + $0x1150] sm:$0xff]  ;;  %v684_v48 = vld [vmem:[#allocation4 + $0x1158] sm:$0xff] }
 0x1c5   :  { %6711 = vmatpush1.bf16.msra.mxu0 %v13517_v4  ;;  %6883 = vmatpush1.bf16.msra.mxu1 %v13519_v5  ;;  %v13629_v4 = vcombine.low %v579_v52, %v587_v55  ;;  %v13631_v5 = vcombine.low %v580_v56, %v588_v57  ;;  %v691_v52 = vld [vmem:[#allocation4 + $0x1190] sm:$0xff]  ;;  %v692_v56 = vld [vmem:[#allocation4 + $0x1198] sm:$0xff] }
 0x1c6   :  { %6712 = vmatprep.subr.bf16.mxu0 %v13534_v6  ;;  %6884 = vmatprep.subr.bf16.mxu1 %v13536_v7  ;;  %v13646_v6 = vcombine.high %v595_v63, %v603_v0  ;;  %v13648_v7 = vcombine.high %v596_v2, %v604_v3  ;;  %v699_v55 = vld [vmem:[#allocation4 + $0x11d0] sm:$0xff]  ;;  %v700_v57 = vld [vmem:[#allocation4 + $0x11d8] sm:$0xff] }
 0x1c9   :  { %6713 = vmatpush1.bf16.msra.mxu0 %v13533_v45  ;;  %6885 = vmatpush1.bf16.msra.mxu1 %v13535_v46  ;;  %v13645_v45 = vcombine.low %v595_v63, %v603_v0  ;;  %v13647_v46 = vcombine.low %v596_v2, %v604_v3  ;;  %v707_v63 = vld [vmem:[#allocation4 + $0x1210] sm:$0xff]  ;;  %v708_v2 = vld [vmem:[#allocation4 + $0x1218] sm:$0xff] }
 0x1ca   :  { %6714 = vmatprep.subr.bf16.mxu0 %v13550_v12  ;;  %6886 = vmatprep.subr.bf16.mxu1 %v13552_v13  ;;  %v13662_v12 = vcombine.high %v611_v8, %v619_v9  ;;  %v13664_v13 = vcombine.high %v612_v10, %v620_v11  ;;  %v715_v0 = vld [vmem:[#allocation4 + $0x1250] sm:$0xff]  ;;  %v716_v3 = vld [vmem:[#allocation4 + $0x1258] sm:$0xff] }
 0x1cd   :  { %6715 = vmatpush1.bf16.msra.mxu0 %v13549_v21  ;;  %6887 = vmatpush1.bf16.msra.mxu1 %v13551_v53  ;;  %v13661_v21 = vcombine.low %v611_v8, %v619_v9  ;;  %v13663_v53 = vcombine.low %v612_v10, %v620_v11  ;;  %v723_v8 = vld [vmem:[#allocation4 + $0x1290] sm:$0xff]  ;;  %v724_v10 = vld [vmem:[#allocation4 + $0x1298] sm:$0xff] }
 0x1ce   :  { %6716 = vmatprep.subr.bf16.mxu0 %v13566_v54  ;;  %6888 = vmatprep.subr.bf16.mxu1 %v13568_v22  ;;  %v13678_v54 = vcombine.high %v627_v14, %v635_v16  ;;  %v13680_v22 = vcombine.high %v628_v19, %v636_v20  ;;  %v731_v9 = vld [vmem:[#allocation4 + $0x12d0] sm:$0xff]  ;;  %v732_v11 = vld [vmem:[#allocation4 + $0x12d8] sm:$0xff] }
 0x1d1   :  { %6717 = vmatpush1.bf16.msra.mxu0 %v13565_v31  ;;  %6889 = vmatpush1.bf16.msra.mxu1 %v13567_v32  ;;  %v13677_v31 = vcombine.low %v627_v14, %v635_v16  ;;  %v13679_v32 = vcombine.low %v628_v19, %v636_v20  ;;  %v739_v14 = vld [vmem:[#allocation4 + $0x1310] sm:$0xff]  ;;  %v740_v19 = vld [vmem:[#allocation4 + $0x1318] sm:$0xff] }
 0x1d2   :  { %6718 = vmatprep.subr.bf16.mxu0 %v13582_v33  ;;  %6890 = vmatprep.subr.bf16.mxu1 %v13584_v17  ;;  %v13694_v33 = vcombine.high %v643_v23, %v651_v25  ;;  %v13696_v17 = vcombine.high %v644_v26, %v652_v28  ;;  %v747_v16 = vld [vmem:[#allocation4 + $0x1350] sm:$0xff]  ;;  %v748_v20 = vld [vmem:[#allocation4 + $0x1358] sm:$0xff] }
 0x1d5   :  { %6719 = vmatpush1.bf16.msra.mxu0 %v13581_v38  ;;  %6891 = vmatpush1.bf16.msra.mxu1 %v13583_v39  ;;  %v13693_v38 = vcombine.low %v643_v23, %v651_v25  ;;  %v13695_v39 = vcombine.low %v644_v26, %v652_v28  ;;  %v755_v23 = vld [vmem:[#allocation4 + $0x1390] sm:$0xff]  ;;  %v756_v26 = vld [vmem:[#allocation4 + $0x1398] sm:$0xff] }
 0x1d6   :  { %6720 = vmatprep.subr.bf16.mxu0 %v13598_v40  ;;  %6892 = vmatprep.subr.bf16.mxu1 %v13600_v41  ;;  %v13710_v40 = vcombine.high %v659_v18, %v667_v34  ;;  %v13712_v41 = vcombine.high %v660_v36, %v668_v37  ;;  %v763_v25 = vld [vmem:[#allocation4 + $0x13d0] sm:$0xff]  ;;  %v764_v28 = vld [vmem:[#allocation4 + $0x13d8] sm:$0xff] }
 0x1d9   :  { %6721 = vmatpush1.bf16.msra.mxu0 %v13597_v49  ;;  %6893 = vmatpush1.bf16.msra.mxu1 %v13599_v29  ;;  %v13709_v49 = vcombine.low %v659_v18, %v667_v34  ;;  %v13711_v29 = vcombine.low %v660_v36, %v668_v37  ;;  %v771_v18 = vld [vmem:[#allocation4 + $0x1410] sm:$0xff]  ;;  %v772_v36 = vld [vmem:[#allocation4 + $0x1418] sm:$0xff] }
 0x1da   :  { %6722 = vmatprep.subr.bf16.mxu0 %v13614_v30  ;;  %6894 = vmatprep.subr.bf16.mxu1 %v13616_v50  ;;  %v13726_v30 = vcombine.high %v675_v42, %v683_v44  ;;  %v13728_v50 = vcombine.high %v676_v47, %v684_v48  ;;  %v779_v34 = vld [vmem:[#allocation4 + $0x1450] sm:$0xff]  ;;  %v780_v37 = vld [vmem:[#allocation4 + $0x1458] sm:$0xff] }
 0x1dd   :  { %6723 = vmatpush1.bf16.msra.mxu0 %v13613_v59  ;;  %6895 = vmatpush1.bf16.msra.mxu1 %v13615_v60  ;;  %v13725_v59 = vcombine.low %v675_v42, %v683_v44  ;;  %v13727_v60 = vcombine.low %v676_v47, %v684_v48  ;;  %v787_v42 = vld [vmem:[#allocation4 + $0x1490] sm:$0xff]  ;;  %v788_v47 = vld [vmem:[#allocation4 + $0x1498] sm:$0xff] }
 0x1de   :  { %6724 = vmatprep.subr.bf16.mxu0 %v13630_v61  ;;  %6896 = vmatprep.subr.bf16.mxu1 %v13632_v62  ;;  %v13742_v61 = vcombine.high %v691_v52, %v699_v55  ;;  %v13744_v62 = vcombine.high %v692_v56, %v700_v57  ;;  %v795_v44 = vld [vmem:[#allocation4 + $0x14d0] sm:$0xff]  ;;  %v796_v48 = vld [vmem:[#allocation4 + $0x14d8] sm:$0xff] }
 0x1e1   :  { %6725 = vmatpush1.bf16.msra.mxu0 %v13629_v4  ;;  %6897 = vmatpush1.bf16.msra.mxu1 %v13631_v5  ;;  %v13741_v4 = vcombine.low %v691_v52, %v699_v55  ;;  %v13743_v5 = vcombine.low %v692_v56, %v700_v57  ;;  %v803_v52 = vld [vmem:[#allocation4 + $0x1510] sm:$0xff]  ;;  %v804_v56 = vld [vmem:[#allocation4 + $0x1518] sm:$0xff] }
 0x1e2   :  { %6726 = vmatprep.subr.bf16.mxu0 %v13646_v6  ;;  %6898 = vmatprep.subr.bf16.mxu1 %v13648_v7  ;;  %v13758_v6 = vcombine.high %v707_v63, %v715_v0  ;;  %v13760_v7 = vcombine.high %v708_v2, %v716_v3  ;;  %v811_v55 = vld [vmem:[#allocation4 + $0x1550] sm:$0xff]  ;;  %v812_v57 = vld [vmem:[#allocation4 + $0x1558] sm:$0xff] }
 0x1e5   :  { %6727 = vmatpush1.bf16.msra.mxu0 %v13645_v45  ;;  %6899 = vmatpush1.bf16.msra.mxu1 %v13647_v46  ;;  %v13757_v45 = vcombine.low %v707_v63, %v715_v0  ;;  %v13759_v46 = vcombine.low %v708_v2, %v716_v3  ;;  %v819_v63 = vld [vmem:[#allocation4 + $0x1590] sm:$0xff]  ;;  %v820_v2 = vld [vmem:[#allocation4 + $0x1598] sm:$0xff] }
 0x1e6   :  { %6728 = vmatprep.subr.bf16.mxu0 %v13662_v12  ;;  %6900 = vmatprep.subr.bf16.mxu1 %v13664_v13  ;;  %v13774_v12 = vcombine.high %v723_v8, %v731_v9  ;;  %v13776_v13 = vcombine.high %v724_v10, %v732_v11  ;;  %v827_v0 = vld [vmem:[#allocation4 + $0x15d0] sm:$0xff]  ;;  %v828_v3 = vld [vmem:[#allocation4 + $0x15d8] sm:$0xff] }
 0x1e9   :  { %6729 = vmatpush1.bf16.msra.mxu0 %v13661_v21  ;;  %6901 = vmatpush1.bf16.msra.mxu1 %v13663_v53  ;;  %v13773_v21 = vcombine.low %v723_v8, %v731_v9  ;;  %v13775_v53 = vcombine.low %v724_v10, %v732_v11  ;;  %v835_v8 = vld [vmem:[#allocation4 + $0x1610] sm:$0xff]  ;;  %v836_v10 = vld [vmem:[#allocation4 + $0x1618] sm:$0xff] }
 0x1ea   :  { %6730 = vmatprep.subr.bf16.mxu0 %v13678_v54  ;;  %6902 = vmatprep.subr.bf16.mxu1 %v13680_v22  ;;  %v13790_v54 = vcombine.high %v739_v14, %v747_v16  ;;  %v13792_v22 = vcombine.high %v740_v19, %v748_v20  ;;  %v843_v9 = vld [vmem:[#allocation4 + $0x1650] sm:$0xff]  ;;  %v844_v11 = vld [vmem:[#allocation4 + $0x1658] sm:$0xff] }
 0x1ed   :  { %6731 = vmatpush1.bf16.msra.mxu0 %v13677_v31  ;;  %6903 = vmatpush1.bf16.msra.mxu1 %v13679_v32  ;;  %v13789_v31 = vcombine.low %v739_v14, %v747_v16  ;;  %v13791_v32 = vcombine.low %v740_v19, %v748_v20  ;;  %v851_v14 = vld [vmem:[#allocation4 + $0x1690] sm:$0xff]  ;;  %v852_v19 = vld [vmem:[#allocation4 + $0x1698] sm:$0xff] }
 0x1ee   :  { %6743 = vmatprep.subr.bf16.mxu0 %v13694_v33  ;;  %6915 = vmatprep.subr.bf16.mxu1 %v13696_v17  ;;  %v13806_v33 = vcombine.high %v755_v23, %v763_v25  ;;  %v13808_v17 = vcombine.high %v756_v26, %v764_v28  ;;  %v859_v16 = vld [vmem:[#allocation4 + $0x16d0] sm:$0xff]  ;;  %v860_v20 = vld [vmem:[#allocation4 + $0x16d8] sm:$0xff] }
 0x1f0   :  { %6733 = vmatmul.mubr.bf16.vlgmr.msra.gmra.mrb[4].mxu0 %v15427_v27  ;;  %6905 = vmatmul.mubr.bf16.vlgmr.msra.gmra.mrb[4].mxu1 %v15427_v27 }
 0x1f1   :  { %6744 = vmatpush1.bf16.msra.mxu0 %v13693_v38  ;;  %6916 = vmatpush1.bf16.msra.mxu1 %v13695_v39  ;;  %v13805_v38 = vcombine.low %v755_v23, %v763_v25  ;;  %v13807_v39 = vcombine.low %v756_v26, %v764_v28  ;;  %v867_v23 = vld [vmem:[#allocation4 + $0x1710] sm:$0xff]  ;;  %v868_v26 = vld [vmem:[#allocation4 + $0x1718] sm:$0xff] }
 0x1f2   :  { %6745 = vmatprep.subr.bf16.mxu0 %v13710_v40  ;;  %6917 = vmatprep.subr.bf16.mxu1 %v13712_v41  ;;  %v13822_v40 = vcombine.high %v771_v18, %v779_v34  ;;  %v13824_v41 = vcombine.high %v772_v36, %v780_v37  ;;  %v875_v25 = vld [vmem:[#allocation4 + $0x1750] sm:$0xff]  ;;  %v876_v28 = vld [vmem:[#allocation4 + $0x1758] sm:$0xff] }
 0x1f3   :  { %6775 = vmatprep.mubr.bf16.mxu0 %v15441_v35  ;;  %6947 = vmatprep.mubr.bf16.mxu1 %v15441_v35 }
 0x1f5   :  { %6746 = vmatpush1.bf16.msra.mxu0 %v13709_v49  ;;  %6918 = vmatpush1.bf16.msra.mxu1 %v13711_v29  ;;  %v13821_v49 = vcombine.low %v771_v18, %v779_v34  ;;  %v13823_v29 = vcombine.low %v772_v36, %v780_v37  ;;  %v883_v18 = vld [vmem:[#allocation4 + $0x1790] sm:$0xff]  ;;  %v884_v36 = vld [vmem:[#allocation4 + $0x1798] sm:$0xff] }
 0x1f6   :  { %6747 = vmatprep.subr.bf16.mxu0 %v13726_v30  ;;  %6919 = vmatprep.subr.bf16.mxu1 %v13728_v50  ;;  %v13838_v30 = vcombine.high %v787_v42, %v795_v44  ;;  %v13840_v50 = vcombine.high %v788_v47, %v796_v48  ;;  %v891_v34 = vld [vmem:[#allocation4 + $0x17d0] sm:$0xff]  ;;  %v892_v37 = vld [vmem:[#allocation4 + $0x17d8] sm:$0xff] }
 0x1f9   :  { %6748 = vmatpush1.bf16.msra.mxu0 %v13725_v59  ;;  %6920 = vmatpush1.bf16.msra.mxu1 %v13727_v60  ;;  %v13837_v59 = vcombine.low %v787_v42, %v795_v44  ;;  %v13839_v60 = vcombine.low %v788_v47, %v796_v48  ;;  %v899_v42 = vld [vmem:[#allocation4 + $0x1810] sm:$0xff]  ;;  %v900_v47 = vld [vmem:[#allocation4 + $0x1818] sm:$0xff] }
 0x1fa   :  { %6749 = vmatprep.subr.bf16.mxu0 %v13742_v61  ;;  %6921 = vmatprep.subr.bf16.mxu1 %v13744_v62  ;;  %v13854_v61 = vcombine.high %v803_v52, %v811_v55  ;;  %v13856_v62 = vcombine.high %v804_v56, %v812_v57  ;;  %v907_v44 = vld [vmem:[#allocation4 + $0x1850] sm:$0xff]  ;;  %v908_v48 = vld [vmem:[#allocation4 + $0x1858] sm:$0xff] }
 0x1fd   :  { %6750 = vmatpush1.bf16.msra.mxu0 %v13741_v4  ;;  %6922 = vmatpush1.bf16.msra.mxu1 %v13743_v5  ;;  %v13853_v4 = vcombine.low %v803_v52, %v811_v55  ;;  %v13855_v5 = vcombine.low %v804_v56, %v812_v57  ;;  %v915_v52 = vld [vmem:[#allocation4 + $0x1890] sm:$0xff]  ;;  %v916_v56 = vld [vmem:[#allocation4 + $0x1898] sm:$0xff] }
 0x1fe   :  { %6751 = vmatprep.subr.bf16.mxu0 %v13758_v6  ;;  %6923 = vmatprep.subr.bf16.mxu1 %v13760_v7  ;;  %v13870_v6 = vcombine.high %v819_v63, %v827_v0  ;;  %v13872_v7 = vcombine.high %v820_v2, %v828_v3  ;;  %v923_v55 = vld [vmem:[#allocation4 + $0x18d0] sm:$0xff]  ;;  %v924_v57 = vld [vmem:[#allocation4 + $0x18d8] sm:$0xff] }
 0x201   :  { %6752 = vmatpush1.bf16.msra.mxu0 %v13757_v45  ;;  %6924 = vmatpush1.bf16.msra.mxu1 %v13759_v46  ;;  %v13869_v45 = vcombine.low %v819_v63, %v827_v0  ;;  %v13871_v46 = vcombine.low %v820_v2, %v828_v3  ;;  %v931_v63 = vld [vmem:[#allocation4 + $0x1910] sm:$0xff]  ;;  %v932_v2 = vld [vmem:[#allocation4 + $0x1918] sm:$0xff] }
 0x202   :  { %6753 = vmatprep.subr.bf16.mxu0 %v13774_v12  ;;  %6925 = vmatprep.subr.bf16.mxu1 %v13776_v13  ;;  %v13886_v12 = vcombine.high %v835_v8, %v843_v9  ;;  %v13888_v13 = vcombine.high %v836_v10, %v844_v11  ;;  %v939_v0 = vld [vmem:[#allocation4 + $0x1950] sm:$0xff]  ;;  %v940_v3 = vld [vmem:[#allocation4 + $0x1958] sm:$0xff] }
 0x205   :  { %6754 = vmatpush1.bf16.msra.mxu0 %v13773_v21  ;;  %6926 = vmatpush1.bf16.msra.mxu1 %v13775_v53  ;;  %v13885_v21 = vcombine.low %v835_v8, %v843_v9  ;;  %v13887_v53 = vcombine.low %v836_v10, %v844_v11  ;;  %v947_v8 = vld [vmem:[#allocation4 + $0x1990] sm:$0xff]  ;;  %v948_v10 = vld [vmem:[#allocation4 + $0x1998] sm:$0xff] }
 0x206   :  { %6755 = vmatprep.subr.bf16.mxu0 %v13790_v54  ;;  %6927 = vmatprep.subr.bf16.mxu1 %v13792_v22  ;;  %v13902_v54 = vcombine.high %v851_v14, %v859_v16  ;;  %v13904_v22 = vcombine.high %v852_v19, %v860_v20  ;;  %v955_v9 = vld [vmem:[#allocation4 + $0x19d0] sm:$0xff]  ;;  %v956_v11 = vld [vmem:[#allocation4 + $0x19d8] sm:$0xff] }
 0x209   :  { %6756 = vmatpush1.bf16.msra.mxu0 %v13789_v31  ;;  %6928 = vmatpush1.bf16.msra.mxu1 %v13791_v32  ;;  %v13901_v31 = vcombine.low %v851_v14, %v859_v16  ;;  %v13903_v32 = vcombine.low %v852_v19, %v860_v20  ;;  %v963_v14 = vld [vmem:[#allocation4 + $0x1a10] sm:$0xff]  ;;  %v964_v19 = vld [vmem:[#allocation4 + $0x1a18] sm:$0xff] }
 0x20a   :  { %6757 = vmatprep.subr.bf16.mxu0 %v13806_v33  ;;  %6929 = vmatprep.subr.bf16.mxu1 %v13808_v17  ;;  %v13918_v33 = vcombine.high %v867_v23, %v875_v25  ;;  %v13920_v17 = vcombine.high %v868_v26, %v876_v28  ;;  %v971_v16 = vld [vmem:[#allocation4 + $0x1a50] sm:$0xff]  ;;  %v972_v20 = vld [vmem:[#allocation4 + $0x1a58] sm:$0xff] }
 0x20d   :  { %6758 = vmatpush1.bf16.msra.mxu0 %v13805_v38  ;;  %6930 = vmatpush1.bf16.msra.mxu1 %v13807_v39  ;;  %v13917_v38 = vcombine.low %v867_v23, %v875_v25  ;;  %v13919_v39 = vcombine.low %v868_v26, %v876_v28  ;;  %v979_v23 = vld [vmem:[#allocation4 + $0x1a90] sm:$0xff]  ;;  %v980_v26 = vld [vmem:[#allocation4 + $0x1a98] sm:$0xff] }
 0x20e   :  { %6759 = vmatprep.subr.bf16.mxu0 %v13822_v40  ;;  %6931 = vmatprep.subr.bf16.mxu1 %v13824_v41  ;;  %v13934_v40 = vcombine.high %v883_v18, %v891_v34  ;;  %v13936_v41 = vcombine.high %v884_v36, %v892_v37  ;;  %v987_v25 = vld [vmem:[#allocation4 + $0x1ad0] sm:$0xff]  ;;  %v988_v28 = vld [vmem:[#allocation4 + $0x1ad8] sm:$0xff] }
 0x211   :  { %6760 = vmatpush1.bf16.msra.mxu0 %v13821_v49  ;;  %6932 = vmatpush1.bf16.msra.mxu1 %v13823_v29  ;;  %v13933_v49 = vcombine.low %v883_v18, %v891_v34  ;;  %v13935_v29 = vcombine.low %v884_v36, %v892_v37  ;;  %v995_v18 = vld [vmem:[#allocation4 + $0x1b10] sm:$0xff]  ;;  %v996_v36 = vld [vmem:[#allocation4 + $0x1b18] sm:$0xff] }
 0x212   :  { %6761 = vmatprep.subr.bf16.mxu0 %v13838_v30  ;;  %6933 = vmatprep.subr.bf16.mxu1 %v13840_v50  ;;  %v13950_v30 = vcombine.high %v899_v42, %v907_v44  ;;  %v13952_v50 = vcombine.high %v900_v47, %v908_v48  ;;  %v1003_v34 = vld [vmem:[#allocation4 + $0x1b50] sm:$0xff]  ;;  %v1004_v37 = vld [vmem:[#allocation4 + $0x1b58] sm:$0xff] }
 0x215   :  { %6762 = vmatpush1.bf16.msra.mxu0 %v13837_v59  ;;  %6934 = vmatpush1.bf16.msra.mxu1 %v13839_v60  ;;  %v13949_v59 = vcombine.low %v899_v42, %v907_v44  ;;  %v13951_v60 = vcombine.low %v900_v47, %v908_v48  ;;  %v14048_v42 = vcombine.high %v996_v36, %v1004_v37  ;;  %v1011_v44 = vld [vmem:[#allocation4 + $0x1b90] sm:$0xff] }
 0x216   :  { %6763 = vmatprep.subr.bf16.mxu0 %v13854_v61  ;;  %6935 = vmatprep.subr.bf16.mxu1 %v13856_v62  ;;  %v13966_v61 = vcombine.high %v915_v52, %v923_v55  ;;  %v13968_v62 = vcombine.high %v916_v56, %v924_v57  ;;  %v1019_v47 = vld [vmem:[#allocation4 + $0x1bd0] sm:$0xff] }
 0x219   :  { %6764 = vmatpush1.bf16.msra.mxu0 %v13853_v4  ;;  %6936 = vmatpush1.bf16.msra.mxu1 %v13855_v5  ;;  %v13965_v4 = vcombine.low %v915_v52, %v923_v55  ;;  %v13967_v5 = vcombine.low %v916_v56, %v924_v57  ;;  %v14045_v55 = vcombine.low %v995_v18, %v1003_v34 }
 0x21a   :  { %6765 = vmatprep.subr.bf16.mxu0 %v13870_v6  ;;  %6937 = vmatprep.subr.bf16.mxu1 %v13872_v7  ;;  %v13982_v6 = vcombine.high %v931_v63, %v939_v0  ;;  %v13984_v7 = vcombine.high %v932_v2, %v940_v3 }
 0x21d   :  { %6766 = vmatpush1.bf16.msra.mxu0 %v13869_v45  ;;  %6938 = vmatpush1.bf16.msra.mxu1 %v13871_v46  ;;  %v13981_v45 = vcombine.low %v931_v63, %v939_v0  ;;  %v13983_v46 = vcombine.low %v932_v2, %v940_v3  ;;  %v1027_v63 = vld [vmem:[#allocation4 + $0x1c10] sm:$0xff]  ;;  %v1028_v2 = vld [vmem:[#allocation4 + $0x1c18] sm:$0xff] }
 0x21e   :  { %6767 = vmatprep.subr.bf16.mxu0 %v13886_v12  ;;  %6939 = vmatprep.subr.bf16.mxu1 %v13888_v13  ;;  %v13998_v12 = vcombine.high %v947_v8, %v955_v9  ;;  %v14000_v13 = vcombine.high %v948_v10, %v956_v11  ;;  %v1035_v0 = vld [vmem:[#allocation4 + $0x1c50] sm:$0xff]  ;;  %v1036_v3 = vld [vmem:[#allocation4 + $0x1c58] sm:$0xff] }
 0x221   :  { %6768 = vmatpush1.bf16.msra.mxu0 %v13885_v21  ;;  %6940 = vmatpush1.bf16.msra.mxu1 %v13887_v53  ;;  %v13997_v21 = vcombine.low %v947_v8, %v955_v9  ;;  %v13999_v53 = vcombine.low %v948_v10, %v956_v11  ;;  %v1043_v8 = vld [vmem:[#allocation4 + $0x1c90] sm:$0xff]  ;;  %v1044_v10 = vld [vmem:[#allocation4 + $0x1c98] sm:$0xff] }
 0x222   :  { %6769 = vmatprep.subr.bf16.mxu0 %v13902_v54  ;;  %6941 = vmatprep.subr.bf16.mxu1 %v13904_v22  ;;  %v14014_v54 = vcombine.high %v963_v14, %v971_v16  ;;  %v14016_v22 = vcombine.high %v964_v19, %v972_v20  ;;  %v1051_v9 = vld [vmem:[#allocation4 + $0x1cd0] sm:$0xff]  ;;  %v1052_v11 = vld [vmem:[#allocation4 + $0x1cd8] sm:$0xff] }
 0x225   :  { %6770 = vmatpush1.bf16.msra.mxu0 %v13901_v31  ;;  %6942 = vmatpush1.bf16.msra.mxu1 %v13903_v32  ;;  %v14013_v31 = vcombine.low %v963_v14, %v971_v16  ;;  %v14015_v32 = vcombine.low %v964_v19, %v972_v20  ;;  %v1059_v14 = vld [vmem:[#allocation4 + $0x1d10] sm:$0xff]  ;;  %v1060_v19 = vld [vmem:[#allocation4 + $0x1d18] sm:$0xff] }
 0x226   :  { %6771 = vmatprep.subr.bf16.mxu0 %v13918_v33  ;;  %6943 = vmatprep.subr.bf16.mxu1 %v13920_v17  ;;  %v14030_v33 = vcombine.high %v979_v23, %v987_v25  ;;  %v14032_v17 = vcombine.high %v980_v26, %v988_v28  ;;  %v1067_v16 = vld [vmem:[#allocation4 + $0x1d50] sm:$0xff]  ;;  %v1068_v20 = vld [vmem:[#allocation4 + $0x1d58] sm:$0xff] }
 0x229   :  { %6772 = vmatpush1.bf16.msra.mxu0 %v13917_v38  ;;  %6944 = vmatpush1.bf16.msra.mxu1 %v13919_v39  ;;  %v14029_v38 = vcombine.low %v979_v23, %v987_v25  ;;  %v14031_v39 = vcombine.low %v980_v26, %v988_v28  ;;  %v1075_v23 = vld [vmem:[#allocation4 + $0x1d90] sm:$0xff]  ;;  %v1076_v26 = vld [vmem:[#allocation4 + $0x1d98] sm:$0xff] }
 0x22a   :  { %6773 = vmatprep.subr.bf16.mxu0 %v13934_v40  ;;  %6945 = vmatprep.subr.bf16.mxu1 %v13936_v41  ;;  %v14046_v40 = vcombine.high %v995_v18, %v1003_v34  ;;  %v1083_v25 = vld [vmem:[#allocation4 + $0x1dd0] sm:$0xff]  ;;  %v1084_v28 = vld [vmem:[#allocation4 + $0x1dd8] sm:$0xff] }
 0x22b   :  { %v1091_v18 = vld [vmem:[#allocation4 + $0x1e10] sm:$0xff] }
 0x22c   :  { %v1099_v34 = vld [vmem:[#allocation4 + $0x1e50] sm:$0xff] }
 0x22d   :  { %6774 = vmatpush1.bf16.msra.mxu0 %v13933_v49  ;;  %6946 = vmatpush1.bf16.msra.mxu1 %v13935_v29  ;;  %v1012_v29 = vld [vmem:[#allocation4 + $0x1b98] sm:$0xff] }
 0x22e   :  { %6786 = vmatprep.subr.bf16.mxu0 %v13950_v30  ;;  %6958 = vmatprep.subr.bf16.mxu1 %v13952_v50  ;;  %v1020_v30 = vld [vmem:[#allocation4 + $0x1bd8] sm:$0xff] }
 0x230   :  { %6776 = vmatmul.mubr.bf16.vlgmr.msra.gmra.mrb[4].mxu0 %v15449_v43  ;;  %6948 = vmatmul.mubr.bf16.vlgmr.msra.gmra.mrb[4].mxu1 %v15449_v43 }
 0x231   :  { %6787 = vmatpush1.bf16.msra.mxu0 %v13949_v59  ;;  %6959 = vmatpush1.bf16.msra.mxu1 %v13951_v60  ;;  %v14047_v59 = vcombine.low %v996_v36, %v1004_v37  ;;  %v14062_v60 = vcombine.high %v1011_v44, %v1019_v47  ;;  %v1092_v36 = vld [vmem:[#allocation4 + $0x1e18] sm:$0xff] }
 0x232   :  { %6788 = vmatprep.subr.bf16.mxu0 %v13966_v61  ;;  %6960 = vmatprep.subr.bf16.mxu1 %v13968_v62  ;;  %v14064_v62 = vcombine.high %v1012_v29, %v1020_v30  ;;  %v1100_v37 = vld [vmem:[#allocation4 + $0x1e58] sm:$0xff] }
 0x233   :  { %6818 = vmatprep.mubr.bf16.mxu0 %v15463_v51  ;;  %6990 = vmatprep.mubr.bf16.mxu1 %v15463_v51 }
 0x235   :  { %6789 = vmatpush1.bf16.msra.mxu0 %v13965_v4  ;;  %6961 = vmatpush1.bf16.msra.mxu1 %v13967_v5  ;;  %v14061_v4 = vcombine.low %v1011_v44, %v1019_v47  ;;  %v14063_v5 = vcombine.low %v1012_v29, %v1020_v30  ;;  %v1107_v44 = vld [vmem:[#allocation4 + $0x1e90] sm:$0xff]  ;;  %v1108_v29 = vld [vmem:[#allocation4 + $0x1e98] sm:$0xff] }
 0x236   :  { %6790 = vmatprep.subr.bf16.mxu0 %v13982_v6  ;;  %6962 = vmatprep.subr.bf16.mxu1 %v13984_v7  ;;  %v14078_v6 = vcombine.high %v1027_v63, %v1035_v0  ;;  %v14080_v7 = vcombine.high %v1028_v2, %v1036_v3  ;;  %v1115_v47 = vld [vmem:[#allocation4 + $0x1ed0] sm:$0xff]  ;;  %v1116_v30 = vld [vmem:[#allocation4 + $0x1ed8] sm:$0xff] }
 0x239   :  { %6791 = vmatpush1.bf16.msra.mxu0 %v13981_v45  ;;  %6963 = vmatpush1.bf16.msra.mxu1 %v13983_v46  ;;  %v14077_v45 = vcombine.low %v1027_v63, %v1035_v0  ;;  %v14079_v46 = vcombine.low %v1028_v2, %v1036_v3  ;;  %v1123_v63 = vld [vmem:[#allocation4 + $0x1f10] sm:$0xff]  ;;  %v1124_v2 = vld [vmem:[#allocation4 + $0x1f18] sm:$0xff] }
 0x23a   :  { %6792 = vmatprep.subr.bf16.mxu0 %v13998_v12  ;;  %6964 = vmatprep.subr.bf16.mxu1 %v14000_v13  ;;  %v14094_v12 = vcombine.high %v1043_v8, %v1051_v9  ;;  %v14096_v13 = vcombine.high %v1044_v10, %v1052_v11  ;;  %v1131_v0 = vld [vmem:[#allocation4 + $0x1f50] sm:$0xff]  ;;  %v1132_v3 = vld [vmem:[#allocation4 + $0x1f58] sm:$0xff] }
 0x23d   :  { %6793 = vmatpush1.bf16.msra.mxu0 %v13997_v21  ;;  %6965 = vmatpush1.bf16.msra.mxu1 %v13999_v53  ;;  %v14093_v21 = vcombine.low %v1043_v8, %v1051_v9  ;;  %v14095_v53 = vcombine.low %v1044_v10, %v1052_v11  ;;  %v1139_v8 = vld [vmem:[#allocation4 + $0x1f90] sm:$0xff]  ;;  %v1140_v10 = vld [vmem:[#allocation4 + $0x1f98] sm:$0xff] }
 0x23e   :  { %6794 = vmatprep.subr.bf16.mxu0 %v14014_v54  ;;  %6966 = vmatprep.subr.bf16.mxu1 %v14016_v22  ;;  %v14110_v54 = vcombine.high %v1059_v14, %v1067_v16  ;;  %v14112_v22 = vcombine.high %v1060_v19, %v1068_v20  ;;  %v1147_v9 = vld [vmem:[#allocation4 + $0x1fd0] sm:$0xff]  ;;  %v1148_v11 = vld [vmem:[#allocation4 + $0x1fd8] sm:$0xff] }
 0x241   :  { %6795 = vmatpush1.bf16.msra.mxu0 %v14013_v31  ;;  %6967 = vmatpush1.bf16.msra.mxu1 %v14015_v32  ;;  %v14109_v31 = vcombine.low %v1059_v14, %v1067_v16  ;;  %v14111_v32 = vcombine.low %v1060_v19, %v1068_v20  ;;  %v133_v14 = vld [vmem:[#allocation4 + $0x20] sm:$0xff]  ;;  %v134_v19 = vld [vmem:[#allocation4 + $0x28] sm:$0xff] }
 0x242   :  { %6796 = vmatprep.subr.bf16.mxu0 %v14030_v33  ;;  %6968 = vmatprep.subr.bf16.mxu1 %v14032_v17  ;;  %v14126_v33 = vcombine.high %v1075_v23, %v1083_v25  ;;  %v14128_v17 = vcombine.high %v1076_v26, %v1084_v28  ;;  %v141_v16 = vld [vmem:[#allocation4 + $0x60] sm:$0xff]  ;;  %v142_v20 = vld [vmem:[#allocation4 + $0x68] sm:$0xff] }
 0x243   :  { %v15489_v41 = vpop.f32.mrb[0].mxu0  ;;  %v15491_v48 = vpop.f32.mrb[0].mxu1 }
 0x244   :  { %v15493_v49 = vpop.f32.mrb[1].mxu0  ;;  %v15495_v50 = vpop.f32.mrb[1].mxu1 }
 0x245   :  { %v15497_v52 = vpop.f32.mrb[2].mxu0  ;;  %6797 = vmatpush1.bf16.msra.mxu0 %v14029_v38  ;;  %v15499_v56 = vpop.f32.mrb[2].mxu1  ;;  %6969 = vmatpush1.bf16.msra.mxu1 %v14031_v39  ;;  %v14125_v38 = vcombine.low %v1075_v23, %v1083_v25  ;;  %v14127_v39 = vcombine.low %v1076_v26, %v1084_v28  ;;  %v149_v23 = vld [vmem:[#allocation4 + $0xa0] sm:$0xff]  ;;  %v150_v26 = vld [vmem:[#allocation4 + $0xa8] sm:$0xff] }
 0x246   :  { %v15501_v57 = vpop.f32.mrb[3].mxu0  ;;  %6798 = vmatprep.subr.bf16.mxu0 %v14046_v40  ;;  %v15503_v61 = vpop.f32.mrb[3].mxu1  ;;  %6970 = vmatprep.subr.bf16.mxu1 %v14048_v42  ;;  %v14142_v40 = vcombine.high %v1091_v18, %v1099_v34  ;;  %v14144_v42 = vcombine.high %v1092_v36, %v1100_v37  ;;  %v157_v25 = vld [vmem:[#allocation4 + $0xe0] sm:$0xff]  ;;  %v158_v28 = vld [vmem:[#allocation4 + $0xe8] sm:$0xff] }
 0x249   :  { %6799 = vmatpush1.bf16.msra.mxu0 %v14045_v55  ;;  %6971 = vmatpush1.bf16.msra.mxu1 %v14047_v59  ;;  %v14141_v55 = vcombine.low %v1091_v18, %v1099_v34  ;;  %v14143_v59 = vcombine.low %v1092_v36, %v1100_v37  ;;  %v165_v18 = vld [vmem:[#allocation4 + $0x120] sm:$0xff]  ;;  %v166_v36 = vld [vmem:[#allocation4 + $0x128] sm:$0xff] }
 0x24a   :  { %6800 = vmatprep.subr.bf16.mxu0 %v14062_v60  ;;  %6972 = vmatprep.subr.bf16.mxu1 %v14064_v62  ;;  %v14158_v60 = vcombine.high %v1107_v44, %v1115_v47  ;;  %v14160_v62 = vcombine.high %v1108_v29, %v1116_v30  ;;  %v173_v34 = vld [vmem:[#allocation4 + $0x160] sm:$0xff]  ;;  %v174_v37 = vld [vmem:[#allocation4 + $0x168] sm:$0xff] }
 0x24d   :  { %6801 = vmatpush1.bf16.msra.mxu0 %v14061_v4  ;;  %6973 = vmatpush1.bf16.msra.mxu1 %v14063_v5  ;;  %v14157_v4 = vcombine.low %v1107_v44, %v1115_v47  ;;  %v14159_v5 = vcombine.low %v1108_v29, %v1116_v30  ;;  %v181_v44 = vld [vmem:[#allocation4 + $0x1a0] sm:$0xff]  ;;  %v182_v29 = vld [vmem:[#allocation4 + $0x1a8] sm:$0xff] }
 0x24e   :  { %6802 = vmatprep.subr.bf16.mxu0 %v14078_v6  ;;  %6974 = vmatprep.subr.bf16.mxu1 %v14080_v7  ;;  %v14174_v6 = vcombine.high %v1123_v63, %v1131_v0  ;;  %v14176_v7 = vcombine.high %v1124_v2, %v1132_v3  ;;  %v189_v47 = vld [vmem:[#allocation4 + $0x1e0] sm:$0xff]  ;;  %v190_v30 = vld [vmem:[#allocation4 + $0x1e8] sm:$0xff] }
 0x251   :  { %6803 = vmatpush1.bf16.msra.mxu0 %v14077_v45  ;;  %6975 = vmatpush1.bf16.msra.mxu1 %v14079_v46  ;;  %v14173_v45 = vcombine.low %v1123_v63, %v1131_v0  ;;  %v14175_v46 = vcombine.low %v1124_v2, %v1132_v3  ;;  %v197_v63 = vld [vmem:[#allocation4 + $0x220] sm:$0xff]  ;;  %v198_v2 = vld [vmem:[#allocation4 + $0x228] sm:$0xff] }
 0x252   :  { %6804 = vmatprep.subr.bf16.mxu0 %v14094_v12  ;;  %6976 = vmatprep.subr.bf16.mxu1 %v14096_v13  ;;  %v14190_v12 = vcombine.high %v1139_v8, %v1147_v9  ;;  %v14192_v13 = vcombine.high %v1140_v10, %v1148_v11  ;;  %v205_v0 = vld [vmem:[#allocation4 + $0x260] sm:$0xff]  ;;  %v206_v3 = vld [vmem:[#allocation4 + $0x268] sm:$0xff] }
 0x255   :  { %6805 = vmatpush1.bf16.msra.mxu0 %v14093_v21  ;;  %6977 = vmatpush1.bf16.msra.mxu1 %v14095_v53  ;;  %v14189_v21 = vcombine.low %v1139_v8, %v1147_v9  ;;  %v14191_v53 = vcombine.low %v1140_v10, %v1148_v11  ;;  %v213_v8 = vld [vmem:[#allocation4 + $0x2a0] sm:$0xff]  ;;  %v214_v10 = vld [vmem:[#allocation4 + $0x2a8] sm:$0xff] }
 0x256   :  { %6806 = vmatprep.subr.bf16.mxu0 %v14110_v54  ;;  %6978 = vmatprep.subr.bf16.mxu1 %v14112_v22  ;;  %v13186_v54 = vcombine.high %v133_v14, %v141_v16  ;;  %v13188_v22 = vcombine.high %v134_v19, %v142_v20  ;;  %v221_v9 = vld [vmem:[#allocation4 + $0x2e0] sm:$0xff]  ;;  %v222_v11 = vld [vmem:[#allocation4 + $0x2e8] sm:$0xff] }
 0x259   :  { %6807 = vmatpush1.bf16.msra.mxu0 %v14109_v31  ;;  %6979 = vmatpush1.bf16.msra.mxu1 %v14111_v32  ;;  %v13185_v31 = vcombine.low %v133_v14, %v141_v16  ;;  %v13187_v32 = vcombine.low %v134_v19, %v142_v20  ;;  %v229_v14 = vld [vmem:[#allocation4 + $0x320] sm:$0xff]  ;;  %v230_v19 = vld [vmem:[#allocation4 + $0x328] sm:$0xff] }
 0x25a   :  { %6808 = vmatprep.subr.bf16.mxu0 %v14126_v33  ;;  %6980 = vmatprep.subr.bf16.mxu1 %v14128_v17  ;;  %v13202_v33 = vcombine.high %v149_v23, %v157_v25  ;;  %v13204_v17 = vcombine.high %v150_v26, %v158_v28  ;;  %v237_v16 = vld [vmem:[#allocation4 + $0x360] sm:$0xff]  ;;  %v238_v20 = vld [vmem:[#allocation4 + $0x368] sm:$0xff] }
 0x25d   :  { %6809 = vmatpush1.bf16.msra.mxu0 %v14125_v38  ;;  %6981 = vmatpush1.bf16.msra.mxu1 %v14127_v39  ;;  %v13201_v38 = vcombine.low %v149_v23, %v157_v25  ;;  %v13203_v39 = vcombine.low %v150_v26, %v158_v28  ;;  %v245_v23 = vld [vmem:[#allocation4 + $0x3a0] sm:$0xff]  ;;  %v246_v26 = vld [vmem:[#allocation4 + $0x3a8] sm:$0xff] }
 0x25e   :  { %6810 = vmatprep.subr.bf16.mxu0 %v14142_v40  ;;  %6982 = vmatprep.subr.bf16.mxu1 %v14144_v42  ;;  %v13218_v40 = vcombine.high %v165_v18, %v173_v34  ;;  %v13220_v42 = vcombine.high %v166_v36, %v174_v37  ;;  %v253_v25 = vld [vmem:[#allocation4 + $0x3e0] sm:$0xff]  ;;  %v254_v28 = vld [vmem:[#allocation4 + $0x3e8] sm:$0xff] }
 0x261   :  { %6811 = vmatpush1.bf16.msra.mxu0 %v14141_v55  ;;  %6983 = vmatpush1.bf16.msra.mxu1 %v14143_v59  ;;  %v13217_v55 = vcombine.low %v165_v18, %v173_v34  ;;  %v13219_v59 = vcombine.low %v166_v36, %v174_v37  ;;  %v261_v18 = vld [vmem:[#allocation4 + $0x420] sm:$0xff]  ;;  %v262_v36 = vld [vmem:[#allocation4 + $0x428] sm:$0xff] }
 0x262   :  { %6812 = vmatprep.subr.bf16.mxu0 %v14158_v60  ;;  %6984 = vmatprep.subr.bf16.mxu1 %v14160_v62  ;;  %v13234_v60 = vcombine.high %v181_v44, %v189_v47  ;;  %v13236_v62 = vcombine.high %v182_v29, %v190_v30  ;;  %v269_v34 = vld [vmem:[#allocation4 + $0x460] sm:$0xff]  ;;  %v270_v37 = vld [vmem:[#allocation4 + $0x468] sm:$0xff] }
 0x265   :  { %6813 = vmatpush1.bf16.msra.mxu0 %v14157_v4  ;;  %6985 = vmatpush1.bf16.msra.mxu1 %v14159_v5  ;;  %v13233_v4 = vcombine.low %v181_v44, %v189_v47  ;;  %v13235_v5 = vcombine.low %v182_v29, %v190_v30  ;;  %v277_v44 = vld [vmem:[#allocation4 + $0x4a0] sm:$0xff]  ;;  %v278_v29 = vld [vmem:[#allocation4 + $0x4a8] sm:$0xff] }
 0x266   :  { %6814 = vmatprep.subr.bf16.mxu0 %v14174_v6  ;;  %6986 = vmatprep.subr.bf16.mxu1 %v14176_v7  ;;  %v13250_v6 = vcombine.high %v197_v63, %v205_v0  ;;  %v13252_v7 = vcombine.high %v198_v2, %v206_v3  ;;  %v285_v47 = vld [vmem:[#allocation4 + $0x4e0] sm:$0xff]  ;;  %v286_v30 = vld [vmem:[#allocation4 + $0x4e8] sm:$0xff] }
 0x269   :  { %6815 = vmatpush1.bf16.msra.mxu0 %v14173_v45  ;;  %6987 = vmatpush1.bf16.msra.mxu1 %v14175_v46  ;;  %v13249_v45 = vcombine.low %v197_v63, %v205_v0  ;;  %v13251_v46 = vcombine.low %v198_v2, %v206_v3  ;;  %v293_v63 = vld [vmem:[#allocation4 + $0x520] sm:$0xff]  ;;  %v294_v2 = vld [vmem:[#allocation4 + $0x528] sm:$0xff] }
 0x26a   :  { %6816 = vmatprep.subr.bf16.mxu0 %v14190_v12  ;;  %6988 = vmatprep.subr.bf16.mxu1 %v14192_v13  ;;  %v13266_v12 = vcombine.high %v213_v8, %v221_v9  ;;  %v13268_v13 = vcombine.high %v214_v10, %v222_v11  ;;  %v301_v0 = vld [vmem:[#allocation4 + $0x560] sm:$0xff]  ;;  %v302_v3 = vld [vmem:[#allocation4 + $0x568] sm:$0xff] }
 0x26d   :  { %6817 = vmatpush1.bf16.msra.mxu0 %v14189_v21  ;;  %6989 = vmatpush1.bf16.msra.mxu1 %v14191_v53  ;;  %v13265_v21 = vcombine.low %v213_v8, %v221_v9  ;;  %v13267_v53 = vcombine.low %v214_v10, %v222_v11  ;;  %v309_v8 = vld [vmem:[#allocation4 + $0x5a0] sm:$0xff]  ;;  %v310_v10 = vld [vmem:[#allocation4 + $0x5a8] sm:$0xff] }
 0x26e   :  { %7001 = vmatprep.subr.bf16.mxu0 %v13186_v54  ;;  %7173 = vmatprep.subr.bf16.mxu1 %v13188_v22  ;;  %v13282_v54 = vcombine.high %v229_v14, %v237_v16  ;;  %v13284_v22 = vcombine.high %v230_v19, %v238_v20  ;;  %v317_v9 = vld [vmem:[#allocation4 + $0x5e0] sm:$0xff]  ;;  %v318_v11 = vld [vmem:[#allocation4 + $0x5e8] sm:$0xff] }
 0x270   :  { %6819 = vmatmul.mubr.bf16.vlgmr.msra.gmra.mrb[4].mxu0 %v15471_v1  ;;  %6991 = vmatmul.mubr.bf16.vlgmr.msra.gmra.mrb[4].mxu1 %v15471_v1 }
 0x271   :  { %7002 = vmatpush1.bf16.msra.mxu0 %v13185_v31  ;;  %7174 = vmatpush1.bf16.msra.mxu1 %v13187_v32  ;;  %v13281_v31 = vcombine.low %v229_v14, %v237_v16  ;;  %v13283_v32 = vcombine.low %v230_v19, %v238_v20  ;;  %v325_v14 = vld [vmem:[#allocation4 + $0x620] sm:$0xff]  ;;  %v326_v19 = vld [vmem:[#allocation4 + $0x628] sm:$0xff] }
 0x272   :  { %7003 = vmatprep.subr.bf16.mxu0 %v13202_v33  ;;  %7175 = vmatprep.subr.bf16.mxu1 %v13204_v17  ;;  %v13298_v33 = vcombine.high %v245_v23, %v253_v25  ;;  %v13300_v17 = vcombine.high %v246_v26, %v254_v28  ;;  %v333_v16 = vld [vmem:[#allocation4 + $0x660] sm:$0xff]  ;;  %v334_v20 = vld [vmem:[#allocation4 + $0x668] sm:$0xff] }
 0x273   :  { %7033 = vmatprep.mubr.bf16.mxu0 %v15399_v58  ;;  %7205 = vmatprep.mubr.bf16.mxu1 %v15399_v58 }
 0x275   :  { %7004 = vmatpush1.bf16.msra.mxu0 %v13201_v38  ;;  %7176 = vmatpush1.bf16.msra.mxu1 %v13203_v39  ;;  %v13297_v38 = vcombine.low %v245_v23, %v253_v25  ;;  %v13299_v39 = vcombine.low %v246_v26, %v254_v28  ;;  %v341_v23 = vld [vmem:[#allocation4 + $0x6a0] sm:$0xff]  ;;  %v342_v26 = vld [vmem:[#allocation4 + $0x6a8] sm:$0xff] }
 0x276   :  { %7005 = vmatprep.subr.bf16.mxu0 %v13218_v40  ;;  %7177 = vmatprep.subr.bf16.mxu1 %v13220_v42  ;;  %v13314_v40 = vcombine.high %v261_v18, %v269_v34  ;;  %v13316_v42 = vcombine.high %v262_v36, %v270_v37  ;;  %v349_v25 = vld [vmem:[#allocation4 + $0x6e0] sm:$0xff]  ;;  %v350_v28 = vld [vmem:[#allocation4 + $0x6e8] sm:$0xff] }
 0x279   :  { %7006 = vmatpush1.bf16.msra.mxu0 %v13217_v55  ;;  %7178 = vmatpush1.bf16.msra.mxu1 %v13219_v59  ;;  %v13313_v55 = vcombine.low %v261_v18, %v269_v34  ;;  %v13315_v59 = vcombine.low %v262_v36, %v270_v37  ;;  %v357_v18 = vld [vmem:[#allocation4 + $0x720] sm:$0xff]  ;;  %v358_v36 = vld [vmem:[#allocation4 + $0x728] sm:$0xff] }
 0x27a   :  { %7007 = vmatprep.subr.bf16.mxu0 %v13234_v60  ;;  %7179 = vmatprep.subr.bf16.mxu1 %v13236_v62  ;;  %v13330_v60 = vcombine.high %v277_v44, %v285_v47  ;;  %v13332_v62 = vcombine.high %v278_v29, %v286_v30  ;;  %v365_v34 = vld [vmem:[#allocation4 + $0x760] sm:$0xff]  ;;  %v366_v37 = vld [vmem:[#allocation4 + $0x768] sm:$0xff] }
 0x27d   :  { %7008 = vmatpush1.bf16.msra.mxu0 %v13233_v4  ;;  %7180 = vmatpush1.bf16.msra.mxu1 %v13235_v5  ;;  %v13329_v4 = vcombine.low %v277_v44, %v285_v47  ;;  %v13331_v5 = vcombine.low %v278_v29, %v286_v30  ;;  %v373_v44 = vld [vmem:[#allocation4 + $0x7a0] sm:$0xff]  ;;  %v374_v29 = vld [vmem:[#allocation4 + $0x7a8] sm:$0xff] }
 0x27e   :  { %7009 = vmatprep.subr.bf16.mxu0 %v13250_v6  ;;  %7181 = vmatprep.subr.bf16.mxu1 %v13252_v7  ;;  %v13346_v6 = vcombine.high %v293_v63, %v301_v0  ;;  %v13348_v7 = vcombine.high %v294_v2, %v302_v3  ;;  %v381_v47 = vld [vmem:[#allocation4 + $0x7e0] sm:$0xff]  ;;  %v382_v30 = vld [vmem:[#allocation4 + $0x7e8] sm:$0xff] }
 0x281   :  { %7010 = vmatpush1.bf16.msra.mxu0 %v13249_v45  ;;  %7182 = vmatpush1.bf16.msra.mxu1 %v13251_v46  ;;  %v13345_v45 = vcombine.low %v293_v63, %v301_v0  ;;  %v13347_v46 = vcombine.low %v294_v2, %v302_v3  ;;  %v389_v63 = vld [vmem:[#allocation4 + $0x820] sm:$0xff]  ;;  %v390_v2 = vld [vmem:[#allocation4 + $0x828] sm:$0xff] }
 0x282   :  { %7011 = vmatprep.subr.bf16.mxu0 %v13266_v12  ;;  %7183 = vmatprep.subr.bf16.mxu1 %v13268_v13  ;;  %v13362_v12 = vcombine.high %v309_v8, %v317_v9  ;;  %v13364_v13 = vcombine.high %v310_v10, %v318_v11  ;;  %v397_v0 = vld [vmem:[#allocation4 + $0x860] sm:$0xff]  ;;  %v398_v3 = vld [vmem:[#allocation4 + $0x868] sm:$0xff] }
 0x285   :  { %7012 = vmatpush1.bf16.msra.mxu0 %v13265_v21  ;;  %7184 = vmatpush1.bf16.msra.mxu1 %v13267_v53  ;;  %v13361_v21 = vcombine.low %v309_v8, %v317_v9  ;;  %v13363_v53 = vcombine.low %v310_v10, %v318_v11  ;;  %v405_v8 = vld [vmem:[#allocation4 + $0x8a0] sm:$0xff]  ;;  %v406_v10 = vld [vmem:[#allocation4 + $0x8a8] sm:$0xff] }
 0x286   :  { %7013 = vmatprep.subr.bf16.mxu0 %v13282_v54  ;;  %7185 = vmatprep.subr.bf16.mxu1 %v13284_v22  ;;  %v13378_v54 = vcombine.high %v325_v14, %v333_v16  ;;  %v13380_v22 = vcombine.high %v326_v19, %v334_v20  ;;  %v413_v9 = vld [vmem:[#allocation4 + $0x8e0] sm:$0xff]  ;;  %v414_v11 = vld [vmem:[#allocation4 + $0x8e8] sm:$0xff] }
 0x289   :  { %7014 = vmatpush1.bf16.msra.mxu0 %v13281_v31  ;;  %7186 = vmatpush1.bf16.msra.mxu1 %v13283_v32  ;;  %v13377_v31 = vcombine.low %v325_v14, %v333_v16  ;;  %v13379_v32 = vcombine.low %v326_v19, %v334_v20  ;;  %v421_v14 = vld [vmem:[#allocation4 + $0x920] sm:$0xff]  ;;  %v422_v19 = vld [vmem:[#allocation4 + $0x928] sm:$0xff] }
 0x28a   :  { %7015 = vmatprep.subr.bf16.mxu0 %v13298_v33  ;;  %7187 = vmatprep.subr.bf16.mxu1 %v13300_v17  ;;  %v13394_v33 = vcombine.high %v341_v23, %v349_v25  ;;  %v13396_v17 = vcombine.high %v342_v26, %v350_v28  ;;  %v429_v16 = vld [vmem:[#allocation4 + $0x960] sm:$0xff]  ;;  %v430_v20 = vld [vmem:[#allocation4 + $0x968] sm:$0xff] }
 0x28d   :  { %7016 = vmatpush1.bf16.msra.mxu0 %v13297_v38  ;;  %7188 = vmatpush1.bf16.msra.mxu1 %v13299_v39  ;;  %v13393_v38 = vcombine.low %v341_v23, %v349_v25  ;;  %v13395_v39 = vcombine.low %v342_v26, %v350_v28  ;;  %v437_v23 = vld [vmem:[#allocation4 + $0x9a0] sm:$0xff]  ;;  %v438_v26 = vld [vmem:[#allocation4 + $0x9a8] sm:$0xff] }
 0x28e   :  { %7017 = vmatprep.subr.bf16.mxu0 %v13314_v40  ;;  %7189 = vmatprep.subr.bf16.mxu1 %v13316_v42  ;;  %v13410_v40 = vcombine.high %v357_v18, %v365_v34  ;;  %v13412_v42 = vcombine.high %v358_v36, %v366_v37  ;;  %v445_v25 = vld [vmem:[#allocation4 + $0x9e0] sm:$0xff]  ;;  %v446_v28 = vld [vmem:[#allocation4 + $0x9e8] sm:$0xff] }
 0x291   :  { %7018 = vmatpush1.bf16.msra.mxu0 %v13313_v55  ;;  %7190 = vmatpush1.bf16.msra.mxu1 %v13315_v59  ;;  %v13409_v55 = vcombine.low %v357_v18, %v365_v34  ;;  %v13411_v59 = vcombine.low %v358_v36, %v366_v37  ;;  %v453_v18 = vld [vmem:[#allocation4 + $0xa20] sm:$0xff]  ;;  %v454_v36 = vld [vmem:[#allocation4 + $0xa28] sm:$0xff] }
 0x292   :  { %7019 = vmatprep.subr.bf16.mxu0 %v13330_v60  ;;  %7191 = vmatprep.subr.bf16.mxu1 %v13332_v62  ;;  %v13426_v60 = vcombine.high %v373_v44, %v381_v47  ;;  %v13428_v62 = vcombine.high %v374_v29, %v382_v30  ;;  %v461_v34 = vld [vmem:[#allocation4 + $0xa60] sm:$0xff]  ;;  %v462_v37 = vld [vmem:[#allocation4 + $0xa68] sm:$0xff] }
 0x295   :  { %7020 = vmatpush1.bf16.msra.mxu0 %v13329_v4  ;;  %7192 = vmatpush1.bf16.msra.mxu1 %v13331_v5  ;;  %v13425_v4 = vcombine.low %v373_v44, %v381_v47  ;;  %v13427_v5 = vcombine.low %v374_v29, %v382_v30  ;;  %v469_v44 = vld [vmem:[#allocation4 + $0xaa0] sm:$0xff]  ;;  %v470_v29 = vld [vmem:[#allocation4 + $0xaa8] sm:$0xff] }
 0x296   :  { %7021 = vmatprep.subr.bf16.mxu0 %v13346_v6  ;;  %7193 = vmatprep.subr.bf16.mxu1 %v13348_v7  ;;  %v13442_v6 = vcombine.high %v389_v63, %v397_v0  ;;  %v13444_v7 = vcombine.high %v390_v2, %v398_v3  ;;  %v477_v47 = vld [vmem:[#allocation4 + $0xae0] sm:$0xff]  ;;  %v478_v30 = vld [vmem:[#allocation4 + $0xae8] sm:$0xff] }
 0x299   :  { %7022 = vmatpush1.bf16.msra.mxu0 %v13345_v45  ;;  %7194 = vmatpush1.bf16.msra.mxu1 %v13347_v46  ;;  %v13441_v45 = vcombine.low %v389_v63, %v397_v0  ;;  %v13443_v46 = vcombine.low %v390_v2, %v398_v3  ;;  %v485_v63 = vld [vmem:[#allocation4 + $0xb20] sm:$0xff]  ;;  %v486_v2 = vld [vmem:[#allocation4 + $0xb28] sm:$0xff] }
 0x29a   :  { %7023 = vmatprep.subr.bf16.mxu0 %v13362_v12  ;;  %7195 = vmatprep.subr.bf16.mxu1 %v13364_v13  ;;  %v13458_v12 = vcombine.high %v405_v8, %v413_v9  ;;  %v13460_v13 = vcombine.high %v406_v10, %v414_v11  ;;  %v493_v0 = vld [vmem:[#allocation4 + $0xb60] sm:$0xff]  ;;  %v494_v3 = vld [vmem:[#allocation4 + $0xb68] sm:$0xff] }
 0x29d   :  { %7024 = vmatpush1.bf16.msra.mxu0 %v13361_v21  ;;  %7196 = vmatpush1.bf16.msra.mxu1 %v13363_v53  ;;  %v13457_v21 = vcombine.low %v405_v8, %v413_v9  ;;  %v13459_v53 = vcombine.low %v406_v10, %v414_v11  ;;  %v501_v8 = vld [vmem:[#allocation4 + $0xba0] sm:$0xff]  ;;  %v502_v10 = vld [vmem:[#allocation4 + $0xba8] sm:$0xff] }
 0x29e   :  { %7025 = vmatprep.subr.bf16.mxu0 %v13378_v54  ;;  %7197 = vmatprep.subr.bf16.mxu1 %v13380_v22  ;;  %v13474_v54 = vcombine.high %v421_v14, %v429_v16  ;;  %v13476_v22 = vcombine.high %v422_v19, %v430_v20  ;;  %v509_v9 = vld [vmem:[#allocation4 + $0xbe0] sm:$0xff]  ;;  %v510_v11 = vld [vmem:[#allocation4 + $0xbe8] sm:$0xff] }
 0x2a1   :  { %7026 = vmatpush1.bf16.msra.mxu0 %v13377_v31  ;;  %7198 = vmatpush1.bf16.msra.mxu1 %v13379_v32  ;;  %v13473_v31 = vcombine.low %v421_v14, %v429_v16  ;;  %v13475_v32 = vcombine.low %v422_v19, %v430_v20  ;;  %v517_v14 = vld [vmem:[#allocation4 + $0xc20] sm:$0xff]  ;;  %v518_v19 = vld [vmem:[#allocation4 + $0xc28] sm:$0xff] }
 0x2a2   :  { %7027 = vmatprep.subr.bf16.mxu0 %v13394_v33  ;;  %7199 = vmatprep.subr.bf16.mxu1 %v13396_v17  ;;  %v13490_v33 = vcombine.high %v437_v23, %v445_v25  ;;  %v13492_v17 = vcombine.high %v438_v26, %v446_v28  ;;  %v525_v16 = vld [vmem:[#allocation4 + $0xc60] sm:$0xff]  ;;  %v526_v20 = vld [vmem:[#allocation4 + $0xc68] sm:$0xff] }
 0x2a5   :  { %7028 = vmatpush1.bf16.msra.mxu0 %v13393_v38  ;;  %7200 = vmatpush1.bf16.msra.mxu1 %v13395_v39  ;;  %v13489_v38 = vcombine.low %v437_v23, %v445_v25  ;;  %v13491_v39 = vcombine.low %v438_v26, %v446_v28  ;;  %v533_v23 = vld [vmem:[#allocation4 + $0xca0] sm:$0xff]  ;;  %v534_v26 = vld [vmem:[#allocation4 + $0xca8] sm:$0xff] }
 0x2a6   :  { %7029 = vmatprep.subr.bf16.mxu0 %v13410_v40  ;;  %7201 = vmatprep.subr.bf16.mxu1 %v13412_v42  ;;  %v13506_v40 = vcombine.high %v453_v18, %v461_v34  ;;  %v13508_v42 = vcombine.high %v454_v36, %v462_v37  ;;  %v541_v25 = vld [vmem:[#allocation4 + $0xce0] sm:$0xff]  ;;  %v542_v28 = vld [vmem:[#allocation4 + $0xce8] sm:$0xff] }
 0x2a9   :  { %7030 = vmatpush1.bf16.msra.mxu0 %v13409_v55  ;;  %7202 = vmatpush1.bf16.msra.mxu1 %v13411_v59  ;;  %v13505_v55 = vcombine.low %v453_v18, %v461_v34  ;;  %v13507_v59 = vcombine.low %v454_v36, %v462_v37  ;;  %v549_v18 = vld [vmem:[#allocation4 + $0xd20] sm:$0xff]  ;;  %v550_v36 = vld [vmem:[#allocation4 + $0xd28] sm:$0xff] }
 0x2aa   :  { %7031 = vmatprep.subr.bf16.mxu0 %v13426_v60  ;;  %7203 = vmatprep.subr.bf16.mxu1 %v13428_v62  ;;  %v13522_v60 = vcombine.high %v469_v44, %v477_v47  ;;  %v13524_v62 = vcombine.high %v470_v29, %v478_v30  ;;  %v557_v34 = vld [vmem:[#allocation4 + $0xd60] sm:$0xff]  ;;  %v558_v37 = vld [vmem:[#allocation4 + $0xd68] sm:$0xff] }
 0x2ad   :  { %7032 = vmatpush1.bf16.msra.mxu0 %v13425_v4  ;;  %7204 = vmatpush1.bf16.msra.mxu1 %v13427_v5  ;;  %v13521_v4 = vcombine.low %v469_v44, %v477_v47  ;;  %v13523_v5 = vcombine.low %v470_v29, %v478_v30  ;;  %v565_v44 = vld [vmem:[#allocation4 + $0xda0] sm:$0xff]  ;;  %v566_v29 = vld [vmem:[#allocation4 + $0xda8] sm:$0xff] }
 0x2ae   :  { %7044 = vmatprep.subr.bf16.mxu0 %v13442_v6  ;;  %7216 = vmatprep.subr.bf16.mxu1 %v13444_v7  ;;  %v13538_v6 = vcombine.high %v485_v63, %v493_v0  ;;  %v13540_v7 = vcombine.high %v486_v2, %v494_v3  ;;  %v573_v47 = vld [vmem:[#allocation4 + $0xde0] sm:$0xff]  ;;  %v574_v30 = vld [vmem:[#allocation4 + $0xde8] sm:$0xff] }
 0x2b0   :  { %7034 = vmatmul.mubr.bf16.vlgmr.msra.gmra.mrb[8].mxu0 %v15405_v15  ;;  %7206 = vmatmul.mubr.bf16.vlgmr.msra.gmra.mrb[8].mxu1 %v15405_v15 }
 0x2b1   :  { %7045 = vmatpush1.bf16.msra.mxu0 %v13441_v45  ;;  %7217 = vmatpush1.bf16.msra.mxu1 %v13443_v46  ;;  %v13537_v45 = vcombine.low %v485_v63, %v493_v0  ;;  %v13539_v46 = vcombine.low %v486_v2, %v494_v3  ;;  %v581_v63 = vld [vmem:[#allocation4 + $0xe20] sm:$0xff]  ;;  %v582_v2 = vld [vmem:[#allocation4 + $0xe28] sm:$0xff] }
 0x2b2   :  { %7046 = vmatprep.subr.bf16.mxu0 %v13458_v12  ;;  %7218 = vmatprep.subr.bf16.mxu1 %v13460_v13  ;;  %v13554_v12 = vcombine.high %v501_v8, %v509_v9  ;;  %v13556_v13 = vcombine.high %v502_v10, %v510_v11  ;;  %v589_v0 = vld [vmem:[#allocation4 + $0xe60] sm:$0xff]  ;;  %v590_v3 = vld [vmem:[#allocation4 + $0xe68] sm:$0xff] }
 0x2b3   :  { %7076 = vmatprep.mubr.bf16.mxu0 %v15419_v24  ;;  %7248 = vmatprep.mubr.bf16.mxu1 %v15419_v24 }
 0x2b5   :  { %7047 = vmatpush1.bf16.msra.mxu0 %v13457_v21  ;;  %7219 = vmatpush1.bf16.msra.mxu1 %v13459_v53  ;;  %v13553_v21 = vcombine.low %v501_v8, %v509_v9  ;;  %v13555_v53 = vcombine.low %v502_v10, %v510_v11  ;;  %v597_v8 = vld [vmem:[#allocation4 + $0xea0] sm:$0xff]  ;;  %v598_v10 = vld [vmem:[#allocation4 + $0xea8] sm:$0xff] }
 0x2b6   :  { %7048 = vmatprep.subr.bf16.mxu0 %v13474_v54  ;;  %7220 = vmatprep.subr.bf16.mxu1 %v13476_v22  ;;  %v13570_v54 = vcombine.high %v517_v14, %v525_v16  ;;  %v13572_v22 = vcombine.high %v518_v19, %v526_v20  ;;  %v605_v9 = vld [vmem:[#allocation4 + $0xee0] sm:$0xff]  ;;  %v606_v11 = vld [vmem:[#allocation4 + $0xee8] sm:$0xff] }
 0x2b9   :  { %7049 = vmatpush1.bf16.msra.mxu0 %v13473_v31  ;;  %7221 = vmatpush1.bf16.msra.mxu1 %v13475_v32  ;;  %v13569_v31 = vcombine.low %v517_v14, %v525_v16  ;;  %v13571_v32 = vcombine.low %v518_v19, %v526_v20  ;;  %v613_v14 = vld [vmem:[#allocation4 + $0xf20] sm:$0xff]  ;;  %v614_v19 = vld [vmem:[#allocation4 + $0xf28] sm:$0xff] }
 0x2ba   :  { %7050 = vmatprep.subr.bf16.mxu0 %v13490_v33  ;;  %7222 = vmatprep.subr.bf16.mxu1 %v13492_v17  ;;  %v13586_v33 = vcombine.high %v533_v23, %v541_v25  ;;  %v13588_v17 = vcombine.high %v534_v26, %v542_v28  ;;  %v621_v16 = vld [vmem:[#allocation4 + $0xf60] sm:$0xff]  ;;  %v622_v20 = vld [vmem:[#allocation4 + $0xf68] sm:$0xff] }
 0x2bd   :  { %7051 = vmatpush1.bf16.msra.mxu0 %v13489_v38  ;;  %7223 = vmatpush1.bf16.msra.mxu1 %v13491_v39  ;;  %v13585_v38 = vcombine.low %v533_v23, %v541_v25  ;;  %v13587_v39 = vcombine.low %v534_v26, %v542_v28  ;;  %v629_v23 = vld [vmem:[#allocation4 + $0xfa0] sm:$0xff]  ;;  %v630_v26 = vld [vmem:[#allocation4 + $0xfa8] sm:$0xff] }
 0x2be   :  { %7052 = vmatprep.subr.bf16.mxu0 %v13506_v40  ;;  %7224 = vmatprep.subr.bf16.mxu1 %v13508_v42  ;;  %v13602_v40 = vcombine.high %v549_v18, %v557_v34  ;;  %v13604_v42 = vcombine.high %v550_v36, %v558_v37  ;;  %v637_v25 = vld [vmem:[#allocation4 + $0xfe0] sm:$0xff]  ;;  %v638_v28 = vld [vmem:[#allocation4 + $0xfe8] sm:$0xff] }
 0x2c1   :  { %7053 = vmatpush1.bf16.msra.mxu0 %v13505_v55  ;;  %7225 = vmatpush1.bf16.msra.mxu1 %v13507_v59  ;;  %v13601_v55 = vcombine.low %v549_v18, %v557_v34  ;;  %v13603_v59 = vcombine.low %v550_v36, %v558_v37  ;;  %v645_v18 = vld [vmem:[#allocation4 + $0x1020] sm:$0xff]  ;;  %v646_v36 = vld [vmem:[#allocation4 + $0x1028] sm:$0xff] }
 0x2c2   :  { %7054 = vmatprep.subr.bf16.mxu0 %v13522_v60  ;;  %7226 = vmatprep.subr.bf16.mxu1 %v13524_v62  ;;  %v13618_v60 = vcombine.high %v565_v44, %v573_v47  ;;  %v13620_v62 = vcombine.high %v566_v29, %v574_v30  ;;  %v653_v34 = vld [vmem:[#allocation4 + $0x1060] sm:$0xff]  ;;  %v654_v37 = vld [vmem:[#allocation4 + $0x1068] sm:$0xff] }
 0x2c5   :  { %7055 = vmatpush1.bf16.msra.mxu0 %v13521_v4  ;;  %7227 = vmatpush1.bf16.msra.mxu1 %v13523_v5  ;;  %v13617_v4 = vcombine.low %v565_v44, %v573_v47  ;;  %v13619_v5 = vcombine.low %v566_v29, %v574_v30  ;;  %v661_v44 = vld [vmem:[#allocation4 + $0x10a0] sm:$0xff]  ;;  %v662_v29 = vld [vmem:[#allocation4 + $0x10a8] sm:$0xff] }
 0x2c6   :  { %7056 = vmatprep.subr.bf16.mxu0 %v13538_v6  ;;  %7228 = vmatprep.subr.bf16.mxu1 %v13540_v7  ;;  %v13634_v6 = vcombine.high %v581_v63, %v589_v0  ;;  %v13636_v7 = vcombine.high %v582_v2, %v590_v3  ;;  %v669_v47 = vld [vmem:[#allocation4 + $0x10e0] sm:$0xff]  ;;  %v670_v30 = vld [vmem:[#allocation4 + $0x10e8] sm:$0xff] }
 0x2c9   :  { %7057 = vmatpush1.bf16.msra.mxu0 %v13537_v45  ;;  %7229 = vmatpush1.bf16.msra.mxu1 %v13539_v46  ;;  %v13633_v45 = vcombine.low %v581_v63, %v589_v0  ;;  %v13635_v46 = vcombine.low %v582_v2, %v590_v3  ;;  %v677_v63 = vld [vmem:[#allocation4 + $0x1120] sm:$0xff]  ;;  %v678_v2 = vld [vmem:[#allocation4 + $0x1128] sm:$0xff] }
 0x2ca   :  { %7058 = vmatprep.subr.bf16.mxu0 %v13554_v12  ;;  %7230 = vmatprep.subr.bf16.mxu1 %v13556_v13  ;;  %v13650_v12 = vcombine.high %v597_v8, %v605_v9  ;;  %v13652_v13 = vcombine.high %v598_v10, %v606_v11  ;;  %v685_v0 = vld [vmem:[#allocation4 + $0x1160] sm:$0xff]  ;;  %v686_v3 = vld [vmem:[#allocation4 + $0x1168] sm:$0xff] }
 0x2cd   :  { %7059 = vmatpush1.bf16.msra.mxu0 %v13553_v21  ;;  %7231 = vmatpush1.bf16.msra.mxu1 %v13555_v53  ;;  %v13649_v21 = vcombine.low %v597_v8, %v605_v9  ;;  %v13651_v53 = vcombine.low %v598_v10, %v606_v11  ;;  %v693_v8 = vld [vmem:[#allocation4 + $0x11a0] sm:$0xff]  ;;  %v694_v10 = vld [vmem:[#allocation4 + $0x11a8] sm:$0xff] }
 0x2ce   :  { %7060 = vmatprep.subr.bf16.mxu0 %v13570_v54  ;;  %7232 = vmatprep.subr.bf16.mxu1 %v13572_v22  ;;  %v13666_v54 = vcombine.high %v613_v14, %v621_v16  ;;  %v13668_v22 = vcombine.high %v614_v19, %v622_v20  ;;  %v701_v9 = vld [vmem:[#allocation4 + $0x11e0] sm:$0xff]  ;;  %v702_v11 = vld [vmem:[#allocation4 + $0x11e8] sm:$0xff] }
 0x2d1   :  { %7061 = vmatpush1.bf16.msra.mxu0 %v13569_v31  ;;  %7233 = vmatpush1.bf16.msra.mxu1 %v13571_v32  ;;  %v13665_v31 = vcombine.low %v613_v14, %v621_v16  ;;  %v13667_v32 = vcombine.low %v614_v19, %v622_v20  ;;  %v709_v14 = vld [vmem:[#allocation4 + $0x1220] sm:$0xff]  ;;  %v710_v19 = vld [vmem:[#allocation4 + $0x1228] sm:$0xff] }
 0x2d2   :  { %7062 = vmatprep.subr.bf16.mxu0 %v13586_v33  ;;  %7234 = vmatprep.subr.bf16.mxu1 %v13588_v17  ;;  %v13682_v33 = vcombine.high %v629_v23, %v637_v25  ;;  %v13684_v17 = vcombine.high %v630_v26, %v638_v28  ;;  %v717_v16 = vld [vmem:[#allocation4 + $0x1260] sm:$0xff]  ;;  %v718_v20 = vld [vmem:[#allocation4 + $0x1268] sm:$0xff] }
 0x2d5   :  { %7063 = vmatpush1.bf16.msra.mxu0 %v13585_v38  ;;  %7235 = vmatpush1.bf16.msra.mxu1 %v13587_v39  ;;  %v13681_v38 = vcombine.low %v629_v23, %v637_v25  ;;  %v13683_v39 = vcombine.low %v630_v26, %v638_v28  ;;  %v725_v23 = vld [vmem:[#allocation4 + $0x12a0] sm:$0xff]  ;;  %v726_v26 = vld [vmem:[#allocation4 + $0x12a8] sm:$0xff] }
 0x2d6   :  { %7064 = vmatprep.subr.bf16.mxu0 %v13602_v40  ;;  %7236 = vmatprep.subr.bf16.mxu1 %v13604_v42  ;;  %v13698_v40 = vcombine.high %v645_v18, %v653_v34  ;;  %v13700_v42 = vcombine.high %v646_v36, %v654_v37  ;;  %v733_v25 = vld [vmem:[#allocation4 + $0x12e0] sm:$0xff]  ;;  %v734_v28 = vld [vmem:[#allocation4 + $0x12e8] sm:$0xff] }
 0x2d9   :  { %7065 = vmatpush1.bf16.msra.mxu0 %v13601_v55  ;;  %7237 = vmatpush1.bf16.msra.mxu1 %v13603_v59  ;;  %v13697_v55 = vcombine.low %v645_v18, %v653_v34  ;;  %v13699_v59 = vcombine.low %v646_v36, %v654_v37  ;;  %v741_v18 = vld [vmem:[#allocation4 + $0x1320] sm:$0xff]  ;;  %v742_v36 = vld [vmem:[#allocation4 + $0x1328] sm:$0xff] }
 0x2da   :  { %7066 = vmatprep.subr.bf16.mxu0 %v13618_v60  ;;  %7238 = vmatprep.subr.bf16.mxu1 %v13620_v62  ;;  %v13714_v60 = vcombine.high %v661_v44, %v669_v47  ;;  %v13716_v62 = vcombine.high %v662_v29, %v670_v30  ;;  %v749_v34 = vld [vmem:[#allocation4 + $0x1360] sm:$0xff]  ;;  %v750_v37 = vld [vmem:[#allocation4 + $0x1368] sm:$0xff] }
 0x2dd   :  { %7067 = vmatpush1.bf16.msra.mxu0 %v13617_v4  ;;  %7239 = vmatpush1.bf16.msra.mxu1 %v13619_v5  ;;  %v13713_v4 = vcombine.low %v661_v44, %v669_v47  ;;  %v13715_v5 = vcombine.low %v662_v29, %v670_v30  ;;  %v757_v44 = vld [vmem:[#allocation4 + $0x13a0] sm:$0xff]  ;;  %v758_v29 = vld [vmem:[#allocation4 + $0x13a8] sm:$0xff] }
 0x2de   :  { %7068 = vmatprep.subr.bf16.mxu0 %v13634_v6  ;;  %7240 = vmatprep.subr.bf16.mxu1 %v13636_v7  ;;  %v13730_v6 = vcombine.high %v677_v63, %v685_v0  ;;  %v13732_v7 = vcombine.high %v678_v2, %v686_v3  ;;  %v765_v47 = vld [vmem:[#allocation4 + $0x13e0] sm:$0xff]  ;;  %v766_v30 = vld [vmem:[#allocation4 + $0x13e8] sm:$0xff] }
 0x2e1   :  { %7069 = vmatpush1.bf16.msra.mxu0 %v13633_v45  ;;  %7241 = vmatpush1.bf16.msra.mxu1 %v13635_v46  ;;  %v13729_v45 = vcombine.low %v677_v63, %v685_v0  ;;  %v13731_v46 = vcombine.low %v678_v2, %v686_v3  ;;  %v773_v63 = vld [vmem:[#allocation4 + $0x1420] sm:$0xff]  ;;  %v774_v2 = vld [vmem:[#allocation4 + $0x1428] sm:$0xff] }
 0x2e2   :  { %7070 = vmatprep.subr.bf16.mxu0 %v13650_v12  ;;  %7242 = vmatprep.subr.bf16.mxu1 %v13652_v13  ;;  %v13746_v12 = vcombine.high %v693_v8, %v701_v9  ;;  %v13748_v13 = vcombine.high %v694_v10, %v702_v11  ;;  %v781_v0 = vld [vmem:[#allocation4 + $0x1460] sm:$0xff]  ;;  %v782_v3 = vld [vmem:[#allocation4 + $0x1468] sm:$0xff] }
 0x2e5   :  { %7071 = vmatpush1.bf16.msra.mxu0 %v13649_v21  ;;  %7243 = vmatpush1.bf16.msra.mxu1 %v13651_v53  ;;  %v13745_v21 = vcombine.low %v693_v8, %v701_v9  ;;  %v13747_v53 = vcombine.low %v694_v10, %v702_v11  ;;  %v789_v8 = vld [vmem:[#allocation4 + $0x14a0] sm:$0xff]  ;;  %v790_v10 = vld [vmem:[#allocation4 + $0x14a8] sm:$0xff] }
 0x2e6   :  { %7072 = vmatprep.subr.bf16.mxu0 %v13666_v54  ;;  %7244 = vmatprep.subr.bf16.mxu1 %v13668_v22  ;;  %v13762_v54 = vcombine.high %v709_v14, %v717_v16  ;;  %v13764_v22 = vcombine.high %v710_v19, %v718_v20  ;;  %v797_v9 = vld [vmem:[#allocation4 + $0x14e0] sm:$0xff]  ;;  %v798_v11 = vld [vmem:[#allocation4 + $0x14e8] sm:$0xff] }
 0x2e9   :  { %7073 = vmatpush1.bf16.msra.mxu0 %v13665_v31  ;;  %7245 = vmatpush1.bf16.msra.mxu1 %v13667_v32  ;;  %v13761_v31 = vcombine.low %v709_v14, %v717_v16  ;;  %v13763_v32 = vcombine.low %v710_v19, %v718_v20  ;;  %v805_v14 = vld [vmem:[#allocation4 + $0x1520] sm:$0xff]  ;;  %v806_v19 = vld [vmem:[#allocation4 + $0x1528] sm:$0xff] }
 0x2ea   :  { %7074 = vmatprep.subr.bf16.mxu0 %v13682_v33  ;;  %7246 = vmatprep.subr.bf16.mxu1 %v13684_v17  ;;  %v13778_v33 = vcombine.high %v725_v23, %v733_v25  ;;  %v13780_v17 = vcombine.high %v726_v26, %v734_v28  ;;  %v813_v16 = vld [vmem:[#allocation4 + $0x1560] sm:$0xff]  ;;  %v814_v20 = vld [vmem:[#allocation4 + $0x1568] sm:$0xff] }
 0x2ed   :  { %7075 = vmatpush1.bf16.msra.mxu0 %v13681_v38  ;;  %7247 = vmatpush1.bf16.msra.mxu1 %v13683_v39  ;;  %v13777_v38 = vcombine.low %v725_v23, %v733_v25  ;;  %v13779_v39 = vcombine.low %v726_v26, %v734_v28  ;;  %v821_v23 = vld [vmem:[#allocation4 + $0x15a0] sm:$0xff]  ;;  %v822_v26 = vld [vmem:[#allocation4 + $0x15a8] sm:$0xff] }
 0x2ee   :  { %7087 = vmatprep.subr.bf16.mxu0 %v13698_v40  ;;  %7259 = vmatprep.subr.bf16.mxu1 %v13700_v42  ;;  %v13794_v40 = vcombine.high %v741_v18, %v749_v34  ;;  %v13796_v42 = vcombine.high %v742_v36, %v750_v37  ;;  %v829_v25 = vld [vmem:[#allocation4 + $0x15e0] sm:$0xff]  ;;  %v830_v28 = vld [vmem:[#allocation4 + $0x15e8] sm:$0xff] }
 0x2f0   :  { %7077 = vmatmul.mubr.bf16.vlgmr.msra.gmra.mrb[8].mxu0 %v15427_v27  ;;  %7249 = vmatmul.mubr.bf16.vlgmr.msra.gmra.mrb[8].mxu1 %v15427_v27 }
 0x2f1   :  { %7088 = vmatpush1.bf16.msra.mxu0 %v13697_v55  ;;  %7260 = vmatpush1.bf16.msra.mxu1 %v13699_v59  ;;  %v13793_v55 = vcombine.low %v741_v18, %v749_v34  ;;  %v13795_v59 = vcombine.low %v742_v36, %v750_v37  ;;  %v837_v18 = vld [vmem:[#allocation4 + $0x1620] sm:$0xff]  ;;  %v838_v36 = vld [vmem:[#allocation4 + $0x1628] sm:$0xff] }
 0x2f2   :  { %7089 = vmatprep.subr.bf16.mxu0 %v13714_v60  ;;  %7261 = vmatprep.subr.bf16.mxu1 %v13716_v62  ;;  %v13810_v60 = vcombine.high %v757_v44, %v765_v47  ;;  %v13812_v62 = vcombine.high %v758_v29, %v766_v30  ;;  %v845_v34 = vld [vmem:[#allocation4 + $0x1660] sm:$0xff]  ;;  %v846_v37 = vld [vmem:[#allocation4 + $0x1668] sm:$0xff] }
 0x2f3   :  { %7119 = vmatprep.mubr.bf16.mxu0 %v15441_v35  ;;  %7291 = vmatprep.mubr.bf16.mxu1 %v15441_v35 }
 0x2f5   :  { %7090 = vmatpush1.bf16.msra.mxu0 %v13713_v4  ;;  %7262 = vmatpush1.bf16.msra.mxu1 %v13715_v5  ;;  %v13809_v4 = vcombine.low %v757_v44, %v765_v47  ;;  %v13811_v5 = vcombine.low %v758_v29, %v766_v30  ;;  %v853_v44 = vld [vmem:[#allocation4 + $0x16a0] sm:$0xff]  ;;  %v854_v29 = vld [vmem:[#allocation4 + $0x16a8] sm:$0xff] }
 0x2f6   :  { %7091 = vmatprep.subr.bf16.mxu0 %v13730_v6  ;;  %7263 = vmatprep.subr.bf16.mxu1 %v13732_v7  ;;  %v13826_v6 = vcombine.high %v773_v63, %v781_v0  ;;  %v13828_v7 = vcombine.high %v774_v2, %v782_v3  ;;  %v861_v47 = vld [vmem:[#allocation4 + $0x16e0] sm:$0xff]  ;;  %v862_v30 = vld [vmem:[#allocation4 + $0x16e8] sm:$0xff] }
 0x2f9   :  { %7092 = vmatpush1.bf16.msra.mxu0 %v13729_v45  ;;  %7264 = vmatpush1.bf16.msra.mxu1 %v13731_v46  ;;  %v13825_v45 = vcombine.low %v773_v63, %v781_v0  ;;  %v13827_v46 = vcombine.low %v774_v2, %v782_v3  ;;  %v869_v63 = vld [vmem:[#allocation4 + $0x1720] sm:$0xff]  ;;  %v870_v2 = vld [vmem:[#allocation4 + $0x1728] sm:$0xff] }
 0x2fa   :  { %7093 = vmatprep.subr.bf16.mxu0 %v13746_v12  ;;  %7265 = vmatprep.subr.bf16.mxu1 %v13748_v13  ;;  %v13842_v12 = vcombine.high %v789_v8, %v797_v9  ;;  %v13844_v13 = vcombine.high %v790_v10, %v798_v11  ;;  %v877_v0 = vld [vmem:[#allocation4 + $0x1760] sm:$0xff]  ;;  %v878_v3 = vld [vmem:[#allocation4 + $0x1768] sm:$0xff] }
 0x2fd   :  { %7094 = vmatpush1.bf16.msra.mxu0 %v13745_v21  ;;  %7266 = vmatpush1.bf16.msra.mxu1 %v13747_v53  ;;  %v13841_v21 = vcombine.low %v789_v8, %v797_v9  ;;  %v13843_v53 = vcombine.low %v790_v10, %v798_v11  ;;  %v885_v8 = vld [vmem:[#allocation4 + $0x17a0] sm:$0xff]  ;;  %v886_v10 = vld [vmem:[#allocation4 + $0x17a8] sm:$0xff] }
 0x2fe   :  { %7095 = vmatprep.subr.bf16.mxu0 %v13762_v54  ;;  %7267 = vmatprep.subr.bf16.mxu1 %v13764_v22  ;;  %v13858_v54 = vcombine.high %v805_v14, %v813_v16  ;;  %v13860_v22 = vcombine.high %v806_v19, %v814_v20  ;;  %v893_v9 = vld [vmem:[#allocation4 + $0x17e0] sm:$0xff]  ;;  %v894_v11 = vld [vmem:[#allocation4 + $0x17e8] sm:$0xff] }
 0x301   :  { %7096 = vmatpush1.bf16.msra.mxu0 %v13761_v31  ;;  %7268 = vmatpush1.bf16.msra.mxu1 %v13763_v32  ;;  %v13857_v31 = vcombine.low %v805_v14, %v813_v16  ;;  %v13859_v32 = vcombine.low %v806_v19, %v814_v20  ;;  %v901_v14 = vld [vmem:[#allocation4 + $0x1820] sm:$0xff]  ;;  %v902_v19 = vld [vmem:[#allocation4 + $0x1828] sm:$0xff] }
 0x302   :  { %7097 = vmatprep.subr.bf16.mxu0 %v13778_v33  ;;  %7269 = vmatprep.subr.bf16.mxu1 %v13780_v17  ;;  %v13874_v33 = vcombine.high %v821_v23, %v829_v25  ;;  %v13876_v17 = vcombine.high %v822_v26, %v830_v28  ;;  %v909_v16 = vld [vmem:[#allocation4 + $0x1860] sm:$0xff]  ;;  %v910_v20 = vld [vmem:[#allocation4 + $0x1868] sm:$0xff] }
 0x305   :  { %7098 = vmatpush1.bf16.msra.mxu0 %v13777_v38  ;;  %7270 = vmatpush1.bf16.msra.mxu1 %v13779_v39  ;;  %v13873_v38 = vcombine.low %v821_v23, %v829_v25  ;;  %v13875_v39 = vcombine.low %v822_v26, %v830_v28  ;;  %v917_v23 = vld [vmem:[#allocation4 + $0x18a0] sm:$0xff]  ;;  %v918_v26 = vld [vmem:[#allocation4 + $0x18a8] sm:$0xff] }
 0x306   :  { %7099 = vmatprep.subr.bf16.mxu0 %v13794_v40  ;;  %7271 = vmatprep.subr.bf16.mxu1 %v13796_v42  ;;  %v13890_v40 = vcombine.high %v837_v18, %v845_v34  ;;  %v13892_v42 = vcombine.high %v838_v36, %v846_v37  ;;  %v925_v25 = vld [vmem:[#allocation4 + $0x18e0] sm:$0xff]  ;;  %v926_v28 = vld [vmem:[#allocation4 + $0x18e8] sm:$0xff] }
 0x309   :  { %7100 = vmatpush1.bf16.msra.mxu0 %v13793_v55  ;;  %7272 = vmatpush1.bf16.msra.mxu1 %v13795_v59  ;;  %v13889_v55 = vcombine.low %v837_v18, %v845_v34  ;;  %v13891_v59 = vcombine.low %v838_v36, %v846_v37  ;;  %v933_v18 = vld [vmem:[#allocation4 + $0x1920] sm:$0xff]  ;;  %v934_v36 = vld [vmem:[#allocation4 + $0x1928] sm:$0xff] }
 0x30a   :  { %7101 = vmatprep.subr.bf16.mxu0 %v13810_v60  ;;  %7273 = vmatprep.subr.bf16.mxu1 %v13812_v62  ;;  %v13906_v60 = vcombine.high %v853_v44, %v861_v47  ;;  %v13908_v62 = vcombine.high %v854_v29, %v862_v30  ;;  %v941_v34 = vld [vmem:[#allocation4 + $0x1960] sm:$0xff]  ;;  %v942_v37 = vld [vmem:[#allocation4 + $0x1968] sm:$0xff] }
 0x30d   :  { %7102 = vmatpush1.bf16.msra.mxu0 %v13809_v4  ;;  %7274 = vmatpush1.bf16.msra.mxu1 %v13811_v5  ;;  %v13905_v4 = vcombine.low %v853_v44, %v861_v47  ;;  %v13907_v5 = vcombine.low %v854_v29, %v862_v30  ;;  %v949_v44 = vld [vmem:[#allocation4 + $0x19a0] sm:$0xff]  ;;  %v950_v29 = vld [vmem:[#allocation4 + $0x19a8] sm:$0xff] }
 0x30e   :  { %7103 = vmatprep.subr.bf16.mxu0 %v13826_v6  ;;  %7275 = vmatprep.subr.bf16.mxu1 %v13828_v7  ;;  %v13922_v6 = vcombine.high %v869_v63, %v877_v0  ;;  %v13924_v7 = vcombine.high %v870_v2, %v878_v3  ;;  %v957_v47 = vld [vmem:[#allocation4 + $0x19e0] sm:$0xff]  ;;  %v958_v30 = vld [vmem:[#allocation4 + $0x19e8] sm:$0xff] }
 0x311   :  { %7104 = vmatpush1.bf16.msra.mxu0 %v13825_v45  ;;  %7276 = vmatpush1.bf16.msra.mxu1 %v13827_v46  ;;  %v13921_v45 = vcombine.low %v869_v63, %v877_v0  ;;  %v13923_v46 = vcombine.low %v870_v2, %v878_v3  ;;  %v965_v63 = vld [vmem:[#allocation4 + $0x1a20] sm:$0xff]  ;;  %v966_v2 = vld [vmem:[#allocation4 + $0x1a28] sm:$0xff] }
 0x312   :  { %7105 = vmatprep.subr.bf16.mxu0 %v13842_v12  ;;  %7277 = vmatprep.subr.bf16.mxu1 %v13844_v13  ;;  %v13938_v12 = vcombine.high %v885_v8, %v893_v9  ;;  %v13940_v13 = vcombine.high %v886_v10, %v894_v11  ;;  %v973_v0 = vld [vmem:[#allocation4 + $0x1a60] sm:$0xff]  ;;  %v974_v3 = vld [vmem:[#allocation4 + $0x1a68] sm:$0xff] }
 0x315   :  { %7106 = vmatpush1.bf16.msra.mxu0 %v13841_v21  ;;  %7278 = vmatpush1.bf16.msra.mxu1 %v13843_v53  ;;  %v13937_v21 = vcombine.low %v885_v8, %v893_v9  ;;  %v13939_v53 = vcombine.low %v886_v10, %v894_v11  ;;  %v981_v8 = vld [vmem:[#allocation4 + $0x1aa0] sm:$0xff]  ;;  %v982_v10 = vld [vmem:[#allocation4 + $0x1aa8] sm:$0xff] }
 0x316   :  { %7107 = vmatprep.subr.bf16.mxu0 %v13858_v54  ;;  %7279 = vmatprep.subr.bf16.mxu1 %v13860_v22  ;;  %v13954_v54 = vcombine.high %v901_v14, %v909_v16  ;;  %v13956_v22 = vcombine.high %v902_v19, %v910_v20  ;;  %v989_v9 = vld [vmem:[#allocation4 + $0x1ae0] sm:$0xff]  ;;  %v990_v11 = vld [vmem:[#allocation4 + $0x1ae8] sm:$0xff] }
 0x319   :  { %7108 = vmatpush1.bf16.msra.mxu0 %v13857_v31  ;;  %7280 = vmatpush1.bf16.msra.mxu1 %v13859_v32  ;;  %v13953_v31 = vcombine.low %v901_v14, %v909_v16  ;;  %v13955_v32 = vcombine.low %v902_v19, %v910_v20  ;;  %v997_v14 = vld [vmem:[#allocation4 + $0x1b20] sm:$0xff]  ;;  %v998_v19 = vld [vmem:[#allocation4 + $0x1b28] sm:$0xff] }
 0x31a   :  { %7109 = vmatprep.subr.bf16.mxu0 %v13874_v33  ;;  %7281 = vmatprep.subr.bf16.mxu1 %v13876_v17  ;;  %v13970_v33 = vcombine.high %v917_v23, %v925_v25  ;;  %v13972_v17 = vcombine.high %v918_v26, %v926_v28  ;;  %v1005_v16 = vld [vmem:[#allocation4 + $0x1b60] sm:$0xff]  ;;  %v1006_v20 = vld [vmem:[#allocation4 + $0x1b68] sm:$0xff] }
 0x31d   :  { %7110 = vmatpush1.bf16.msra.mxu0 %v13873_v38  ;;  %7282 = vmatpush1.bf16.msra.mxu1 %v13875_v39  ;;  %v13969_v38 = vcombine.low %v917_v23, %v925_v25  ;;  %v13971_v39 = vcombine.low %v918_v26, %v926_v28  ;;  %v14052_v23 = vcombine.high %v998_v19, %v1006_v20  ;;  %v1013_v25 = vld [vmem:[#allocation4 + $0x1ba0] sm:$0xff] }
 0x31e   :  { %7111 = vmatprep.subr.bf16.mxu0 %v13890_v40  ;;  %7283 = vmatprep.subr.bf16.mxu1 %v13892_v42  ;;  %v13986_v40 = vcombine.high %v933_v18, %v941_v34  ;;  %v13988_v42 = vcombine.high %v934_v36, %v942_v37  ;;  %v1021_v26 = vld [vmem:[#allocation4 + $0x1be0] sm:$0xff] }
 0x321   :  { %7112 = vmatpush1.bf16.msra.mxu0 %v13889_v55  ;;  %7284 = vmatpush1.bf16.msra.mxu1 %v13891_v59  ;;  %v13985_v55 = vcombine.low %v933_v18, %v941_v34  ;;  %v13987_v59 = vcombine.low %v934_v36, %v942_v37  ;;  %v14049_v34 = vcombine.low %v997_v14, %v1005_v16 }
 0x322   :  { %7113 = vmatprep.subr.bf16.mxu0 %v13906_v60  ;;  %7285 = vmatprep.subr.bf16.mxu1 %v13908_v62  ;;  %v14002_v60 = vcombine.high %v949_v44, %v957_v47  ;;  %v14004_v62 = vcombine.high %v950_v29, %v958_v30 }
 0x325   :  { %7114 = vmatpush1.bf16.msra.mxu0 %v13905_v4  ;;  %7286 = vmatpush1.bf16.msra.mxu1 %v13907_v5  ;;  %v14001_v4 = vcombine.low %v949_v44, %v957_v47  ;;  %v14003_v5 = vcombine.low %v950_v29, %v958_v30  ;;  %v1029_v44 = vld [vmem:[#allocation4 + $0x1c20] sm:$0xff]  ;;  %v1030_v29 = vld [vmem:[#allocation4 + $0x1c28] sm:$0xff] }
 0x326   :  { %7115 = vmatprep.subr.bf16.mxu0 %v13922_v6  ;;  %7287 = vmatprep.subr.bf16.mxu1 %v13924_v7  ;;  %v14018_v6 = vcombine.high %v965_v63, %v973_v0  ;;  %v14020_v7 = vcombine.high %v966_v2, %v974_v3  ;;  %v1037_v47 = vld [vmem:[#allocation4 + $0x1c60] sm:$0xff]  ;;  %v1038_v30 = vld [vmem:[#allocation4 + $0x1c68] sm:$0xff] }
 0x329   :  { %7116 = vmatpush1.bf16.msra.mxu0 %v13921_v45  ;;  %7288 = vmatpush1.bf16.msra.mxu1 %v13923_v46  ;;  %v14017_v45 = vcombine.low %v965_v63, %v973_v0  ;;  %v14019_v46 = vcombine.low %v966_v2, %v974_v3  ;;  %v1045_v63 = vld [vmem:[#allocation4 + $0x1ca0] sm:$0xff]  ;;  %v1046_v2 = vld [vmem:[#allocation4 + $0x1ca8] sm:$0xff] }
 0x32a   :  { %7117 = vmatprep.subr.bf16.mxu0 %v13938_v12  ;;  %7289 = vmatprep.subr.bf16.mxu1 %v13940_v13  ;;  %v14034_v12 = vcombine.high %v981_v8, %v989_v9  ;;  %v14036_v13 = vcombine.high %v982_v10, %v990_v11  ;;  %v1053_v0 = vld [vmem:[#allocation4 + $0x1ce0] sm:$0xff]  ;;  %v1054_v3 = vld [vmem:[#allocation4 + $0x1ce8] sm:$0xff] }
 0x32d   :  { %7118 = vmatpush1.bf16.msra.mxu0 %v13937_v21  ;;  %7290 = vmatpush1.bf16.msra.mxu1 %v13939_v53  ;;  %v14033_v21 = vcombine.low %v981_v8, %v989_v9  ;;  %v14035_v53 = vcombine.low %v982_v10, %v990_v11  ;;  %v1061_v8 = vld [vmem:[#allocation4 + $0x1d20] sm:$0xff]  ;;  %v1062_v10 = vld [vmem:[#allocation4 + $0x1d28] sm:$0xff] }
 0x32e   :  { %7130 = vmatprep.subr.bf16.mxu0 %v13954_v54  ;;  %7302 = vmatprep.subr.bf16.mxu1 %v13956_v22  ;;  %v14050_v54 = vcombine.high %v997_v14, %v1005_v16  ;;  %v1069_v9 = vld [vmem:[#allocation4 + $0x1d60] sm:$0xff]  ;;  %v1070_v11 = vld [vmem:[#allocation4 + $0x1d68] sm:$0xff] }
 0x32f   :  { %v1077_v14 = vld [vmem:[#allocation4 + $0x1da0] sm:$0xff] }
 0x330   :  { %7120 = vmatmul.mubr.bf16.vlgmr.msra.gmra.mrb[8].mxu0 %v15449_v43  ;;  %7292 = vmatmul.mubr.bf16.vlgmr.msra.gmra.mrb[8].mxu1 %v15449_v43  ;;  %v1085_v16 = vld [vmem:[#allocation4 + $0x1de0] sm:$0xff] }
 0x331   :  { %7131 = vmatpush1.bf16.msra.mxu0 %v13953_v31  ;;  %7303 = vmatpush1.bf16.msra.mxu1 %v13955_v32  ;;  %v1014_v32 = vld [vmem:[#allocation4 + $0x1ba8] sm:$0xff] }
 0x332   :  { %7132 = vmatprep.subr.bf16.mxu0 %v13970_v33  ;;  %7304 = vmatprep.subr.bf16.mxu1 %v13972_v17  ;;  %v1022_v33 = vld [vmem:[#allocation4 + $0x1be8] sm:$0xff] }
 0x333   :  { %7162 = vmatprep.mubr.bf16.mxu0 %v15463_v51  ;;  %7334 = vmatprep.mubr.bf16.mxu1 %v15463_v51 }
 0x335   :  { %7133 = vmatpush1.bf16.msra.mxu0 %v13969_v38  ;;  %7305 = vmatpush1.bf16.msra.mxu1 %v13971_v39  ;;  %v14051_v38 = vcombine.low %v998_v19, %v1006_v20  ;;  %v14066_v39 = vcombine.high %v1013_v25, %v1021_v26  ;;  %v1078_v19 = vld [vmem:[#allocation4 + $0x1da8] sm:$0xff] }
 0x336   :  { %7134 = vmatprep.subr.bf16.mxu0 %v13986_v40  ;;  %7306 = vmatprep.subr.bf16.mxu1 %v13988_v42  ;;  %v14068_v42 = vcombine.high %v1014_v32, %v1022_v33  ;;  %v1086_v20 = vld [vmem:[#allocation4 + $0x1de8] sm:$0xff] }
 0x339   :  { %7135 = vmatpush1.bf16.msra.mxu0 %v13985_v55  ;;  %7307 = vmatpush1.bf16.msra.mxu1 %v13987_v59  ;;  %v14065_v55 = vcombine.low %v1013_v25, %v1021_v26  ;;  %v14067_v59 = vcombine.low %v1014_v32, %v1022_v33  ;;  %v1093_v25 = vld [vmem:[#allocation4 + $0x1e20] sm:$0xff]  ;;  %v1094_v32 = vld [vmem:[#allocation4 + $0x1e28] sm:$0xff] }
 0x33a   :  { %7136 = vmatprep.subr.bf16.mxu0 %v14002_v60  ;;  %7308 = vmatprep.subr.bf16.mxu1 %v14004_v62  ;;  %v14082_v60 = vcombine.high %v1029_v44, %v1037_v47  ;;  %v14084_v62 = vcombine.high %v1030_v29, %v1038_v30  ;;  %v1101_v26 = vld [vmem:[#allocation4 + $0x1e60] sm:$0xff]  ;;  %v1102_v33 = vld [vmem:[#allocation4 + $0x1e68] sm:$0xff] }
 0x33d   :  { %7137 = vmatpush1.bf16.msra.mxu0 %v14001_v4  ;;  %7309 = vmatpush1.bf16.msra.mxu1 %v14003_v5  ;;  %v14081_v4 = vcombine.low %v1029_v44, %v1037_v47  ;;  %v14083_v5 = vcombine.low %v1030_v29, %v1038_v30  ;;  %v1109_v44 = vld [vmem:[#allocation4 + $0x1ea0] sm:$0xff]  ;;  %v1110_v29 = vld [vmem:[#allocation4 + $0x1ea8] sm:$0xff] }
 0x33e   :  { %7138 = vmatprep.subr.bf16.mxu0 %v14018_v6  ;;  %7310 = vmatprep.subr.bf16.mxu1 %v14020_v7  ;;  %v14098_v6 = vcombine.high %v1045_v63, %v1053_v0  ;;  %v14100_v7 = vcombine.high %v1046_v2, %v1054_v3  ;;  %v1117_v47 = vld [vmem:[#allocation4 + $0x1ee0] sm:$0xff]  ;;  %v1118_v30 = vld [vmem:[#allocation4 + $0x1ee8] sm:$0xff] }
 0x341   :  { %7139 = vmatpush1.bf16.msra.mxu0 %v14017_v45  ;;  %7311 = vmatpush1.bf16.msra.mxu1 %v14019_v46  ;;  %v14097_v45 = vcombine.low %v1045_v63, %v1053_v0  ;;  %v14099_v46 = vcombine.low %v1046_v2, %v1054_v3  ;;  %v1125_v63 = vld [vmem:[#allocation4 + $0x1f20] sm:$0xff]  ;;  %v1126_v2 = vld [vmem:[#allocation4 + $0x1f28] sm:$0xff] }
 0x342   :  { %7140 = vmatprep.subr.bf16.mxu0 %v14034_v12  ;;  %7312 = vmatprep.subr.bf16.mxu1 %v14036_v13  ;;  %v14114_v12 = vcombine.high %v1061_v8, %v1069_v9  ;;  %v14116_v13 = vcombine.high %v1062_v10, %v1070_v11  ;;  %v1133_v0 = vld [vmem:[#allocation4 + $0x1f60] sm:$0xff]  ;;  %v1134_v3 = vld [vmem:[#allocation4 + $0x1f68] sm:$0xff] }
 0x343   :  { %v15521_v22 = vpop.f32.mrb[4].mxu0  ;;  %v15523_v28 = vpop.f32.mrb[4].mxu1 }
 0x344   :  { %v15525_v31 = vpop.f32.mrb[5].mxu0  ;;  %v15527_v17 = vpop.f32.mrb[5].mxu1 }
 0x345   :  { %v15529_v18 = vpop.f32.mrb[6].mxu0  ;;  %7141 = vmatpush1.bf16.msra.mxu0 %v14033_v21  ;;  %v15531_v36 = vpop.f32.mrb[6].mxu1  ;;  %7313 = vmatpush1.bf16.msra.mxu1 %v14035_v53  ;;  %v14113_v21 = vcombine.low %v1061_v8, %v1069_v9  ;;  %v14115_v53 = vcombine.low %v1062_v10, %v1070_v11  ;;  %v1141_v8 = vld [vmem:[#allocation4 + $0x1fa0] sm:$0xff]  ;;  %v1142_v10 = vld [vmem:[#allocation4 + $0x1fa8] sm:$0xff] }
 0x346   :  { %v15533_v37 = vpop.f32.mrb[7].mxu0  ;;  %7142 = vmatprep.subr.bf16.mxu0 %v14050_v54  ;;  %v15535_v40 = vpop.f32.mrb[7].mxu1  ;;  %7314 = vmatprep.subr.bf16.mxu1 %v14052_v23  ;;  %v14130_v54 = vcombine.high %v1077_v14, %v1085_v16  ;;  %v14132_v23 = vcombine.high %v1078_v19, %v1086_v20  ;;  %v1149_v9 = vld [vmem:[#allocation4 + $0x1fe0] sm:$0xff]  ;;  %v1150_v11 = vld [vmem:[#allocation4 + $0x1fe8] sm:$0xff] }
 0x349   :  { %7143 = vmatpush1.bf16.msra.mxu0 %v14049_v34  ;;  %7315 = vmatpush1.bf16.msra.mxu1 %v14051_v38  ;;  %v14129_v34 = vcombine.low %v1077_v14, %v1085_v16  ;;  %v14131_v38 = vcombine.low %v1078_v19, %v1086_v20  ;;  %v135_v14 = vld [vmem:[#allocation4 + $0x30] sm:$0xff]  ;;  %v136_v19 = vld [vmem:[#allocation4 + $0x38] sm:$0xff] }
 0x34a   :  { %7144 = vmatprep.subr.bf16.mxu0 %v14066_v39  ;;  %7316 = vmatprep.subr.bf16.mxu1 %v14068_v42  ;;  %v14146_v39 = vcombine.high %v1093_v25, %v1101_v26  ;;  %v14148_v42 = vcombine.high %v1094_v32, %v1102_v33  ;;  %v143_v16 = vld [vmem:[#allocation4 + $0x70] sm:$0xff]  ;;  %v144_v20 = vld [vmem:[#allocation4 + $0x78] sm:$0xff] }
 0x34d   :  { %7145 = vmatpush1.bf16.msra.mxu0 %v14065_v55  ;;  %7317 = vmatpush1.bf16.msra.mxu1 %v14067_v59  ;;  %v14145_v55 = vcombine.low %v1093_v25, %v1101_v26  ;;  %v14147_v59 = vcombine.low %v1094_v32, %v1102_v33  ;;  %v151_v25 = vld [vmem:[#allocation4 + $0xb0] sm:$0xff]  ;;  %v152_v32 = vld [vmem:[#allocation4 + $0xb8] sm:$0xff] }
 0x34e   :  { %7146 = vmatprep.subr.bf16.mxu0 %v14082_v60  ;;  %7318 = vmatprep.subr.bf16.mxu1 %v14084_v62  ;;  %v14162_v60 = vcombine.high %v1109_v44, %v1117_v47  ;;  %v14164_v62 = vcombine.high %v1110_v29, %v1118_v30  ;;  %v159_v26 = vld [vmem:[#allocation4 + $0xf0] sm:$0xff]  ;;  %v160_v33 = vld [vmem:[#allocation4 + $0xf8] sm:$0xff] }
 0x351   :  { %7147 = vmatpush1.bf16.msra.mxu0 %v14081_v4  ;;  %7319 = vmatpush1.bf16.msra.mxu1 %v14083_v5  ;;  %v14161_v4 = vcombine.low %v1109_v44, %v1117_v47  ;;  %v14163_v5 = vcombine.low %v1110_v29, %v1118_v30  ;;  %v167_v44 = vld [vmem:[#allocation4 + $0x130] sm:$0xff]  ;;  %v168_v29 = vld [vmem:[#allocation4 + $0x138] sm:$0xff] }
 0x352   :  { %7148 = vmatprep.subr.bf16.mxu0 %v14098_v6  ;;  %7320 = vmatprep.subr.bf16.mxu1 %v14100_v7  ;;  %v14178_v6 = vcombine.high %v1125_v63, %v1133_v0  ;;  %v14180_v7 = vcombine.high %v1126_v2, %v1134_v3  ;;  %v175_v47 = vld [vmem:[#allocation4 + $0x170] sm:$0xff]  ;;  %v176_v30 = vld [vmem:[#allocation4 + $0x178] sm:$0xff] }
 0x355   :  { %7149 = vmatpush1.bf16.msra.mxu0 %v14097_v45  ;;  %7321 = vmatpush1.bf16.msra.mxu1 %v14099_v46  ;;  %v14177_v45 = vcombine.low %v1125_v63, %v1133_v0  ;;  %v14179_v46 = vcombine.low %v1126_v2, %v1134_v3  ;;  %v183_v63 = vld [vmem:[#allocation4 + $0x1b0] sm:$0xff]  ;;  %v184_v2 = vld [vmem:[#allocation4 + $0x1b8] sm:$0xff] }
 0x356   :  { %7150 = vmatprep.subr.bf16.mxu0 %v14114_v12  ;;  %7322 = vmatprep.subr.bf16.mxu1 %v14116_v13  ;;  %v14194_v12 = vcombine.high %v1141_v8, %v1149_v9  ;;  %v14196_v13 = vcombine.high %v1142_v10, %v1150_v11  ;;  %v191_v0 = vld [vmem:[#allocation4 + $0x1f0] sm:$0xff]  ;;  %v192_v3 = vld [vmem:[#allocation4 + $0x1f8] sm:$0xff] }
 0x359   :  { %7151 = vmatpush1.bf16.msra.mxu0 %v14113_v21  ;;  %7323 = vmatpush1.bf16.msra.mxu1 %v14115_v53  ;;  %v14193_v21 = vcombine.low %v1141_v8, %v1149_v9  ;;  %v14195_v53 = vcombine.low %v1142_v10, %v1150_v11  ;;  %v199_v8 = vld [vmem:[#allocation4 + $0x230] sm:$0xff]  ;;  %v200_v10 = vld [vmem:[#allocation4 + $0x238] sm:$0xff] }
 0x35a   :  { %7152 = vmatprep.subr.bf16.mxu0 %v14130_v54  ;;  %7324 = vmatprep.subr.bf16.mxu1 %v14132_v23  ;;  %v13190_v54 = vcombine.high %v135_v14, %v143_v16  ;;  %v13192_v23 = vcombine.high %v136_v19, %v144_v20  ;;  %v207_v9 = vld [vmem:[#allocation4 + $0x270] sm:$0xff]  ;;  %v208_v11 = vld [vmem:[#allocation4 + $0x278] sm:$0xff] }
 0x35d   :  { %7153 = vmatpush1.bf16.msra.mxu0 %v14129_v34  ;;  %7325 = vmatpush1.bf16.msra.mxu1 %v14131_v38  ;;  %v13189_v34 = vcombine.low %v135_v14, %v143_v16  ;;  %v13191_v38 = vcombine.low %v136_v19, %v144_v20  ;;  %v223_v14 = vld [vmem:[#allocation4 + $0x2f0] sm:$0xff]  ;;  %v216_v16 = vld [vmem:[#allocation4 + $0x2b8] sm:$0xff]  ;;  %v13253_v20 = vcombine.low %v199_v8, %v207_v9 }
 0x35e   :  { %7154 = vmatprep.subr.bf16.mxu0 %v14146_v39  ;;  %7326 = vmatprep.subr.bf16.mxu1 %v14148_v42  ;;  %v13206_v39 = vcombine.high %v151_v25, %v159_v26  ;;  %v13208_v42 = vcombine.high %v152_v32, %v160_v33  ;;  %v224_v19 = vld [vmem:[#allocation4 + $0x2f8] sm:$0xff] }
 0x361   :  { %7155 = vmatpush1.bf16.msra.mxu0 %v14145_v55  ;;  %7327 = vmatpush1.bf16.msra.mxu1 %v14147_v59  ;;  %v13205_v55 = vcombine.low %v151_v25, %v159_v26  ;;  %v13207_v59 = vcombine.low %v152_v32, %v160_v33  ;;  %v239_v25 = vld [vmem:[#allocation4 + $0x370] sm:$0xff]  ;;  %v232_v26 = vld [vmem:[#allocation4 + $0x338] sm:$0xff] }
 0x362   :  { %7156 = vmatprep.subr.bf16.mxu0 %v14162_v60  ;;  %7328 = vmatprep.subr.bf16.mxu1 %v14164_v62  ;;  %v13222_v60 = vcombine.high %v167_v44, %v175_v47  ;;  %v13224_v62 = vcombine.high %v168_v29, %v176_v30  ;;  %v240_v32 = vld [vmem:[#allocation4 + $0x378] sm:$0xff] }
 0x365   :  { %7157 = vmatpush1.bf16.msra.mxu0 %v14161_v4  ;;  %7329 = vmatpush1.bf16.msra.mxu1 %v14163_v5  ;;  %v13221_v4 = vcombine.low %v167_v44, %v175_v47  ;;  %v13223_v5 = vcombine.low %v168_v29, %v176_v30  ;;  %v255_v44 = vld [vmem:[#allocation4 + $0x3f0] sm:$0xff]  ;;  %v248_v47 = vld [vmem:[#allocation4 + $0x3b8] sm:$0xff] }
 0x366   :  { %7158 = vmatprep.subr.bf16.mxu0 %v14178_v6  ;;  %7330 = vmatprep.subr.bf16.mxu1 %v14180_v7  ;;  %v13238_v6 = vcombine.high %v183_v63, %v191_v0  ;;  %v13240_v7 = vcombine.high %v184_v2, %v192_v3  ;;  %v256_v29 = vld [vmem:[#allocation4 + $0x3f8] sm:$0xff] }
 0x369   :  { %7159 = vmatpush1.bf16.msra.mxu0 %v14177_v45  ;;  %7331 = vmatpush1.bf16.msra.mxu1 %v14179_v46  ;;  %v13237_v45 = vcombine.low %v183_v63, %v191_v0  ;;  %v13239_v46 = vcombine.low %v184_v2, %v192_v3  ;;  %v271_v63 = vld [vmem:[#allocation4 + $0x470] sm:$0xff]  ;;  %v264_v0 = vld [vmem:[#allocation4 + $0x438] sm:$0xff] }
 0x36a   :  { %7160 = vmatprep.subr.bf16.mxu0 %v14194_v12  ;;  %7332 = vmatprep.subr.bf16.mxu1 %v14196_v13  ;;  %v13254_v12 = vcombine.high %v199_v8, %v207_v9  ;;  %v215_v13 = vld [vmem:[#allocation4 + $0x2b0] sm:$0xff]  ;;  %v272_v2 = vld [vmem:[#allocation4 + $0x478] sm:$0xff] }
 0x36b   :  { %v13269_v33 = vcombine.low %v215_v13, %v223_v14  ;;  %v287_v8 = vld [vmem:[#allocation4 + $0x4f0] sm:$0xff]  ;;  %v280_v9 = vld [vmem:[#allocation4 + $0x4b8] sm:$0xff] }
 0x36d   :  { %7161 = vmatpush1.bf16.msra.mxu0 %v14193_v21  ;;  %7333 = vmatpush1.bf16.msra.mxu1 %v14195_v53  ;;  %v13255_v21 = vcombine.low %v200_v10, %v208_v11  ;;  %v13270_v53 = vcombine.high %v215_v13, %v223_v14  ;;  %v303_v13 = vld [vmem:[#allocation4 + $0x570] sm:$0xff]  ;;  %v296_v14 = vld [vmem:[#allocation4 + $0x538] sm:$0xff] }
 0x36e   :  { %7345 = vmatprep.subr.bf16.mxu0 %v13190_v54  ;;  %7517 = vmatprep.subr.bf16.mxu1 %v13192_v23  ;;  %v13272_v54 = vcombine.high %v216_v16, %v224_v19  ;;  %v231_v23 = vld [vmem:[#allocation4 + $0x330] sm:$0xff] }
 0x36f   :  { %v13285_v30 = vcombine.low %v231_v23, %v239_v25 }
 0x370   :  { %7163 = vmatmul.mubr.bf16.vlgmr.msra.gmra.mrb[8].mxu0 %v15471_v1  ;;  %7335 = vmatmul.mubr.bf16.vlgmr.msra.gmra.mrb[8].mxu1 %v15471_v1 }
 0x371   :  { %7346 = vmatpush1.bf16.msra.mxu0 %v13189_v34  ;;  %7518 = vmatpush1.bf16.msra.mxu1 %v13191_v38  ;;  %v13271_v34 = vcombine.low %v216_v16, %v224_v19  ;;  %v13286_v38 = vcombine.high %v231_v23, %v239_v25  ;;  %v304_v16 = vld [vmem:[#allocation4 + $0x578] sm:$0xff]  ;;  %v319_v23 = vld [vmem:[#allocation4 + $0x5f0] sm:$0xff] }
 0x372   :  { %7347 = vmatprep.subr.bf16.mxu0 %v13206_v39  ;;  %7519 = vmatprep.subr.bf16.mxu1 %v13208_v42  ;;  %v13288_v39 = vcombine.high %v232_v26, %v240_v32  ;;  %v247_v42 = vld [vmem:[#allocation4 + $0x3b0] sm:$0xff]  ;;  %v312_v25 = vld [vmem:[#allocation4 + $0x5b8] sm:$0xff] }
 0x373   :  { %7377 = vmatprep.mubr.bf16.mxu0 %v15399_v58  ;;  %7549 = vmatprep.mubr.bf16.mxu1 %v15399_v58  ;;  %v13256_v58 = vcombine.high %v200_v10, %v208_v11  ;;  %v13301_v3 = vcombine.low %v247_v42, %v255_v44  ;;  %v288_v10 = vld [vmem:[#allocation4 + $0x4f8] sm:$0xff] }
 0x375   :  { %7348 = vmatpush1.bf16.msra.mxu0 %v13205_v55  ;;  %7520 = vmatpush1.bf16.msra.mxu1 %v13207_v59  ;;  %v13287_v55 = vcombine.low %v232_v26, %v240_v32  ;;  %v13302_v59 = vcombine.high %v247_v42, %v255_v44  ;;  %v320_v26 = vld [vmem:[#allocation4 + $0x5f8] sm:$0xff]  ;;  %v335_v42 = vld [vmem:[#allocation4 + $0x670] sm:$0xff] }
 0x376   :  { %7349 = vmatprep.subr.bf16.mxu0 %v13222_v60  ;;  %7521 = vmatprep.subr.bf16.mxu1 %v13224_v62  ;;  %v13304_v60 = vcombine.high %v248_v47, %v256_v29  ;;  %v263_v62 = vld [vmem:[#allocation4 + $0x430] sm:$0xff]  ;;  %v328_v44 = vld [vmem:[#allocation4 + $0x638] sm:$0xff] }
 0x377   :  { %v13317_v11 = vcombine.low %v263_v62, %v271_v63 }
 0x379   :  { %7350 = vmatpush1.bf16.msra.mxu0 %v13221_v4  ;;  %7522 = vmatpush1.bf16.msra.mxu1 %v13223_v5  ;;  %v13303_v4 = vcombine.low %v248_v47, %v256_v29  ;;  %v13318_v5 = vcombine.high %v263_v62, %v271_v63  ;;  %v336_v47 = vld [vmem:[#allocation4 + $0x678] sm:$0xff]  ;;  %v351_v62 = vld [vmem:[#allocation4 + $0x6f0] sm:$0xff] }
 0x37a   :  { %7351 = vmatprep.subr.bf16.mxu0 %v13238_v6  ;;  %7523 = vmatprep.subr.bf16.mxu1 %v13240_v7  ;;  %v13320_v6 = vcombine.high %v264_v0, %v272_v2  ;;  %v279_v7 = vld [vmem:[#allocation4 + $0x4b0] sm:$0xff]  ;;  %v344_v63 = vld [vmem:[#allocation4 + $0x6b8] sm:$0xff] }
 0x37b   :  { %v13333_v19 = vcombine.low %v279_v7, %v287_v8 }
 0x37d   :  { %7352 = vmatpush1.bf16.msra.mxu0 %v13237_v45  ;;  %7524 = vmatpush1.bf16.msra.mxu1 %v13239_v46  ;;  %v13319_v45 = vcombine.low %v264_v0, %v272_v2  ;;  %v13334_v46 = vcombine.high %v279_v7, %v287_v8  ;;  %v352_v0 = vld [vmem:[#allocation4 + $0x6f8] sm:$0xff]  ;;  %v367_v7 = vld [vmem:[#allocation4 + $0x770] sm:$0xff] }
 0x37e   :  { %7353 = vmatprep.subr.bf16.mxu0 %v13254_v12  ;;  %7525 = vmatprep.subr.bf16.mxu1 %v13256_v58  ;;  %v13336_v12 = vcombine.high %v280_v9, %v288_v10  ;;  %v295_v58 = vld [vmem:[#allocation4 + $0x530] sm:$0xff]  ;;  %v360_v8 = vld [vmem:[#allocation4 + $0x738] sm:$0xff] }
 0x37f   :  { %v13349_v32 = vcombine.low %v295_v58, %v303_v13 }
 0x381   :  { %7354 = vmatpush1.bf16.msra.mxu0 %v13253_v20  ;;  %7526 = vmatpush1.bf16.msra.mxu1 %v13255_v21  ;;  %v13335_v20 = vcombine.low %v280_v9, %v288_v10  ;;  %v13350_v21 = vcombine.high %v295_v58, %v303_v13  ;;  %v368_v9 = vld [vmem:[#allocation4 + $0x778] sm:$0xff]  ;;  %v383_v58 = vld [vmem:[#allocation4 + $0x7f0] sm:$0xff] }
 0x382   :  { %7355 = vmatprep.subr.bf16.mxu0 %v13270_v53  ;;  %7527 = vmatprep.subr.bf16.mxu1 %v13272_v54  ;;  %v13352_v53 = vcombine.high %v296_v14, %v304_v16  ;;  %v311_v54 = vld [vmem:[#allocation4 + $0x5b0] sm:$0xff]  ;;  %v376_v13 = vld [vmem:[#allocation4 + $0x7b8] sm:$0xff] }
 0x383   :  { %v13365_v29 = vcombine.low %v311_v54, %v319_v23 }
 0x385   :  { %7356 = vmatpush1.bf16.msra.mxu0 %v13269_v33  ;;  %7528 = vmatpush1.bf16.msra.mxu1 %v13271_v34  ;;  %v13351_v33 = vcombine.low %v296_v14, %v304_v16  ;;  %v13366_v34 = vcombine.high %v311_v54, %v319_v23  ;;  %v384_v14 = vld [vmem:[#allocation4 + $0x7f8] sm:$0xff]  ;;  %v399_v54 = vld [vmem:[#allocation4 + $0x870] sm:$0xff] }
 0x386   :  { %7357 = vmatprep.subr.bf16.mxu0 %v13286_v38  ;;  %7529 = vmatprep.subr.bf16.mxu1 %v13288_v39  ;;  %v13368_v38 = vcombine.high %v312_v25, %v320_v26  ;;  %v327_v39 = vld [vmem:[#allocation4 + $0x630] sm:$0xff]  ;;  %v392_v23 = vld [vmem:[#allocation4 + $0x838] sm:$0xff] }
 0x387   :  { %v13381_v2 = vcombine.low %v327_v39, %v335_v42 }
 0x389   :  { %7358 = vmatpush1.bf16.msra.mxu0 %v13285_v30  ;;  %7530 = vmatpush1.bf16.msra.mxu1 %v13287_v55  ;;  %v13367_v30 = vcombine.low %v312_v25, %v320_v26  ;;  %v13382_v55 = vcombine.high %v327_v39, %v335_v42  ;;  %v400_v25 = vld [vmem:[#allocation4 + $0x878] sm:$0xff]  ;;  %v415_v39 = vld [vmem:[#allocation4 + $0x8f0] sm:$0xff] }
 0x38a   :  { %7359 = vmatprep.subr.bf16.mxu0 %v13302_v59  ;;  %7531 = vmatprep.subr.bf16.mxu1 %v13304_v60  ;;  %v13384_v59 = vcombine.high %v328_v44, %v336_v47  ;;  %v343_v60 = vld [vmem:[#allocation4 + $0x6b0] sm:$0xff]  ;;  %v408_v42 = vld [vmem:[#allocation4 + $0x8b8] sm:$0xff] }
 0x38b   :  { %v13397_v10 = vcombine.low %v343_v60, %v351_v62 }
 0x38d   :  { %7360 = vmatpush1.bf16.msra.mxu0 %v13301_v3  ;;  %7532 = vmatpush1.bf16.msra.mxu1 %v13303_v4  ;;  %v13383_v3 = vcombine.low %v328_v44, %v336_v47  ;;  %v13398_v4 = vcombine.high %v343_v60, %v351_v62  ;;  %v416_v44 = vld [vmem:[#allocation4 + $0x8f8] sm:$0xff]  ;;  %v431_v60 = vld [vmem:[#allocation4 + $0x970] sm:$0xff] }
 0x38e   :  { %7361 = vmatprep.subr.bf16.mxu0 %v13318_v5  ;;  %7533 = vmatprep.subr.bf16.mxu1 %v13320_v6  ;;  %v13400_v5 = vcombine.high %v344_v63, %v352_v0  ;;  %v359_v6 = vld [vmem:[#allocation4 + $0x730] sm:$0xff]  ;;  %v424_v62 = vld [vmem:[#allocation4 + $0x938] sm:$0xff] }
 0x38f   :  { %v13413_v16 = vcombine.low %v359_v6, %v367_v7 }
 0x391   :  { %7362 = vmatpush1.bf16.msra.mxu0 %v13317_v11  ;;  %7534 = vmatpush1.bf16.msra.mxu1 %v13319_v45  ;;  %v13399_v11 = vcombine.low %v344_v63, %v352_v0  ;;  %v13414_v45 = vcombine.high %v359_v6, %v367_v7  ;;  %v432_v63 = vld [vmem:[#allocation4 + $0x978] sm:$0xff]  ;;  %v447_v6 = vld [vmem:[#allocation4 + $0x9f0] sm:$0xff] }
 0x392   :  { %7363 = vmatprep.subr.bf16.mxu0 %v13334_v46  ;;  %7535 = vmatprep.subr.bf16.mxu1 %v13336_v12  ;;  %v13416_v46 = vcombine.high %v360_v8, %v368_v9  ;;  %v375_v12 = vld [vmem:[#allocation4 + $0x7b0] sm:$0xff]  ;;  %v440_v7 = vld [vmem:[#allocation4 + $0x9b8] sm:$0xff] }
 0x393   :  { %v13429_v26 = vcombine.low %v375_v12, %v383_v58 }
 0x395   :  { %7364 = vmatpush1.bf16.msra.mxu0 %v13333_v19  ;;  %7536 = vmatpush1.bf16.msra.mxu1 %v13335_v20  ;;  %v13415_v19 = vcombine.low %v360_v8, %v368_v9  ;;  %v13430_v20 = vcombine.high %v375_v12, %v383_v58  ;;  %v448_v8 = vld [vmem:[#allocation4 + $0x9f8] sm:$0xff] }
 0x396   :  { %7365 = vmatprep.subr.bf16.mxu0 %v13350_v21  ;;  %7537 = vmatprep.subr.bf16.mxu1 %v13352_v53  ;;  %v13432_v21 = vcombine.high %v376_v13, %v384_v14  ;;  %v391_v53 = vld [vmem:[#allocation4 + $0x830] sm:$0xff]  ;;  %v456_v12 = vld [vmem:[#allocation4 + $0xa38] sm:$0xff] }
 0x397   :  { %v13445_v47 = vcombine.low %v391_v53, %v399_v54  ;;  %v464_v58 = vld [vmem:[#allocation4 + $0xa78] sm:$0xff] }
 0x399   :  { %7366 = vmatpush1.bf16.msra.mxu0 %v13349_v32  ;;  %7538 = vmatpush1.bf16.msra.mxu1 %v13351_v33  ;;  %v13431_v32 = vcombine.low %v376_v13, %v384_v14  ;;  %v13446_v33 = vcombine.high %v391_v53, %v399_v54  ;;  %v13495_v14 = vcombine.low %v440_v7, %v448_v8  ;;  %v480_v53 = vld [vmem:[#allocation4 + $0xaf8] sm:$0xff] }
 0x39a   :  { %7367 = vmatprep.subr.bf16.mxu0 %v13366_v34  ;;  %7539 = vmatprep.subr.bf16.mxu1 %v13368_v38  ;;  %v13448_v34 = vcombine.high %v392_v23, %v400_v25  ;;  %v407_v38 = vld [vmem:[#allocation4 + $0x8b0] sm:$0xff] }
 0x39b   :  { %v13461_v0 = vcombine.low %v407_v38, %v415_v39 }
 0x39d   :  { %7368 = vmatpush1.bf16.msra.mxu0 %v13365_v29  ;;  %7540 = vmatpush1.bf16.msra.mxu1 %v13367_v30  ;;  %v13447_v29 = vcombine.low %v392_v23, %v400_v25  ;;  %v13462_v30 = vcombine.high %v407_v38, %v415_v39  ;;  %v13511_v23 = vcombine.low %v456_v12, %v464_v58  ;;  %v496_v38 = vld [vmem:[#allocation4 + $0xb78] sm:$0xff] }
 0x39e   :  { %7369 = vmatprep.subr.bf16.mxu0 %v13382_v55  ;;  %7541 = vmatprep.subr.bf16.mxu1 %v13384_v59  ;;  %v13464_v55 = vcombine.high %v408_v42, %v416_v44  ;;  %v423_v59 = vld [vmem:[#allocation4 + $0x930] sm:$0xff] }
 0x39f   :  { %v13477_v9 = vcombine.low %v423_v59, %v431_v60 }
 0x3a1   :  { %7370 = vmatpush1.bf16.msra.mxu0 %v13381_v2  ;;  %7542 = vmatpush1.bf16.msra.mxu1 %v13383_v3  ;;  %v13463_v2 = vcombine.low %v408_v42, %v416_v44  ;;  %v13478_v3 = vcombine.high %v423_v59, %v431_v60  ;;  %v512_v59 = vld [vmem:[#allocation4 + $0xbf8] sm:$0xff] }
 0x3a2   :  { %7371 = vmatprep.subr.bf16.mxu0 %v13398_v4  ;;  %7543 = vmatprep.subr.bf16.mxu1 %v13400_v5  ;;  %v13480_v4 = vcombine.high %v424_v62, %v432_v63  ;;  %v439_v5 = vld [vmem:[#allocation4 + $0x9b0] sm:$0xff] }
 0x3a3   :  { %v13493_v13 = vcombine.low %v439_v5, %v447_v6 }
 0x3a5   :  { %7372 = vmatpush1.bf16.msra.mxu0 %v13397_v10  ;;  %7544 = vmatpush1.bf16.msra.mxu1 %v13399_v11  ;;  %v13494_v10 = vcombine.high %v439_v5, %v447_v6  ;;  %v13496_v11 = vcombine.high %v440_v7, %v448_v8  ;;  %v528_v5 = vld [vmem:[#allocation4 + $0xc78] sm:$0xff]  ;;  %v15268_v6 = vmov 0  }
 0x3a6   :  { %7373 = vmatprep.subr.bf16.mxu0 %v13414_v45  ;;  %7545 = vmatprep.subr.bf16.mxu1 %v13416_v46  ;;  %v455_v45 = vld [vmem:[#allocation4 + $0xa30] sm:$0xff]  ;;  %103 = vst [vmem:[#allocation2] sm:$0xff] %v15268_v6  ;;  %105 = vst [vmem:[#allocation2 + $0x10] sm:$0xff] %v15268_v6 }
 0x3a7   :  { %v463_v46 = vld [vmem:[#allocation4 + $0xa70] sm:$0xff]  ;;  %104 = vst [vmem:[#allocation2 + $0x8] sm:$0xff] %v15268_v6  ;;  %106 = vst [vmem:[#allocation2 + $0x18] sm:$0xff] %v15268_v6 }
 0x3a8   :  { %v13509_v54 = vcombine.low %v455_v45, %v463_v46  ;;  %107 = vst [vmem:[#allocation2 + $0x20] sm:$0xff] %v15268_v6  ;;  %108 = vst [vmem:[#allocation2 + $0x28] sm:$0xff] %v15268_v6 }
 0x3a9   :  { %7374 = vmatpush1.bf16.msra.mxu0 %v13413_v16  ;;  %7546 = vmatpush1.bf16.msra.mxu1 %v13415_v19  ;;  %v13510_v16 = vcombine.high %v455_v45, %v463_v46  ;;  %v471_v19 = vld [vmem:[#allocation4 + $0xab0] sm:$0xff]  ;;  %109 = vst [vmem:[#allocation3] sm:$0xff] %v15268_v6  ;;  %110 = vst [vmem:[#allocation3 + $0x8] sm:$0xff] %v15268_v6  ;;  %v536_v45 = vld [vmem:[#allocation4 + $0xcb8] sm:$0xff] }
 0x3aa   :  { %7375 = vmatprep.subr.bf16.mxu0 %v13430_v20  ;;  %7547 = vmatprep.subr.bf16.mxu1 %v13432_v21  ;;  %v479_v20 = vld [vmem:[#allocation4 + $0xaf0] sm:$0xff]  ;;  %v472_v21 = vld [vmem:[#allocation4 + $0xab8] sm:$0xff]  ;;  %111 = vst [vmem:[#allocation3 + $0x10] sm:$0xff] %v15268_v6  ;;  %112 = vst [vmem:[#allocation3 + $0x18] sm:$0xff] %v15268_v6 }
 0x3ab   :  { %v13526_v25 = vcombine.high %v471_v19, %v479_v20  ;;  %v13525_v39 = vcombine.low %v471_v19, %v479_v20  ;;  %v13527_v42 = vcombine.low %v472_v21, %v480_v53  ;;  %113 = vst [vmem:[#allocation3 + $0x20] sm:$0xff] %v15268_v6  ;;  %114 = vst [vmem:[#allocation3 + $0x28] sm:$0xff] %v15268_v6  ;;  %v544_v46 = vld [vmem:[#allocation4 + $0xcf8] sm:$0xff] }
 0x3ac   :  { %115 = vst [vmem:[#allocation3 + $0x30] sm:$0xff] %v15268_v6  ;;  %116 = vst [vmem:[#allocation3 + $0x38] sm:$0xff] %v15268_v6  ;;  %v552_v19 = vld [vmem:[#allocation4 + $0xd38] sm:$0xff] }
 0x3ad   :  { %7376 = vmatpush1.bf16.msra.mxu0 %v13429_v26  ;;  %7548 = vmatpush1.bf16.msra.mxu1 %v13431_v32  ;;  %v13528_v26 = vcombine.high %v472_v21, %v480_v53  ;;  %v487_v32 = vld [vmem:[#allocation4 + $0xb30] sm:$0xff]  ;;  %117 = vst [vmem:[#allocation3 + $0x40] sm:$0xff] %v15268_v6  ;;  %118 = vst [vmem:[#allocation3 + $0x48] sm:$0xff] %v15268_v6  ;;  %v560_v20 = vld [vmem:[#allocation4 + $0xd78] sm:$0xff]  ;;  %v13591_v53 = vcombine.low %v536_v45, %v544_v46 }
 0x3ae   :  { %7388 = vmatprep.subr.bf16.mxu0 %v13446_v33  ;;  %7560 = vmatprep.subr.bf16.mxu1 %v13448_v34  ;;  %v495_v33 = vld [vmem:[#allocation4 + $0xb70] sm:$0xff]  ;;  %v488_v34 = vld [vmem:[#allocation4 + $0xb38] sm:$0xff]  ;;  %119 = vst [vmem:[#allocation3 + $0x50] sm:$0xff] %v15268_v6  ;;  %120 = vst [vmem:[#allocation3 + $0x58] sm:$0xff] %v15268_v6 }
 0x3af   :  { %v13542_v44 = vcombine.high %v487_v32, %v495_v33  ;;  %v13541_v60 = vcombine.low %v487_v32, %v495_v33  ;;  %v568_v32 = vld [vmem:[#allocation4 + $0xdb8] sm:$0xff] }
 0x3b0   :  { %7378 = vmatmul.mubr.bf16.vlgmr.msra.gmra.mrb[12].mxu0 %v15405_v15  ;;  %7550 = vmatmul.mubr.bf16.vlgmr.msra.gmra.mrb[12].mxu1 %v15405_v15  ;;  %v13479_v15 = vcombine.low %v424_v62, %v432_v63  ;;  %v13543_v62 = vcombine.low %v488_v34, %v496_v38  ;;  %v576_v33 = vld [vmem:[#allocation4 + $0xdf8] sm:$0xff] }
 0x3b1   :  { %7389 = vmatpush1.bf16.msra.mxu0 %v13445_v47  ;;  %7561 = vmatpush1.bf16.msra.mxu1 %v13447_v29  ;;  %v13544_v47 = vcombine.high %v488_v34, %v496_v38  ;;  %v503_v29 = vld [vmem:[#allocation4 + $0xbb0] sm:$0xff]  ;;  %v13607_v38 = vcombine.low %v552_v19, %v560_v20 }
 0x3b2   :  { %7390 = vmatprep.subr.bf16.mxu0 %v13462_v30  ;;  %7562 = vmatprep.subr.bf16.mxu1 %v13464_v55  ;;  %v511_v30 = vld [vmem:[#allocation4 + $0xbf0] sm:$0xff]  ;;  %v504_v55 = vld [vmem:[#allocation4 + $0xbb8] sm:$0xff] }
 0x3b3   :  { %7420 = vmatprep.mubr.bf16.mxu0 %v15419_v24  ;;  %7592 = vmatprep.mubr.bf16.mxu1 %v15419_v24  ;;  %v13512_v24 = vcombine.high %v456_v12, %v464_v58  ;;  %v13558_v63 = vcombine.high %v503_v29, %v511_v30  ;;  %v13557_v7 = vcombine.low %v503_v29, %v511_v30  ;;  %v584_v29 = vld [vmem:[#allocation4 + $0xe38] sm:$0xff] }
 0x3b4   :  { %v13559_v8 = vcombine.low %v504_v55, %v512_v59  ;;  %v592_v30 = vld [vmem:[#allocation4 + $0xe78] sm:$0xff] }
 0x3b5   :  { %7391 = vmatpush1.bf16.msra.mxu0 %v13461_v0  ;;  %7563 = vmatpush1.bf16.msra.mxu1 %v13463_v2  ;;  %v13560_v0 = vcombine.high %v504_v55, %v512_v59  ;;  %v519_v2 = vld [vmem:[#allocation4 + $0xc30] sm:$0xff]  ;;  %v13623_v59 = vcombine.low %v568_v32, %v576_v33 }
 0x3b6   :  { %7392 = vmatprep.subr.bf16.mxu0 %v13478_v3  ;;  %7564 = vmatprep.subr.bf16.mxu1 %v13480_v4  ;;  %v527_v3 = vld [vmem:[#allocation4 + $0xc70] sm:$0xff]  ;;  %v520_v4 = vld [vmem:[#allocation4 + $0xc38] sm:$0xff] }
 0x3b7   :  { %v13573_v12 = vcombine.low %v519_v2, %v527_v3  ;;  %v13575_v58 = vcombine.low %v520_v4, %v528_v5 }
 0x3b9   :  { %7393 = vmatpush1.bf16.msra.mxu0 %v13477_v9  ;;  %7565 = vmatpush1.bf16.msra.mxu1 %v13479_v15  ;;  %v13574_v9 = vcombine.high %v519_v2, %v527_v3  ;;  %v13576_v15 = vcombine.high %v520_v4, %v528_v5  ;;  %v600_v2 = vld [vmem:[#allocation4 + $0xeb8] sm:$0xff]  ;;  %v13639_v5 = vcombine.low %v584_v29, %v592_v30 }
 0x3ba   :  { %7394 = vmatprep.subr.bf16.mxu0 %v13494_v10  ;;  %7566 = vmatprep.subr.bf16.mxu1 %v13496_v11  ;;  %v535_v10 = vld [vmem:[#allocation4 + $0xcb0] sm:$0xff]  ;;  %v608_v3 = vld [vmem:[#allocation4 + $0xef8] sm:$0xff] }
 0x3bb   :  { %v543_v11 = vld [vmem:[#allocation4 + $0xcf0] sm:$0xff] }
 0x3bc   :  { %v13589_v21 = vcombine.low %v535_v10, %v543_v11 }
 0x3bd   :  { %7395 = vmatpush1.bf16.msra.mxu0 %v13493_v13  ;;  %7567 = vmatpush1.bf16.msra.mxu1 %v13495_v14  ;;  %v13590_v13 = vcombine.high %v535_v10, %v543_v11  ;;  %v13592_v14 = vcombine.high %v536_v45, %v544_v46  ;;  %v624_v10 = vld [vmem:[#allocation4 + $0xf78] sm:$0xff]  ;;  %v13655_v45 = vcombine.low %v600_v2, %v608_v3 }
 0x3be   :  { %7396 = vmatprep.subr.bf16.mxu0 %v13510_v16  ;;  %7568 = vmatprep.subr.bf16.mxu1 %v13512_v24  ;;  %v551_v16 = vld [vmem:[#allocation4 + $0xd30] sm:$0xff] }
 0x3bf   :  { %v559_v24 = vld [vmem:[#allocation4 + $0xd70] sm:$0xff] }
 0x3c0   :  { %v13605_v34 = vcombine.low %v551_v16, %v559_v24 }
 0x3c1   :  { %7397 = vmatpush1.bf16.msra.mxu0 %v13509_v54  ;;  %7569 = vmatpush1.bf16.msra.mxu1 %v13511_v23  ;;  %v13606_v54 = vcombine.high %v551_v16, %v559_v24  ;;  %v13608_v23 = vcombine.high %v552_v19, %v560_v20  ;;  %v640_v16 = vld [vmem:[#allocation4 + $0xff8] sm:$0xff] }
 0x3c2   :  { %7398 = vmatprep.subr.bf16.mxu0 %v13526_v25  ;;  %7570 = vmatprep.subr.bf16.mxu1 %v13528_v26  ;;  %v567_v25 = vld [vmem:[#allocation4 + $0xdb0] sm:$0xff] }
 0x3c3   :  { %v575_v26 = vld [vmem:[#allocation4 + $0xdf0] sm:$0xff] }
 0x3c4   :  { %v13621_v55 = vcombine.low %v567_v25, %v575_v26 }
 0x3c5   :  { %7399 = vmatpush1.bf16.msra.mxu0 %v13525_v39  ;;  %7571 = vmatpush1.bf16.msra.mxu1 %v13527_v42  ;;  %v13622_v39 = vcombine.high %v567_v25, %v575_v26  ;;  %v13624_v42 = vcombine.high %v568_v32, %v576_v33  ;;  %v656_v25 = vld [vmem:[#allocation4 + $0x1078] sm:$0xff] }
 0x3c6   :  { %7400 = vmatprep.subr.bf16.mxu0 %v13542_v44  ;;  %7572 = vmatprep.subr.bf16.mxu1 %v13544_v47  ;;  %v583_v44 = vld [vmem:[#allocation4 + $0xe30] sm:$0xff] }
 0x3c7   :  { %v591_v47 = vld [vmem:[#allocation4 + $0xe70] sm:$0xff] }
 0x3c8   :  { %v13637_v4 = vcombine.low %v583_v44, %v591_v47 }
 0x3c9   :  { %7401 = vmatpush1.bf16.msra.mxu0 %v13541_v60  ;;  %7573 = vmatpush1.bf16.msra.mxu1 %v13543_v62  ;;  %v13638_v60 = vcombine.high %v583_v44, %v591_v47  ;;  %v13640_v62 = vcombine.high %v584_v29, %v592_v30  ;;  %v672_v44 = vld [vmem:[#allocation4 + $0x10f8] sm:$0xff] }
 0x3ca   :  { %7402 = vmatprep.subr.bf16.mxu0 %v13558_v63  ;;  %7574 = vmatprep.subr.bf16.mxu1 %v13560_v0  ;;  %v599_v63 = vld [vmem:[#allocation4 + $0xeb0] sm:$0xff] }
 0x3cb   :  { %v607_v0 = vld [vmem:[#allocation4 + $0xef0] sm:$0xff] }
 0x3cc   :  { %v13654_v6 = vcombine.high %v599_v63, %v607_v0  ;;  %v13653_v11 = vcombine.low %v599_v63, %v607_v0  ;;  %v688_v63 = vld [vmem:[#allocation4 + $0x1178] sm:$0xff] }
 0x3cd   :  { %7403 = vmatpush1.bf16.msra.mxu0 %v13557_v7  ;;  %7575 = vmatpush1.bf16.msra.mxu1 %v13559_v8  ;;  %v13656_v7 = vcombine.high %v600_v2, %v608_v3  ;;  %v615_v8 = vld [vmem:[#allocation4 + $0xf30] sm:$0xff] }
 0x3ce   :  { %7404 = vmatprep.subr.bf16.mxu0 %v13574_v9  ;;  %7576 = vmatprep.subr.bf16.mxu1 %v13576_v15  ;;  %v623_v9 = vld [vmem:[#allocation4 + $0xf70] sm:$0xff]  ;;  %v616_v15 = vld [vmem:[#allocation4 + $0xf38] sm:$0xff] }
 0x3cf   :  { %v13670_v46 = vcombine.high %v615_v8, %v623_v9  ;;  %v13669_v24 = vcombine.low %v615_v8, %v623_v9  ;;  %v13671_v19 = vcombine.low %v616_v15, %v624_v10  ;;  %v704_v8 = vld [vmem:[#allocation4 + $0x11f8] sm:$0xff] }
 0x3d1   :  { %7405 = vmatpush1.bf16.msra.mxu0 %v13573_v12  ;;  %7577 = vmatpush1.bf16.msra.mxu1 %v13575_v58  ;;  %v13672_v12 = vcombine.high %v616_v15, %v624_v10  ;;  %v631_v58 = vld [vmem:[#allocation4 + $0xfb0] sm:$0xff] }
 0x3d2   :  { %7406 = vmatprep.subr.bf16.mxu0 %v13590_v13  ;;  %7578 = vmatprep.subr.bf16.mxu1 %v13592_v14  ;;  %v639_v13 = vld [vmem:[#allocation4 + $0xff0] sm:$0xff]  ;;  %v632_v14 = vld [vmem:[#allocation4 + $0xfb8] sm:$0xff] }
 0x3d3   :  { %v13686_v20 = vcombine.high %v631_v58, %v639_v13  ;;  %v13685_v26 = vcombine.low %v631_v58, %v639_v13  ;;  %v13687_v32 = vcombine.low %v632_v14, %v640_v16 }
 0x3d5   :  { %7407 = vmatpush1.bf16.msra.mxu0 %v13589_v21  ;;  %7579 = vmatpush1.bf16.msra.mxu1 %v13591_v53  ;;  %v13688_v21 = vcombine.high %v632_v14, %v640_v16  ;;  %v647_v53 = vld [vmem:[#allocation4 + $0x1030] sm:$0xff] }
 0x3d6   :  { %7408 = vmatprep.subr.bf16.mxu0 %v13606_v54  ;;  %7580 = vmatprep.subr.bf16.mxu1 %v13608_v23  ;;  %v655_v54 = vld [vmem:[#allocation4 + $0x1070] sm:$0xff]  ;;  %v648_v23 = vld [vmem:[#allocation4 + $0x1038] sm:$0xff] }
 0x3d7   :  { %v13702_v33 = vcombine.high %v647_v53, %v655_v54  ;;  %v13701_v47 = vcombine.low %v647_v53, %v655_v54  ;;  %v13703_v29 = vcombine.low %v648_v23, %v656_v25  ;;  %v727_v16 = vld [vmem:[#allocation4 + $0x12b0] sm:$0xff] }
 0x3d9   :  { %7409 = vmatpush1.bf16.msra.mxu0 %v13605_v34  ;;  %7581 = vmatpush1.bf16.msra.mxu1 %v13607_v38  ;;  %v13704_v34 = vcombine.high %v648_v23, %v656_v25  ;;  %v663_v38 = vld [vmem:[#allocation4 + $0x10b0] sm:$0xff] }
 0x3da   :  { %7410 = vmatprep.subr.bf16.mxu0 %v13622_v39  ;;  %7582 = vmatprep.subr.bf16.mxu1 %v13624_v42  ;;  %v671_v39 = vld [vmem:[#allocation4 + $0x10f0] sm:$0xff]  ;;  %v664_v42 = vld [vmem:[#allocation4 + $0x10b8] sm:$0xff] }
 0x3db   :  { %v13718_v30 = vcombine.high %v663_v38, %v671_v39  ;;  %v13717_v0 = vcombine.low %v663_v38, %v671_v39  ;;  %v13719_v2 = vcombine.low %v664_v42, %v672_v44  ;;  %v743_v25 = vld [vmem:[#allocation4 + $0x1330] sm:$0xff] }
 0x3dd   :  { %7411 = vmatpush1.bf16.msra.mxu0 %v13621_v55  ;;  %7583 = vmatpush1.bf16.msra.mxu1 %v13623_v59  ;;  %v13720_v55 = vcombine.high %v664_v42, %v672_v44  ;;  %v679_v59 = vld [vmem:[#allocation4 + $0x1130] sm:$0xff] }
 0x3de   :  { %7412 = vmatprep.subr.bf16.mxu0 %v13638_v60  ;;  %7584 = vmatprep.subr.bf16.mxu1 %v13640_v62  ;;  %v687_v60 = vld [vmem:[#allocation4 + $0x1170] sm:$0xff]  ;;  %v680_v62 = vld [vmem:[#allocation4 + $0x1138] sm:$0xff] }
 0x3df   :  { %v13734_v3 = vcombine.high %v679_v59, %v687_v60  ;;  %v13733_v9 = vcombine.low %v679_v59, %v687_v60  ;;  %v759_v44 = vld [vmem:[#allocation4 + $0x13b0] sm:$0xff] }
 0x3e1   :  { %7413 = vmatpush1.bf16.msra.mxu0 %v13637_v4  ;;  %7585 = vmatpush1.bf16.msra.mxu1 %v13639_v5  ;;  %v13736_v4 = vcombine.high %v680_v62, %v688_v63  ;;  %v695_v5 = vld [vmem:[#allocation4 + $0x11b0] sm:$0xff] }
 0x3e2   :  { %7414 = vmatprep.subr.bf16.mxu0 %v13654_v6  ;;  %7586 = vmatprep.subr.bf16.mxu1 %v13656_v7  ;;  %v703_v6 = vld [vmem:[#allocation4 + $0x11f0] sm:$0xff]  ;;  %v696_v7 = vld [vmem:[#allocation4 + $0x11b8] sm:$0xff] }
 0x3e3   :  { %v13750_v15 = vcombine.high %v695_v5, %v703_v6  ;;  %v13752_v10 = vcombine.high %v696_v7, %v704_v8  ;;  %v13749_v58 = vcombine.low %v695_v5, %v703_v6  ;;  %v13751_v13 = vcombine.low %v696_v7, %v704_v8  ;;  %v791_v8 = vld [vmem:[#allocation4 + $0x14b0] sm:$0xff] }
 0x3e5   :  { %7415 = vmatpush1.bf16.msra.mxu0 %v13653_v11  ;;  %7587 = vmatpush1.bf16.msra.mxu1 %v13655_v45  ;;  %v711_v11 = vld [vmem:[#allocation4 + $0x1230] sm:$0xff] }
 0x3e6   :  { %7416 = vmatprep.subr.bf16.mxu0 %v13670_v46  ;;  %7588 = vmatprep.subr.bf16.mxu1 %v13672_v12  ;;  %v719_v45 = vld [vmem:[#allocation4 + $0x1270] sm:$0xff]  ;;  %v712_v46 = vld [vmem:[#allocation4 + $0x1238] sm:$0xff] }
 0x3e7   :  { %v720_v12 = vld [vmem:[#allocation4 + $0x1278] sm:$0xff]  ;;  %v13766_v14 = vcombine.high %v711_v11, %v719_v45 }
 0x3e8   :  { %v13767_v53 = vcombine.low %v712_v46, %v720_v12 }
 0x3e9   :  { %7417 = vmatpush1.bf16.msra.mxu0 %v13669_v24  ;;  %7589 = vmatpush1.bf16.msra.mxu1 %v13671_v19  ;;  %v735_v24 = vld [vmem:[#allocation4 + $0x12f0] sm:$0xff]  ;;  %v728_v19 = vld [vmem:[#allocation4 + $0x12b8] sm:$0xff] }
 0x3ea   :  { %7418 = vmatprep.subr.bf16.mxu0 %v13686_v20  ;;  %7590 = vmatprep.subr.bf16.mxu1 %v13688_v21  ;;  %v736_v20 = vld [vmem:[#allocation4 + $0x12f8] sm:$0xff]  ;;  %v13765_v21 = vcombine.low %v711_v11, %v719_v45  ;;  %v13782_v54 = vcombine.high %v727_v16, %v735_v24 }
 0x3eb   :  { %v13784_v23 = vcombine.high %v728_v19, %v736_v20  ;;  %v13783_v38 = vcombine.low %v728_v19, %v736_v20  ;;  %v823_v20 = vld [vmem:[#allocation4 + $0x15b0] sm:$0xff] }
 0x3ed   :  { %7419 = vmatpush1.bf16.msra.mxu0 %v13685_v26  ;;  %7591 = vmatpush1.bf16.msra.mxu1 %v13687_v32  ;;  %v751_v26 = vld [vmem:[#allocation4 + $0x1370] sm:$0xff]  ;;  %v744_v32 = vld [vmem:[#allocation4 + $0x1338] sm:$0xff] }
 0x3ee   :  { %7431 = vmatprep.subr.bf16.mxu0 %v13702_v33  ;;  %7603 = vmatprep.subr.bf16.mxu1 %v13704_v34  ;;  %v752_v33 = vld [vmem:[#allocation4 + $0x1378] sm:$0xff]  ;;  %v13781_v34 = vcombine.low %v727_v16, %v735_v24  ;;  %v13798_v39 = vcombine.high %v743_v25, %v751_v26 }
 0x3ef   :  { %v13800_v42 = vcombine.high %v744_v32, %v752_v33  ;;  %v13799_v59 = vcombine.low %v744_v32, %v752_v33  ;;  %v839_v33 = vld [vmem:[#allocation4 + $0x1630] sm:$0xff] }
 0x3f0   :  { %7421 = vmatmul.mubr.bf16.vlgmr.msra.gmra.mrb[12].mxu0 %v15427_v27  ;;  %7593 = vmatmul.mubr.bf16.vlgmr.msra.gmra.mrb[12].mxu1 %v15427_v27  ;;  %v13735_v27 = vcombine.low %v680_v62, %v688_v63  ;;  %v775_v63 = vld [vmem:[#allocation4 + $0x1430] sm:$0xff] }
 0x3f1   :  { %7432 = vmatpush1.bf16.msra.mxu0 %v13701_v47  ;;  %7604 = vmatpush1.bf16.msra.mxu1 %v13703_v29  ;;  %v767_v47 = vld [vmem:[#allocation4 + $0x13f0] sm:$0xff]  ;;  %v760_v29 = vld [vmem:[#allocation4 + $0x13b8] sm:$0xff] }
 0x3f2   :  { %7433 = vmatprep.subr.bf16.mxu0 %v13718_v30  ;;  %7605 = vmatprep.subr.bf16.mxu1 %v13720_v55  ;;  %v768_v30 = vld [vmem:[#allocation4 + $0x13f8] sm:$0xff]  ;;  %v13797_v55 = vcombine.low %v743_v25, %v751_v26  ;;  %v13814_v60 = vcombine.high %v759_v44, %v767_v47 }
 0x3f3   :  { %7463 = vmatprep.mubr.bf16.mxu0 %v15441_v35  ;;  %7635 = vmatprep.mubr.bf16.mxu1 %v15441_v35  ;;  %v13768_v35 = vcombine.high %v712_v46, %v720_v12  ;;  %v13816_v62 = vcombine.high %v760_v29, %v768_v30  ;;  %v13815_v5 = vcombine.low %v760_v29, %v768_v30  ;;  %v807_v12 = vld [vmem:[#allocation4 + $0x1530] sm:$0xff] }
 0x3f4   :  { %v855_v30 = vld [vmem:[#allocation4 + $0x16b0] sm:$0xff] }
 0x3f5   :  { %7434 = vmatpush1.bf16.msra.mxu0 %v13717_v0  ;;  %7606 = vmatpush1.bf16.msra.mxu1 %v13719_v2  ;;  %v783_v0 = vld [vmem:[#allocation4 + $0x1470] sm:$0xff]  ;;  %v776_v2 = vld [vmem:[#allocation4 + $0x1438] sm:$0xff] }
 0x3f6   :  { %7435 = vmatprep.subr.bf16.mxu0 %v13734_v3  ;;  %7607 = vmatprep.subr.bf16.mxu1 %v13736_v4  ;;  %v784_v3 = vld [vmem:[#allocation4 + $0x1478] sm:$0xff]  ;;  %v13813_v4 = vcombine.low %v759_v44, %v767_v47  ;;  %v13830_v6 = vcombine.high %v775_v63, %v783_v0 }
 0x3f7   :  { %v13832_v7 = vcombine.high %v776_v2, %v784_v3  ;;  %v13831_v11 = vcombine.low %v776_v2, %v784_v3  ;;  %v871_v3 = vld [vmem:[#allocation4 + $0x1730] sm:$0xff] }
 0x3f9   :  { %7436 = vmatpush1.bf16.msra.mxu0 %v13733_v9  ;;  %7608 = vmatpush1.bf16.msra.mxu1 %v13735_v27  ;;  %v799_v9 = vld [vmem:[#allocation4 + $0x14f0] sm:$0xff]  ;;  %v792_v27 = vld [vmem:[#allocation4 + $0x14b8] sm:$0xff] }
 0x3fa   :  { %7437 = vmatprep.subr.bf16.mxu0 %v13750_v15  ;;  %7609 = vmatprep.subr.bf16.mxu1 %v13752_v10  ;;  %v800_v15 = vld [vmem:[#allocation4 + $0x14f8] sm:$0xff]  ;;  %v13829_v10 = vcombine.low %v775_v63, %v783_v0  ;;  %v13846_v45 = vcombine.high %v791_v8, %v799_v9 }
 0x3fb   :  { %v13848_v46 = vcombine.high %v792_v27, %v800_v15  ;;  %v13847_v16 = vcombine.low %v792_v27, %v800_v15  ;;  %v887_v15 = vld [vmem:[#allocation4 + $0x17b0] sm:$0xff] }
 0x3fd   :  { %7438 = vmatpush1.bf16.msra.mxu0 %v13749_v58  ;;  %7610 = vmatpush1.bf16.msra.mxu1 %v13751_v13  ;;  %v815_v58 = vld [vmem:[#allocation4 + $0x1570] sm:$0xff]  ;;  %v808_v13 = vld [vmem:[#allocation4 + $0x1538] sm:$0xff] }
 0x3fe   :  { %7439 = vmatprep.subr.bf16.mxu0 %v13766_v14  ;;  %7611 = vmatprep.subr.bf16.mxu1 %v13768_v35  ;;  %v816_v14 = vld [vmem:[#allocation4 + $0x1578] sm:$0xff]  ;;  %v13845_v35 = vcombine.low %v791_v8, %v799_v9  ;;  %v13862_v24 = vcombine.high %v807_v12, %v815_v58 }
 0x3ff   :  { %v13864_v19 = vcombine.high %v808_v13, %v816_v14  ;;  %v13863_v25 = vcombine.low %v808_v13, %v816_v14  ;;  %v903_v14 = vld [vmem:[#allocation4 + $0x1830] sm:$0xff] }
 0x401   :  { %7440 = vmatpush1.bf16.msra.mxu0 %v13765_v21  ;;  %7612 = vmatpush1.bf16.msra.mxu1 %v13767_v53  ;;  %v831_v21 = vld [vmem:[#allocation4 + $0x15f0] sm:$0xff]  ;;  %v824_v53 = vld [vmem:[#allocation4 + $0x15b8] sm:$0xff] }
 0x402   :  { %7441 = vmatprep.subr.bf16.mxu0 %v13782_v54  ;;  %7613 = vmatprep.subr.bf16.mxu1 %v13784_v23  ;;  %v832_v54 = vld [vmem:[#allocation4 + $0x15f8] sm:$0xff]  ;;  %v13861_v23 = vcombine.low %v807_v12, %v815_v58  ;;  %v13878_v26 = vcombine.high %v823_v20, %v831_v21 }
 0x403   :  { %v13880_v32 = vcombine.high %v824_v53, %v832_v54  ;;  %v13879_v44 = vcombine.low %v824_v53, %v832_v54  ;;  %v919_v54 = vld [vmem:[#allocation4 + $0x18b0] sm:$0xff] }
 0x405   :  { %7442 = vmatpush1.bf16.msra.mxu0 %v13781_v34  ;;  %7614 = vmatpush1.bf16.msra.mxu1 %v13783_v38  ;;  %v847_v34 = vld [vmem:[#allocation4 + $0x1670] sm:$0xff]  ;;  %v840_v38 = vld [vmem:[#allocation4 + $0x1638] sm:$0xff] }
 0x406   :  { %7443 = vmatprep.subr.bf16.mxu0 %v13798_v39  ;;  %7615 = vmatprep.subr.bf16.mxu1 %v13800_v42  ;;  %v848_v39 = vld [vmem:[#allocation4 + $0x1678] sm:$0xff]  ;;  %v13877_v42 = vcombine.low %v823_v20, %v831_v21  ;;  %v13894_v47 = vcombine.high %v839_v33, %v847_v34 }
 0x407   :  { %v13896_v29 = vcombine.high %v840_v38, %v848_v39  ;;  %v13895_v63 = vcombine.low %v840_v38, %v848_v39  ;;  %v935_v39 = vld [vmem:[#allocation4 + $0x1930] sm:$0xff] }
 0x409   :  { %7444 = vmatpush1.bf16.msra.mxu0 %v13797_v55  ;;  %7616 = vmatpush1.bf16.msra.mxu1 %v13799_v59  ;;  %v863_v55 = vld [vmem:[#allocation4 + $0x16f0] sm:$0xff]  ;;  %v856_v59 = vld [vmem:[#allocation4 + $0x16b8] sm:$0xff] }
 0x40a   :  { %7445 = vmatprep.subr.bf16.mxu0 %v13814_v60  ;;  %7617 = vmatprep.subr.bf16.mxu1 %v13816_v62  ;;  %v864_v60 = vld [vmem:[#allocation4 + $0x16f8] sm:$0xff]  ;;  %v13893_v62 = vcombine.low %v839_v33, %v847_v34  ;;  %v13910_v0 = vcombine.high %v855_v30, %v863_v55 }
 0x40b   :  { %v13912_v2 = vcombine.high %v856_v59, %v864_v60  ;;  %v13911_v8 = vcombine.low %v856_v59, %v864_v60  ;;  %v7707_v59 = vlaneseq }
 0x40d   :  { %7446 = vmatpush1.bf16.msra.mxu0 %v13813_v4  ;;  %7618 = vmatpush1.bf16.msra.mxu1 %v13815_v5  ;;  %v879_v4 = vld [vmem:[#allocation4 + $0x1770] sm:$0xff]  ;;  %v872_v5 = vld [vmem:[#allocation4 + $0x1738] sm:$0xff] }
 0x40e   :  { %7447 = vmatprep.subr.bf16.mxu0 %v13830_v6  ;;  %7619 = vmatprep.subr.bf16.mxu1 %v13832_v7  ;;  %v880_v6 = vld [vmem:[#allocation4 + $0x1778] sm:$0xff]  ;;  %v13909_v7 = vcombine.low %v855_v30, %v863_v55  ;;  %v13926_v9 = vcombine.high %v871_v3, %v879_v4 }
 0x40f   :  { %v13928_v27 = vcombine.high %v872_v5, %v880_v6  ;;  %v13927_v12 = vcombine.low %v872_v5, %v880_v6  ;;  %v15553_v5 = vshrl.u32 %v7707_v59, 7 }
 0x411   :  { %7448 = vmatpush1.bf16.msra.mxu0 %v13829_v10  ;;  %7620 = vmatpush1.bf16.msra.mxu1 %v13831_v11  ;;  %v895_v10 = vld [vmem:[#allocation4 + $0x17f0] sm:$0xff]  ;;  %v888_v11 = vld [vmem:[#allocation4 + $0x17b8] sm:$0xff] }
 0x412   :  { %7449 = vmatprep.subr.bf16.mxu0 %v13846_v45  ;;  %7621 = vmatprep.subr.bf16.mxu1 %v13848_v46  ;;  %v896_v45 = vld [vmem:[#allocation4 + $0x17f8] sm:$0xff]  ;;  %v13925_v46 = vcombine.low %v871_v3, %v879_v4  ;;  %v13942_v58 = vcombine.high %v887_v15, %v895_v10 }
 0x413   :  { %v13944_v13 = vcombine.high %v888_v11, %v896_v45  ;;  %v13943_v20 = vcombine.low %v888_v11, %v896_v45  ;;  %v15562_v45 = vld [vmem:[#allocation4 + $0x1ab0] sm:$0xff] }
 0x415   :  { %7450 = vmatpush1.bf16.msra.mxu0 %v13845_v35  ;;  %7622 = vmatpush1.bf16.msra.mxu1 %v13847_v16  ;;  %v911_v35 = vld [vmem:[#allocation4 + $0x1870] sm:$0xff]  ;;  %v904_v16 = vld [vmem:[#allocation4 + $0x1838] sm:$0xff] }
 0x416   :  { %7451 = vmatprep.subr.bf16.mxu0 %v13862_v24  ;;  %7623 = vmatprep.subr.bf16.mxu1 %v13864_v19  ;;  %v912_v24 = vld [vmem:[#allocation4 + $0x1878] sm:$0xff]  ;;  %v13941_v19 = vcombine.low %v887_v15, %v895_v10  ;;  %v13958_v21 = vcombine.high %v903_v14, %v911_v35  ;;  %v7743_v15 = vrot.slane %v15489_v41, 1  ;;  %v7744_v10 = vrot.slane %v15493_v49, 1 }
 0x417   :  { %v13960_v53 = vcombine.high %v904_v16, %v912_v24  ;;  %v13959_v33 = vcombine.low %v904_v16, %v912_v24  ;;  %v15570_v16 = vld [vmem:[#allocation4 + $0x1af8] sm:$0xff]  ;;  %v7746_v24 = vrot.slane %v15495_v50, 1 }
 0x419   :  { %7452 = vmatpush1.bf16.msra.mxu0 %v13861_v23  ;;  %7624 = vmatpush1.bf16.msra.mxu1 %v13863_v25  ;;  %v927_v23 = vld [vmem:[#allocation4 + $0x18f0] sm:$0xff]  ;;  %v920_v25 = vld [vmem:[#allocation4 + $0x18b8] sm:$0xff] }
 0x41a   :  { %7453 = vmatprep.subr.bf16.mxu0 %v13878_v26  ;;  %7625 = vmatprep.subr.bf16.mxu1 %v13880_v32  ;;  %v928_v26 = vld [vmem:[#allocation4 + $0x18f8] sm:$0xff]  ;;  %v13957_v32 = vcombine.low %v903_v14, %v911_v35  ;;  %v13974_v34 = vcombine.high %v919_v54, %v927_v23  ;;  %v15566_v14 = vld [vmem:[#allocation4 + $0x1af0] sm:$0xff] }
 0x41b   :  { %v13976_v38 = vcombine.high %v920_v25, %v928_v26  ;;  %v13975_v30 = vcombine.low %v920_v25, %v928_v26  ;;  %v15568_v35 = vld [vmem:[#allocation4 + $0x1ab8] sm:$0xff]  ;;  %v7805_v25 = vrot.slane %v15501_v57, 1 }
 0x41c   :  { %v14040_v59 = vcombine.high %v15568_v35, %v15570_v16 }
 0x41d   :  { %7454 = vmatpush1.bf16.msra.mxu0 %v13877_v42  ;;  %7626 = vmatpush1.bf16.msra.mxu1 %v13879_v44  ;;  %v943_v42 = vld [vmem:[#allocation4 + $0x1970] sm:$0xff]  ;;  %v936_v44 = vld [vmem:[#allocation4 + $0x1938] sm:$0xff] }
 0x41e   :  { %7455 = vmatprep.subr.bf16.mxu0 %v13894_v47  ;;  %7627 = vmatprep.subr.bf16.mxu1 %v13896_v29  ;;  %v944_v47 = vld [vmem:[#allocation4 + $0x1978] sm:$0xff]  ;;  %v13973_v29 = vcombine.low %v919_v54, %v927_v23  ;;  %v13990_v55 = vcombine.high %v935_v39, %v943_v42  ;;  %v13989_v3 = vcombine.low %v935_v39, %v943_v42  ;;  %v7804_v54 = vrot.slane %v15497_v52, 1 }
 0x41f   :  { %v13992_v60 = vcombine.high %v936_v44, %v944_v47  ;;  %v7806_v23 = vrot.slane %v15499_v56, 1  ;;  %v14038_v39 = vcombine.high %v15562_v45, %v15566_v14  ;;  %v14039_v42 = vcombine.low %v15568_v35, %v15570_v16  ;;  %v15726_v56 = vld [vmem:[#allocation4 + $0x1cb8] sm:$0xff] }
 0x421   :  { %7456 = vmatpush1.bf16.msra.mxu0 %v13893_v62  ;;  %7628 = vmatpush1.bf16.msra.mxu1 %v13895_v63  ;;  %v951_v62 = vld [vmem:[#allocation4 + $0x19b0] sm:$0xff] }
 0x422   :  { %7457 = vmatprep.subr.bf16.mxu0 %v13910_v0  ;;  %7629 = vmatprep.subr.bf16.mxu1 %v13912_v2  ;;  %v959_v63 = vld [vmem:[#allocation4 + $0x19f0] sm:$0xff]  ;;  %v952_v0 = vld [vmem:[#allocation4 + $0x19b8] sm:$0xff] }
 0x423   :  { %v960_v2 = vld [vmem:[#allocation4 + $0x19f8] sm:$0xff]  ;;  %v14006_v4 = vcombine.high %v951_v62, %v959_v63  ;;  %v14005_v11 = vcombine.low %v951_v62, %v959_v63 }
 0x424   :  { %v14008_v6 = vcombine.high %v952_v0, %v960_v2 }
 0x425   :  { %7458 = vmatpush1.bf16.msra.mxu0 %v13909_v7  ;;  %7630 = vmatpush1.bf16.msra.mxu1 %v13911_v8  ;;  %v967_v7 = vld [vmem:[#allocation4 + $0x1a30] sm:$0xff] }
 0x426   :  { %7459 = vmatprep.subr.bf16.mxu0 %v13926_v9  ;;  %7631 = vmatprep.subr.bf16.mxu1 %v13928_v27  ;;  %v975_v8 = vld [vmem:[#allocation4 + $0x1a70] sm:$0xff]  ;;  %v15555_v9 = vld [vmem:[#allocation4 + $0x1a38] sm:$0xff] }
 0x427   :  { %v15557_v27 = vld [vmem:[#allocation4 + $0x1a78] sm:$0xff]  ;;  %v14021_v26 = vcombine.low %v967_v7, %v975_v8 }
 0x429   :  { %7460 = vmatpush1.bf16.msra.mxu0 %v13925_v46  ;;  %7632 = vmatpush1.bf16.msra.mxu1 %v13927_v12  ;;  %v14007_v46 = vcombine.low %v952_v0, %v960_v2  ;;  %v14022_v12 = vcombine.high %v967_v7, %v975_v8  ;;  %v15617_v0 = vld [vmem:[#allocation4 + $0x1bb0] sm:$0xff] }
 0x42a   :  { %7461 = vmatprep.subr.bf16.mxu0 %v13942_v58  ;;  %7633 = vmatprep.subr.bf16.mxu1 %v13944_v13  ;;  %v16580_v58 = vsub.s32 0, %v15553_v5  ;;  %v16579_v13 = vsub.s32 2, %v15553_v5  ;;  %v15619_v2 = vld [vmem:[#allocation4 + $0x1bf0] sm:$0xff] }
 0x42b   :  { %v15629_v7 = vld [vmem:[#allocation4 + $0x1c30] sm:$0xff] }
 0x42c   :  { %v15631_v8 = vld [vmem:[#allocation4 + $0x1c70] sm:$0xff] }
 0x42d   :  { %7462 = vmatpush1.bf16.msra.mxu0 %v13941_v19  ;;  %7634 = vmatpush1.bf16.msra.mxu1 %v13943_v20  ;;  %v14024_v19 = vcombine.high %v15555_v9, %v15557_v27  ;;  %v7689_v20 = vld [vmem:[#allocation6] sm:$0xf] }
 0x42e   :  { %7474 = vmatprep.subr.bf16.mxu0 %v13958_v21  ;;  %7646 = vmatprep.subr.bf16.mxu1 %v13960_v53  ;;  %v16578_v21 = vsub.s32 1, %v15553_v5  ;;  %v16577_v53 = vsub.s32 3, %v15553_v5 }
 0x430   :  { %7464 = vmatmul.mubr.bf16.vlgmr.msra.gmra.mrb[12].mxu0 %v15449_v43  ;;  %7636 = vmatmul.mubr.bf16.vlgmr.msra.gmra.mrb[12].mxu1 %v15449_v43  ;;  %v13991_v43 = vcombine.low %v936_v44, %v944_v47  ;;  %v15592_v44 = vld [vmem:[#allocation4 + $0x1b38] sm:$0xff]  ;;  %v15613_v62 = vrot.slane %v7689_v20, %v16577_v53 }
 0x431   :  { %7475 = vmatpush1.bf16.msra.mxu0 %v13957_v32  ;;  %7647 = vmatpush1.bf16.msra.mxu1 %v13959_v33  ;;  %v15580_v32 = vld [vmem:[#allocation4 + $0x1b30] sm:$0xff]  ;;  %v15594_v47 = vld [vmem:[#allocation4 + $0x1b78] sm:$0xff] }
 0x432   :  { %7476 = vmatprep.subr.bf16.mxu0 %v13974_v34  ;;  %7648 = vmatprep.subr.bf16.mxu1 %v13976_v38  ;;  %v15582_v33 = vld [vmem:[#allocation4 + $0x1b70] sm:$0xff]  ;;  %v14023_v34 = vcombine.low %v15555_v9, %v15557_v27  ;;  %v14037_v38 = vcombine.low %v15562_v45, %v15566_v14  ;;  %v14056_v9 = vcombine.high %v15592_v44, %v15594_v47  ;;  %v15635_v27 = vld [vmem:[#allocation4 + $0x1c38] sm:$0xff] }
 0x433   :  { %7506 = vmatprep.mubr.bf16.mxu0 %v15463_v51  ;;  %7678 = vmatprep.mubr.bf16.mxu1 %v15463_v51  ;;  %v7745_v51 = vrot.slane %v15491_v48, 1  ;;  %v14054_v63 = vcombine.high %v15580_v32, %v15582_v33  ;;  %v14069_v45 = vcombine.low %v15617_v0, %v15619_v2 }
 0x435   :  { %7477 = vmatpush1.bf16.msra.mxu0 %v13973_v29  ;;  %7649 = vmatpush1.bf16.msra.mxu1 %v13975_v30  ;;  %v7807_v29 = vrot.slane %v15503_v61, 1  ;;  %v15599_v30 = vrot.slane %v7689_v20, %v16580_v58  ;;  %v7903_v61 = vld [vmem:[#allocation2 + $0x10] sm:$0x33] }
 0x436   :  { %7478 = vmatprep.subr.bf16.mxu0 %v13990_v55  ;;  %7650 = vmatprep.subr.bf16.mxu1 %v13992_v60  ;;  %v15603_v55 = vrot.slane %v7689_v20, %v16579_v13  ;;  %v15609_v60 = vrot.slane %v7689_v20, %v16578_v21 }
 0x439   :  { %7479 = vmatpush1.bf16.msra.mxu0 %v13989_v3  ;;  %7651 = vmatpush1.bf16.msra.mxu1 %v13991_v43  ;;  %v15621_v3 = vld [vmem:[#allocation4 + $0x1bb8] sm:$0xff]  ;;  %v14053_v43 = vcombine.low %v15580_v32, %v15582_v33  ;;  %v15716_v32 = vld [vmem:[#allocation4 + $0x1cb0] sm:$0xff] }
 0x43a   :  { %7480 = vmatprep.subr.bf16.mxu0 %v14006_v4  ;;  %7652 = vmatprep.subr.bf16.mxu1 %v14008_v6  ;;  %v14055_v4 = vcombine.low %v15592_v44, %v15594_v47  ;;  %v15627_v6 = vld [vmem:[#allocation4 + $0x1bf8] sm:$0xff]  ;;  %v15718_v33 = vld [vmem:[#allocation4 + $0x1cf0] sm:$0xff] }
 0x43b   :  { %v14071_v14 = vcombine.low %v15621_v3, %v15627_v6 }
 0x43d   :  { %7481 = vmatpush1.bf16.msra.mxu0 %v14005_v11  ;;  %7653 = vmatpush1.bf16.msra.mxu1 %v14007_v46  ;;  %v15637_v11 = vld [vmem:[#allocation4 + $0x1c78] sm:$0xff]  ;;  %v14070_v46 = vcombine.high %v15617_v0, %v15619_v2  ;;  %v16609_v0 = vcombine.high %v15629_v7, %v15631_v8 }
 0x43e   :  { %7482 = vmatprep.subr.bf16.mxu0 %v14022_v12  ;;  %7654 = vmatprep.subr.bf16.mxu1 %v14024_v19  ;;  %v14072_v19 = vcombine.high %v15621_v3, %v15627_v6  ;;  %v16610_v3 = vcombine.high %v15635_v27, %v15637_v11  ;;  %v1071_v6 = vld [vmem:[#allocation4 + $0x1d70] sm:$0xff] }
 0x441   :  { %7483 = vmatpush1.bf16.msra.mxu0 %v14021_v26  ;;  %7655 = vmatpush1.bf16.msra.mxu1 %v14023_v34 }
 0x442   :  { %7484 = vmatprep.subr.bf16.mxu0 %v14038_v39  ;;  %7656 = vmatprep.subr.bf16.mxu1 %v14040_v59 }
 0x443   :  { %v7164_v12 = vpop.f32.mrb[8].mxu0  ;;  %v7336_v59 = vpop.f32.mrb[8].mxu1 }
 0x444   :  { %v7751_v34 = vadd.f32 %v7743_v15, %v7164_v12  ;;  %v7812_v39 = vadd.f32 %v7804_v54, %v7164_v12  ;;  %v7166_v53 = vpop.f32.mrb[9].mxu0  ;;  %v7753_v58 = vadd.f32 %v7745_v51, %v7336_v59  ;;  %v7814_v20 = vadd.f32 %v7806_v23, %v7336_v59  ;;  %v7338_v12 = vpop.f32.mrb[9].mxu1 }
 0x445   :  { %v7752_v41 = vadd.f32 %v7744_v10, %v7166_v53  ;;  %v7813_v15 = vadd.f32 %v7805_v25, %v7166_v53  ;;  %v7168_v26 = vpop.f32.mrb[10].mxu0  ;;  %7485 = vmatpush1.bf16.msra.mxu0 %v14037_v38  ;;  %v7754_v48 = vadd.f32 %v7746_v24, %v7338_v12  ;;  %v7815_v51 = vadd.f32 %v7807_v29, %v7338_v12  ;;  %v7340_v49 = vpop.f32.mrb[10].mxu1 }
 0x446   :  { %v7755_v21 = vadd.f32 %v7751_v34, %v15599_v30  ;;  %v7820_v13 = vadd.f32 %v7812_v39, %v15599_v30  ;;  %7657 = vmatpush1.bf16.msra.mxu1 %v14039_v42  ;;  %v7170_v10 = vpop.f32.mrb[11].mxu0  ;;  %v7757_v53 = vadd.f32 %v7753_v58, %v15603_v55  ;;  %v7822_v38 = vadd.f32 %v7814_v20, %v15603_v55  ;;  %v7342_v24 = vpop.f32.mrb[11].mxu1  ;;  %v15060_v58 = vld [vmem:[#allocation11 + $0xf0] sm:$0xff]  }
 0x447   :  { %v7756_v34 = vadd.f32 %v7752_v41, %v15609_v60  ;;  %v7821_v39 = vadd.f32 %v7813_v15, %v15609_v60  ;;  %7486 = vmatprep.subr.bf16.mxu0 %v14054_v63  ;;  %v7758_v16 = vadd.f32 %v7754_v48, %v15613_v62  ;;  %v7823_v42 = vadd.f32 %v7815_v51, %v15613_v62 }
 0x448   :  { %v7759_v59 = vmax.f32 %v7755_v21, 0.0  ;;  %v7828_v35 = vmax.f32 %v7820_v13, 0.0  ;;  %7658 = vmatprep.subr.bf16.mxu1 %v14056_v9  ;;  %v7761_v20 = vmax.f32 %v7757_v53, 0.0  ;;  %v7830_v41 = vmax.f32 %v7822_v38, 0.0 }
 0x449   :  { %v7760_v15 = vmax.f32 %v7756_v34, 0.0  ;;  %v7829_v12 = vmax.f32 %v7821_v39, 0.0  ;;  %v16603_v21 = vmov 0  ;;  %7487 = vmatpush1.bf16.msra.mxu0 %v14053_v43  ;;  %v7762_v63 = vmax.f32 %v7758_v16, 0.0 }
 0x44a   :  { %v16604_v21 = vsel %vm15696_vm14, 4294967295, %v16603_v21  ;;  %v7831_v9 = vmax.f32 %v7823_v42, 0.0  ;;  %v7816_v48 = vadd.f32 %v7804_v54, %v7168_v26  ;;  %v7818_v51 = vadd.f32 %v7806_v23, %v7340_v49  ;;  %7659 = vmatpush1.bf16.msra.mxu1 %v14055_v4  ;;  %7488 = vmatprep.subr.bf16.mxu0 %v14070_v46  ;;  %v15728_v54 = vld [vmem:[#allocation4 + $0x1cf8] sm:$0xff]  ;;  %v7890_v23 = vld [vmem:[#allocation2] sm:$0x88] }
 0x44b   :  { %v14775_v43 = vpack.c.bf16 %v7760_v15, %v7759_v59  ;;  %v15720_v53 = vpack.c.bf16 %v7829_v12, %v7828_v35  ;;  %v7817_v38 = vadd.f32 %v7805_v25, %v7170_v10  ;;  %v7819_v52 = vadd.f32 %v7807_v29, %v7342_v24  ;;  %7660 = vmatprep.subr.bf16.mxu1 %v14072_v19  ;;  %v7893_v29 = vld [vmem:[#allocation2 + $0x8] sm:$0x88]  ;;  %v7906_v10 = vld [vmem:[#allocation2 + $0x18] sm:$0x33] }
 0x44c   :  { %v14776_v44 = vpack.c.bf16 %v7762_v63, %v7761_v20  ;;  %v14782_v47 = vpack.c.bf16 %v7831_v9, %v7830_v41  ;;  %v7824_v4 = vadd.f32 %v7816_v48, %v15599_v30  ;;  %v7826_v57 = vadd.f32 %v7818_v51, %v15603_v55  ;;  %v1072_v20 = vld [vmem:[#allocation4 + $0x1d78] sm:$0xff] }
 0x44d   :  { %v7875_v25 = vrot.slane %v14775_v43, 5  ;;  %v7825_v46 = vadd.f32 %v7817_v38, %v15609_v60  ;;  %v7827_v19 = vadd.f32 %v7819_v52, %v15613_v62  ;;  %7489 = vmatpush1.bf16.msra.mxu0 %v14069_v45  ;;  %v14102_v26 = vcombine.high %v15716_v32, %v15718_v33  ;;  %v1063_v45 = vld [vmem:[#allocation4 + $0x1d30] sm:$0xff]  ;;  %v8003_v52 = vld [vmem:[#allocation2 + $0x28] sm:$0xee] }
 0x44e   :  { %v7876_v49 = vrot.slane %v14776_v44, 5  ;;  %v7832_v34 = vmax.f32 %v7824_v4, 0.0  ;;  %v7834_v39 = vmax.f32 %v7826_v57, 0.0  ;;  %7661 = vmatpush1.bf16.msra.mxu1 %v14071_v14  ;;  %7490 = vmatprep.subr.bf16.mxu0 %v16609_v0  ;;  %v14104_v2 = vcombine.high %v15726_v56, %v15728_v54  ;;  %v1064_v14 = vld [vmem:[#allocation4 + $0x1d38] sm:$0xff]  ;;  %v8000_v38 = vld [vmem:[#allocation2 + $0x20] sm:$0xee] }
 0x44f   :  { %v7877_v59 = vrot.slane %v7875_v25, 4  ;;  %v7891_v35 = vsel %vm7889_vm0, %v7875_v25, %v7890_v23  ;;  %v7833_v16 = vmax.f32 %v7825_v46, 0.0  ;;  %v7835_v42 = vmax.f32 %v7827_v19, 0.0  ;;  %7662 = vmatprep.subr.bf16.mxu1 %v16610_v3  ;;  %v1079_v4 = vld [vmem:[#allocation4 + $0x1db0] sm:$0xff]  ;;  %v1080_v25 = vld [vmem:[#allocation4 + $0x1db8] sm:$0xff] }
 0x450   :  { %7892 = vst [vmem:[#allocation2] sm:$0x88] %v7891_v35  ;;  %v7878_v41 = vrot.slane %v7876_v49, 4  ;;  %v7894_v15 = vsel %vm7889_vm0, %v7876_v49, %v7893_v29  ;;  %v16611_v12 = vmov 0  ;;  %v14101_v63 = vcombine.low %v15716_v32, %v15718_v33  ;;  %v1087_v57 = vld [vmem:[#allocation4 + $0x1df0] sm:$0xff]  ;;  %v1120_v3 = vld [vmem:[#allocation4 + $0x1ef8] sm:$0xff] }
 0x451   :  { %v16612_v12 = vsel %vm15776_vm3, 4294967295, %v16611_v12  ;;  %v7904_v9 = vsel %vm7902_vm1, %v7877_v59, %v7903_v61  ;;  %7895 = vst [vmem:[#allocation2 + $0x8] sm:$0x88] %v7894_v15  ;;  %v14783_v48 = vpack.c.bf16 %v7833_v16, %v7832_v34  ;;  %v14784_v50 = vpack.c.bf16 %v7835_v42, %v7834_v39  ;;  %v1095_v49 = vld [vmem:[#allocation4 + $0x1e30] sm:$0xff]  ;;  %v1096_v34 = vld [vmem:[#allocation4 + $0x1e38] sm:$0xff] }
 0x452   :  { %v16613_v51 = vcombine.low %v15629_v7, %v15631_v8  ;;  %v14103_v43 = vcombine.low %v15726_v56, %v15728_v54  ;;  %7905 = vst [vmem:[#allocation2 + $0x10] sm:$0x33] %v7904_v9  ;;  %v7907_v32 = vsel %vm7902_vm1, %v7878_v41, %v7906_v10  ;;  %v16616_v7 = vcombine.low %v15635_v27, %v15637_v11  ;;  %v1088_v27 = vld [vmem:[#allocation4 + $0x1df8] sm:$0xff]  ;;  %v1103_v10 = vld [vmem:[#allocation4 + $0x1e70] sm:$0xff] }
 0x453   :  { %v14118_v8 = vcombine.high %v1063_v45, %v1071_v6  ;;  %v14120_v56 = vcombine.high %v1064_v14, %v1072_v20  ;;  %v14215_v13 = vrot.slane %v15720_v53, 10  ;;  %7908 = vst [vmem:[#allocation2 + $0x18] sm:$0x33] %v7907_v32  ;;  %v14216_v54 = vrot.slane %v14782_v47, 10  ;;  %v1104_v39 = vld [vmem:[#allocation4 + $0x1e78] sm:$0xff]  ;;  %v1111_v35 = vld [vmem:[#allocation4 + $0x1eb0] sm:$0xff] }
 0x454   :  { %7491 = vmatpush1.bf16.msra.mxu0 %v16613_v51  ;;  %7663 = vmatpush1.bf16.msra.mxu1 %v16616_v7  ;;  %v7985_v23 = vrot.slane %v14783_v48, 6  ;;  %v7989_v44 = vrot.slane %v14784_v50, 6  ;;  %v14117_v47 = vcombine.low %v1063_v45, %v1071_v6  ;;  %v14119_v61 = vcombine.low %v1064_v14, %v1072_v20  ;;  %v1119_v16 = vld [vmem:[#allocation4 + $0x1ef0] sm:$0xff]  ;;  %v1112_v42 = vld [vmem:[#allocation4 + $0x1eb8] sm:$0xff] }
 0x455   :  { %7492 = vmatprep.subr.bf16.mxu0 %v14102_v26  ;;  %7664 = vmatprep.subr.bf16.mxu1 %v14104_v2  ;;  %v14134_v19 = vcombine.high %v1079_v4, %v1087_v57  ;;  %v14136_v26 = vcombine.high %v1080_v25, %v1088_v27  ;;  %v14133_v0 = vcombine.low %v1079_v4, %v1087_v57  ;;  %v1127_v15 = vld [vmem:[#allocation4 + $0x1f30] sm:$0xff]  ;;  %v1128_v9 = vld [vmem:[#allocation4 + $0x1f38] sm:$0xff]  ;;  %vm7941_vm0 = vsmask.f32 7946 }
 0x456   :  { %v7986_v11 = vsel %vm15799_vm5, %v14215_v13, %v7985_v23  ;;  %v7990_v53 = vsel %vm15799_vm5, %v14216_v54, %v7989_v44  ;;  %v14135_v2 = vcombine.low %v1080_v25, %v1088_v27  ;;  %v14150_v45 = vcombine.high %v1095_v49, %v1103_v10  ;;  %v1136_v48 = vld [vmem:[#allocation4 + $0x1f78] sm:$0xff]  ;;  %v1143_v33 = vld [vmem:[#allocation4 + $0x1fb0] sm:$0xff]  ;;  %v8012_v23 = vld [vmem:[#allocation8] sm:$0xff] }
 0x457   :  { %v8001_v29 = vsel %vm7999_vm6, %v7986_v11, %v8000_v38  ;;  %v8004_v46 = vsel %vm7999_vm6, %v7990_v53, %v8003_v52  ;;  %v14152_v59 = vcombine.high %v1096_v34, %v1104_v39  ;;  %v14149_v6 = vcombine.low %v1095_v49, %v1103_v10  ;;  %v1151_v38 = vld [vmem:[#allocation4 + $0x1ff0] sm:$0xff]  ;;  %v1144_v52 = vld [vmem:[#allocation4 + $0x1fb8] sm:$0xff]  ;;  %v8020_v44 = vld [vmem:[#allocation8 + $0x40] sm:$0xff] }
 0x458   :  { %7493 = vmatpush1.bf16.msra.mxu0 %v14101_v63  ;;  %7665 = vmatpush1.bf16.msra.mxu1 %v14103_v43  ;;  %8002 = vst [vmem:[#allocation2 + $0x20] sm:$0xee] %v8001_v29  ;;  %8005 = vst [vmem:[#allocation2 + $0x28] sm:$0xee] %v8004_v46  ;;  %v14151_v14 = vcombine.low %v1096_v34, %v1104_v39  ;;  %v14166_v20 = vcombine.high %v1111_v35, %v1119_v16  ;;  %v1135_v63 = vld [vmem:[#allocation4 + $0x1f70] sm:$0xff]  ;;  %v1152_v7 = vld [vmem:[#allocation4 + $0x1ff8] sm:$0xff] }
 0x459   :  { %7494 = vmatprep.subr.bf16.mxu0 %v14118_v8  ;;  %7666 = vmatprep.subr.bf16.mxu1 %v14120_v56  ;;  %v14168_v41 = vcombine.high %v1112_v42, %v1120_v3  ;;  %v14165_v50 = vcombine.low %v1111_v35, %v1119_v16  ;;  %v14167_v51 = vcombine.low %v1112_v42, %v1120_v3  ;;  %v8013_v4 = vld [vmem:[#allocation8 + $0x8] sm:$0xff]  ;;  %v8044_v34 = vld [vmem:[#allocation8 + $0x100] sm:$0xff]  ;;  %vm15839_vm5 = vmand %vm16582_vm7, %vm7853_vm9  ;;  %vm7956_vm7 = vcmask 1044484  }
 0x45a   :  { %v14182_v43 = vcombine.high %v1127_v15, %v1135_v63  ;;  %v14184_v32 = vcombine.high %v1128_v9, %v1136_v48  ;;  %v14181_v8 = vcombine.low %v1127_v15, %v1135_v63  ;;  %v14183_v56 = vcombine.low %v1128_v9, %v1136_v48  ;;  %v8021_v57 = vld [vmem:[#allocation8 + $0x48] sm:$0xff]  ;;  %v8052_v39 = vld [vmem:[#allocation8 + $0x140] sm:$0xff]  ;;  %vm15849_vm6 = vmand %vm16583_vm10, %vm7856_vm11 }
 0x45b   :  { %v14198_v13 = vcombine.high %v1143_v33, %v1151_v38  ;;  %v14200_v54 = vcombine.high %v1144_v52, %v1152_v7  ;;  %v14197_v25 = vcombine.low %v1143_v33, %v1151_v38  ;;  %v14199_v27 = vcombine.low %v1144_v52, %v1152_v7  ;;  %v8029_v29 = vld [vmem:[#allocation8 + $0x88] sm:$0xff]  ;;  %v8060_v42 = vld [vmem:[#allocation8 + $0x180] sm:$0xff]  ;;  %vm7858_vm9 = vmor %vm15849_vm6, %vm15839_vm5 }
 0x45c   :  { %7495 = vmatpush1.bf16.msra.mxu0 %v14117_v47  ;;  %7667 = vmatpush1.bf16.msra.mxu1 %v14119_v61  ;;  %v14226_v11 = vcombine.high %v8012_v23, %v8020_v44  ;;  %v14228_v53 = vcombine.high %v8013_v4, %v8021_v57  ;;  %v8028_v47 = vld [vmem:[#allocation8 + $0x80] sm:$0xff]  ;;  %v8037_v46 = vld [vmem:[#allocation8 + $0xc8] sm:$0xff]  ;;  %v14258_v35 = vcombine.high %v8044_v34, %v8052_v39  ;;  %vm7944_vm11 = vsmask.f32 7962  ;;  %vm15881_vm1 = vmand %vm7940_vm15, %vm7941_vm0 }
 0x45d   :  { %7496 = vmatprep.subr.bf16.mxu0 %v14134_v19  ;;  %7668 = vmatprep.subr.bf16.mxu1 %v14136_v26  ;;  %v8036_v61 = vld [vmem:[#allocation8 + $0xc0] sm:$0xff]  ;;  %v14225_v19 = vcombine.low %v8012_v23, %v8020_v44  ;;  %v14227_v26 = vcombine.low %v8013_v4, %v8021_v57  ;;  %v14244_v10 = vcombine.high %v8029_v29, %v8037_v46  ;;  %v8077_v48 = vld [vmem:[#allocation8 + $0x208] sm:$0xff]  ;;  %vm7957_vm10 = vsmask.f32 4352 }
 0x45e   :  { %v14242_v49 = vcombine.high %v8028_v47, %v8036_v61  ;;  %v8068_v3 = vld [vmem:[#allocation8 + $0x1c0] sm:$0xff]  ;;  %v8093_v7 = vld [vmem:[#allocation8 + $0x288] sm:$0xff]  ;;  %vm15897_vm15 = vmand %vm7956_vm7, %vm7957_vm10  ;;  %vm16631_vm0 = vcmask 1046532   ;;  %vm16632_vm3 = vcmask 1042432  }
 0x45f   :  { %v14274_v15 = vcombine.high %v8060_v42, %v8068_v3  ;;  %v8076_v63 = vld [vmem:[#allocation8 + $0x200] sm:$0xff]  ;;  %v8109_v57 = vld [vmem:[#allocation8 + $0x308] sm:$0xff]  ;;  %vm15903_vm14 = vmor %vm16632_vm3, %vm16631_vm0  ;;  %vm16636_vm3 = vcmask 1041408   ;;  %vm12281_vm0 = vsmask.f32 5390 }
 0x460   :  { %7497 = vmatpush1.bf16.msra.mxu0 %v14133_v0  ;;  %7669 = vmatpush1.bf16.msra.mxu1 %v14135_v2  ;;  %v8045_v0 = vld [vmem:[#allocation8 + $0x108] sm:$0xff]  ;;  %v8084_v9 = vld [vmem:[#allocation8 + $0x240] sm:$0xff]  ;;  %vm7959_vm7 = vmor %vm15897_vm15, %vm15870_vm4  ;;  %vm12280_vm15 = vcmask 1045507  }
 0x461   :  { %7498 = vmatprep.subr.bf16.mxu0 %v14150_v45  ;;  %7670 = vmatprep.subr.bf16.mxu1 %v14152_v59  ;;  %v8053_v2 = vld [vmem:[#allocation8 + $0x148] sm:$0xff]  ;;  %v14241_v45 = vcombine.low %v8028_v47, %v8036_v61  ;;  %v14243_v59 = vcombine.low %v8029_v29, %v8037_v46  ;;  %v8092_v38 = vld [vmem:[#allocation8 + $0x280] sm:$0xff]  ;;  %vm16637_vm10 = vmmov %vm16636_vm3 }
 0x462   :  { %v14260_v16 = vcombine.high %v8045_v0, %v8053_v2  ;;  %v8100_v52 = vld [vmem:[#allocation8 + $0x2c0] sm:$0xff]  ;;  %v8125_v46 = vld [vmem:[#allocation8 + $0x388] sm:$0xff] }
 0x463   :  { %v8108_v44 = vld [vmem:[#allocation8 + $0x300] sm:$0xff] }
 0x464   :  { %7499 = vmatpush1.bf16.msra.mxu0 %v14149_v6  ;;  %7671 = vmatpush1.bf16.msra.mxu1 %v14151_v14  ;;  %v8061_v6 = vld [vmem:[#allocation8 + $0x188] sm:$0xff]  ;;  %v8116_v4 = vld [vmem:[#allocation8 + $0x340] sm:$0xff] }
 0x465   :  { %7500 = vmatprep.subr.bf16.mxu0 %v14166_v20  ;;  %7672 = vmatprep.subr.bf16.mxu1 %v14168_v41  ;;  %v8069_v14 = vld [vmem:[#allocation8 + $0x1c8] sm:$0xff]  ;;  %v14257_v20 = vcombine.low %v8044_v34, %v8052_v39  ;;  %v14259_v41 = vcombine.low %v8045_v0, %v8053_v2  ;;  %v8124_v61 = vld [vmem:[#allocation8 + $0x380] sm:$0xff] }
 0x466   :  { %v8132_v29 = vld [vmem:[#allocation8 + $0x3c0] sm:$0xff]  ;;  %v8141_v2 = vld [vmem:[#allocation8 + $0x408] sm:$0xff] }
 0x467   :  { %v8140_v39 = vld [vmem:[#allocation8 + $0x400] sm:$0xff] }
 0x468   :  { %7501 = vmatpush1.bf16.msra.mxu0 %v14165_v50  ;;  %7673 = vmatpush1.bf16.msra.mxu1 %v14167_v51  ;;  %v8085_v50 = vld [vmem:[#allocation8 + $0x248] sm:$0xff]  ;;  %v14273_v51 = vcombine.low %v8060_v42, %v8068_v3  ;;  %v8148_v0 = vld [vmem:[#allocation8 + $0x440] sm:$0xff] }
 0x469   :  { %7502 = vmatprep.subr.bf16.mxu0 %v14182_v43  ;;  %7674 = vmatprep.subr.bf16.mxu1 %v14184_v32  ;;  %v14275_v43 = vcombine.low %v8061_v6, %v8069_v14  ;;  %v14290_v32 = vcombine.high %v8076_v63, %v8084_v9  ;;  %v14292_v33 = vcombine.high %v8077_v48, %v8085_v50 }
 0x46a   :  { %v14353_v3 = vcombine.low %v8140_v39, %v8148_v0 }
 0x46c   :  { %7503 = vmatpush1.bf16.msra.mxu0 %v14181_v8  ;;  %7675 = vmatpush1.bf16.msra.mxu1 %v14183_v56  ;;  %v8101_v8 = vld [vmem:[#allocation8 + $0x2c8] sm:$0xff]  ;;  %v14289_v56 = vcombine.low %v8076_v63, %v8084_v9 }
 0x46d   :  { %7504 = vmatprep.subr.bf16.mxu0 %v14198_v13  ;;  %7676 = vmatprep.subr.bf16.mxu1 %v14200_v54  ;;  %v14291_v13 = vcombine.low %v8077_v48, %v8085_v50  ;;  %v14306_v54 = vcombine.high %v8092_v38, %v8100_v52  ;;  %v14308_v23 = vcombine.high %v8093_v7, %v8101_v8  ;;  %v8172_v50 = vld [vmem:[#allocation8 + $0x500] sm:$0xff] }
 0x470   :  { %7505 = vmatpush1.bf16.msra.mxu0 %v14197_v25  ;;  %7677 = vmatpush1.bf16.msra.mxu1 %v14199_v27  ;;  %v8117_v25 = vld [vmem:[#allocation8 + $0x348] sm:$0xff]  ;;  %v14305_v27 = vcombine.low %v8092_v38, %v8100_v52 }
 0x471   :  { %11118 = vmatprep.subr.bf16.mxu0 %v14226_v11  ;;  %11220 = vmatprep.subr.bf16.mxu1 %v14228_v53  ;;  %v14307_v11 = vcombine.low %v8093_v7, %v8101_v8  ;;  %v14322_v53 = vcombine.high %v8108_v44, %v8116_v4  ;;  %v14324_v47 = vcombine.high %v8109_v57, %v8117_v25  ;;  %v8188_v8 = vld [vmem:[#allocation8 + $0x580] sm:$0xff] }
 0x473   :  { %7507 = vmatmul.mubr.bf16.vlgmr.msra.gmra.mrb[12].mxu0 %v15471_v1  ;;  %7679 = vmatmul.mubr.bf16.vlgmr.msra.gmra.mrb[12].mxu1 %v15471_v1  ;;  %v14276_v1 = vcombine.high %v8061_v6, %v8069_v14  ;;  %v8156_v14 = vld [vmem:[#allocation8 + $0x480] sm:$0xff] }
 0x474   :  { %11119 = vmatpush1.bf16.msra.mxu0 %v14225_v19  ;;  %11221 = vmatpush1.bf16.msra.mxu1 %v14227_v26  ;;  %v8133_v19 = vld [vmem:[#allocation8 + $0x3c8] sm:$0xff]  ;;  %v14321_v26 = vcombine.low %v8108_v44, %v8116_v4 }
 0x475   :  { %11120 = vmatprep.subr.bf16.mxu0 %v14242_v49  ;;  %11222 = vmatprep.subr.bf16.mxu1 %v14244_v10  ;;  %v14323_v49 = vcombine.low %v8109_v57, %v8117_v25  ;;  %v14338_v10 = vcombine.high %v8124_v61, %v8132_v29  ;;  %v14340_v34 = vcombine.high %v8125_v46, %v8133_v19  ;;  %v8197_v44 = vld [vmem:[#allocation8 + $0x5c8] sm:$0xff]  ;;  %v8204_v25 = vld [vmem:[#allocation8 + $0x600] sm:$0xff] }
 0x478   :  { %11121 = vmatpush1.bf16.msra.mxu0 %v14241_v45  ;;  %11223 = vmatpush1.bf16.msra.mxu1 %v14243_v59  ;;  %v8149_v45 = vld [vmem:[#allocation8 + $0x448] sm:$0xff]  ;;  %v14337_v59 = vcombine.low %v8124_v61, %v8132_v29 }
 0x479   :  { %11122 = vmatprep.subr.bf16.mxu0 %v14258_v35  ;;  %11224 = vmatprep.subr.bf16.mxu1 %v14260_v16  ;;  %v14339_v35 = vcombine.low %v8125_v46, %v8133_v19  ;;  %v14354_v16 = vcombine.high %v8140_v39, %v8148_v0  ;;  %v14356_v42 = vcombine.high %v8141_v2, %v8149_v45  ;;  %v8213_v61 = vld [vmem:[#allocation8 + $0x648] sm:$0xff]  ;;  %v8220_v19 = vld [vmem:[#allocation8 + $0x680] sm:$0xff] }
 0x47a   :  { %v14355_v6 = vcombine.low %v8141_v2, %v8149_v45  ;;  %v8229_v39 = vld [vmem:[#allocation8 + $0x6c8] sm:$0xff]  ;;  %v8236_v45 = vld [vmem:[#allocation8 + $0x700] sm:$0xff] }
 0x47c   :  { %11123 = vmatpush1.bf16.msra.mxu0 %v14257_v20  ;;  %11225 = vmatpush1.bf16.msra.mxu1 %v14259_v41  ;;  %v8164_v20 = vld [vmem:[#allocation8 + $0x4c0] sm:$0xff]  ;;  %v8157_v41 = vld [vmem:[#allocation8 + $0x488] sm:$0xff] }
 0x47d   :  { %11124 = vmatprep.subr.bf16.mxu0 %v14274_v15  ;;  %11226 = vmatprep.subr.bf16.mxu1 %v14276_v1  ;;  %v14370_v15 = vcombine.high %v8156_v14, %v8164_v20  ;;  %v8165_v1 = vld [vmem:[#allocation8 + $0x4c8] sm:$0xff]  ;;  %v14369_v63 = vcombine.low %v8156_v14, %v8164_v20  ;;  %v8252_v20 = vld [vmem:[#allocation8 + $0x780] sm:$0xff] }
 0x47e   :  { %v14371_v9 = vcombine.low %v8157_v41, %v8165_v1  ;;  %v14372_v48 = vcombine.high %v8157_v41, %v8165_v1  ;;  %v8260_v41 = vld [vmem:[#allocation8 + $0x7c0] sm:$0xff] }
 0x47f   :  { %v14466_v1 = vcombine.high %v8252_v20, %v8260_v41 }
 0x480   :  { %11125 = vmatpush1.bf16.msra.mxu0 %v14273_v51  ;;  %11227 = vmatpush1.bf16.msra.mxu1 %v14275_v43  ;;  %v8180_v51 = vld [vmem:[#allocation8 + $0x540] sm:$0xff]  ;;  %v8173_v43 = vld [vmem:[#allocation8 + $0x508] sm:$0xff] }
 0x481   :  { %11126 = vmatprep.subr.bf16.mxu0 %v14290_v32  ;;  %11228 = vmatprep.subr.bf16.mxu1 %v14292_v33  ;;  %v14386_v32 = vcombine.high %v8172_v50, %v8180_v51  ;;  %v8181_v33 = vld [vmem:[#allocation8 + $0x548] sm:$0xff]  ;;  %v14385_v38 = vcombine.low %v8172_v50, %v8180_v51  ;;  %v15817_v51 = vld [vmem:[#allocation8 + $0x800] sm:$0xff] }
 0x482   :  { %v14387_v52 = vcombine.low %v8173_v43, %v8181_v33  ;;  %v14388_v7 = vcombine.high %v8173_v43, %v8181_v33  ;;  %v15819_v43 = vld [vmem:[#allocation8 + $0x840] sm:$0xff] }
 0x483   :  { %v14481_v33 = vcombine.low %v15817_v51, %v15819_v43 }
 0x484   :  { %11127 = vmatpush1.bf16.msra.mxu0 %v14289_v56  ;;  %11229 = vmatpush1.bf16.msra.mxu1 %v14291_v13  ;;  %v8196_v56 = vld [vmem:[#allocation8 + $0x5c0] sm:$0xff]  ;;  %v8189_v13 = vld [vmem:[#allocation8 + $0x588] sm:$0xff] }
 0x485   :  { %11128 = vmatprep.subr.bf16.mxu0 %v14306_v54  ;;  %11230 = vmatprep.subr.bf16.mxu1 %v14308_v23  ;;  %v14401_v54 = vcombine.low %v8188_v8, %v8196_v56  ;;  %v14402_v23 = vcombine.high %v8188_v8, %v8196_v56  ;;  %v14403_v4 = vcombine.low %v8189_v13, %v8197_v44 }
 0x486   :  { %v14404_v57 = vcombine.high %v8189_v13, %v8197_v44 }
 0x488   :  { %11129 = vmatpush1.bf16.msra.mxu0 %v14305_v27  ;;  %11231 = vmatpush1.bf16.msra.mxu1 %v14307_v11  ;;  %v8212_v27 = vld [vmem:[#allocation8 + $0x640] sm:$0xff]  ;;  %v8205_v11 = vld [vmem:[#allocation8 + $0x608] sm:$0xff] }
 0x489   :  { %11130 = vmatprep.subr.bf16.mxu0 %v14322_v53  ;;  %11232 = vmatprep.subr.bf16.mxu1 %v14324_v47  ;;  %v14417_v53 = vcombine.low %v8204_v25, %v8212_v27  ;;  %v14418_v47 = vcombine.high %v8204_v25, %v8212_v27  ;;  %v14419_v29 = vcombine.low %v8205_v11, %v8213_v61 }
 0x48a   :  { %v14420_v46 = vcombine.high %v8205_v11, %v8213_v61 }
 0x48c   :  { %11131 = vmatpush1.bf16.msra.mxu0 %v14321_v26  ;;  %11233 = vmatpush1.bf16.msra.mxu1 %v14323_v49  ;;  %v8228_v26 = vld [vmem:[#allocation8 + $0x6c0] sm:$0xff]  ;;  %v8221_v49 = vld [vmem:[#allocation8 + $0x688] sm:$0xff] }
 0x48d   :  { %11132 = vmatprep.subr.bf16.mxu0 %v14338_v10  ;;  %11234 = vmatprep.subr.bf16.mxu1 %v14340_v34  ;;  %v14433_v10 = vcombine.low %v8220_v19, %v8228_v26  ;;  %v14434_v34 = vcombine.high %v8220_v19, %v8228_v26  ;;  %v14435_v0 = vcombine.low %v8221_v49, %v8229_v39 }
 0x48e   :  { %v14436_v2 = vcombine.high %v8221_v49, %v8229_v39 }
 0x490   :  { %11133 = vmatpush1.bf16.msra.mxu0 %v14337_v59  ;;  %11235 = vmatpush1.bf16.msra.mxu1 %v14339_v35  ;;  %v8244_v59 = vld [vmem:[#allocation8 + $0x740] sm:$0xff] }
 0x491   :  { %11134 = vmatprep.subr.bf16.mxu0 %v14354_v16  ;;  %11236 = vmatprep.subr.bf16.mxu1 %v14356_v42  ;;  %v14449_v35 = vcombine.low %v8236_v45, %v8244_v59  ;;  %v14450_v16 = vcombine.high %v8236_v45, %v8244_v59  ;;  %v8237_v42 = vld [vmem:[#allocation8 + $0x708] sm:$0xff] }
 0x494   :  { %11135 = vmatpush1.bf16.msra.mxu0 %v14353_v3  ;;  %11237 = vmatpush1.bf16.msra.mxu1 %v14355_v6  ;;  %v8245_v3 = vld [vmem:[#allocation8 + $0x748] sm:$0xff] }
 0x495   :  { %11136 = vmatprep.subr.bf16.mxu0 %v14370_v15  ;;  %11238 = vmatprep.subr.bf16.mxu1 %v14372_v48  ;;  %v14451_v6 = vcombine.low %v8237_v42, %v8245_v3  ;;  %v14452_v14 = vcombine.high %v8237_v42, %v8245_v3  ;;  %v8253_v15 = vld [vmem:[#allocation8 + $0x788] sm:$0xff] }
 0x498   :  { %11137 = vmatpush1.bf16.msra.mxu0 %v14369_v63  ;;  %11239 = vmatpush1.bf16.msra.mxu1 %v14371_v9  ;;  %v8261_v63 = vld [vmem:[#allocation8 + $0x7c8] sm:$0xff]  ;;  %v14465_v9 = vcombine.low %v8252_v20, %v8260_v41 }
 0x499   :  { %11138 = vmatprep.subr.bf16.mxu0 %v14386_v32  ;;  %11240 = vmatprep.subr.bf16.mxu1 %v14388_v7  ;;  %v14468_v48 = vcombine.high %v8253_v15, %v8261_v63  ;;  %v14467_v50 = vcombine.low %v8253_v15, %v8261_v63  ;;  %v15821_v32 = vld [vmem:[#allocation8 + $0x808] sm:$0xff]  ;;  %v7862_v63 = vld [vmem:[#allocation2 + $0x8] sm:$0x77] }
 0x49c   :  { %11139 = vmatpush1.bf16.msra.mxu0 %v14385_v38  ;;  %11241 = vmatpush1.bf16.msra.mxu1 %v14387_v52  ;;  %v14482_v38 = vcombine.high %v15817_v51, %v15819_v43  ;;  %v15827_v52 = vld [vmem:[#allocation8 + $0x848] sm:$0xff] }
 0x49d   :  { %11140 = vmatprep.subr.bf16.mxu0 %v14402_v23  ;;  %11242 = vmatprep.subr.bf16.mxu1 %v14404_v57  ;;  %v14483_v7 = vcombine.low %v15821_v32, %v15827_v52  ;;  %v14484_v8 = vcombine.high %v15821_v32, %v15827_v52 }
 0x4a0   :  { %11141 = vmatpush1.bf16.msra.mxu0 %v14401_v54  ;;  %11243 = vmatpush1.bf16.msra.mxu1 %v14403_v4 }
 0x4a1   :  { %11142 = vmatprep.subr.bf16.mxu0 %v14418_v47  ;;  %11244 = vmatprep.subr.bf16.mxu1 %v14420_v46 }
 0x4a4   :  { %11143 = vmatpush1.bf16.msra.mxu0 %v14417_v53  ;;  %11245 = vmatpush1.bf16.msra.mxu1 %v14419_v29 }
 0x4a5   :  { %11144 = vmatprep.subr.bf16.mxu0 %v14434_v34  ;;  %11246 = vmatprep.subr.bf16.mxu1 %v14436_v2  ;;  %v16619_v2 = vmov 0  ;;  %v12430_v34 = vld [vmem:[#allocation3 + $0x40] sm:$0x1c] }
 0x4a6   :  { %v16620_v2 = vsel %vm15849_vm6, 4294967295, %v16619_v2 }
 0x4a7   :  { %16621 = vst [vmem:[#allocation18_spill] sm:$0xff] %v16620_v2 }
 0x4a8   :  { %11145 = vmatpush1.bf16.msra.mxu0 %v14433_v10  ;;  %11247 = vmatpush1.bf16.msra.mxu1 %v14435_v0 }
 0x4a9   :  { %11146 = vmatprep.subr.bf16.mxu0 %v14450_v16  ;;  %11248 = vmatprep.subr.bf16.mxu1 %v14452_v14 }
 0x4ac   :  { %11147 = vmatpush1.bf16.msra.mxu0 %v14449_v35  ;;  %11249 = vmatpush1.bf16.msra.mxu1 %v14451_v6 }
 0x4ad   :  { %11148 = vmatprep.subr.bf16.mxu0 %v14466_v1  ;;  %11250 = vmatprep.subr.bf16.mxu1 %v14468_v48 }
 0x4b0   :  { %11149 = vmatpush1.bf16.msra.mxu0 %v14465_v9  ;;  %11251 = vmatpush1.bf16.msra.mxu1 %v14467_v50 }
 0x4b1   :  { %11169 = vmatprep.subr.bf16.mxu0 %v14482_v38  ;;  %11271 = vmatprep.subr.bf16.mxu1 %v14484_v8 }
 0x546   :  { %v7508_v56 = vpop.f32.mrb[12].mxu0  ;;  %v7680_v54 = vpop.f32.mrb[12].mxu1 }
 0x547   :  { %v7694_v13 = vrot.slane %v7508_v56, 7  ;;  %v7510_v23 = vpop.f32.mrb[13].mxu0  ;;  %v7696_v44 = vrot.slane %v7680_v54, 7  ;;  %v7682_v57 = vpop.f32.mrb[13].mxu1 }
 0x548   :  { %v7695_v4 = vrot.slane %v7510_v23, 7  ;;  %v7512_v25 = vpop.f32.mrb[14].mxu0  ;;  %v7697_v11 = vrot.slane %v7682_v57, 7  ;;  %v7684_v47 = vpop.f32.mrb[14].mxu1 }
 0x549   :  { %v7702_v27 = vadd.f32 %v7694_v13, %v15521_v22  ;;  %v7772_v53 = vrot.slane %v7512_v25, 7  ;;  %v7514_v61 = vpop.f32.mrb[15].mxu0  ;;  %v7704_v29 = vadd.f32 %v7696_v44, %v15523_v28  ;;  %v7776_v19 = vrot.slane %v7684_v47, 7  ;;  %v7686_v49 = vpop.f32.mrb[15].mxu1  ;;  %v7947_v25 = vld [vmem:[#allocation2 + $0x10] sm:$0xcc] }
 0x54a   :  { %v7703_v46 = vadd.f32 %v7695_v4, %v15525_v31  ;;  %v7774_v26 = vrot.slane %v7514_v61, 7  ;;  %v7705_v22 = vadd.f32 %v7697_v11, %v15527_v17  ;;  %v7778_v0 = vrot.slane %v7686_v49, 7 }
 0x54b   :  { %v7727_v10 = vadd.f32 %v15599_v30, %v7702_v27  ;;  %v7773_v39 = vsel %vm7771_vm8, %v7694_v13, %v7772_v53  ;;  %v7729_v28 = vadd.f32 %v15603_v55, %v7704_v29  ;;  %v7777_v59 = vsel %vm7771_vm8, %v7696_v44, %v7776_v19 }
 0x54c   :  { %v7728_v31 = vadd.f32 %v15609_v60, %v7703_v46  ;;  %v7784_v45 = vadd.f32 %v7773_v39, %v15529_v18  ;;  %v7730_v17 = vadd.f32 %v15613_v62, %v7705_v22  ;;  %v7786_v16 = vadd.f32 %v7777_v59, %v15531_v36  ;;  %v7859_v18 = vld [vmem:[#allocation2] sm:$0x77]  ;;  %v7950_v46 = vld [vmem:[#allocation2 + $0x18] sm:$0xcc] }
 0x54d   :  { %v7731_v35 = vmax.f32 %v7727_v10, 0.0  ;;  %v7775_v42 = vsel %vm7771_vm8, %v7695_v4, %v7774_v26  ;;  %v7733_v3 = vmax.f32 %v7729_v28, 0.0  ;;  %v7779_v36 = vsel %vm7771_vm8, %v7697_v11, %v7778_v0  ;;  %v7960_v11 = vld [vmem:[#allocation2 + $0x20] sm:$0x11]  ;;  %v7963_v26 = vld [vmem:[#allocation2 + $0x28] sm:$0x11] }
 0x54e   :  { %v7732_v6 = vmax.f32 %v7728_v31, 0.0  ;;  %v7788_v14 = vadd.f32 %v7784_v45, %v15599_v30  ;;  %v7785_v20 = vadd.f32 %v7775_v42, %v15533_v37  ;;  %v7734_v41 = vmax.f32 %v7730_v17, 0.0  ;;  %v8284_v28 = vld [vmem:[#allocation8 + $0x880] sm:$0xff]  ;;  %v8285_v45 = vld [vmem:[#allocation8 + $0x888] sm:$0xff] }
 0x54f   :  { %v7790_v15 = vadd.f32 %v7786_v16, %v15603_v55  ;;  %v7787_v30 = vadd.f32 %v7779_v36, %v15535_v40  ;;  %vm16626_vm8 = vcmask 1047558   ;;  %v16633_v44 = vmov 0  ;;  %v8292_v31 = vld [vmem:[#allocation8 + $0x8c0] sm:$0xff]  ;;  %v8293_v59 = vld [vmem:[#allocation8 + $0x8c8] sm:$0xff] }
 0x550   :  { %v14773_v1 = vpack.c.bf16 %v7732_v6, %v7731_v35  ;;  %v7792_v9 = vmax.f32 %v7788_v14, 0.0  ;;  %v7789_v48 = vadd.f32 %v7785_v20, %v15609_v60  ;;  %v14774_v37 = vpack.c.bf16 %v7734_v41, %v7733_v3  ;;  %vm15893_vm12 = vmand %vm16626_vm8, %vm7944_vm11  ;;  %v8300_v42 = vld [vmem:[#allocation8 + $0x900] sm:$0xff]  ;;  %v8309_v41 = vld [vmem:[#allocation8 + $0x948] sm:$0xff] }
 0x551   :  { %v7794_v38 = vmax.f32 %v7790_v15, 0.0  ;;  %v7791_v60 = vadd.f32 %v7787_v30, %v15613_v62  ;;  %v16634_v44 = vsel %vm15903_vm14, 4294967295, %v16633_v44  ;;  %v8308_v3 = vld [vmem:[#allocation8 + $0x940] sm:$0xff]  ;;  %v14498_v14 = vcombine.high %v8284_v28, %v8292_v31  ;;  %v8317_v30 = vld [vmem:[#allocation8 + $0x988] sm:$0xff] }
 0x552   :  { %v7860_v55 = vsel %vm7858_vm9, %v14773_v1, %v7859_v18  ;;  %v7793_v8 = vmax.f32 %v7789_v48, 0.0  ;;  %v7863_v56 = vsel %vm7858_vm9, %v14774_v37, %v7862_v63  ;;  %16635 = vst [vmem:[#allocation19_spill] sm:$0xff] %v16634_v44  ;;  %v14209_v4 = vrot.slane %v14773_v1, 9  ;;  %vm7946_vm9 = vmor %vm15893_vm12, %vm15881_vm1  ;;  %v8301_v18 = vld [vmem:[#allocation8 + $0x908] sm:$0xff]  ;;  %v8324_v48 = vld [vmem:[#allocation8 + $0x9c0] sm:$0xff] }
 0x553   :  { %7861 = vst [vmem:[#allocation2] sm:$0x77] %v7860_v55  ;;  %7864 = vst [vmem:[#allocation2 + $0x8] sm:$0x77] %v7863_v56  ;;  %v7795_v62 = vmax.f32 %v7791_v60, 0.0  ;;  %v14210_v53 = vrot.slane %v14774_v37, 9  ;;  %v14500_v20 = vcombine.high %v8285_v45, %v8293_v59  ;;  %v14497_v15 = vcombine.low %v8284_v28, %v8292_v31 }
 0x554   :  { %v14779_v54 = vpack.c.bf16 %v7793_v8, %v7792_v9  ;;  %v14499_v36 = vcombine.low %v8285_v45, %v8293_v59  ;;  %v14514_v1 = vcombine.high %v8300_v42, %v8308_v3  ;;  %v14516_v63 = vcombine.high %v8301_v18, %v8309_v41  ;;  %v8316_v9 = vld [vmem:[#allocation8 + $0x980] sm:$0xff]  ;;  %v8325_v37 = vld [vmem:[#allocation8 + $0x9c8] sm:$0xff]  ;;  %vm16638_vm1 = vmmov %vm16636_vm3 }
 0x555   :  { %v14780_v27 = vpack.c.bf16 %v7795_v62, %v7794_v38  ;;  %v14513_v51 = vcombine.low %v8300_v42, %v8308_v3  ;;  %v14515_v43 = vcombine.low %v8301_v18, %v8309_v41  ;;  %v14530_v52 = vcombine.high %v8316_v9, %v8324_v48  ;;  %v8340_v55 = vld [vmem:[#allocation8 + $0xa40] sm:$0xff]  ;;  %v8333_v38 = vld [vmem:[#allocation8 + $0xa08] sm:$0xff]  ;;  %vm16639_vm11 = vmmov %vm16638_vm1 }
 0x556   :  { %v7928_v57 = vrot.slane %v14779_v54, 5  ;;  %v8341_v8 = vld [vmem:[#allocation8 + $0xa48] sm:$0xff]  ;;  %v14529_v60 = vcombine.low %v8316_v9, %v8324_v48  ;;  %v14531_v56 = vcombine.low %v8317_v30, %v8325_v37  ;;  %v8348_v62 = vld [vmem:[#allocation8 + $0xa80] sm:$0xff]  ;;  %vm12223_vm8 = vcmask 1044480   ;;  %v8427_v44 = vld [vmem:[#allocation8 + $0xcf8] sm:$0xff] }
 0x557   :  { %v7932_v29 = vrot.slane %v14780_v27, 5  ;;  %v14548_v23 = vcombine.high %v8333_v38, %v8341_v8  ;;  %v8381_v28 = vld [vmem:[#allocation8 + $0xb88] sm:$0xff]  ;;  %v8396_v3 = vld [vmem:[#allocation8 + $0xc00] sm:$0xff] }
 0x558   :  { %v7929_v47 = vsel %vm15903_vm14, %v14209_v4, %v7928_v57  ;;  %v7934_v61 = vrot.slane %v7928_v57, 4  ;;  %v8356_v4 = vld [vmem:[#allocation8 + $0xac0] sm:$0xff]  ;;  %v8349_v57 = vld [vmem:[#allocation8 + $0xa88] sm:$0xff] }
 0x559   :  { %v7948_v19 = vsel %vm7946_vm9, %v7929_v47, %v7947_v25  ;;  %v7933_v10 = vsel %vm15903_vm14, %v14210_v53, %v7932_v29  ;;  %v7935_v22 = vrot.slane %v7932_v29, 4  ;;  %v8357_v25 = vld [vmem:[#allocation8 + $0xac8] sm:$0xff]  ;;  %v14562_v53 = vcombine.high %v8348_v62, %v8356_v4  ;;  %v8372_v29 = vld [vmem:[#allocation8 + $0xb40] sm:$0xff] }
 0x55a   :  { %7949 = vst [vmem:[#allocation2 + $0x10] sm:$0xcc] %v7948_v19  ;;  %v7961_v49 = vsel %vm7959_vm7, %v7934_v61, %v7960_v11  ;;  %v7951_v39 = vsel %vm7946_vm9, %v7933_v10, %v7950_v46  ;;  %v14547_v11 = vcombine.low %v8333_v38, %v8341_v8  ;;  %v14564_v47 = vcombine.high %v8349_v57, %v8357_v25  ;;  %v8364_v61 = vld [vmem:[#allocation8 + $0xb00] sm:$0xff]  ;;  %v8365_v46 = vld [vmem:[#allocation8 + $0xb08] sm:$0xff]  ;;  %vm16158_vm9 = vmand %vm12280_vm15, %vm12281_vm0 }
 0x55b   :  { %7962 = vst [vmem:[#allocation2 + $0x20] sm:$0x11] %v7961_v49  ;;  %7952 = vst [vmem:[#allocation2 + $0x18] sm:$0xcc] %v7951_v39  ;;  %v7964_v0 = vsel %vm7959_vm7, %v7935_v22, %v7963_v26  ;;  %v8373_v19 = vld [vmem:[#allocation8 + $0xb48] sm:$0xff]  ;;  %v14561_v26 = vcombine.low %v8348_v62, %v8356_v4  ;;  %v14563_v49 = vcombine.low %v8349_v57, %v8357_v25  ;;  %v8380_v39 = vld [vmem:[#allocation8 + $0xb80] sm:$0xff]  ;;  %vm16656_vm7 = vnez %v16604_v21 }
 0x55c   :  { %7965 = vst [vmem:[#allocation2 + $0x28] sm:$0x11] %v7964_v0  ;;  %v14578_v10 = vcombine.high %v8364_v61, %v8372_v29  ;;  %v14580_v22 = vcombine.high %v8365_v46, %v8373_v19  ;;  %v8388_v0 = vld [vmem:[#allocation8 + $0xbc0] sm:$0xff]  ;;  %v8389_v31 = vld [vmem:[#allocation8 + $0xbc8] sm:$0xff]  ;;  %v14577_v45 = vcombine.low %v8364_v61, %v8372_v29  ;;  %v14579_v59 = vcombine.low %v8365_v46, %v8373_v19  ;;  %v15062_v21 = vld [vmem:[#allocation11 + $0xb0] sm:$0xff]  }
 0x55d   :  { %v14596_v42 = vcombine.high %v8381_v28, %v8389_v31  ;;  %v8405_v18 = vld [vmem:[#allocation8 + $0xc48] sm:$0xff]  ;;  %v14593_v41 = vcombine.low %v8380_v39, %v8388_v0  ;;  %v8420_v9 = vld [vmem:[#allocation8 + $0xcc0] sm:$0xff] }
 0x55e   :  { %v8413_v48 = vld [vmem:[#allocation8 + $0xc88] sm:$0xff]  ;;  %v8452_v62 = vld [vmem:[#allocation8 + $0xdc0] sm:$0xff] }
 0x55f   :  { %v8437_v38 = vld [vmem:[#allocation8 + $0xd48] sm:$0xff]  ;;  %v8468_v61 = vld [vmem:[#allocation8 + $0xe40] sm:$0xff] }
 0x560   :  { %v8445_v4 = vld [vmem:[#allocation8 + $0xd88] sm:$0xff] }
 0x561   :  { %v15939_v35 = vld [vmem:[#allocation2 + $0x4] ss:$16 sps:$4 sm:$0xff]   ;;  %v15941_v17 = vld [vmem:[#allocation2] ss:$16 sps:$4 sm:$0xff]  }
 0x562   :  { %v8010_v16 = vld [vmem:[#allocation2 + $0x20] sm:$0xff]  ;;  %11150 = vmatprep.mubr.bf16.mxu0 %v15939_v35  ;;  %11252 = vmatprep.mubr.bf16.mxu1 %v15939_v35  ;;  %v15961_v40 = vld [vmem:[#allocation2 + $0xc] ss:$16 sps:$4 sm:$0xff]  }
 0x563   :  { %v15945_v6 = vcombine.high %v8010_v16, %v8010_v16  ;;  %11151 = vmatmul.mubr.bf16.vlgmr.msra.gmra.mrb[16].mxu0 %v15941_v17  ;;  %11253 = vmatmul.mubr.bf16.vlgmr.msra.gmra.mrb[16].mxu1 %v15941_v17  ;;  %v15957_v32 = vcombine.low %v8010_v16, %v8010_v16  ;;  %v14594_v16 = vcombine.high %v8380_v39, %v8388_v0  ;;  %v8453_v57 = vld [vmem:[#allocation8 + $0xdc8] sm:$0xff]  ;;  %v8484_v39 = vld [vmem:[#allocation8 + $0xec0] sm:$0xff] }
 0x564   :  { %11170 = vmatpush1.bf16.msra.mxu0 %v14481_v33  ;;  %11272 = vmatpush1.bf16.msra.mxu1 %v14483_v7  ;;  %v8332_v33 = vld [vmem:[#allocation8 + $0xa00] sm:$0xff]  ;;  %v14532_v7 = vcombine.high %v8317_v30, %v8325_v37  ;;  %v8421_v30 = vld [vmem:[#allocation8 + $0xcc8] sm:$0xff] }
 0x565   :  { %11160 = vmatprep.mubr.bf16.mxu0 %v15945_v6  ;;  %11262 = vmatprep.mubr.bf16.mxu1 %v15945_v6  ;;  %v14546_v54 = vcombine.high %v8332_v33, %v8340_v55  ;;  %v14545_v27 = vcombine.low %v8332_v33, %v8340_v55  ;;  %v14628_v33 = vcombine.high %v8413_v48, %v8421_v30  ;;  %v8429_v55 = vld [vmem:[#allocation8 + $0xd08] sm:$0xff] }
 0x566   :  { %11171 = vmatprep.subr.bf16.mxu0 %v14498_v14  ;;  %11273 = vmatprep.subr.bf16.mxu1 %v14500_v20  ;;  %v8404_v14 = vld [vmem:[#allocation8 + $0xc40] sm:$0xff]  ;;  %v8397_v20 = vld [vmem:[#allocation8 + $0xc08] sm:$0xff] }
 0x567   :  { %v14609_v37 = vcombine.low %v8396_v3, %v8404_v14  ;;  %v8461_v29 = vld [vmem:[#allocation8 + $0xe08] sm:$0xff] }
 0x568   :  { %11172 = vmatpush1.bf16.msra.mxu0 %v14497_v15  ;;  %11274 = vmatpush1.bf16.msra.mxu1 %v14499_v36  ;;  %v14595_v15 = vcombine.low %v8381_v28, %v8389_v31  ;;  %v14610_v36 = vcombine.high %v8396_v3, %v8404_v14  ;;  %v8469_v46 = vld [vmem:[#allocation8 + $0xe48] sm:$0xff]  ;;  %v8500_v3 = vld [vmem:[#allocation8 + $0xf40] sm:$0xff] }
 0x569   :  { %11173 = vmatprep.subr.bf16.mxu0 %v14514_v1  ;;  %11275 = vmatprep.subr.bf16.mxu1 %v14516_v63  ;;  %v14612_v1 = vcombine.high %v8397_v20, %v8405_v18  ;;  %v8412_v63 = vld [vmem:[#allocation8 + $0xc80] sm:$0xff]  ;;  %v8477_v0 = vld [vmem:[#allocation8 + $0xe88] sm:$0xff] }
 0x56a   :  { %v14625_v8 = vcombine.low %v8412_v63, %v8420_v9  ;;  %v8485_v28 = vld [vmem:[#allocation8 + $0xec8] sm:$0xff] }
 0x56b   :  { %11161 = vmatmul.mubr.bf16.gmra.mrb[20].mxu0 %v15957_v32  ;;  %11263 = vmatmul.mubr.bf16.gmra.mrb[20].mxu1 %v15957_v32  ;;  %v8493_v14 = vld [vmem:[#allocation8 + $0xf08] sm:$0xff] }
 0x56c   :  { %11174 = vmatpush1.bf16.msra.mxu0 %v14513_v51  ;;  %11276 = vmatpush1.bf16.msra.mxu1 %v14515_v43  ;;  %v14611_v51 = vcombine.low %v8397_v20, %v8405_v18  ;;  %v14626_v43 = vcombine.high %v8412_v63, %v8420_v9  ;;  %v8501_v20 = vld [vmem:[#allocation8 + $0xf48] sm:$0xff]  ;;  %v8516_v63 = vld [vmem:[#allocation8 + $0xfc0] sm:$0xff] }
 0x56d   :  { %11201 = vmatprep.mubr.bf16.mxu0 %v15961_v40  ;;  %11303 = vmatprep.mubr.bf16.mxu1 %v15961_v40  ;;  %v8509_v9 = vld [vmem:[#allocation8 + $0xf88] sm:$0xff] }
 0x56e   :  { %11175 = vmatprep.subr.bf16.mxu0 %v14530_v52  ;;  %11277 = vmatprep.subr.bf16.mxu1 %v14532_v7  ;;  %v8428_v52 = vld [vmem:[#allocation8 + $0xd00] sm:$0xff] }
 0x56f   :  { %v8436_v7 = vld [vmem:[#allocation8 + $0xd40] sm:$0xff] }
 0x570   :  { %11176 = vmatpush1.bf16.msra.mxu0 %v14529_v60  ;;  %11278 = vmatpush1.bf16.msra.mxu1 %v14531_v56  ;;  %v14627_v60 = vcombine.low %v8413_v48, %v8421_v30  ;;  %v14642_v56 = vcombine.high %v8428_v52, %v8436_v7  ;;  %v14641_v25 = vcombine.low %v8428_v52, %v8436_v7  ;;  %v8517_v48 = vld [vmem:[#allocation8 + $0xfc8] sm:$0xff]  ;;  %v8022_v52 = vld [vmem:[#allocation8 + $0x50] sm:$0xff]  ;;  %v8015_v7 = vld [vmem:[#allocation8 + $0x18] sm:$0xff] }
 0x571   :  { %11177 = vmatprep.subr.bf16.mxu0 %v14546_v54  ;;  %11279 = vmatprep.subr.bf16.mxu1 %v14548_v23  ;;  %v14644_v54 = vcombine.high %v8429_v55, %v8437_v38  ;;  %v8444_v23 = vld [vmem:[#allocation8 + $0xd80] sm:$0xff] }
 0x572   :  { %v14657_v19 = vcombine.low %v8444_v23, %v8452_v62 }
 0x574   :  { %11178 = vmatpush1.bf16.msra.mxu0 %v14545_v27  ;;  %11280 = vmatpush1.bf16.msra.mxu1 %v14547_v11  ;;  %v14643_v27 = vcombine.low %v8429_v55, %v8437_v38  ;;  %v14658_v11 = vcombine.high %v8444_v23, %v8452_v62  ;;  %v8023_v55 = vld [vmem:[#allocation8 + $0x58] sm:$0xff]  ;;  %v8038_v23 = vld [vmem:[#allocation8 + $0xd0] sm:$0xff] }
 0x575   :  { %11179 = vmatprep.subr.bf16.mxu0 %v14562_v53  ;;  %11281 = vmatprep.subr.bf16.mxu1 %v14564_v47  ;;  %v14660_v53 = vcombine.high %v8445_v4, %v8453_v57  ;;  %v8460_v47 = vld [vmem:[#allocation8 + $0xe00] sm:$0xff]  ;;  %v8011_v62 = vld [vmem:[#allocation2 + $0x28] sm:$0xff] }
 0x576   :  { %v14673_v31 = vcombine.low %v8460_v47, %v8468_v61 }
 0x578   :  { %11180 = vmatpush1.bf16.msra.mxu0 %v14561_v26  ;;  %11282 = vmatpush1.bf16.msra.mxu1 %v14563_v49  ;;  %v14659_v26 = vcombine.low %v8445_v4, %v8453_v57  ;;  %v14674_v49 = vcombine.high %v8460_v47, %v8468_v61  ;;  %v8031_v4 = vld [vmem:[#allocation8 + $0x98] sm:$0xff] }
 0x579   :  { %11181 = vmatprep.subr.bf16.mxu0 %v14578_v10  ;;  %11283 = vmatprep.subr.bf16.mxu1 %v14580_v22  ;;  %v14676_v10 = vcombine.high %v8461_v29, %v8469_v46  ;;  %v8476_v22 = vld [vmem:[#allocation8 + $0xe80] sm:$0xff]  ;;  %v8039_v57 = vld [vmem:[#allocation8 + $0xd8] sm:$0xff] }
 0x57a   :  { %v14689_v18 = vcombine.low %v8476_v22, %v8484_v39  ;;  %v14248_v61 = vcombine.high %v8031_v4, %v8039_v57 }
 0x57c   :  { %11182 = vmatpush1.bf16.msra.mxu0 %v14577_v45  ;;  %11284 = vmatpush1.bf16.msra.mxu1 %v14579_v59  ;;  %v14675_v45 = vcombine.low %v8461_v29, %v8469_v46  ;;  %v14690_v59 = vcombine.high %v8476_v22, %v8484_v39  ;;  %v8046_v29 = vld [vmem:[#allocation8 + $0x110] sm:$0xff] }
 0x57d   :  { %11183 = vmatprep.subr.bf16.mxu0 %v14594_v16  ;;  %11285 = vmatprep.subr.bf16.mxu1 %v14596_v42  ;;  %v14692_v16 = vcombine.high %v8477_v0, %v8485_v28  ;;  %v8492_v42 = vld [vmem:[#allocation8 + $0xf00] sm:$0xff]  ;;  %v8054_v46 = vld [vmem:[#allocation8 + $0x150] sm:$0xff] }
 0x57e   :  { %v14705_v30 = vcombine.low %v8492_v42, %v8500_v3  ;;  %v14262_v22 = vcombine.high %v8046_v29, %v8054_v46 }
 0x580   :  { %11184 = vmatpush1.bf16.msra.mxu0 %v14593_v41  ;;  %11286 = vmatpush1.bf16.msra.mxu1 %v14595_v15  ;;  %v14691_v41 = vcombine.low %v8477_v0, %v8485_v28  ;;  %v14706_v15 = vcombine.high %v8492_v42, %v8500_v3  ;;  %v8062_v0 = vld [vmem:[#allocation8 + $0x190] sm:$0xff] }
 0x581   :  { %11185 = vmatprep.subr.bf16.mxu0 %v14610_v36  ;;  %11287 = vmatprep.subr.bf16.mxu1 %v14612_v1  ;;  %v14708_v36 = vcombine.high %v8493_v14, %v8501_v20  ;;  %v8508_v1 = vld [vmem:[#allocation8 + $0xf80] sm:$0xff]  ;;  %v8070_v28 = vld [vmem:[#allocation8 + $0x1d0] sm:$0xff] }
 0x582   :  { %v14721_v38 = vcombine.low %v8508_v1, %v8516_v63  ;;  %v14278_v3 = vcombine.high %v8062_v0, %v8070_v28 }
 0x584   :  { %11186 = vmatpush1.bf16.msra.mxu0 %v14609_v37  ;;  %11288 = vmatpush1.bf16.msra.mxu1 %v14611_v51  ;;  %v14707_v37 = vcombine.low %v8493_v14, %v8501_v20  ;;  %v14722_v51 = vcombine.high %v8508_v1, %v8516_v63  ;;  %v8078_v20 = vld [vmem:[#allocation8 + $0x210] sm:$0xff] }
 0x585   :  { %11187 = vmatprep.subr.bf16.mxu0 %v14626_v43  ;;  %11289 = vmatprep.subr.bf16.mxu1 %v14628_v33  ;;  %v14724_v43 = vcombine.high %v8509_v9, %v8517_v48  ;;  %v8014_v33 = vld [vmem:[#allocation8 + $0x10] sm:$0xff] }
 0x588   :  { %11188 = vmatpush1.bf16.msra.mxu0 %v14625_v8  ;;  %11290 = vmatpush1.bf16.msra.mxu1 %v14627_v60  ;;  %v14723_v8 = vcombine.low %v8509_v9, %v8517_v48  ;;  %v14230_v60 = vcombine.high %v8014_v33, %v8022_v52  ;;  %v8094_v48 = vld [vmem:[#allocation8 + $0x290] sm:$0xff] }
 0x589   :  { %11189 = vmatprep.subr.bf16.mxu0 %v14642_v56  ;;  %11291 = vmatprep.subr.bf16.mxu1 %v14644_v54  ;;  %v14232_v56 = vcombine.high %v8015_v7, %v8023_v55  ;;  %v8030_v54 = vld [vmem:[#allocation8 + $0x90] sm:$0xff] }
 0x58a   :  { %v14246_v47 = vcombine.high %v8030_v54, %v8038_v23 }
 0x58c   :  { %11190 = vmatpush1.bf16.msra.mxu0 %v14641_v25  ;;  %11292 = vmatpush1.bf16.msra.mxu1 %v14643_v27  ;;  %v15965_v25 = vld [vmem:[#allocation2 + $0x8] ss:$16 sps:$4 sm:$0xff]   ;;  %v14229_v27 = vcombine.low %v8014_v33, %v8022_v52 }
 0x58d   :  { %11191 = vmatprep.subr.bf16.mxu0 %v14658_v11  ;;  %11293 = vmatprep.subr.bf16.mxu1 %v14660_v53  ;;  %v14231_v11 = vcombine.low %v8015_v7, %v8023_v55  ;;  %v15967_v53 = vcombine.high %v8011_v62, %v8011_v62  ;;  %v8110_v7 = vld [vmem:[#allocation8 + $0x310] sm:$0xff] }
 0x58e   :  { %v8118_v55 = vld [vmem:[#allocation8 + $0x350] sm:$0xff] }
 0x590   :  { %11192 = vmatpush1.bf16.msra.mxu0 %v14657_v19  ;;  %11294 = vmatpush1.bf16.msra.mxu1 %v14659_v26  ;;  %v8047_v19 = vld [vmem:[#allocation8 + $0x118] sm:$0xff] }
 0x591   :  { %11193 = vmatprep.subr.bf16.mxu0 %v14674_v49  ;;  %11295 = vmatprep.subr.bf16.mxu1 %v14676_v10  ;;  %v8055_v26 = vld [vmem:[#allocation8 + $0x158] sm:$0xff]  ;;  %v14245_v49 = vcombine.low %v8030_v54, %v8038_v23  ;;  %v14247_v10 = vcombine.low %v8031_v4, %v8039_v57  ;;  %v14326_v54 = vcombine.high %v8110_v7, %v8118_v55  ;;  %v8134_v4 = vld [vmem:[#allocation8 + $0x3d0] sm:$0xff] }
 0x592   :  { %v14264_v39 = vcombine.high %v8047_v19, %v8055_v26  ;;  %v14263_v42 = vcombine.low %v8047_v19, %v8055_v26  ;;  %v8127_v57 = vld [vmem:[#allocation8 + $0x398] sm:$0xff]  ;;  %v8150_v19 = vld [vmem:[#allocation8 + $0x450] sm:$0xff] }
 0x593   :  { %v8143_v26 = vld [vmem:[#allocation8 + $0x418] sm:$0xff] }
 0x594   :  { %11194 = vmatpush1.bf16.msra.mxu0 %v14673_v31  ;;  %11296 = vmatpush1.bf16.msra.mxu1 %v14675_v45  ;;  %v8063_v31 = vld [vmem:[#allocation8 + $0x198] sm:$0xff] }
 0x595   :  { %11195 = vmatprep.subr.bf16.mxu0 %v14690_v59  ;;  %11297 = vmatprep.subr.bf16.mxu1 %v14692_v16  ;;  %v8071_v45 = vld [vmem:[#allocation8 + $0x1d8] sm:$0xff]  ;;  %v15973_v59 = vcombine.low %v8011_v62, %v8011_v62  ;;  %v14261_v16 = vcombine.low %v8046_v29, %v8054_v46  ;;  %v8126_v62 = vld [vmem:[#allocation8 + $0x390] sm:$0xff] }
 0x596   :  { %v14280_v14 = vcombine.high %v8063_v31, %v8071_v45  ;;  %v14279_v1 = vcombine.low %v8063_v31, %v8071_v45  ;;  %v8142_v46 = vld [vmem:[#allocation8 + $0x410] sm:$0xff]  ;;  %v8159_v45 = vld [vmem:[#allocation8 + $0x498] sm:$0xff] }
 0x597   :  { %v8166_v31 = vld [vmem:[#allocation8 + $0x4d0] sm:$0xff] }
 0x598   :  { %11196 = vmatpush1.bf16.msra.mxu0 %v14689_v18  ;;  %11298 = vmatpush1.bf16.msra.mxu1 %v14691_v41  ;;  %v8086_v18 = vld [vmem:[#allocation8 + $0x250] sm:$0xff]  ;;  %v8079_v41 = vld [vmem:[#allocation8 + $0x218] sm:$0xff] }
 0x599   :  { %11197 = vmatprep.subr.bf16.mxu0 %v14706_v15  ;;  %11299 = vmatprep.subr.bf16.mxu1 %v14708_v36  ;;  %v8087_v15 = vld [vmem:[#allocation8 + $0x258] sm:$0xff]  ;;  %v14277_v36 = vcombine.low %v8062_v0, %v8070_v28  ;;  %v14294_v63 = vcombine.high %v8078_v20, %v8086_v18  ;;  %v8158_v28 = vld [vmem:[#allocation8 + $0x490] sm:$0xff] }
 0x59a   :  { %v14296_v9 = vcombine.high %v8079_v41, %v8087_v15  ;;  %v14295_v33 = vcombine.low %v8079_v41, %v8087_v15  ;;  %v8182_v41 = vld [vmem:[#allocation8 + $0x550] sm:$0xff]  ;;  %v8175_v15 = vld [vmem:[#allocation8 + $0x518] sm:$0xff] }
 0x59c   :  { %11198 = vmatpush1.bf16.msra.mxu0 %v14705_v30  ;;  %11300 = vmatpush1.bf16.msra.mxu1 %v14707_v37  ;;  %v8102_v30 = vld [vmem:[#allocation8 + $0x2d0] sm:$0xff]  ;;  %v8095_v37 = vld [vmem:[#allocation8 + $0x298] sm:$0xff] }
 0x59d   :  { %11199 = vmatprep.subr.bf16.mxu0 %v14722_v51  ;;  %11301 = vmatprep.subr.bf16.mxu1 %v14724_v43  ;;  %v8103_v51 = vld [vmem:[#allocation8 + $0x2d8] sm:$0xff]  ;;  %v14293_v43 = vcombine.low %v8078_v20, %v8086_v18  ;;  %v14310_v52 = vcombine.high %v8094_v48, %v8102_v30  ;;  %v8174_v18 = vld [vmem:[#allocation8 + $0x510] sm:$0xff] }
 0x5a0   :  { %11200 = vmatpush1.bf16.msra.mxu0 %v14721_v38  ;;  %11302 = vmatpush1.bf16.msra.mxu1 %v14723_v8  ;;  %v8111_v38 = vld [vmem:[#allocation8 + $0x318] sm:$0xff] }
 0x5a1   :  { %11322 = vmatprep.subr.bf16.mxu0 %v14230_v60  ;;  %11424 = vmatprep.subr.bf16.mxu1 %v14232_v56  ;;  %v8119_v8 = vld [vmem:[#allocation8 + $0x358] sm:$0xff]  ;;  %v14309_v60 = vcombine.low %v8094_v48, %v8102_v30  ;;  %v14311_v56 = vcombine.low %v8095_v37, %v8103_v51  ;;  %v8190_v30 = vld [vmem:[#allocation8 + $0x590] sm:$0xff] }
 0x5a2   :  { %v14328_v23 = vcombine.high %v8111_v38, %v8119_v8 }
 0x5a3   :  { %11202 = vmatmul.mubr.bf16.vlgmr.msra.gmra.mrb[16].mxu0 %v15965_v25  ;;  %11304 = vmatmul.mubr.bf16.vlgmr.msra.gmra.mrb[16].mxu1 %v15965_v25 }
 0x5a4   :  { %11211 = vmatprep.mubr.bf16.mxu0 %v15967_v53  ;;  %11313 = vmatprep.mubr.bf16.mxu1 %v15967_v53 }
 0x5a5   :  { %11323 = vmatpush1.bf16.msra.mxu0 %v14229_v27  ;;  %11425 = vmatpush1.bf16.msra.mxu1 %v14231_v11  ;;  %v8135_v27 = vld [vmem:[#allocation8 + $0x3d8] sm:$0xff]  ;;  %v14325_v11 = vcombine.low %v8110_v7, %v8118_v55  ;;  %v8206_v55 = vld [vmem:[#allocation8 + $0x610] sm:$0xff] }
 0x5a6   :  { %11324 = vmatprep.subr.bf16.mxu0 %v14246_v47  ;;  %11426 = vmatprep.subr.bf16.mxu1 %v14248_v61  ;;  %v14327_v47 = vcombine.low %v8111_v38, %v8119_v8  ;;  %v14342_v61 = vcombine.high %v8126_v62, %v8134_v4  ;;  %v14344_v29 = vcombine.high %v8127_v57, %v8135_v27  ;;  %v8214_v38 = vld [vmem:[#allocation8 + $0x650] sm:$0xff]  ;;  %v8207_v8 = vld [vmem:[#allocation8 + $0x618] sm:$0xff] }
 0x5a9   :  { %11325 = vmatpush1.bf16.msra.mxu0 %v14245_v49  ;;  %11427 = vmatpush1.bf16.msra.mxu1 %v14247_v10  ;;  %v8151_v49 = vld [vmem:[#allocation8 + $0x458] sm:$0xff]  ;;  %v14341_v10 = vcombine.low %v8126_v62, %v8134_v4  ;;  %v8222_v4 = vld [vmem:[#allocation8 + $0x690] sm:$0xff] }
 0x5aa   :  { %11326 = vmatprep.subr.bf16.mxu0 %v14262_v22  ;;  %11428 = vmatprep.subr.bf16.mxu1 %v14264_v39  ;;  %v14343_v22 = vcombine.low %v8127_v57, %v8135_v27  ;;  %v14358_v39 = vcombine.high %v8142_v46, %v8150_v19  ;;  %v14360_v0 = vcombine.high %v8143_v26, %v8151_v49  ;;  %v8230_v57 = vld [vmem:[#allocation8 + $0x6d0] sm:$0xff]  ;;  %v8223_v27 = vld [vmem:[#allocation8 + $0x698] sm:$0xff] }
 0x5ab   :  { %11212 = vmatmul.mubr.bf16.gmra.mrb[20].mxu0 %v15973_v59  ;;  %11314 = vmatmul.mubr.bf16.gmra.mrb[20].mxu1 %v15973_v59 }
 0x5ac   :  { %11354 = vmatprep.mubr.bf16.mxu0 %v15939_v35  ;;  %11456 = vmatprep.mubr.bf16.mxu1 %v15939_v35  ;;  %v14312_v35 = vcombine.high %v8095_v37, %v8103_v51  ;;  %v8198_v37 = vld [vmem:[#allocation8 + $0x5d0] sm:$0xff]  ;;  %v8191_v51 = vld [vmem:[#allocation8 + $0x598] sm:$0xff] }
 0x5ad   :  { %11327 = vmatpush1.bf16.msra.mxu0 %v14261_v16  ;;  %11429 = vmatpush1.bf16.msra.mxu1 %v14263_v42  ;;  %v8167_v16 = vld [vmem:[#allocation8 + $0x4d8] sm:$0xff]  ;;  %v14357_v42 = vcombine.low %v8142_v46, %v8150_v19  ;;  %v8238_v19 = vld [vmem:[#allocation8 + $0x710] sm:$0xff] }
 0x5ae   :  { %11328 = vmatprep.subr.bf16.mxu0 %v14278_v3  ;;  %11430 = vmatprep.subr.bf16.mxu1 %v14280_v14  ;;  %v14359_v3 = vcombine.low %v8143_v26, %v8151_v49  ;;  %v14374_v14 = vcombine.high %v8158_v28, %v8166_v31  ;;  %v14376_v20 = vcombine.high %v8159_v45, %v8167_v16  ;;  %v8246_v26 = vld [vmem:[#allocation8 + $0x750] sm:$0xff]  ;;  %v8239_v49 = vld [vmem:[#allocation8 + $0x718] sm:$0xff] }
 0x5b1   :  { %11329 = vmatpush1.bf16.msra.mxu0 %v14277_v36  ;;  %11431 = vmatpush1.bf16.msra.mxu1 %v14279_v1  ;;  %v8183_v36 = vld [vmem:[#allocation8 + $0x558] sm:$0xff]  ;;  %v14373_v1 = vcombine.low %v8158_v28, %v8166_v31  ;;  %v8254_v31 = vld [vmem:[#allocation8 + $0x790] sm:$0xff] }
 0x5b2   :  { %11330 = vmatprep.subr.bf16.mxu0 %v14294_v63  ;;  %11432 = vmatprep.subr.bf16.mxu1 %v14296_v9  ;;  %v14375_v63 = vcombine.low %v8159_v45, %v8167_v16  ;;  %v14390_v9 = vcombine.high %v8174_v18, %v8182_v41  ;;  %v14392_v48 = vcombine.high %v8175_v15, %v8183_v36  ;;  %v8262_v45 = vld [vmem:[#allocation8 + $0x7d0] sm:$0xff]  ;;  %v8255_v16 = vld [vmem:[#allocation8 + $0x798] sm:$0xff] }
 0x5b5   :  { %11331 = vmatpush1.bf16.msra.mxu0 %v14293_v43  ;;  %11433 = vmatpush1.bf16.msra.mxu1 %v14295_v33  ;;  %v8199_v43 = vld [vmem:[#allocation8 + $0x5d8] sm:$0xff]  ;;  %v14389_v33 = vcombine.low %v8174_v18, %v8182_v41  ;;  %v8270_v41 = vld [vmem:[#allocation8 + $0x810] sm:$0xff] }
 0x5b6   :  { %11332 = vmatprep.subr.bf16.mxu0 %v14310_v52  ;;  %11434 = vmatprep.subr.bf16.mxu1 %v14312_v35  ;;  %v14391_v52 = vcombine.low %v8175_v15, %v8183_v36  ;;  %v14406_v35 = vcombine.high %v8190_v30, %v8198_v37  ;;  %v14408_v7 = vcombine.high %v8191_v51, %v8199_v43  ;;  %v8278_v15 = vld [vmem:[#allocation8 + $0x850] sm:$0xff]  ;;  %v8271_v36 = vld [vmem:[#allocation8 + $0x818] sm:$0xff] }
 0x5b9   :  { %11333 = vmatpush1.bf16.msra.mxu0 %v14309_v60  ;;  %11435 = vmatpush1.bf16.msra.mxu1 %v14311_v56  ;;  %v8215_v60 = vld [vmem:[#allocation8 + $0x658] sm:$0xff]  ;;  %v14405_v56 = vcombine.low %v8190_v30, %v8198_v37  ;;  %v8286_v37 = vld [vmem:[#allocation8 + $0x890] sm:$0xff] }
 0x5ba   :  { %11334 = vmatprep.subr.bf16.mxu0 %v14326_v54  ;;  %11436 = vmatprep.subr.bf16.mxu1 %v14328_v23  ;;  %v14407_v54 = vcombine.low %v8191_v51, %v8199_v43  ;;  %v14422_v23 = vcombine.high %v8206_v55, %v8214_v38  ;;  %v14424_v62 = vcombine.high %v8207_v8, %v8215_v60  ;;  %v8294_v51 = vld [vmem:[#allocation8 + $0x8d0] sm:$0xff]  ;;  %v8287_v43 = vld [vmem:[#allocation8 + $0x898] sm:$0xff] }
 0x5bd   :  { %11335 = vmatpush1.bf16.msra.mxu0 %v14325_v11  ;;  %11437 = vmatpush1.bf16.msra.mxu1 %v14327_v47  ;;  %v8231_v11 = vld [vmem:[#allocation8 + $0x6d8] sm:$0xff]  ;;  %v14421_v47 = vcombine.low %v8206_v55, %v8214_v38  ;;  %v8302_v38 = vld [vmem:[#allocation8 + $0x910] sm:$0xff] }
 0x5be   :  { %11336 = vmatprep.subr.bf16.mxu0 %v14342_v61  ;;  %11438 = vmatprep.subr.bf16.mxu1 %v14344_v29  ;;  %v14423_v61 = vcombine.low %v8207_v8, %v8215_v60  ;;  %v14438_v29 = vcombine.high %v8222_v4, %v8230_v57  ;;  %v14440_v46 = vcombine.high %v8223_v27, %v8231_v11  ;;  %v8310_v8 = vld [vmem:[#allocation8 + $0x950] sm:$0xff]  ;;  %v8303_v60 = vld [vmem:[#allocation8 + $0x918] sm:$0xff] }
 0x5c1   :  { %11337 = vmatpush1.bf16.msra.mxu0 %v14341_v10  ;;  %11439 = vmatpush1.bf16.msra.mxu1 %v14343_v22  ;;  %v8247_v10 = vld [vmem:[#allocation8 + $0x758] sm:$0xff]  ;;  %v14437_v22 = vcombine.low %v8222_v4, %v8230_v57  ;;  %v8318_v57 = vld [vmem:[#allocation8 + $0x990] sm:$0xff] }
 0x5c2   :  { %11338 = vmatprep.subr.bf16.mxu0 %v14358_v39  ;;  %11440 = vmatprep.subr.bf16.mxu1 %v14360_v0  ;;  %v14439_v39 = vcombine.low %v8223_v27, %v8231_v11  ;;  %v14454_v0 = vcombine.high %v8238_v19, %v8246_v26  ;;  %v14456_v28 = vcombine.high %v8239_v49, %v8247_v10  ;;  %v8326_v27 = vld [vmem:[#allocation8 + $0x9d0] sm:$0xff]  ;;  %v8319_v11 = vld [vmem:[#allocation8 + $0x998] sm:$0xff] }
 0x5c5   :  { %11339 = vmatpush1.bf16.msra.mxu0 %v14357_v42  ;;  %11441 = vmatpush1.bf16.msra.mxu1 %v14359_v3  ;;  %v8263_v42 = vld [vmem:[#allocation8 + $0x7d8] sm:$0xff]  ;;  %v14453_v3 = vcombine.low %v8238_v19, %v8246_v26  ;;  %v8334_v19 = vld [vmem:[#allocation8 + $0xa10] sm:$0xff] }
 0x5c6   :  { %11340 = vmatprep.subr.bf16.mxu0 %v14374_v14  ;;  %11442 = vmatprep.subr.bf16.mxu1 %v14376_v20  ;;  %v14455_v14 = vcombine.low %v8239_v49, %v8247_v10  ;;  %v14470_v20 = vcombine.high %v8254_v31, %v8262_v45  ;;  %v14472_v18 = vcombine.high %v8255_v16, %v8263_v42  ;;  %v8342_v26 = vld [vmem:[#allocation8 + $0xa50] sm:$0xff]  ;;  %v8335_v49 = vld [vmem:[#allocation8 + $0xa18] sm:$0xff] }
 0x5c7   :  { %v8343_v10 = vld [vmem:[#allocation8 + $0xa58] sm:$0xff] }
 0x5c9   :  { %11341 = vmatpush1.bf16.msra.mxu0 %v14373_v1  ;;  %11443 = vmatpush1.bf16.msra.mxu1 %v14375_v63  ;;  %v8279_v1 = vld [vmem:[#allocation8 + $0x858] sm:$0xff]  ;;  %v14469_v63 = vcombine.low %v8254_v31, %v8262_v45  ;;  %v8350_v31 = vld [vmem:[#allocation8 + $0xa90] sm:$0xff] }
 0x5ca   :  { %11342 = vmatprep.subr.bf16.mxu0 %v14390_v9  ;;  %11444 = vmatprep.subr.bf16.mxu1 %v14392_v48  ;;  %v14471_v9 = vcombine.low %v8255_v16, %v8263_v42  ;;  %v14486_v48 = vcombine.high %v8270_v41, %v8278_v15  ;;  %v14488_v30 = vcombine.high %v8271_v36, %v8279_v1  ;;  %v8358_v45 = vld [vmem:[#allocation8 + $0xad0] sm:$0xff]  ;;  %v8351_v16 = vld [vmem:[#allocation8 + $0xa98] sm:$0xff] }
 0x5cb   :  { %v8359_v42 = vld [vmem:[#allocation8 + $0xad8] sm:$0xff] }
 0x5cd   :  { %11343 = vmatpush1.bf16.msra.mxu0 %v14389_v33  ;;  %11445 = vmatpush1.bf16.msra.mxu1 %v14391_v52  ;;  %v8295_v33 = vld [vmem:[#allocation8 + $0x8d8] sm:$0xff]  ;;  %v14485_v52 = vcombine.low %v8270_v41, %v8278_v15  ;;  %v8366_v41 = vld [vmem:[#allocation8 + $0xb10] sm:$0xff] }
 0x5ce   :  { %11344 = vmatprep.subr.bf16.mxu0 %v14406_v35  ;;  %11446 = vmatprep.subr.bf16.mxu1 %v14408_v7  ;;  %v14487_v35 = vcombine.low %v8271_v36, %v8279_v1  ;;  %v14502_v7 = vcombine.high %v8286_v37, %v8294_v51  ;;  %v14504_v55 = vcombine.high %v8287_v43, %v8295_v33  ;;  %v8374_v15 = vld [vmem:[#allocation8 + $0xb50] sm:$0xff]  ;;  %v8375_v36 = vld [vmem:[#allocation8 + $0xb58] sm:$0xff] }
 0x5cf   :  { %v14565_v1 = vcombine.low %v8350_v31, %v8358_v45 }
 0x5d1   :  { %11345 = vmatpush1.bf16.msra.mxu0 %v14405_v56  ;;  %11447 = vmatpush1.bf16.msra.mxu1 %v14407_v54  ;;  %v8311_v56 = vld [vmem:[#allocation8 + $0x958] sm:$0xff]  ;;  %v14501_v54 = vcombine.low %v8286_v37, %v8294_v51  ;;  %v8390_v37 = vld [vmem:[#allocation8 + $0xbd0] sm:$0xff] }
 0x5d2   :  { %11346 = vmatprep.subr.bf16.mxu0 %v14422_v23  ;;  %11448 = vmatprep.subr.bf16.mxu1 %v14424_v62  ;;  %v14503_v23 = vcombine.low %v8287_v43, %v8295_v33  ;;  %v14518_v62 = vcombine.high %v8302_v38, %v8310_v8  ;;  %v14520_v4 = vcombine.high %v8303_v60, %v8311_v56  ;;  %v8383_v51 = vld [vmem:[#allocation8 + $0xb98] sm:$0xff] }
 0x5d3   :  { %v8391_v43 = vld [vmem:[#allocation8 + $0xbd8] sm:$0xff]  ;;  %v14581_v33 = vcombine.low %v8366_v41, %v8374_v15 }
 0x5d5   :  { %11347 = vmatpush1.bf16.msra.mxu0 %v14421_v47  ;;  %11449 = vmatpush1.bf16.msra.mxu1 %v14423_v61  ;;  %v8327_v47 = vld [vmem:[#allocation8 + $0x9d8] sm:$0xff]  ;;  %v14519_v61 = vcombine.low %v8303_v60, %v8311_v56 }
 0x5d6   :  { %11348 = vmatprep.subr.bf16.mxu0 %v14438_v29  ;;  %11450 = vmatprep.subr.bf16.mxu1 %v14440_v46  ;;  %v14534_v29 = vcombine.high %v8318_v57, %v8326_v27  ;;  %v14536_v46 = vcombine.high %v8319_v11, %v8327_v47  ;;  %v8407_v60 = vld [vmem:[#allocation8 + $0xc58] sm:$0xff] }
 0x5d9   :  { %11349 = vmatpush1.bf16.msra.mxu0 %v14437_v22  ;;  %11451 = vmatpush1.bf16.msra.mxu1 %v14439_v39  ;;  %v14533_v22 = vcombine.low %v8318_v57, %v8326_v27  ;;  %v14535_v39 = vcombine.low %v8319_v11, %v8327_v47  ;;  %v8422_v57 = vld [vmem:[#allocation8 + $0xcd0] sm:$0xff]  ;;  %v8415_v27 = vld [vmem:[#allocation8 + $0xc98] sm:$0xff] }
 0x5da   :  { %11350 = vmatprep.subr.bf16.mxu0 %v14454_v0  ;;  %11452 = vmatprep.subr.bf16.mxu1 %v14456_v28  ;;  %v14550_v0 = vcombine.high %v8334_v19, %v8342_v26  ;;  %v14552_v28 = vcombine.high %v8335_v49, %v8343_v10  ;;  %v8423_v11 = vld [vmem:[#allocation8 + $0xcd8] sm:$0xff] }
 0x5dd   :  { %11351 = vmatpush1.bf16.msra.mxu0 %v14453_v3  ;;  %11453 = vmatpush1.bf16.msra.mxu1 %v14455_v14  ;;  %v14549_v3 = vcombine.low %v8334_v19, %v8342_v26  ;;  %v14551_v14 = vcombine.low %v8335_v49, %v8343_v10  ;;  %v8438_v19 = vld [vmem:[#allocation8 + $0xd50] sm:$0xff]  ;;  %v8431_v26 = vld [vmem:[#allocation8 + $0xd18] sm:$0xff] }
 0x5de   :  { %11352 = vmatprep.subr.bf16.mxu0 %v14470_v20  ;;  %11454 = vmatprep.subr.bf16.mxu1 %v14472_v18  ;;  %v14566_v20 = vcombine.high %v8350_v31, %v8358_v45  ;;  %v14568_v18 = vcombine.high %v8351_v16, %v8359_v42  ;;  %v8439_v49 = vld [vmem:[#allocation8 + $0xd58] sm:$0xff]  ;;  %v8454_v31 = vld [vmem:[#allocation8 + $0xdd0] sm:$0xff] }
 0x5df   :  { %v8447_v45 = vld [vmem:[#allocation8 + $0xd98] sm:$0xff] }
 0x5e1   :  { %11353 = vmatpush1.bf16.msra.mxu0 %v14469_v63  ;;  %11455 = vmatpush1.bf16.msra.mxu1 %v14471_v9  ;;  %v14567_v63 = vcombine.low %v8351_v16, %v8359_v42  ;;  %v14582_v9 = vcombine.high %v8366_v41, %v8374_v15  ;;  %v8455_v16 = vld [vmem:[#allocation8 + $0xdd8] sm:$0xff]  ;;  %v8470_v41 = vld [vmem:[#allocation8 + $0xe50] sm:$0xff] }
 0x5e2   :  { %11373 = vmatprep.subr.bf16.mxu0 %v14486_v48  ;;  %11475 = vmatprep.subr.bf16.mxu1 %v14488_v30  ;;  %v8382_v30 = vld [vmem:[#allocation8 + $0xb90] sm:$0xff]  ;;  %v8463_v15 = vld [vmem:[#allocation8 + $0xe18] sm:$0xff] }
 0x5e3   :  { %v14597_v56 = vcombine.low %v8382_v30, %v8390_v37 }
 0x5e4   :  { %11355 = vmatmul.mubr.bf16.vlgmr.msra.gmra.mrb[24].mxu0 %v15941_v17  ;;  %11457 = vmatmul.mubr.bf16.vlgmr.msra.gmra.mrb[24].mxu1 %v15941_v17  ;;  %v14517_v17 = vcombine.low %v8302_v38, %v8310_v8  ;;  %v8406_v38 = vld [vmem:[#allocation8 + $0xc50] sm:$0xff]  ;;  %v8399_v8 = vld [vmem:[#allocation8 + $0xc18] sm:$0xff] }
 0x5e5   :  { %11364 = vmatprep.mubr.bf16.mxu0 %v15945_v6  ;;  %11374 = vmatpush1.bf16.msra.mxu0 %v14485_v52 }
 0x5e6   :  { %11466 = vmatprep.mubr.bf16.mxu1 %v15945_v6  ;;  %11476 = vmatpush1.bf16.msra.mxu1 %v14487_v35  ;;  %v14598_v35 = vcombine.high %v8382_v30, %v8390_v37  ;;  %v8486_v30 = vld [vmem:[#allocation8 + $0xed0] sm:$0xff]  ;;  %v8479_v37 = vld [vmem:[#allocation8 + $0xe98] sm:$0xff] }
 0x5e7   :  { %11375 = vmatprep.subr.bf16.mxu0 %v14502_v7  ;;  %11477 = vmatprep.subr.bf16.mxu1 %v14504_v55  ;;  %v14600_v7 = vcombine.high %v8383_v51, %v8391_v43  ;;  %v8398_v55 = vld [vmem:[#allocation8 + $0xc10] sm:$0xff] }
 0x5e8   :  { %v14613_v47 = vcombine.low %v8398_v55, %v8406_v38 }
 0x5e9   :  { %11376 = vmatpush1.bf16.msra.mxu0 %v14501_v54  ;;  %v14599_v54 = vcombine.low %v8383_v51, %v8391_v43  ;;  %v8487_v51 = vld [vmem:[#allocation8 + $0xed8] sm:$0xff] }
 0x5ea   :  { %11478 = vmatpush1.bf16.msra.mxu1 %v14503_v23  ;;  %11377 = vmatprep.subr.bf16.mxu0 %v14518_v62  ;;  %v14614_v23 = vcombine.high %v8398_v55, %v8406_v38  ;;  %v14616_v62 = vcombine.high %v8399_v8, %v8407_v60  ;;  %v8502_v55 = vld [vmem:[#allocation8 + $0xf50] sm:$0xff]  ;;  %v8495_v38 = vld [vmem:[#allocation8 + $0xf18] sm:$0xff] }
 0x5eb   :  { %11479 = vmatprep.subr.bf16.mxu1 %v14520_v4  ;;  %v8414_v4 = vld [vmem:[#allocation8 + $0xc90] sm:$0xff] }
 0x5ec   :  { %11365 = vmatmul.mubr.bf16.gmra.mrb[28].mxu0 %v15957_v32  ;;  %11467 = vmatmul.mubr.bf16.gmra.mrb[28].mxu1 %v15957_v32  ;;  %v14629_v10 = vcombine.low %v8414_v4, %v8422_v57 }
 0x5ed   :  { %11378 = vmatpush1.bf16.msra.mxu0 %v14517_v17  ;;  %11405 = vmatprep.mubr.bf16.mxu0 %v15961_v40  ;;  %v14615_v17 = vcombine.low %v8399_v8, %v8407_v60  ;;  %v8503_v8 = vld [vmem:[#allocation8 + $0xf58] sm:$0xff] }
 0x5ee   :  { %11480 = vmatpush1.bf16.msra.mxu1 %v14519_v61  ;;  %11507 = vmatprep.mubr.bf16.mxu1 %v15961_v40  ;;  %v8367_v40 = vld [vmem:[#allocation8 + $0xb18] sm:$0xff]  ;;  %v14630_v61 = vcombine.high %v8414_v4, %v8422_v57  ;;  %v8518_v4 = vld [vmem:[#allocation8 + $0xfd0] sm:$0xff] }
 0x5ef   :  { %11379 = vmatprep.subr.bf16.mxu0 %v14534_v29  ;;  %11481 = vmatprep.subr.bf16.mxu1 %v14536_v46  ;;  %v14584_v48 = vcombine.high %v8367_v40, %v8375_v36  ;;  %v14583_v52 = vcombine.low %v8367_v40, %v8375_v36  ;;  %v14632_v29 = vcombine.high %v8415_v27, %v8423_v11  ;;  %v8430_v46 = vld [vmem:[#allocation8 + $0xd10] sm:$0xff]  ;;  %v8471_v40 = vld [vmem:[#allocation8 + $0xe58] sm:$0xff] }
 0x5f0   :  { %v14645_v42 = vcombine.low %v8430_v46, %v8438_v19  ;;  %v8511_v57 = vld [vmem:[#allocation8 + $0xf98] sm:$0xff] }
 0x5f1   :  { %11380 = vmatpush1.bf16.msra.mxu0 %v14533_v22  ;;  %v14631_v22 = vcombine.low %v8415_v27, %v8423_v11  ;;  %v8519_v27 = vld [vmem:[#allocation8 + $0xfd8] sm:$0xff] }
 0x5f2   :  { %11482 = vmatpush1.bf16.msra.mxu1 %v14535_v39  ;;  %11381 = vmatprep.subr.bf16.mxu0 %v14550_v0  ;;  %v14646_v39 = vcombine.high %v8430_v46, %v8438_v19  ;;  %v14648_v0 = vcombine.high %v8431_v26, %v8439_v49  ;;  %v8024_v46 = vld [vmem:[#allocation8 + $0x60] sm:$0xff]  ;;  %v8017_v19 = vld [vmem:[#allocation8 + $0x28] sm:$0xff] }
 0x5f3   :  { %11483 = vmatprep.subr.bf16.mxu1 %v14552_v28  ;;  %v8446_v28 = vld [vmem:[#allocation8 + $0xd90] sm:$0xff] }
 0x5f4   :  { %v14661_v36 = vcombine.low %v8446_v28, %v8454_v31 }
 0x5f5   :  { %11382 = vmatpush1.bf16.msra.mxu0 %v14549_v3  ;;  %v14647_v3 = vcombine.low %v8431_v26, %v8439_v49  ;;  %v8025_v26 = vld [vmem:[#allocation8 + $0x68] sm:$0xff] }
 0x5f6   :  { %11484 = vmatpush1.bf16.msra.mxu1 %v14551_v14  ;;  %11383 = vmatprep.subr.bf16.mxu0 %v14566_v20  ;;  %v14662_v14 = vcombine.high %v8446_v28, %v8454_v31  ;;  %v14664_v20 = vcombine.high %v8447_v45, %v8455_v16  ;;  %v8040_v28 = vld [vmem:[#allocation8 + $0xe0] sm:$0xff]  ;;  %v8033_v31 = vld [vmem:[#allocation8 + $0xa8] sm:$0xff] }
 0x5f7   :  { %11485 = vmatprep.subr.bf16.mxu1 %v14568_v18  ;;  %v8462_v18 = vld [vmem:[#allocation8 + $0xe10] sm:$0xff] }
 0x5f8   :  { %v14677_v43 = vcombine.low %v8462_v18, %v8470_v41 }
 0x5f9   :  { %11384 = vmatpush1.bf16.msra.mxu0 %v14565_v1  ;;  %v14663_v1 = vcombine.low %v8447_v45, %v8455_v16  ;;  %v8041_v45 = vld [vmem:[#allocation8 + $0xe8] sm:$0xff] }
 0x5fa   :  { %11486 = vmatpush1.bf16.msra.mxu1 %v14567_v63  ;;  %11385 = vmatprep.subr.bf16.mxu0 %v14582_v9  ;;  %v14678_v63 = vcombine.high %v8462_v18, %v8470_v41  ;;  %v14680_v9 = vcombine.high %v8463_v15, %v8471_v40  ;;  %v8056_v18 = vld [vmem:[#allocation8 + $0x160] sm:$0xff]  ;;  %v8049_v41 = vld [vmem:[#allocation8 + $0x128] sm:$0xff] }
 0x5fb   :  { %11487 = vmatprep.subr.bf16.mxu1 %v14584_v48  ;;  %v8478_v48 = vld [vmem:[#allocation8 + $0xe90] sm:$0xff] }
 0x5fc   :  { %v14693_v60 = vcombine.low %v8478_v48, %v8486_v30 }
 0x5fd   :  { %11386 = vmatpush1.bf16.msra.mxu0 %v14581_v33  ;;  %v14679_v33 = vcombine.low %v8463_v15, %v8471_v40  ;;  %v8057_v15 = vld [vmem:[#allocation8 + $0x168] sm:$0xff] }
 0x5fe   :  { %11488 = vmatpush1.bf16.msra.mxu1 %v14583_v52  ;;  %11387 = vmatprep.subr.bf16.mxu0 %v14598_v35  ;;  %v14694_v52 = vcombine.high %v8478_v48, %v8486_v30  ;;  %v14696_v35 = vcombine.high %v8479_v37, %v8487_v51  ;;  %v8072_v48 = vld [vmem:[#allocation8 + $0x1e0] sm:$0xff]  ;;  %v8065_v30 = vld [vmem:[#allocation8 + $0x1a8] sm:$0xff] }
 0x5ff   :  { %11489 = vmatprep.subr.bf16.mxu1 %v14600_v7  ;;  %v8494_v7 = vld [vmem:[#allocation8 + $0xf10] sm:$0xff] }
 0x600   :  { %v14709_v11 = vcombine.low %v8494_v7, %v8502_v55 }
 0x601   :  { %11388 = vmatpush1.bf16.msra.mxu0 %v14597_v56  ;;  %v14695_v56 = vcombine.low %v8479_v37, %v8487_v51  ;;  %v8073_v37 = vld [vmem:[#allocation8 + $0x1e8] sm:$0xff]  ;;  %v14267_v51 = vcombine.low %v8049_v41, %v8057_v15 }
 0x602   :  { %11490 = vmatpush1.bf16.msra.mxu1 %v14599_v54  ;;  %11389 = vmatprep.subr.bf16.mxu0 %v14614_v23  ;;  %v14710_v54 = vcombine.high %v8494_v7, %v8502_v55  ;;  %v14712_v23 = vcombine.high %v8495_v38, %v8503_v8  ;;  %v15993_v7 = vld [vmem:[#allocation2 + $0x4] ss:$16 sps:$4 sm:$0xff]   ;;  %v8081_v55 = vld [vmem:[#allocation8 + $0x228] sm:$0xff] }
 0x603   :  { %11491 = vmatprep.subr.bf16.mxu1 %v14616_v62  ;;  %v8510_v62 = vld [vmem:[#allocation8 + $0xf90] sm:$0xff] }
 0x604   :  { %v14725_v49 = vcombine.low %v8510_v62, %v8518_v4 }
 0x605   :  { %11390 = vmatpush1.bf16.msra.mxu0 %v14613_v47  ;;  %v14711_v47 = vcombine.low %v8495_v38, %v8503_v8  ;;  %v8089_v38 = vld [vmem:[#allocation8 + $0x268] sm:$0xff] }
 0x606   :  { %11492 = vmatpush1.bf16.msra.mxu1 %v14615_v17  ;;  %11391 = vmatprep.subr.bf16.mxu0 %v14630_v61  ;;  %v14726_v17 = vcombine.high %v8510_v62, %v8518_v4  ;;  %v14728_v61 = vcombine.high %v8511_v57, %v8519_v27  ;;  %v8104_v62 = vld [vmem:[#allocation8 + $0x2e0] sm:$0xff]  ;;  %v8097_v4 = vld [vmem:[#allocation8 + $0x2a8] sm:$0xff] }
 0x607   :  { %11493 = vmatprep.subr.bf16.mxu1 %v14632_v29  ;;  %v8016_v29 = vld [vmem:[#allocation8 + $0x20] sm:$0xff] }
 0x608   :  { %v14233_v16 = vcombine.low %v8016_v29, %v8024_v46 }
 0x609   :  { %11392 = vmatpush1.bf16.msra.mxu0 %v14629_v10  ;;  %v14727_v10 = vcombine.low %v8511_v57, %v8519_v27  ;;  %v8105_v57 = vld [vmem:[#allocation8 + $0x2e8] sm:$0xff] }
 0x60a   :  { %11494 = vmatpush1.bf16.msra.mxu1 %v14631_v22  ;;  %11393 = vmatprep.subr.bf16.mxu0 %v14646_v39  ;;  %v14234_v22 = vcombine.high %v8016_v29, %v8024_v46  ;;  %v14236_v39 = vcombine.high %v8017_v19, %v8025_v26  ;;  %v8120_v29 = vld [vmem:[#allocation8 + $0x360] sm:$0xff]  ;;  %v8113_v46 = vld [vmem:[#allocation8 + $0x328] sm:$0xff] }
 0x60b   :  { %11495 = vmatprep.subr.bf16.mxu1 %v14648_v0  ;;  %v8032_v0 = vld [vmem:[#allocation8 + $0xa0] sm:$0xff] }
 0x60c   :  { %v14249_v40 = vcombine.low %v8032_v0, %v8040_v28 }
 0x60d   :  { %11394 = vmatpush1.bf16.msra.mxu0 %v14645_v42  ;;  %v14235_v42 = vcombine.low %v8017_v19, %v8025_v26  ;;  %v8121_v19 = vld [vmem:[#allocation8 + $0x368] sm:$0xff] }
 0x60e   :  { %11496 = vmatpush1.bf16.msra.mxu1 %v14647_v3  ;;  %11395 = vmatprep.subr.bf16.mxu0 %v14662_v14  ;;  %v14250_v3 = vcombine.high %v8032_v0, %v8040_v28  ;;  %v14252_v14 = vcombine.high %v8033_v31, %v8041_v45  ;;  %v8136_v0 = vld [vmem:[#allocation8 + $0x3e0] sm:$0xff]  ;;  %v8129_v28 = vld [vmem:[#allocation8 + $0x3a8] sm:$0xff] }
 0x60f   :  { %11497 = vmatprep.subr.bf16.mxu1 %v14664_v20  ;;  %v8048_v20 = vld [vmem:[#allocation8 + $0x120] sm:$0xff] }
 0x611   :  { %11396 = vmatpush1.bf16.msra.mxu0 %v14661_v36  ;;  %v14251_v36 = vcombine.low %v8033_v31, %v8041_v45  ;;  %v8137_v31 = vld [vmem:[#allocation8 + $0x3e8] sm:$0xff] }
 0x612   :  { %11498 = vmatpush1.bf16.msra.mxu1 %v14663_v1  ;;  %11397 = vmatprep.subr.bf16.mxu0 %v14678_v63  ;;  %v14266_v1 = vcombine.high %v8048_v20, %v8056_v18  ;;  %v14268_v63 = vcombine.high %v8049_v41, %v8057_v15  ;;  %v8153_v41 = vld [vmem:[#allocation8 + $0x468] sm:$0xff] }
 0x613   :  { %11499 = vmatprep.subr.bf16.mxu1 %v14680_v9  ;;  %v8064_v9 = vld [vmem:[#allocation8 + $0x1a0] sm:$0xff] }
 0x614   :  { %v14281_v8 = vcombine.low %v8064_v9, %v8072_v48 }
 0x615   :  { %11398 = vmatpush1.bf16.msra.mxu0 %v14677_v43  ;;  %v14282_v43 = vcombine.high %v8064_v9, %v8072_v48  ;;  %v8168_v9 = vld [vmem:[#allocation8 + $0x4e0] sm:$0xff]  ;;  %v8161_v48 = vld [vmem:[#allocation8 + $0x4a8] sm:$0xff] }
 0x616   :  { %11500 = vmatpush1.bf16.msra.mxu1 %v14679_v33  ;;  %11399 = vmatprep.subr.bf16.mxu0 %v14694_v52  ;;  %v14284_v33 = vcombine.high %v8065_v30, %v8073_v37  ;;  %v8080_v52 = vld [vmem:[#allocation8 + $0x220] sm:$0xff] }
 0x617   :  { %11501 = vmatprep.subr.bf16.mxu1 %v14696_v35  ;;  %v8088_v35 = vld [vmem:[#allocation8 + $0x260] sm:$0xff] }
 0x618   :  { %v14297_v27 = vcombine.low %v8080_v52, %v8088_v35 }
 0x619   :  { %11400 = vmatpush1.bf16.msra.mxu0 %v14693_v60  ;;  %v14283_v60 = vcombine.low %v8065_v30, %v8073_v37  ;;  %v8169_v30 = vld [vmem:[#allocation8 + $0x4e8] sm:$0xff] }
 0x61a   :  { %11502 = vmatpush1.bf16.msra.mxu1 %v14695_v56  ;;  %11401 = vmatprep.subr.bf16.mxu0 %v14710_v54  ;;  %v14298_v56 = vcombine.high %v8080_v52, %v8088_v35  ;;  %v14300_v54 = vcombine.high %v8081_v55, %v8089_v38  ;;  %v8184_v52 = vld [vmem:[#allocation8 + $0x560] sm:$0xff]  ;;  %v8177_v35 = vld [vmem:[#allocation8 + $0x528] sm:$0xff] }
 0x61b   :  { %11503 = vmatprep.subr.bf16.mxu1 %v14712_v23  ;;  %v8096_v23 = vld [vmem:[#allocation8 + $0x2a0] sm:$0xff] }
 0x61c   :  { %v14313_v26 = vcombine.low %v8096_v23, %v8104_v62 }
 0x61d   :  { %11402 = vmatpush1.bf16.msra.mxu0 %v14709_v11  ;;  %v14299_v11 = vcombine.low %v8081_v55, %v8089_v38  ;;  %v8185_v55 = vld [vmem:[#allocation8 + $0x568] sm:$0xff] }
 0x61e   :  { %11504 = vmatpush1.bf16.msra.mxu1 %v14711_v47  ;;  %11403 = vmatprep.subr.bf16.mxu0 %v14726_v17  ;;  %v14314_v47 = vcombine.high %v8096_v23, %v8104_v62  ;;  %v14316_v17 = vcombine.high %v8097_v4, %v8105_v57  ;;  %v8200_v23 = vld [vmem:[#allocation8 + $0x5e0] sm:$0xff]  ;;  %v8193_v62 = vld [vmem:[#allocation8 + $0x5a8] sm:$0xff] }
 0x61f   :  { %11505 = vmatprep.subr.bf16.mxu1 %v14728_v61  ;;  %v8112_v61 = vld [vmem:[#allocation8 + $0x320] sm:$0xff] }
 0x620   :  { %v14329_v45 = vcombine.low %v8112_v61, %v8120_v29 }
 0x621   :  { %11404 = vmatpush1.bf16.msra.mxu0 %v14725_v49  ;;  %v14315_v49 = vcombine.low %v8097_v4, %v8105_v57  ;;  %v8201_v4 = vld [vmem:[#allocation8 + $0x5e8] sm:$0xff] }
 0x622   :  { %11506 = vmatpush1.bf16.msra.mxu1 %v14727_v10  ;;  %11526 = vmatprep.subr.bf16.mxu0 %v14234_v22  ;;  %v14330_v10 = vcombine.high %v8112_v61, %v8120_v29  ;;  %v14332_v22 = vcombine.high %v8113_v46, %v8121_v19  ;;  %v8216_v61 = vld [vmem:[#allocation8 + $0x660] sm:$0xff]  ;;  %v8209_v29 = vld [vmem:[#allocation8 + $0x628] sm:$0xff] }
 0x623   :  { %11628 = vmatprep.subr.bf16.mxu1 %v14236_v39  ;;  %v8128_v39 = vld [vmem:[#allocation8 + $0x3a0] sm:$0xff] }
 0x624   :  { %11406 = vmatmul.mubr.bf16.vlgmr.msra.gmra.mrb[24].mxu0 %v15965_v25  ;;  %v14345_v15 = vcombine.low %v8128_v39, %v8136_v0 }
 0x625   :  { %11508 = vmatmul.mubr.bf16.vlgmr.msra.gmra.mrb[24].mxu1 %v15965_v25  ;;  %11415 = vmatprep.mubr.bf16.mxu0 %v15967_v53  ;;  %v14265_v25 = vcombine.low %v8048_v20, %v8056_v18  ;;  %v8152_v20 = vld [vmem:[#allocation8 + $0x460] sm:$0xff]  ;;  %v8145_v18 = vld [vmem:[#allocation8 + $0x428] sm:$0xff] }
 0x626   :  { %11517 = vmatprep.mubr.bf16.mxu1 %v15967_v53  ;;  %11527 = vmatpush1.bf16.msra.mxu0 %v14233_v16  ;;  %v14331_v16 = vcombine.low %v8113_v46, %v8121_v19  ;;  %v8217_v46 = vld [vmem:[#allocation8 + $0x668] sm:$0xff] }
 0x627   :  { %11629 = vmatpush1.bf16.msra.mxu1 %v14235_v42  ;;  %11528 = vmatprep.subr.bf16.mxu0 %v14250_v3  ;;  %v14346_v42 = vcombine.high %v8128_v39, %v8136_v0  ;;  %v14348_v3 = vcombine.high %v8129_v28, %v8137_v31  ;;  %v8232_v39 = vld [vmem:[#allocation8 + $0x6e0] sm:$0xff]  ;;  %v8225_v0 = vld [vmem:[#allocation8 + $0x6a8] sm:$0xff] }
 0x628   :  { %11630 = vmatprep.subr.bf16.mxu1 %v14252_v14  ;;  %v8144_v14 = vld [vmem:[#allocation8 + $0x420] sm:$0xff] }
 0x629   :  { %v14361_v37 = vcombine.low %v8144_v14, %v8152_v20 }
 0x62a   :  { %11529 = vmatpush1.bf16.msra.mxu0 %v14249_v40  ;;  %v14347_v40 = vcombine.low %v8129_v28, %v8137_v31  ;;  %v8233_v28 = vld [vmem:[#allocation8 + $0x6e8] sm:$0xff] }
 0x62b   :  { %11631 = vmatpush1.bf16.msra.mxu1 %v14251_v36  ;;  %11530 = vmatprep.subr.bf16.mxu0 %v14266_v1  ;;  %v14362_v36 = vcombine.high %v8144_v14, %v8152_v20  ;;  %v14364_v1 = vcombine.high %v8145_v18, %v8153_v41  ;;  %v8248_v14 = vld [vmem:[#allocation8 + $0x760] sm:$0xff]  ;;  %v8241_v20 = vld [vmem:[#allocation8 + $0x728] sm:$0xff] }
 0x62c   :  { %11416 = vmatmul.mubr.bf16.gmra.mrb[28].mxu0 %v15973_v59  ;;  %11632 = vmatprep.subr.bf16.mxu1 %v14268_v63  ;;  %v8160_v63 = vld [vmem:[#allocation8 + $0x4a0] sm:$0xff] }
 0x62d   :  { %11518 = vmatmul.mubr.bf16.gmra.mrb[28].mxu1 %v15973_v59  ;;  %11558 = vmatprep.mubr.bf16.mxu0 %v15993_v7  ;;  %v14377_v38 = vcombine.low %v8160_v63, %v8168_v9 }
 0x62e   :  { %11531 = vmatpush1.bf16.msra.mxu0 %v14265_v25  ;;  %11660 = vmatprep.mubr.bf16.mxu1 %v15993_v7  ;;  %v14363_v25 = vcombine.low %v8145_v18, %v8153_v41  ;;  %v8249_v18 = vld [vmem:[#allocation8 + $0x768] sm:$0xff] }
 0x62f   :  { %11633 = vmatpush1.bf16.msra.mxu1 %v14267_v51  ;;  %11532 = vmatprep.subr.bf16.mxu0 %v14282_v43  ;;  %v14378_v51 = vcombine.high %v8160_v63, %v8168_v9  ;;  %v14380_v43 = vcombine.high %v8161_v48, %v8169_v30  ;;  %v8264_v63 = vld [vmem:[#allocation8 + $0x7e0] sm:$0xff]  ;;  %v8257_v9 = vld [vmem:[#allocation8 + $0x7a8] sm:$0xff] }
 0x630   :  { %11634 = vmatprep.subr.bf16.mxu1 %v14284_v33  ;;  %v8176_v33 = vld [vmem:[#allocation8 + $0x520] sm:$0xff] }
 0x631   :  { %v14393_v57 = vcombine.low %v8176_v33, %v8184_v52 }
 0x632   :  { %11533 = vmatpush1.bf16.msra.mxu0 %v14281_v8  ;;  %v14379_v8 = vcombine.low %v8161_v48, %v8169_v30  ;;  %v8265_v48 = vld [vmem:[#allocation8 + $0x7e8] sm:$0xff] }
 0x633   :  { %11635 = vmatpush1.bf16.msra.mxu1 %v14283_v60  ;;  %11534 = vmatprep.subr.bf16.mxu0 %v14298_v56  ;;  %v14394_v60 = vcombine.high %v8176_v33, %v8184_v52  ;;  %v14396_v56 = vcombine.high %v8177_v35, %v8185_v55  ;;  %v8280_v33 = vld [vmem:[#allocation8 + $0x860] sm:$0xff]  ;;  %v8273_v52 = vld [vmem:[#allocation8 + $0x828] sm:$0xff] }
 0x634   :  { %11636 = vmatprep.subr.bf16.mxu1 %v14300_v54  ;;  %v8192_v54 = vld [vmem:[#allocation8 + $0x5a0] sm:$0xff] }
 0x635   :  { %v14409_v19 = vcombine.low %v8192_v54, %v8200_v23 }
 0x636   :  { %11535 = vmatpush1.bf16.msra.mxu0 %v14297_v27  ;;  %v14395_v27 = vcombine.low %v8177_v35, %v8185_v55  ;;  %v8281_v35 = vld [vmem:[#allocation8 + $0x868] sm:$0xff] }
 0x637   :  { %11637 = vmatpush1.bf16.msra.mxu1 %v14299_v11  ;;  %11536 = vmatprep.subr.bf16.mxu0 %v14314_v47  ;;  %v14410_v11 = vcombine.high %v8192_v54, %v8200_v23  ;;  %v14412_v47 = vcombine.high %v8193_v62, %v8201_v4  ;;  %v8296_v54 = vld [vmem:[#allocation8 + $0x8e0] sm:$0xff]  ;;  %v8289_v23 = vld [vmem:[#allocation8 + $0x8a8] sm:$0xff] }
 0x638   :  { %11638 = vmatprep.subr.bf16.mxu1 %v14316_v17  ;;  %v8208_v17 = vld [vmem:[#allocation8 + $0x620] sm:$0xff] }
 0x639   :  { %v14425_v31 = vcombine.low %v8208_v17, %v8216_v61 }
 0x63a   :  { %11537 = vmatpush1.bf16.msra.mxu0 %v14313_v26  ;;  %v14411_v26 = vcombine.low %v8193_v62, %v8201_v4  ;;  %v8297_v62 = vld [vmem:[#allocation8 + $0x8e8] sm:$0xff] }
 0x63b   :  { %11639 = vmatpush1.bf16.msra.mxu1 %v14315_v49  ;;  %11538 = vmatprep.subr.bf16.mxu0 %v14330_v10  ;;  %v14426_v49 = vcombine.high %v8208_v17, %v8216_v61  ;;  %v14428_v10 = vcombine.high %v8209_v29, %v8217_v46  ;;  %v8304_v17 = vld [vmem:[#allocation8 + $0x920] sm:$0xff] }
 0x63c   :  { %11640 = vmatprep.subr.bf16.mxu1 %v14332_v22  ;;  %v8224_v22 = vld [vmem:[#allocation8 + $0x6a0] sm:$0xff] }
 0x63d   :  { %v14441_v41 = vcombine.low %v8224_v22, %v8232_v39  ;;  %v8312_v61 = vld [vmem:[#allocation8 + $0x960] sm:$0xff] }
 0x63e   :  { %11539 = vmatpush1.bf16.msra.mxu0 %v14329_v45  ;;  %v14427_v45 = vcombine.low %v8209_v29, %v8217_v46  ;;  %v8305_v29 = vld [vmem:[#allocation8 + $0x928] sm:$0xff] }
 0x63f   :  { %11641 = vmatpush1.bf16.msra.mxu1 %v14331_v16  ;;  %11540 = vmatprep.subr.bf16.mxu0 %v14346_v42  ;;  %v14442_v16 = vcombine.high %v8224_v22, %v8232_v39  ;;  %v14444_v42 = vcombine.high %v8225_v0, %v8233_v28  ;;  %v8313_v46 = vld [vmem:[#allocation8 + $0x968] sm:$0xff]  ;;  %v8320_v22 = vld [vmem:[#allocation8 + $0x9a0] sm:$0xff] }
 0x640   :  { %11642 = vmatprep.subr.bf16.mxu1 %v14348_v3  ;;  %v8240_v3 = vld [vmem:[#allocation8 + $0x720] sm:$0xff] }
 0x641   :  { %v14457_v30 = vcombine.low %v8240_v3, %v8248_v14  ;;  %v8328_v39 = vld [vmem:[#allocation8 + $0x9e0] sm:$0xff] }
 0x642   :  { %11541 = vmatpush1.bf16.msra.mxu0 %v14345_v15  ;;  %v14443_v15 = vcombine.low %v8225_v0, %v8233_v28  ;;  %v8321_v0 = vld [vmem:[#allocation8 + $0x9a8] sm:$0xff] }
 0x643   :  { %11643 = vmatpush1.bf16.msra.mxu1 %v14347_v40  ;;  %11542 = vmatprep.subr.bf16.mxu0 %v14362_v36  ;;  %v14458_v40 = vcombine.high %v8240_v3, %v8248_v14  ;;  %v14460_v36 = vcombine.high %v8241_v20, %v8249_v18  ;;  %v8329_v28 = vld [vmem:[#allocation8 + $0x9e8] sm:$0xff]  ;;  %v8336_v3 = vld [vmem:[#allocation8 + $0xa20] sm:$0xff] }
 0x644   :  { %11644 = vmatprep.subr.bf16.mxu1 %v14364_v1  ;;  %v8256_v1 = vld [vmem:[#allocation8 + $0x7a0] sm:$0xff] }
 0x645   :  { %v14473_v55 = vcombine.low %v8256_v1, %v8264_v63  ;;  %v8344_v14 = vld [vmem:[#allocation8 + $0xa60] sm:$0xff] }
 0x646   :  { %11543 = vmatpush1.bf16.msra.mxu0 %v14361_v37  ;;  %v14459_v37 = vcombine.low %v8241_v20, %v8249_v18  ;;  %v16005_v20 = vld [vmem:[#allocation2 + $0xc] ss:$16 sps:$4 sm:$0xff]  }
 0x647   :  { %11645 = vmatpush1.bf16.msra.mxu1 %v14363_v25  ;;  %11544 = vmatprep.subr.bf16.mxu0 %v14378_v51  ;;  %v14474_v25 = vcombine.high %v8256_v1, %v8264_v63  ;;  %v14476_v51 = vcombine.high %v8257_v9, %v8265_v48  ;;  %v8337_v18 = vld [vmem:[#allocation8 + $0xa28] sm:$0xff]  ;;  %v8352_v63 = vld [vmem:[#allocation8 + $0xaa0] sm:$0xff] }
 0x648   :  { %11646 = vmatprep.subr.bf16.mxu1 %v14380_v43  ;;  %v8272_v43 = vld [vmem:[#allocation8 + $0x820] sm:$0xff] }
 0x649   :  { %v14489_v4 = vcombine.low %v8272_v43, %v8280_v33 }
 0x64a   :  { %11545 = vmatpush1.bf16.msra.mxu0 %v14377_v38  ;;  %v14475_v38 = vcombine.low %v8257_v9, %v8265_v48  ;;  %v8360_v9 = vld [vmem:[#allocation8 + $0xae0] sm:$0xff]  ;;  %v8353_v48 = vld [vmem:[#allocation8 + $0xaa8] sm:$0xff] }
 0x64b   :  { %11647 = vmatpush1.bf16.msra.mxu1 %v14379_v8  ;;  %11546 = vmatprep.subr.bf16.mxu0 %v14394_v60  ;;  %v14490_v8 = vcombine.high %v8272_v43, %v8280_v33  ;;  %v14492_v60 = vcombine.high %v8273_v52, %v8281_v35  ;;  %v8368_v33 = vld [vmem:[#allocation8 + $0xb20] sm:$0xff] }
 0x64c   :  { %11648 = vmatprep.subr.bf16.mxu1 %v14396_v56  ;;  %v8288_v56 = vld [vmem:[#allocation8 + $0x8a0] sm:$0xff] }
 0x64e   :  { %11547 = vmatpush1.bf16.msra.mxu0 %v14393_v57  ;;  %v14491_v57 = vcombine.low %v8273_v52, %v8281_v35  ;;  %v8376_v52 = vld [vmem:[#allocation8 + $0xb60] sm:$0xff] }
 0x64f   :  { %11649 = vmatpush1.bf16.msra.mxu1 %v14395_v27  ;;  %11548 = vmatprep.subr.bf16.mxu0 %v14410_v11  ;;  %v14506_v27 = vcombine.high %v8288_v56, %v8296_v54  ;;  %v15997_v11 = vld [vmem:[#allocation2] ss:$16 sps:$4 sm:$0xff]  }
 0x650   :  { %11650 = vmatprep.subr.bf16.mxu1 %v14412_v47  ;;  %v14508_v47 = vcombine.high %v8289_v23, %v8297_v62 }
 0x652   :  { %11549 = vmatpush1.bf16.msra.mxu0 %v14409_v19  ;;  %v14505_v19 = vcombine.low %v8288_v56, %v8296_v54  ;;  %v14569_v54 = vcombine.low %v8352_v63, %v8360_v9 }
 0x653   :  { %11651 = vmatpush1.bf16.msra.mxu1 %v14411_v26  ;;  %11550 = vmatprep.subr.bf16.mxu0 %v14426_v49  ;;  %v14507_v26 = vcombine.low %v8289_v23, %v8297_v62  ;;  %v14522_v49 = vcombine.high %v8304_v17, %v8312_v61 }
 0x654   :  { %11652 = vmatprep.subr.bf16.mxu1 %v14428_v10  ;;  %v14524_v10 = vcombine.high %v8305_v29, %v8313_v46 }
 0x656   :  { %11551 = vmatpush1.bf16.msra.mxu0 %v14425_v31  ;;  %v14521_v31 = vcombine.low %v8304_v17, %v8312_v61 }
 0x657   :  { %11653 = vmatpush1.bf16.msra.mxu1 %v14427_v45  ;;  %11552 = vmatprep.subr.bf16.mxu0 %v14442_v16  ;;  %v14523_v45 = vcombine.low %v8305_v29, %v8313_v46  ;;  %v14538_v16 = vcombine.high %v8320_v22, %v8328_v39  ;;  %v8384_v46 = vld [vmem:[#allocation8 + $0xba0] sm:$0xff] }
 0x658   :  { %11654 = vmatprep.subr.bf16.mxu1 %v14444_v42  ;;  %v14540_v42 = vcombine.high %v8321_v0, %v8329_v28 }
 0x65a   :  { %11553 = vmatpush1.bf16.msra.mxu0 %v14441_v41  ;;  %v8345_v41 = vld [vmem:[#allocation8 + $0xa68] sm:$0xff] }
 0x65b   :  { %11655 = vmatpush1.bf16.msra.mxu1 %v14443_v15  ;;  %11554 = vmatprep.subr.bf16.mxu0 %v14458_v40  ;;  %v14537_v15 = vcombine.low %v8320_v22, %v8328_v39  ;;  %v14539_v40 = vcombine.low %v8321_v0, %v8329_v28  ;;  %v14556_v1 = vcombine.high %v8337_v18, %v8345_v41  ;;  %v8393_v22 = vld [vmem:[#allocation8 + $0xbe8] sm:$0xff] }
 0x65c   :  { %11656 = vmatprep.subr.bf16.mxu1 %v14460_v36  ;;  %v14554_v36 = vcombine.high %v8336_v3, %v8344_v14 }
 0x65e   :  { %11555 = vmatpush1.bf16.msra.mxu0 %v14457_v30  ;;  %v8361_v30 = vld [vmem:[#allocation8 + $0xae8] sm:$0xff] }
 0x65f   :  { %11657 = vmatpush1.bf16.msra.mxu1 %v14459_v37  ;;  %11556 = vmatprep.subr.bf16.mxu0 %v14474_v25  ;;  %v14553_v37 = vcombine.low %v8336_v3, %v8344_v14  ;;  %v14555_v25 = vcombine.low %v8337_v18, %v8345_v41  ;;  %v14572_v43 = vcombine.high %v8353_v48, %v8361_v30 }
 0x660   :  { %11658 = vmatprep.subr.bf16.mxu1 %v14476_v51  ;;  %v14570_v51 = vcombine.high %v8352_v63, %v8360_v9  ;;  %v14571_v23 = vcombine.low %v8353_v48, %v8361_v30  ;;  %v8401_v30 = vld [vmem:[#allocation8 + $0xc28] sm:$0xff] }
 0x662   :  { %11557 = vmatpush1.bf16.msra.mxu0 %v14473_v55 }
 0x663   :  { %11659 = vmatpush1.bf16.msra.mxu1 %v14475_v38  ;;  %11577 = vmatprep.subr.bf16.mxu0 %v14490_v8  ;;  %v8369_v38 = vld [vmem:[#allocation8 + $0xb28] sm:$0xff] }
 0x664   :  { %11679 = vmatprep.subr.bf16.mxu1 %v14492_v60  ;;  %v8377_v8 = vld [vmem:[#allocation8 + $0xb68] sm:$0xff] }
 0x665   :  { %11559 = vmatmul.mubr.bf16.vlgmr.msra.gmra.mrb[32].mxu0 %v15997_v11  ;;  %v14588_v29 = vcombine.high %v8369_v38, %v8377_v8  ;;  %v14587_v3 = vcombine.low %v8369_v38, %v8377_v8 }
 0x666   :  { %11661 = vmatmul.mubr.bf16.vlgmr.msra.gmra.mrb[32].mxu1 %v15997_v11  ;;  %11568 = vmatprep.mubr.bf16.mxu0 %v15945_v6 }
 0x667   :  { %11578 = vmatpush1.bf16.msra.mxu0 %v14489_v4  ;;  %11670 = vmatprep.mubr.bf16.mxu1 %v15945_v6 }
 0x668   :  { %11680 = vmatpush1.bf16.msra.mxu1 %v14491_v57  ;;  %11579 = vmatprep.subr.bf16.mxu0 %v14506_v27  ;;  %v14586_v57 = vcombine.high %v8368_v33, %v8376_v52 }
 0x669   :  { %11681 = vmatprep.subr.bf16.mxu1 %v14508_v47 }
 0x66b   :  { %11580 = vmatpush1.bf16.msra.mxu0 %v14505_v19  ;;  %v8392_v19 = vld [vmem:[#allocation8 + $0xbe0] sm:$0xff] }
 0x66c   :  { %11682 = vmatpush1.bf16.msra.mxu1 %v14507_v26  ;;  %11581 = vmatprep.subr.bf16.mxu0 %v14522_v49  ;;  %v14601_v14 = vcombine.low %v8384_v46, %v8392_v19  ;;  %v14602_v18 = vcombine.high %v8384_v46, %v8392_v19  ;;  %v8416_v19 = vld [vmem:[#allocation8 + $0xca0] sm:$0xff] }
 0x66d   :  { %11569 = vmatmul.mubr.bf16.gmra.mrb[36].mxu0 %v15957_v32  ;;  %11683 = vmatprep.subr.bf16.mxu1 %v14524_v10  ;;  %v8385_v10 = vld [vmem:[#allocation8 + $0xba8] sm:$0xff] }
 0x66e   :  { %11671 = vmatmul.mubr.bf16.gmra.mrb[36].mxu1 %v15957_v32  ;;  %11609 = vmatprep.mubr.bf16.mxu0 %v16005_v20  ;;  %v14604_v41 = vcombine.high %v8385_v10, %v8393_v22  ;;  %v14603_v9 = vcombine.low %v8385_v10, %v8393_v22  ;;  %v8425_v10 = vld [vmem:[#allocation8 + $0xce8] sm:$0xff] }
 0x66f   :  { %11582 = vmatpush1.bf16.msra.mxu0 %v14521_v31  ;;  %11711 = vmatprep.mubr.bf16.mxu1 %v16005_v20  ;;  %v14585_v31 = vcombine.low %v8368_v33, %v8376_v52 }
 0x670   :  { %11684 = vmatpush1.bf16.msra.mxu1 %v14523_v45  ;;  %11583 = vmatprep.subr.bf16.mxu0 %v14538_v16  ;;  %v8400_v45 = vld [vmem:[#allocation8 + $0xc20] sm:$0xff] }
 0x671   :  { %11685 = vmatprep.subr.bf16.mxu1 %v14540_v42  ;;  %v8408_v16 = vld [vmem:[#allocation8 + $0xc60] sm:$0xff] }
 0x672   :  { %v14618_v48 = vcombine.high %v8400_v45, %v8408_v16 }
 0x673   :  { %11584 = vmatpush1.bf16.msra.mxu0 %v14537_v15 }
 0x674   :  { %11686 = vmatpush1.bf16.msra.mxu1 %v14539_v40  ;;  %11585 = vmatprep.subr.bf16.mxu0 %v14554_v36 }
 0x675   :  { %11687 = vmatprep.subr.bf16.mxu1 %v14556_v1 }
 0x676   :  { %v16009_v35 = vpop.f32.mrb[16].mxu0  ;;  %v16011_v55 = vpop.f32.mrb[16].mxu1 }
 0x677   :  { %11586 = vmatpush1.bf16.msra.mxu0 %v14553_v37  ;;  %v16013_v60 = vpop.f32.mrb[17].mxu0  ;;  %v16015_v56 = vpop.f32.mrb[17].mxu1  ;;  %v12006_v39 = vrot.slane %v16009_v35, 6  ;;  %v12012_v0 = vrot.slane %v16011_v55, 6  ;;  %v8409_v37 = vld [vmem:[#allocation8 + $0xc68] sm:$0xff] }
 0x678   :  { %11688 = vmatpush1.bf16.msra.mxu1 %v14555_v25  ;;  %11587 = vmatprep.subr.bf16.mxu0 %v14570_v51  ;;  %v16017_v62 = vpop.f32.mrb[18].mxu0  ;;  %v16019_v4 = vpop.f32.mrb[18].mxu1  ;;  %v12009_v28 = vrot.slane %v16013_v60, 6  ;;  %v12015_v42 = vrot.slane %v16015_v56, 6  ;;  %v14620_v46 = vcombine.high %v8401_v30, %v8409_v37 }
 0x679   :  { %11689 = vmatprep.subr.bf16.mxu1 %v14572_v43  ;;  %v12007_v27 = vrot.slane %v16017_v62, 6  ;;  %v12013_v47 = vrot.slane %v16019_v4, 6  ;;  %v11209_v17 = vpop.f32.mrb[19].mxu0  ;;  %v11311_v61 = vpop.f32.mrb[19].mxu1  ;;  %v12224_v51 = vrot.slane %v16017_v62, 3  ;;  %v12230_v43 = vrot.slane %v16019_v4, 3 }
 0x67a   :  { %v12010_v26 = vrot.slane %v11209_v17, 6  ;;  %v12016_v49 = vrot.slane %v11311_v61, 6 }
 0x67b   :  { %11588 = vmatpush1.bf16.msra.mxu0 %v14569_v54  ;;  %v16028_v15 = vsel %vm16636_vm3, %v12006_v39, %v12007_v27  ;;  %v16031_v40 = vsel %vm16637_vm10, %v12012_v0, %v12013_v47  ;;  %v12227_v54 = vrot.slane %v11209_v17, 3  ;;  %v14617_v0 = vcombine.low %v8400_v45, %v8408_v16  ;;  %v8456_v45 = vld [vmem:[#allocation8 + $0xde0] sm:$0xff]  ;;  %v8449_v16 = vld [vmem:[#allocation8 + $0xda8] sm:$0xff] }
 0x67c   :  { %11690 = vmatpush1.bf16.msra.mxu1 %v14571_v23  ;;  %11589 = vmatprep.subr.bf16.mxu0 %v14586_v57  ;;  %v16034_v36 = vsel %vm16638_vm1, %v12009_v28, %v12010_v26  ;;  %v16041_v25 = vsel %vm16639_vm11, %v12015_v42, %v12016_v49  ;;  %v12233_v23 = vrot.slane %v11311_v61, 3  ;;  %v8424_v26 = vld [vmem:[#allocation8 + $0xce0] sm:$0xff]  ;;  %v8417_v61 = vld [vmem:[#allocation8 + $0xca8] sm:$0xff]  ;;  %v14619_v28 = vcombine.low %v8401_v30, %v8409_v37 }
 0x67d   :  { %11691 = vmatprep.subr.bf16.mxu1 %v14588_v29  ;;  %v14636_v42 = vcombine.high %v8417_v61, %v8425_v10  ;;  %vm16657_vm3 = vnez %v16612_v12  ;;  %v15063_v12 = vld [vmem:[#allocation11 + $0x78] sm:$0xff]   ;;  %vm12427_vm1 = vcmask 1044482   ;;  %vm12428_vm11 = vsmask.f32 4362 }
 0x67e   :  { %v16036_v1 = vpop.f32.mrb[20].mxu0  ;;  %v16038_v63 = vpop.f32.mrb[20].mxu1 }
 0x67f   :  { %11590 = vmatpush1.bf16.msra.mxu0 %v14585_v31  ;;  %v12225_v33 = vrot.slane %v16036_v1, 3  ;;  %v12231_v52 = vrot.slane %v16038_v63, 3  ;;  %v16047_v38 = vpop.f32.mrb[21].mxu0  ;;  %v16049_v8 = vpop.f32.mrb[21].mxu1  ;;  %v14634_v31 = vcombine.high %v8416_v19, %v8424_v26 }
 0x680   :  { %11692 = vmatpush1.bf16.msra.mxu1 %v14587_v3  ;;  %v12228_v57 = vrot.slane %v16047_v38, 3  ;;  %v12234_v27 = vrot.slane %v16049_v8, 3  ;;  %11591 = vmatprep.subr.bf16.mxu0 %v14602_v18  ;;  %v11217_v62 = vpop.f32.mrb[22].mxu0  ;;  %v11319_v47 = vpop.f32.mrb[22].mxu1  ;;  %v8432_v3 = vld [vmem:[#allocation8 + $0xd20] sm:$0xff] }
 0x681   :  { %11693 = vmatprep.subr.bf16.mxu1 %v14604_v41  ;;  %v11218_v4 = vpop.f32.mrb[23].mxu0  ;;  %v11320_v29 = vpop.f32.mrb[23].mxu1  ;;  %v16054_v49 = vsel %vm12223_vm8, %v12224_v51, %v12225_v33  ;;  %v16057_v17 = vsel %vm12223_vm8, %v12230_v43, %v12231_v52  ;;  %v8440_v18 = vld [vmem:[#allocation8 + $0xd60] sm:$0xff]  ;;  %v8433_v41 = vld [vmem:[#allocation8 + $0xd28] sm:$0xff]  ;;  %v14633_v43 = vcombine.low %v8416_v19, %v8424_v26  ;;  %v14635_v33 = vcombine.low %v8417_v61, %v8425_v10 }
 0x682   :  { %v16060_v22 = vsel %vm12223_vm8, %v12227_v54, %v12228_v57  ;;  %v16063_v39 = vsel %vm12223_vm8, %v12233_v23, %v12234_v27  ;;  %v8441_v51 = vld [vmem:[#allocation8 + $0xd68] sm:$0xff]  ;;  %v14650_v52 = vcombine.high %v8432_v3, %v8440_v18  ;;  %v8464_v57 = vld [vmem:[#allocation8 + $0xe20] sm:$0xff]  ;;  %vm16375_vm8 = vmand %vm12427_vm1, %vm12428_vm11 }
 0x683   :  { %11592 = vmatpush1.bf16.msra.mxu0 %v14601_v14  ;;  %v14652_v54 = vcombine.high %v8433_v41, %v8441_v51  ;;  %v8448_v14 = vld [vmem:[#allocation8 + $0xda0] sm:$0xff]  ;;  %v14651_v30 = vcombine.low %v8433_v41, %v8441_v51  ;;  %v8465_v62 = vld [vmem:[#allocation8 + $0xe28] sm:$0xff] }
 0x684   :  { %11694 = vmatpush1.bf16.msra.mxu1 %v14603_v9  ;;  %11593 = vmatprep.subr.bf16.mxu0 %v14618_v48  ;;  %v8457_v9 = vld [vmem:[#allocation8 + $0xde8] sm:$0xff]  ;;  %v14649_v48 = vcombine.low %v8432_v3, %v8440_v18  ;;  %v14666_v37 = vcombine.high %v8448_v14, %v8456_v45  ;;  %v8472_v27 = vld [vmem:[#allocation8 + $0xe60] sm:$0xff]  ;;  %v14665_v4 = vcombine.low %v8448_v14, %v8456_v45 }
 0x685   :  { %11695 = vmatprep.subr.bf16.mxu1 %v14620_v46  ;;  %v14668_v23 = vcombine.high %v8449_v16, %v8457_v9  ;;  %v8473_v47 = vld [vmem:[#allocation8 + $0xe68] sm:$0xff]  ;;  %v14667_v29 = vcombine.low %v8449_v16, %v8457_v9  ;;  %v14682_v46 = vcombine.high %v8464_v57, %v8472_v27  ;;  %v8480_v26 = vld [vmem:[#allocation8 + $0xea0] sm:$0xff] }
 0x686   :  { %v14684_v19 = vcombine.high %v8465_v62, %v8473_v47  ;;  %v8488_v61 = vld [vmem:[#allocation8 + $0xee0] sm:$0xff]  ;;  %v8481_v10 = vld [vmem:[#allocation8 + $0xea8] sm:$0xff] }
 0x687   :  { %11594 = vmatpush1.bf16.msra.mxu0 %v14617_v0  ;;  %v8489_v0 = vld [vmem:[#allocation8 + $0xee8] sm:$0xff]  ;;  %v8496_v18 = vld [vmem:[#allocation8 + $0xf20] sm:$0xff] }
 0x688   :  { %11696 = vmatpush1.bf16.msra.mxu1 %v14619_v28  ;;  %11595 = vmatprep.subr.bf16.mxu0 %v14634_v31  ;;  %v14681_v28 = vcombine.low %v8464_v57, %v8472_v27  ;;  %v14683_v31 = vcombine.low %v8465_v62, %v8473_v47  ;;  %v14700_v3 = vcombine.high %v8481_v10, %v8489_v0  ;;  %v8504_v41 = vld [vmem:[#allocation8 + $0xf60] sm:$0xff]  ;;  %v8497_v51 = vld [vmem:[#allocation8 + $0xf28] sm:$0xff]  ;;  %v8018_v27 = vld [vmem:[#allocation8 + $0x30] sm:$0xff] }
 0x689   :  { %11697 = vmatprep.subr.bf16.mxu1 %v14636_v42  ;;  %v14698_v42 = vcombine.high %v8480_v26, %v8488_v61  ;;  %v8512_v45 = vld [vmem:[#allocation8 + $0xfa0] sm:$0xff]  ;;  %v8513_v9 = vld [vmem:[#allocation8 + $0xfa8] sm:$0xff]  ;;  %v8026_v62 = vld [vmem:[#allocation8 + $0x70] sm:$0xff] }
 0x68a   :  { %v8520_v16 = vld [vmem:[#allocation8 + $0xfe0] sm:$0xff]  ;;  %v8019_v47 = vld [vmem:[#allocation8 + $0x38] sm:$0xff] }
 0x68b   :  { %11596 = vmatpush1.bf16.msra.mxu0 %v14633_v43  ;;  %v8505_v43 = vld [vmem:[#allocation8 + $0xf68] sm:$0xff] }
 0x68c   :  { %11698 = vmatpush1.bf16.msra.mxu1 %v14635_v33  ;;  %11597 = vmatprep.subr.bf16.mxu0 %v14650_v52  ;;  %v14697_v33 = vcombine.low %v8480_v26, %v8488_v61  ;;  %v14699_v52 = vcombine.low %v8481_v10, %v8489_v0  ;;  %v14716_v14 = vcombine.high %v8497_v51, %v8505_v43  ;;  %v8034_v61 = vld [vmem:[#allocation8 + $0xb0] sm:$0xff]  ;;  %v8035_v0 = vld [vmem:[#allocation8 + $0xb8] sm:$0xff] }
 0x68d   :  { %11699 = vmatprep.subr.bf16.mxu1 %v14652_v54  ;;  %v14714_v54 = vcombine.high %v8496_v18, %v8504_v41  ;;  %v8042_v10 = vld [vmem:[#allocation8 + $0xf0] sm:$0xff] }
 0x68f   :  { %11598 = vmatpush1.bf16.msra.mxu0 %v14649_v48  ;;  %v8521_v48 = vld [vmem:[#allocation8 + $0xfe8] sm:$0xff] }
 0x690   :  { %11700 = vmatpush1.bf16.msra.mxu1 %v14651_v30  ;;  %11599 = vmatprep.subr.bf16.mxu0 %v14666_v37  ;;  %v14713_v30 = vcombine.low %v8496_v18, %v8504_v41  ;;  %v14715_v37 = vcombine.low %v8497_v51, %v8505_v43  ;;  %v14732_v57 = vcombine.high %v8513_v9, %v8521_v48  ;;  %v16065_v18 = vld [vmem:[#allocation2 + $0x8] ss:$16 sps:$4 sm:$0xff]  }
 0x691   :  { %11701 = vmatprep.subr.bf16.mxu1 %v14668_v23  ;;  %v14730_v23 = vcombine.high %v8512_v45, %v8520_v16  ;;  %v8050_v51 = vld [vmem:[#allocation8 + $0x130] sm:$0xff] }
 0x692   :  { %v8058_v43 = vld [vmem:[#allocation8 + $0x170] sm:$0xff] }
 0x693   :  { %11600 = vmatpush1.bf16.msra.mxu0 %v14665_v4  ;;  %v8027_v4 = vld [vmem:[#allocation8 + $0x78] sm:$0xff] }
 0x694   :  { %11702 = vmatpush1.bf16.msra.mxu1 %v14667_v29  ;;  %11601 = vmatprep.subr.bf16.mxu0 %v14682_v46  ;;  %v14729_v29 = vcombine.low %v8512_v45, %v8520_v16  ;;  %v14731_v46 = vcombine.low %v8513_v9, %v8521_v48  ;;  %v14240_v26 = vcombine.high %v8019_v47, %v8027_v4  ;;  %v8066_v9 = vld [vmem:[#allocation8 + $0x1b0] sm:$0xff] }
 0x695   :  { %11703 = vmatprep.subr.bf16.mxu1 %v14684_v19  ;;  %v14238_v19 = vcombine.high %v8018_v27, %v8026_v62  ;;  %v14270_v45 = vcombine.high %v8050_v51, %v8058_v43  ;;  %v8074_v48 = vld [vmem:[#allocation8 + $0x1f0] sm:$0xff] }
 0x697   :  { %11602 = vmatpush1.bf16.msra.mxu0 %v14681_v28  ;;  %v8043_v28 = vld [vmem:[#allocation8 + $0xf8] sm:$0xff] }
 0x698   :  { %11704 = vmatpush1.bf16.msra.mxu1 %v14683_v31  ;;  %11603 = vmatprep.subr.bf16.mxu0 %v14698_v42  ;;  %v14237_v31 = vcombine.low %v8018_v27, %v8026_v62  ;;  %v14239_v42 = vcombine.low %v8019_v47, %v8027_v4  ;;  %v14256_v41 = vcombine.high %v8035_v0, %v8043_v28  ;;  %v8082_v47 = vld [vmem:[#allocation8 + $0x230] sm:$0xff] }
 0x699   :  { %11705 = vmatprep.subr.bf16.mxu1 %v14700_v3  ;;  %v14254_v3 = vcombine.high %v8034_v61, %v8042_v10  ;;  %v14286_v27 = vcombine.high %v8066_v9, %v8074_v48  ;;  %v8090_v4 = vld [vmem:[#allocation8 + $0x270] sm:$0xff] }
 0x69b   :  { %11604 = vmatpush1.bf16.msra.mxu0 %v14697_v33  ;;  %v8051_v33 = vld [vmem:[#allocation8 + $0x138] sm:$0xff] }
 0x69c   :  { %11706 = vmatpush1.bf16.msra.mxu1 %v14699_v52  ;;  %11605 = vmatprep.subr.bf16.mxu0 %v14714_v54  ;;  %v8059_v52 = vld [vmem:[#allocation8 + $0x178] sm:$0xff]  ;;  %v14253_v54 = vcombine.low %v8034_v61, %v8042_v10  ;;  %v14302_v61 = vcombine.high %v8082_v47, %v8090_v4 }
 0x69d   :  { %11707 = vmatprep.subr.bf16.mxu1 %v14716_v14  ;;  %v14255_v14 = vcombine.low %v8035_v0, %v8043_v28  ;;  %v14272_v16 = vcombine.high %v8051_v33, %v8059_v52  ;;  %v8098_v0 = vld [vmem:[#allocation8 + $0x2b0] sm:$0xff] }
 0x69e   :  { %v8106_v28 = vld [vmem:[#allocation8 + $0x2f0] sm:$0xff] }
 0x69f   :  { %11606 = vmatpush1.bf16.msra.mxu0 %v14713_v30  ;;  %v8067_v30 = vld [vmem:[#allocation8 + $0x1b8] sm:$0xff] }
 0x6a0   :  { %11708 = vmatpush1.bf16.msra.mxu1 %v14715_v37  ;;  %11607 = vmatprep.subr.bf16.mxu0 %v14730_v23  ;;  %v8075_v37 = vld [vmem:[#allocation8 + $0x1f8] sm:$0xff]  ;;  %v14269_v23 = vcombine.low %v8050_v51, %v8058_v43  ;;  %v14318_v51 = vcombine.high %v8098_v0, %v8106_v28 }
 0x6a1   :  { %11709 = vmatprep.subr.bf16.mxu1 %v14732_v57  ;;  %v14271_v57 = vcombine.low %v8051_v33, %v8059_v52  ;;  %v14288_v62 = vcombine.high %v8067_v30, %v8075_v37  ;;  %v8122_v33 = vld [vmem:[#allocation8 + $0x370] sm:$0xff]  ;;  %v8115_v52 = vld [vmem:[#allocation8 + $0x338] sm:$0xff] }
 0x6a3   :  { %11608 = vmatpush1.bf16.msra.mxu0 %v14729_v29  ;;  %v8083_v29 = vld [vmem:[#allocation8 + $0x238] sm:$0xff] }
 0x6a4   :  { %11710 = vmatpush1.bf16.msra.mxu1 %v14731_v46  ;;  %11730 = vmatprep.subr.bf16.mxu0 %v14238_v19  ;;  %v8091_v46 = vld [vmem:[#allocation8 + $0x278] sm:$0xff]  ;;  %v14285_v19 = vcombine.low %v8066_v9, %v8074_v48  ;;  %v8130_v48 = vld [vmem:[#allocation8 + $0x3b0] sm:$0xff] }
 0x6a5   :  { %11832 = vmatprep.subr.bf16.mxu1 %v14240_v26  ;;  %v14287_v26 = vcombine.low %v8067_v30, %v8075_v37  ;;  %v14304_v10 = vcombine.high %v8083_v29, %v8091_v46  ;;  %v8138_v30 = vld [vmem:[#allocation8 + $0x3f0] sm:$0xff]  ;;  %v8131_v37 = vld [vmem:[#allocation8 + $0x3b8] sm:$0xff] }
 0x6a6   :  { %11610 = vmatmul.mubr.bf16.vlgmr.msra.gmra.mrb[32].mxu0 %v16065_v18 }
 0x6a7   :  { %11712 = vmatmul.mubr.bf16.vlgmr.msra.gmra.mrb[32].mxu1 %v16065_v18  ;;  %11619 = vmatprep.mubr.bf16.mxu0 %v15967_v53 }
 0x6a8   :  { %11721 = vmatprep.mubr.bf16.mxu1 %v15967_v53  ;;  %11731 = vmatpush1.bf16.msra.mxu0 %v14237_v31  ;;  %v8099_v31 = vld [vmem:[#allocation8 + $0x2b8] sm:$0xff] }
 0x6a9   :  { %11833 = vmatpush1.bf16.msra.mxu1 %v14239_v42  ;;  %11732 = vmatprep.subr.bf16.mxu0 %v14254_v3  ;;  %v8107_v42 = vld [vmem:[#allocation8 + $0x2f8] sm:$0xff]  ;;  %v14301_v3 = vcombine.low %v8082_v47, %v8090_v4  ;;  %v8146_v4 = vld [vmem:[#allocation8 + $0x430] sm:$0xff] }
 0x6aa   :  { %11834 = vmatprep.subr.bf16.mxu1 %v14256_v41  ;;  %v14303_v41 = vcombine.low %v8083_v29, %v8091_v46  ;;  %v14320_v43 = vcombine.high %v8099_v31, %v8107_v42  ;;  %v8154_v29 = vld [vmem:[#allocation8 + $0x470] sm:$0xff]  ;;  %v8147_v46 = vld [vmem:[#allocation8 + $0x438] sm:$0xff] }
 0x6ac   :  { %11733 = vmatpush1.bf16.msra.mxu0 %v14253_v54  ;;  %v8123_v54 = vld [vmem:[#allocation8 + $0x378] sm:$0xff] }
 0x6ad   :  { %11835 = vmatpush1.bf16.msra.mxu1 %v14255_v14  ;;  %11734 = vmatprep.subr.bf16.mxu0 %v14270_v45  ;;  %v14317_v14 = vcombine.low %v8098_v0, %v8106_v28  ;;  %v14319_v45 = vcombine.low %v8099_v31, %v8107_v42  ;;  %v14336_v9 = vcombine.high %v8115_v52, %v8123_v54  ;;  %v8162_v28 = vld [vmem:[#allocation8 + $0x4b0] sm:$0xff]  ;;  %v8163_v42 = vld [vmem:[#allocation8 + $0x4b8] sm:$0xff] }
 0x6ae   :  { %11620 = vmatmul.mubr.bf16.gmra.mrb[36].mxu0 %v15973_v59  ;;  %11836 = vmatprep.subr.bf16.mxu1 %v14272_v16  ;;  %v8170_v31 = vld [vmem:[#allocation8 + $0x4f0] sm:$0xff] }
 0x6af   :  { %11722 = vmatmul.mubr.bf16.gmra.mrb[36].mxu1 %v15973_v59  ;;  %11762 = vmatprep.mubr.bf16.mxu0 %v15993_v7 }
 0x6b0   :  { %11735 = vmatpush1.bf16.msra.mxu0 %v14269_v23  ;;  %11864 = vmatprep.mubr.bf16.mxu1 %v15993_v7  ;;  %v8114_v7 = vld [vmem:[#allocation8 + $0x330] sm:$0xff]  ;;  %v8139_v23 = vld [vmem:[#allocation8 + $0x3f8] sm:$0xff] }
 0x6b1   :  { %11837 = vmatpush1.bf16.msra.mxu1 %v14271_v57  ;;  %11736 = vmatprep.subr.bf16.mxu0 %v14286_v27  ;;  %v14334_v16 = vcombine.high %v8114_v7, %v8122_v33  ;;  %v14333_v57 = vcombine.low %v8114_v7, %v8122_v33  ;;  %v14335_v27 = vcombine.low %v8115_v52, %v8123_v54  ;;  %v8178_v33 = vld [vmem:[#allocation8 + $0x530] sm:$0xff]  ;;  %v8179_v54 = vld [vmem:[#allocation8 + $0x538] sm:$0xff] }
 0x6b2   :  { %11838 = vmatprep.subr.bf16.mxu1 %v14288_v62  ;;  %v14350_v62 = vcombine.high %v8130_v48, %v8138_v30  ;;  %v14352_v47 = vcombine.high %v8131_v37, %v8139_v23  ;;  %v8186_v52 = vld [vmem:[#allocation8 + $0x570] sm:$0xff] }
 0x6b4   :  { %11737 = vmatpush1.bf16.msra.mxu0 %v14285_v19  ;;  %v8155_v19 = vld [vmem:[#allocation8 + $0x478] sm:$0xff] }
 0x6b5   :  { %11839 = vmatpush1.bf16.msra.mxu1 %v14287_v26  ;;  %11738 = vmatprep.subr.bf16.mxu0 %v14302_v61  ;;  %v14349_v26 = vcombine.low %v8130_v48, %v8138_v30  ;;  %v14351_v61 = vcombine.low %v8131_v37, %v8139_v23  ;;  %v14368_v0 = vcombine.high %v8147_v46, %v8155_v19  ;;  %v8194_v30 = vld [vmem:[#allocation8 + $0x5b0] sm:$0xff]  ;;  %v8195_v23 = vld [vmem:[#allocation8 + $0x5b8] sm:$0xff] }
 0x6b6   :  { %11840 = vmatprep.subr.bf16.mxu1 %v14304_v10  ;;  %v14366_v10 = vcombine.high %v8146_v4, %v8154_v29  ;;  %v8202_v37 = vld [vmem:[#allocation8 + $0x5f0] sm:$0xff] }
 0x6b8   :  { %11739 = vmatpush1.bf16.msra.mxu0 %v14301_v3  ;;  %v8171_v3 = vld [vmem:[#allocation8 + $0x4f8] sm:$0xff] }
 0x6b9   :  { %11841 = vmatpush1.bf16.msra.mxu1 %v14303_v41  ;;  %11740 = vmatprep.subr.bf16.mxu0 %v14318_v51  ;;  %v14365_v41 = vcombine.low %v8146_v4, %v8154_v29  ;;  %v14367_v51 = vcombine.low %v8147_v46, %v8155_v19  ;;  %v14384_v7 = vcombine.high %v8163_v42, %v8171_v3  ;;  %v8210_v29 = vld [vmem:[#allocation8 + $0x630] sm:$0xff]  ;;  %v8211_v19 = vld [vmem:[#allocation8 + $0x638] sm:$0xff] }
 0x6ba   :  { %11842 = vmatprep.subr.bf16.mxu1 %v14320_v43  ;;  %v14382_v43 = vcombine.high %v8162_v28, %v8170_v31  ;;  %v8218_v46 = vld [vmem:[#allocation8 + $0x670] sm:$0xff] }
 0x6bc   :  { %11741 = vmatpush1.bf16.msra.mxu0 %v14317_v14  ;;  %v8187_v14 = vld [vmem:[#allocation8 + $0x578] sm:$0xff] }
 0x6bd   :  { %11843 = vmatpush1.bf16.msra.mxu1 %v14319_v45  ;;  %11742 = vmatprep.subr.bf16.mxu0 %v14334_v16  ;;  %v14381_v45 = vcombine.low %v8162_v28, %v8170_v31  ;;  %v14383_v16 = vcombine.low %v8163_v42, %v8171_v3  ;;  %v14400_v48 = vcombine.high %v8179_v54, %v8187_v14  ;;  %v8226_v31 = vld [vmem:[#allocation8 + $0x6b0] sm:$0xff]  ;;  %v8227_v3 = vld [vmem:[#allocation8 + $0x6b8] sm:$0xff] }
 0x6be   :  { %11844 = vmatprep.subr.bf16.mxu1 %v14336_v9  ;;  %v14398_v9 = vcombine.high %v8178_v33, %v8186_v52  ;;  %v8234_v42 = vld [vmem:[#allocation8 + $0x6f0] sm:$0xff] }
 0x6c0   :  { %11743 = vmatpush1.bf16.msra.mxu0 %v14333_v57  ;;  %v8203_v57 = vld [vmem:[#allocation8 + $0x5f8] sm:$0xff] }
 0x6c1   :  { %11845 = vmatpush1.bf16.msra.mxu1 %v14335_v27  ;;  %11744 = vmatprep.subr.bf16.mxu0 %v14350_v62  ;;  %v14397_v27 = vcombine.low %v8178_v33, %v8186_v52  ;;  %v14399_v62 = vcombine.low %v8179_v54, %v8187_v14  ;;  %v14416_v4 = vcombine.high %v8195_v23, %v8203_v57  ;;  %v8242_v52 = vld [vmem:[#allocation8 + $0x730] sm:$0xff]  ;;  %v8243_v14 = vld [vmem:[#allocation8 + $0x738] sm:$0xff] }
 0x6c2   :  { %11846 = vmatprep.subr.bf16.mxu1 %v14352_v47  ;;  %v14414_v47 = vcombine.high %v8194_v30, %v8202_v37  ;;  %v8250_v54 = vld [vmem:[#allocation8 + $0x770] sm:$0xff] }
 0x6c4   :  { %11745 = vmatpush1.bf16.msra.mxu0 %v14349_v26  ;;  %v8219_v26 = vld [vmem:[#allocation8 + $0x678] sm:$0xff] }
 0x6c5   :  { %11847 = vmatpush1.bf16.msra.mxu1 %v14351_v61  ;;  %11746 = vmatprep.subr.bf16.mxu0 %v14366_v10  ;;  %v14413_v61 = vcombine.low %v8194_v30, %v8202_v37  ;;  %v14415_v10 = vcombine.low %v8195_v23, %v8203_v57  ;;  %v14432_v28 = vcombine.high %v8211_v19, %v8219_v26  ;;  %v8258_v37 = vld [vmem:[#allocation8 + $0x7b0] sm:$0xff]  ;;  %v8259_v57 = vld [vmem:[#allocation8 + $0x7b8] sm:$0xff] }
 0x6c6   :  { %11848 = vmatprep.subr.bf16.mxu1 %v14368_v0  ;;  %v14430_v0 = vcombine.high %v8210_v29, %v8218_v46  ;;  %v8266_v23 = vld [vmem:[#allocation8 + $0x7f0] sm:$0xff] }
 0x6c8   :  { %11747 = vmatpush1.bf16.msra.mxu0 %v14365_v41  ;;  %v8235_v41 = vld [vmem:[#allocation8 + $0x6f8] sm:$0xff] }
 0x6c9   :  { %11849 = vmatpush1.bf16.msra.mxu1 %v14367_v51  ;;  %11748 = vmatprep.subr.bf16.mxu0 %v14382_v43  ;;  %v14429_v51 = vcombine.low %v8210_v29, %v8218_v46  ;;  %v14431_v43 = vcombine.low %v8211_v19, %v8219_v26  ;;  %v14448_v33 = vcombine.high %v8227_v3, %v8235_v41  ;;  %v8274_v46 = vld [vmem:[#allocation8 + $0x830] sm:$0xff]  ;;  %v8275_v26 = vld [vmem:[#allocation8 + $0x838] sm:$0xff] }
 0x6ca   :  { %11850 = vmatprep.subr.bf16.mxu1 %v14384_v7  ;;  %v14446_v7 = vcombine.high %v8226_v31, %v8234_v42  ;;  %v8282_v19 = vld [vmem:[#allocation8 + $0x870] sm:$0xff] }
 0x6cc   :  { %11749 = vmatpush1.bf16.msra.mxu0 %v14381_v45  ;;  %v8251_v45 = vld [vmem:[#allocation8 + $0x778] sm:$0xff] }
 0x6cd   :  { %11851 = vmatpush1.bf16.msra.mxu1 %v14383_v16  ;;  %11750 = vmatprep.subr.bf16.mxu0 %v14398_v9  ;;  %v14445_v16 = vcombine.low %v8226_v31, %v8234_v42  ;;  %v14447_v9 = vcombine.low %v8227_v3, %v8235_v41  ;;  %v14464_v30 = vcombine.high %v8243_v14, %v8251_v45  ;;  %v8290_v42 = vld [vmem:[#allocation8 + $0x8b0] sm:$0xff]  ;;  %v8291_v41 = vld [vmem:[#allocation8 + $0x8b8] sm:$0xff] }
 0x6ce   :  { %11852 = vmatprep.subr.bf16.mxu1 %v14400_v48  ;;  %v14462_v48 = vcombine.high %v8242_v52, %v8250_v54  ;;  %v8298_v3 = vld [vmem:[#allocation8 + $0x8f0] sm:$0xff] }
 0x6d0   :  { %11751 = vmatpush1.bf16.msra.mxu0 %v14397_v27  ;;  %v8267_v27 = vld [vmem:[#allocation8 + $0x7f8] sm:$0xff] }
 0x6d1   :  { %11853 = vmatpush1.bf16.msra.mxu1 %v14399_v62  ;;  %11752 = vmatprep.subr.bf16.mxu0 %v14414_v47  ;;  %v14461_v62 = vcombine.low %v8242_v52, %v8250_v54  ;;  %v14463_v47 = vcombine.low %v8243_v14, %v8251_v45  ;;  %v14480_v29 = vcombine.high %v8259_v57, %v8267_v27  ;;  %v8306_v54 = vld [vmem:[#allocation8 + $0x930] sm:$0xff]  ;;  %v8307_v45 = vld [vmem:[#allocation8 + $0x938] sm:$0xff] }
 0x6d2   :  { %11854 = vmatprep.subr.bf16.mxu1 %v14416_v4  ;;  %v14478_v4 = vcombine.high %v8258_v37, %v8266_v23  ;;  %v8314_v14 = vld [vmem:[#allocation8 + $0x970] sm:$0xff] }
 0x6d4   :  { %11753 = vmatpush1.bf16.msra.mxu0 %v14413_v61  ;;  %v8283_v61 = vld [vmem:[#allocation8 + $0x878] sm:$0xff] }
 0x6d5   :  { %11855 = vmatpush1.bf16.msra.mxu1 %v14415_v10  ;;  %11754 = vmatprep.subr.bf16.mxu0 %v14430_v0  ;;  %v14477_v10 = vcombine.low %v8258_v37, %v8266_v23  ;;  %v14479_v0 = vcombine.low %v8259_v57, %v8267_v27  ;;  %v14496_v31 = vcombine.high %v8275_v26, %v8283_v61  ;;  %v8322_v23 = vld [vmem:[#allocation8 + $0x9b0] sm:$0xff]  ;;  %v8323_v27 = vld [vmem:[#allocation8 + $0x9b8] sm:$0xff] }
 0x6d6   :  { %11856 = vmatprep.subr.bf16.mxu1 %v14432_v28  ;;  %v14494_v28 = vcombine.high %v8274_v46, %v8282_v19  ;;  %v8330_v57 = vld [vmem:[#allocation8 + $0x9f0] sm:$0xff] }
 0x6d8   :  { %11755 = vmatpush1.bf16.msra.mxu0 %v14429_v51  ;;  %v8299_v51 = vld [vmem:[#allocation8 + $0x8f8] sm:$0xff] }
 0x6d9   :  { %11857 = vmatpush1.bf16.msra.mxu1 %v14431_v43  ;;  %11756 = vmatprep.subr.bf16.mxu0 %v14446_v7  ;;  %v14493_v43 = vcombine.low %v8274_v46, %v8282_v19  ;;  %v14495_v7 = vcombine.low %v8275_v26, %v8283_v61  ;;  %v14512_v52 = vcombine.high %v8291_v41, %v8299_v51  ;;  %v8346_v46 = vld [vmem:[#allocation8 + $0xa70] sm:$0xff]  ;;  %v8339_v19 = vld [vmem:[#allocation8 + $0xa38] sm:$0xff] }
 0x6da   :  { %11858 = vmatprep.subr.bf16.mxu1 %v14448_v33  ;;  %v14510_v33 = vcombine.high %v8290_v42, %v8298_v3  ;;  %v8347_v26 = vld [vmem:[#allocation8 + $0xa78] sm:$0xff]  ;;  %v14541_v61 = vcombine.low %v8322_v23, %v8330_v57 }
 0x6dc   :  { %11757 = vmatpush1.bf16.msra.mxu0 %v14445_v16  ;;  %v8315_v16 = vld [vmem:[#allocation8 + $0x978] sm:$0xff] }
 0x6dd   :  { %11859 = vmatpush1.bf16.msra.mxu1 %v14447_v9  ;;  %11758 = vmatprep.subr.bf16.mxu0 %v14462_v48  ;;  %v14509_v9 = vcombine.low %v8290_v42, %v8298_v3  ;;  %v14511_v48 = vcombine.low %v8291_v41, %v8299_v51  ;;  %v14528_v37 = vcombine.high %v8307_v45, %v8315_v16  ;;  %v8362_v42 = vld [vmem:[#allocation8 + $0xaf0] sm:$0xff]  ;;  %v8355_v3 = vld [vmem:[#allocation8 + $0xab8] sm:$0xff] }
 0x6de   :  { %11860 = vmatprep.subr.bf16.mxu1 %v14464_v30  ;;  %v14526_v30 = vcombine.high %v8306_v54, %v8314_v14  ;;  %v8363_v41 = vld [vmem:[#allocation8 + $0xaf8] sm:$0xff]  ;;  %v14559_v51 = vcombine.low %v8339_v19, %v8347_v26 }
 0x6e0   :  { %11759 = vmatpush1.bf16.msra.mxu0 %v14461_v62  ;;  %v8331_v62 = vld [vmem:[#allocation8 + $0x9f8] sm:$0xff] }
 0x6e1   :  { %11861 = vmatpush1.bf16.msra.mxu1 %v14463_v47  ;;  %11760 = vmatprep.subr.bf16.mxu0 %v14478_v4  ;;  %v14527_v47 = vcombine.low %v8307_v45, %v8315_v16  ;;  %v14542_v4 = vcombine.high %v8322_v23, %v8330_v57  ;;  %v8371_v45 = vld [vmem:[#allocation8 + $0xb38] sm:$0xff] }
 0x6e2   :  { %11862 = vmatprep.subr.bf16.mxu1 %v14480_v29  ;;  %v8338_v29 = vld [vmem:[#allocation8 + $0xa30] sm:$0xff]  ;;  %v8379_v16 = vld [vmem:[#allocation8 + $0xb78] sm:$0xff] }
 0x6e4   :  { %11761 = vmatpush1.bf16.msra.mxu0 %v14477_v10  ;;  %v14543_v10 = vcombine.low %v8323_v27, %v8331_v62 }
 0x6e5   :  { %11863 = vmatpush1.bf16.msra.mxu1 %v14479_v0  ;;  %11781 = vmatprep.subr.bf16.mxu0 %v14494_v28  ;;  %v14558_v0 = vcombine.high %v8338_v29, %v8346_v46  ;;  %v14560_v28 = vcombine.high %v8339_v19, %v8347_v26  ;;  %v14591_v19 = vcombine.low %v8371_v45, %v8379_v16 }
 0x6e6   :  { %11883 = vmatprep.subr.bf16.mxu1 %v14496_v31  ;;  %v8354_v31 = vld [vmem:[#allocation8 + $0xab0] sm:$0xff] }
 0x6e7   :  { %11763 = vmatmul.mubr.bf16.vlgmr.msra.gmra.mrb[40].mxu0 %v15997_v11 }
 0x6e8   :  { %11865 = vmatmul.mubr.bf16.vlgmr.msra.gmra.mrb[40].mxu1 %v15997_v11  ;;  %11772 = vmatprep.mubr.bf16.mxu0 %v15945_v6  ;;  %v14525_v11 = vcombine.low %v8306_v54, %v8314_v14 }
 0x6e9   :  { %11782 = vmatpush1.bf16.msra.mxu0 %v14493_v43  ;;  %11874 = vmatprep.mubr.bf16.mxu1 %v15945_v6  ;;  %v14544_v6 = vcombine.high %v8323_v27, %v8331_v62  ;;  %v14574_v43 = vcombine.high %v8354_v31, %v8362_v42 }
 0x6ea   :  { %11884 = vmatpush1.bf16.msra.mxu1 %v14495_v7  ;;  %11783 = vmatprep.subr.bf16.mxu0 %v14510_v33  ;;  %v8370_v33 = vld [vmem:[#allocation8 + $0xb30] sm:$0xff] }
 0x6eb   :  { %11885 = vmatprep.subr.bf16.mxu1 %v14512_v52  ;;  %v8378_v52 = vld [vmem:[#allocation8 + $0xb70] sm:$0xff] }
 0x6ec   :  { %v14590_v27 = vcombine.high %v8370_v33, %v8378_v52 }
 0x6ed   :  { %11784 = vmatpush1.bf16.msra.mxu0 %v14509_v9 }
 0x6ee   :  { %11886 = vmatpush1.bf16.msra.mxu1 %v14511_v48  ;;  %11785 = vmatprep.subr.bf16.mxu0 %v14526_v30  ;;  %v14573_v48 = vcombine.low %v8354_v31, %v8362_v42 }
 0x6ef   :  { %11773 = vmatmul.mubr.bf16.gmra.mrb[44].mxu0 %v15957_v32  ;;  %11887 = vmatprep.subr.bf16.mxu1 %v14528_v37  ;;  %v14575_v37 = vcombine.low %v8355_v3, %v8363_v41 }
 0x6f0   :  { %11875 = vmatmul.mubr.bf16.gmra.mrb[44].mxu1 %v15957_v32  ;;  %11813 = vmatprep.mubr.bf16.mxu0 %v16005_v20  ;;  %v14557_v32 = vcombine.low %v8338_v29, %v8346_v46  ;;  %v8395_v29 = vld [vmem:[#allocation8 + $0xbf8] sm:$0xff]  ;;  %v14589_v46 = vcombine.low %v8370_v33, %v8378_v52 }
 0x6f1   :  { %11786 = vmatpush1.bf16.msra.mxu0 %v14525_v11  ;;  %11915 = vmatprep.mubr.bf16.mxu1 %v16005_v20  ;;  %v14576_v20 = vcombine.high %v8355_v3, %v8363_v41  ;;  %v14592_v11 = vcombine.high %v8371_v45, %v8379_v16  ;;  %v8403_v3 = vld [vmem:[#allocation8 + $0xc38] sm:$0xff] }
 0x6f2   :  { %11888 = vmatpush1.bf16.msra.mxu1 %v14527_v47  ;;  %11787 = vmatprep.subr.bf16.mxu0 %v14542_v4  ;;  %v8386_v47 = vld [vmem:[#allocation8 + $0xbb0] sm:$0xff]  ;;  %v8411_v41 = vld [vmem:[#allocation8 + $0xc78] sm:$0xff] }
 0x6f3   :  { %11889 = vmatprep.subr.bf16.mxu1 %v14544_v6  ;;  %v8394_v4 = vld [vmem:[#allocation8 + $0xbf0] sm:$0xff]  ;;  %v8387_v6 = vld [vmem:[#allocation8 + $0xbb8] sm:$0xff] }
 0x6f4   :  { %v14606_v26 = vcombine.high %v8386_v47, %v8394_v4 }
 0x6f5   :  { %11788 = vmatpush1.bf16.msra.mxu0 %v14541_v61 }
 0x6f6   :  { %11890 = vmatpush1.bf16.msra.mxu1 %v14543_v10  ;;  %11789 = vmatprep.subr.bf16.mxu0 %v14558_v0  ;;  %v14608_v10 = vcombine.high %v8387_v6, %v8395_v29  ;;  %v8402_v0 = vld [vmem:[#allocation8 + $0xc30] sm:$0xff] }
 0x6f7   :  { %11891 = vmatprep.subr.bf16.mxu1 %v14560_v28  ;;  %v16083_v7 = vpop.f32.mrb[24].mxu0  ;;  %v8410_v28 = vld [vmem:[#allocation8 + $0xc70] sm:$0xff] }
 0x6f8   :  { %v16085_v54 = vpop.f32.mrb[24].mxu1  ;;  %v16087_v14 = vpop.f32.mrb[25].mxu0  ;;  %v14622_v45 = vcombine.high %v8402_v0, %v8410_v28  ;;  %v14621_v2 = vcombine.low %v8402_v0, %v8410_v28  ;;  %v8458_v0 = vld [vmem:[#allocation8 + $0xdf0] sm:$0xff]  ;;  %v8451_v28 = vld [vmem:[#allocation8 + $0xdb8] sm:$0xff] }
 0x6f9   :  { %11790 = vmatpush1.bf16.msra.mxu0 %v14557_v32  ;;  %v16089_v9 = vpop.f32.mrb[25].mxu1  ;;  %v16091_v30 = vpop.f32.mrb[26].mxu0 }
 0x6fa   :  { %11892 = vmatpush1.bf16.msra.mxu1 %v14559_v51  ;;  %11791 = vmatprep.subr.bf16.mxu0 %v14574_v43  ;;  %v16093_v23 = vpop.f32.mrb[26].mxu1  ;;  %v16095_v57 = vpop.f32.mrb[27].mxu0  ;;  %v14605_v51 = vcombine.low %v8386_v47, %v8394_v4 }
 0x6fb   :  { %11893 = vmatprep.subr.bf16.mxu1 %v14576_v20  ;;  %v16097_v62 = vpop.f32.mrb[27].mxu1  ;;  %v14607_v20 = vcombine.low %v8387_v6, %v8395_v29  ;;  %v8442_v6 = vld [vmem:[#allocation8 + $0xd70] sm:$0xff]  ;;  %v8435_v29 = vld [vmem:[#allocation8 + $0xd38] sm:$0xff] }
 0x6fd   :  { %11792 = vmatpush1.bf16.msra.mxu0 %v14573_v48  ;;  %v14624_v48 = vcombine.high %v8403_v3, %v8411_v41 }
 0x6fe   :  { %11894 = vmatpush1.bf16.msra.mxu1 %v14575_v37  ;;  %11793 = vmatprep.subr.bf16.mxu0 %v14590_v27  ;;  %v8418_v37 = vld [vmem:[#allocation8 + $0xcb0] sm:$0xff] }
 0x6ff   :  { %11895 = vmatprep.subr.bf16.mxu1 %v14592_v11  ;;  %v16099_v61 = vpop.f32.mrb[28].mxu0  ;;  %v8426_v27 = vld [vmem:[#allocation8 + $0xcf0] sm:$0xff]  ;;  %v8419_v11 = vld [vmem:[#allocation8 + $0xcb8] sm:$0xff] }
 0x700   :  { %v16101_v31 = vpop.f32.mrb[28].mxu1  ;;  %v16103_v42 = vpop.f32.mrb[29].mxu0  ;;  %v14638_v47 = vcombine.high %v8418_v37, %v8426_v27  ;;  %v14640_v4 = vcombine.high %v8419_v11, %v8427_v44 }
 0x701   :  { %16640 = vst [vmem:[#allocation20_spill] sm:$0xff] %v16101_v31  ;;  %16641 = vst [vmem:[#allocation21_spill] sm:$0xff] %v16103_v42  ;;  %11794 = vmatpush1.bf16.msra.mxu0 %v14589_v46  ;;  %v16105_v32 = vpop.f32.mrb[29].mxu1  ;;  %v11421_v43 = vpop.f32.mrb[30].mxu0  ;;  %v14623_v46 = vcombine.low %v8403_v3, %v8411_v41 }
 0x702   :  { %16642 = vst [vmem:[#allocation22_spill] sm:$0xff] %v16105_v32  ;;  %11896 = vmatpush1.bf16.msra.mxu1 %v14591_v19  ;;  %11795 = vmatprep.subr.bf16.mxu0 %v14606_v26  ;;  %v11523_v33 = vpop.f32.mrb[30].mxu1  ;;  %v11422_v52 = vpop.f32.mrb[31].mxu0  ;;  %v8434_v19 = vld [vmem:[#allocation8 + $0xd30] sm:$0xff]  ;;  %v8443_v26 = vld [vmem:[#allocation8 + $0xd78] sm:$0xff]  ;;  %v14639_v43 = vcombine.low %v8419_v11, %v8427_v44 }
 0x703   :  { %11897 = vmatprep.subr.bf16.mxu1 %v14608_v10  ;;  %v11524_v16 = vpop.f32.mrb[31].mxu1  ;;  %v14637_v10 = vcombine.low %v8418_v37, %v8426_v27  ;;  %v14654_v33 = vcombine.high %v8434_v19, %v8442_v6  ;;  %v14656_v52 = vcombine.high %v8435_v29, %v8443_v26  ;;  %v14653_v3 = vcombine.low %v8434_v19, %v8442_v6  ;;  %v8467_v37 = vld [vmem:[#allocation8 + $0xe38] sm:$0xff]  ;;  %v8490_v19 = vld [vmem:[#allocation8 + $0xef0] sm:$0xff] }
 0x704   :  { %v14655_v41 = vcombine.low %v8435_v29, %v8443_v26  ;;  %v8475_v27 = vld [vmem:[#allocation8 + $0xe78] sm:$0xff] }
 0x705   :  { %11796 = vmatpush1.bf16.msra.mxu0 %v14605_v51  ;;  %v8450_v51 = vld [vmem:[#allocation8 + $0xdb0] sm:$0xff]  ;;  %v8483_v6 = vld [vmem:[#allocation8 + $0xeb8] sm:$0xff]  ;;  %v14687_v26 = vcombine.low %v8467_v37, %v8475_v27 }
 0x706   :  { %11898 = vmatpush1.bf16.msra.mxu1 %v14607_v20  ;;  %11797 = vmatprep.subr.bf16.mxu0 %v14622_v45  ;;  %v8459_v20 = vld [vmem:[#allocation8 + $0xdf8] sm:$0xff]  ;;  %v14670_v45 = vcombine.high %v8450_v51, %v8458_v0  ;;  %v14669_v44 = vcombine.low %v8450_v51, %v8458_v0  ;;  %v8506_v51 = vld [vmem:[#allocation8 + $0xf70] sm:$0xff] }
 0x707   :  { %11899 = vmatprep.subr.bf16.mxu1 %v14624_v48  ;;  %v14672_v16 = vcombine.high %v8451_v28, %v8459_v20  ;;  %v8474_v48 = vld [vmem:[#allocation8 + $0xe70] sm:$0xff]  ;;  %v14671_v11 = vcombine.low %v8451_v28, %v8459_v20  ;;  %v8499_v0 = vld [vmem:[#allocation8 + $0xf38] sm:$0xff] }
 0x709   :  { %11798 = vmatpush1.bf16.msra.mxu0 %v14621_v2  ;;  %v8466_v2 = vld [vmem:[#allocation8 + $0xe30] sm:$0xff] }
 0x70a   :  { %11900 = vmatpush1.bf16.msra.mxu1 %v14623_v46  ;;  %11799 = vmatprep.subr.bf16.mxu0 %v14638_v47  ;;  %v14686_v46 = vcombine.high %v8466_v2, %v8474_v48  ;;  %v14688_v47 = vcombine.high %v8467_v37, %v8475_v27  ;;  %v14685_v29 = vcombine.low %v8466_v2, %v8474_v48  ;;  %v8522_v2 = vld [vmem:[#allocation8 + $0xff0] sm:$0xff]  ;;  %v8515_v48 = vld [vmem:[#allocation8 + $0xfb8] sm:$0xff] }
 0x70b   :  { %11901 = vmatprep.subr.bf16.mxu1 %v14640_v4  ;;  %v8482_v4 = vld [vmem:[#allocation8 + $0xeb0] sm:$0xff] }
 0x70c   :  { %v14701_v28 = vcombine.low %v8482_v4, %v8490_v19 }
 0x70d   :  { %11800 = vmatpush1.bf16.msra.mxu0 %v14637_v10  ;;  %v8491_v10 = vld [vmem:[#allocation8 + $0xef8] sm:$0xff] }
 0x70e   :  { %11902 = vmatpush1.bf16.msra.mxu1 %v14639_v43  ;;  %11801 = vmatprep.subr.bf16.mxu0 %v14654_v33  ;;  %v14702_v43 = vcombine.high %v8482_v4, %v8490_v19  ;;  %v14704_v33 = vcombine.high %v8483_v6, %v8491_v10  ;;  %v14703_v20 = vcombine.low %v8483_v6, %v8491_v10  ;;  %v15035_v19 = vld [vmem:[#allocation11 + $0x40] sm:$0xff]  }
 0x70f   :  { %11903 = vmatprep.subr.bf16.mxu1 %v14656_v52  ;;  %v8498_v52 = vld [vmem:[#allocation8 + $0xf30] sm:$0xff]  ;;  %v15036_v6 = vld [vmem:[#allocation11 + $0xc0] sm:$0xff]  }
 0x710   :  { %v14717_v37 = vcombine.low %v8498_v52, %v8506_v51  ;;  %v15037_v10 = vld [vmem:[#allocation11] sm:$0xff]  }
 0x711   :  { %11802 = vmatpush1.bf16.msra.mxu0 %v14653_v3  ;;  %v8507_v3 = vld [vmem:[#allocation8 + $0xf78] sm:$0xff] }
 0x712   :  { %11904 = vmatpush1.bf16.msra.mxu1 %v14655_v41  ;;  %11803 = vmatprep.subr.bf16.mxu0 %v14670_v45  ;;  %v14718_v41 = vcombine.high %v8498_v52, %v8506_v51  ;;  %v14720_v45 = vcombine.high %v8499_v0, %v8507_v3  ;;  %v14719_v27 = vcombine.low %v8499_v0, %v8507_v3  ;;  %v15042_v52 = vld [vmem:[#allocation11 + $0x88] sm:$0xff]   ;;  %v11934_v51 = vld [vmem:[#allocation9] sm:$0xf]  ;;  %v16643_v0 = vsub.s32 0, %v15553_v5 }
 0x713   :  { %11905 = vmatprep.subr.bf16.mxu1 %v14672_v16  ;;  %v8514_v16 = vld [vmem:[#allocation8 + $0xfb0] sm:$0xff]  ;;  %v16644_v3 = vsub.s32 2, %v15553_v5 }
 0x715   :  { %11804 = vmatpush1.bf16.msra.mxu0 %v14669_v44  ;;  %v8523_v44 = vld [vmem:[#allocation8 + $0xff8] sm:$0xff] }
 0x716   :  { %11906 = vmatpush1.bf16.msra.mxu1 %v14671_v11  ;;  %11805 = vmatprep.subr.bf16.mxu0 %v14686_v46  ;;  %v14734_v11 = vcombine.high %v8514_v16, %v8522_v2  ;;  %v14736_v46 = vcombine.high %v8515_v48, %v8523_v44  ;;  %v14735_v4 = vcombine.low %v8515_v48, %v8523_v44  ;;  %v16592_v48 = vrot.slane %v16015_v56, 3 }
 0x717   :  { %11907 = vmatprep.subr.bf16.mxu1 %v14688_v47  ;;  %v14733_v47 = vcombine.low %v8514_v16, %v8522_v2  ;;  %v12074_v16 = vrot.slane %v16009_v35, 3  ;;  %v16593_v2 = vrot.slane %v16013_v60, 3  ;;  %v16597_v44 = vrot.slane %v16036_v1, 6 }
 0x719   :  { %11806 = vmatpush1.bf16.msra.mxu0 %v14685_v29  ;;  %v15038_v29 = vld [vmem:[#allocation11 + $0x80] sm:$0xff]  }
 0x71a   :  { %11908 = vmatpush1.bf16.msra.mxu1 %v14687_v26  ;;  %11807 = vmatprep.subr.bf16.mxu0 %v14702_v43  ;;  %v15039_v26 = vld [vmem:[#allocation11 + $0x48] sm:$0xff]  }
 0x71b   :  { %11909 = vmatprep.subr.bf16.mxu1 %v14704_v33  ;;  %v15040_v43 = vld [vmem:[#allocation11 + $0xc8] sm:$0xff]  }
 0x71c   :  { %v15041_v33 = vld [vmem:[#allocation11 + $0x8] sm:$0xff]  }
 0x71d   :  { %11808 = vmatpush1.bf16.msra.mxu0 %v14701_v28  ;;  %v16645_v28 = vsub.s32 1, %v15553_v5 }
 0x71e   :  { %11910 = vmatpush1.bf16.msra.mxu1 %v14703_v20  ;;  %11809 = vmatprep.subr.bf16.mxu0 %v14718_v41  ;;  %v16646_v41 = vsub.s32 3, %v15553_v5 }
 0x71f   :  { %11911 = vmatprep.subr.bf16.mxu1 %v14720_v45  ;;  %v16123_v20 = vrot.slane %v11934_v51, %v16645_v28 }
 0x720   :  { %v16127_v45 = vrot.slane %v11934_v51, %v16646_v41 }
 0x721   :  { %11810 = vmatpush1.bf16.msra.mxu0 %v14717_v37  ;;  %v16598_v37 = vrot.slane %v16038_v63, 6 }
 0x722   :  { %11912 = vmatpush1.bf16.msra.mxu1 %v14719_v27  ;;  %11811 = vmatprep.subr.bf16.mxu0 %v14734_v11 }
 0x723   :  { %11913 = vmatprep.subr.bf16.mxu1 %v14736_v46 }
 0x725   :  { %11812 = vmatpush1.bf16.msra.mxu0 %v14733_v47 }
 0x726   :  { %11914 = vmatpush1.bf16.msra.mxu1 %v14735_v4  ;;  %14785 = vmatprep.subr.bf16.mxu0 %v15035_v19 }
 0x727   :  { %14819 = vmatprep.subr.bf16.mxu1 %v15036_v6 }
 0x728   :  { %11814 = vmatmul.mubr.bf16.vlgmr.msra.gmra.mrb[40].mxu0 %v16065_v18 }
 0x729   :  { %11916 = vmatmul.mubr.bf16.vlgmr.msra.gmra.mrb[40].mxu1 %v16065_v18  ;;  %11823 = vmatprep.mubr.bf16.mxu0 %v15967_v53  ;;  %v16115_v18 = vrot.slane %v11934_v51, %v16643_v0 }
 0x72a   :  { %11925 = vmatprep.mubr.bf16.mxu1 %v15967_v53  ;;  %14786 = vmatpush3.bf16.msra.mxu0 %v15037_v10  ;;  %v16119_v53 = vrot.slane %v11934_v51, %v16644_v3 }
 0x72b   :  { %14820 = vmatpush3.bf16.msra.mxu1 %v15038_v29  ;;  %14787 = vmatprep.subr.bf16.mxu0 %v15039_v26 }
 0x72c   :  { %14821 = vmatprep.subr.bf16.mxu1 %v15040_v43 }
 0x72e   :  { %14788 = vmatpush3.bf16.msra.mxu0 %v15041_v33 }
 0x72f   :  { %14822 = vmatpush3.bf16.msra.mxu1 %v15042_v52 }
 0x730   :  { %11824 = vmatmul.mubr.bf16.gmra.mrb[44].mxu0 %v15973_v59 }
 0x731   :  { %11926 = vmatmul.mubr.bf16.gmra.mrb[44].mxu1 %v15973_v59  ;;  %v12076_v59 = vrot.slane %v16011_v55, 3 }
 0x779   :  { %v11611_v27 = vpop.f32.mrb[32].mxu0 }
 0x77a   :  { %v12022_v5 = vadd.f32 %v16028_v15, %v11611_v27  ;;  %v12082_v47 = vadd.f32 %v12074_v16, %v11611_v27  ;;  %v11713_v4 = vpop.f32.mrb[32].mxu1  ;;  %v11613_v35 = vpop.f32.mrb[33].mxu0 }
 0x77b   :  { %v12024_v55 = vadd.f32 %v16031_v40, %v11713_v4  ;;  %v12084_v19 = vadd.f32 %v12076_v59, %v11713_v4  ;;  %v12023_v6 = vadd.f32 %v16034_v36, %v11613_v35  ;;  %v12083_v10 = vadd.f32 %v16593_v2, %v11613_v35  ;;  %v11715_v29 = vpop.f32.mrb[33].mxu1  ;;  %v11615_v26 = vpop.f32.mrb[34].mxu0  ;;  %v12292_v2 = vld [vmem:[#allocation3 + $0x18] sm:$0x38] }
 0x77c   :  { %v12026_v43 = vadd.f32 %v12022_v5, %v16115_v18  ;;  %v12090_v33 = vadd.f32 %v12082_v47, %v16115_v18  ;;  %v12025_v52 = vadd.f32 %v16041_v25, %v11715_v29  ;;  %v12085_v15 = vadd.f32 %v16592_v48, %v11715_v29  ;;  %v11717_v51 = vpop.f32.mrb[34].mxu1  ;;  %v11617_v0 = vpop.f32.mrb[35].mxu0 }
 0x77d   :  { %v12028_v40 = vadd.f32 %v12024_v55, %v16119_v53  ;;  %v12092_v36 = vadd.f32 %v12084_v19, %v16119_v53  ;;  %v12027_v3 = vadd.f32 %v12023_v6, %v16123_v20  ;;  %v11719_v28 = vpop.f32.mrb[35].mxu1  ;;  %v16151_v27 = vadd.f32 %v12083_v10, %v16123_v20  ;;  %v12283_v55 = vld [vmem:[#allocation3] sm:$0x38] }
 0x77e   :  { %v12030_v41 = vmax.f32 %v12026_v43, 0.0  ;;  %v12029_v25 = vadd.f32 %v12025_v52, %v16127_v45  ;;  %v12098_v5 = vmax.f32 %v12090_v33, 0.0  ;;  %v16155_v35 = vadd.f32 %v12085_v15, %v16127_v45  ;;  %v12289_v43 = vld [vmem:[#allocation3 + $0x10] sm:$0x38]  ;;  %v12286_v52 = vld [vmem:[#allocation3 + $0x8] sm:$0x38] }
 0x77f   :  { %v12032_v47 = vmax.f32 %v12028_v40, 0.0  ;;  %v12031_v4 = vmax.f32 %v12027_v3, 0.0  ;;  %v12100_v46 = vmax.f32 %v12092_v36, 0.0  ;;  %v12086_v48 = vadd.f32 %v12074_v16, %v11615_v26 }
 0x780   :  { %v12034_v29 = vpack.c.bf16 %v12030_v41, %v12030_v41  ;;  %v12033_v19 = vmax.f32 %v12029_v25, 0.0  ;;  %v12162_v33 = vadd.f32 %v16597_v44, %v11615_v26  ;;  %v12088_v40 = vadd.f32 %v12076_v59, %v11717_v51 }
 0x781   :  { %v12036_v10 = vpack.c.bf16 %v12032_v47, %v12032_v47  ;;  %v12035_v11 = vpack.c.bf16 %v12031_v4, %v12031_v4  ;;  %v11621_v15 = vpop.f32.mrb[36].mxu0  ;;  %v12094_v36 = vadd.f32 %v12086_v48, %v16115_v18  ;;  %v12164_v16 = vadd.f32 %v16598_v37, %v11717_v51 }
 0x782   :  { %v12272_v3 = vrot.slane %v12034_v29, 5  ;;  %v12037_v41 = vpack.c.bf16 %v12033_v19, %v12033_v19  ;;  %v11723_v25 = vpop.f32.mrb[36].mxu1  ;;  %v16167_v32 = vpop.f32.mrb[37].mxu0  ;;  %v12099_v4 = vmax.f32 %v16151_v27, 0.0  ;;  %v12096_v31 = vadd.f32 %v12088_v40, %v16119_v53 }
 0x783   :  { %v12274_v47 = vrot.slane %v12036_v10, 5  ;;  %v12273_v42 = vrot.slane %v12035_v11, 5  ;;  %v16171_v26 = vpop.f32.mrb[37].mxu1  ;;  %v11625_v59 = vpop.f32.mrb[38].mxu0  ;;  %v12101_v48 = vmax.f32 %v16155_v35, 0.0  ;;  %v12102_v44 = vmax.f32 %v12094_v36, 0.0 }
 0x784   :  { %v12284_v29 = vsel %vm16158_vm9, %v12272_v3, %v12283_v55  ;;  %v12275_v19 = vrot.slane %v12037_v41, 5  ;;  %v11727_v51 = vpop.f32.mrb[38].mxu1  ;;  %v11626_v37 = vpop.f32.mrb[39].mxu0  ;;  %v12170_v27 = vadd.f32 %v12162_v33, %v16115_v18  ;;  %v12104_v40 = vmax.f32 %v12096_v31, 0.0 }
 0x785   :  { %12285 = vst [vmem:[#allocation3] sm:$0x38] %v12284_v29  ;;  %v12290_v10 = vsel %vm16158_vm9, %v12274_v47, %v12289_v43  ;;  %v12287_v11 = vsel %vm16158_vm9, %v12273_v42, %v12286_v52  ;;  %v11728_v59 = vpop.f32.mrb[39].mxu1  ;;  %v12106_v55 = vpack.c.bf16 %v12102_v44, %v12098_v5  ;;  %v16184_v3 = vadd.f32 %v12164_v16, %v16119_v53  ;;  %v12343_v43 = vld [vmem:[#allocation3 + $0x20] sm:$0xe]  ;;  %v15043_v51 = vld [vmem:[#allocation11 + $0x50] sm:$0xff]  }
 0x786   :  { %12291 = vst [vmem:[#allocation3 + $0x10] sm:$0x38] %v12290_v10  ;;  %12288 = vst [vmem:[#allocation3 + $0x8] sm:$0x38] %v12287_v11  ;;  %v12293_v35 = vsel %vm16158_vm9, %v12275_v19, %v12292_v2  ;;  %v16649_v37 = vrot.slane %v16013_v60, 3  ;;  %v12108_v36 = vpack.c.bf16 %v12104_v40, %v12100_v46  ;;  %v16650_v42 = vrot.slane %v16047_v38, 6  ;;  %14789 = vmatprep.subr.bf16.mxu0 %v15043_v51 }
 0x787   :  { %12294 = vst [vmem:[#allocation3 + $0x18] sm:$0x38] %v12293_v35  ;;  %v16651_v31 = vrot.slane %v16015_v56, 3  ;;  %v16652_v47 = vrot.slane %v16049_v8, 6  ;;  %v12335_v2 = vrot.slane %v12106_v55, 2  ;;  %v16653_v60 = vrot.slane %v16036_v1, 6 }
 0x788   :  { %v12087_v41 = vadd.f32 %v16649_v37, %v11617_v0  ;;  %v12163_v52 = vadd.f32 %v16650_v42, %v11617_v0  ;;  %v12349_v44 = vld [vmem:[#allocation3 + $0x30] sm:$0xe]  ;;  %v12240_v29 = vadd.f32 %v16054_v49, %v11621_v15  ;;  %v12178_v46 = vmax.f32 %v12170_v27, 0.0  ;;  %v15044_v1 = vld [vmem:[#allocation11 + $0xd0] sm:$0xff]   ;;  %v12346_v37 = vld [vmem:[#allocation3 + $0x28] sm:$0xe] }
 0x789   :  { %v12089_v33 = vadd.f32 %v16651_v31, %v11719_v28  ;;  %v16194_v6 = vadd.f32 %v16652_v47, %v11719_v28  ;;  %v12166_v16 = vadd.f32 %v16653_v60, %v11621_v15  ;;  %v12337_v19 = vrot.slane %v12108_v36, 2  ;;  %v15045_v35 = vld [vmem:[#allocation11 + $0x10] sm:$0xff]   ;;  %14823 = vmatprep.subr.bf16.mxu1 %v15044_v1 }
 0x78a   :  { %v12095_v5 = vadd.f32 %v12087_v41, %v16123_v20  ;;  %v16201_v0 = vadd.f32 %v12163_v52, %v16123_v20  ;;  %v12344_v28 = vsel %vm15749_vm2, %v12335_v2, %v12343_v43  ;;  %v12244_v40 = vadd.f32 %v12240_v29, %v16115_v18  ;;  %14790 = vmatpush3.bf16.msra.mxu0 %v15045_v35  ;;  %v15046_v2 = vld [vmem:[#allocation11 + $0x90] sm:$0xff]   ;;  %v12391_v29 = vld [vmem:[#allocation3 + $0x20] sm:$0x80] }
 0x78b   :  { %v12097_v56 = vadd.f32 %v12089_v33, %v16127_v45  ;;  %v12174_v11 = vadd.f32 %v12166_v16, %v16115_v18  ;;  %12345 = vst [vmem:[#allocation3 + $0x20] sm:$0xe] %v12344_v28  ;;  %v12180_v49 = vmax.f32 %v16184_v3, 0.0  ;;  %v12350_v15 = vsel %vm15749_vm2, %v12337_v19, %v12349_v44  ;;  %v15048_v44 = vld [vmem:[#allocation11 + $0xd8] sm:$0xff]   ;;  %v12352_v60 = vld [vmem:[#allocation3 + $0x38] sm:$0xe]  ;;  %14824 = vmatpush3.bf16.msra.mxu1 %v15046_v2 }
 0x78c   :  { %v12103_v10 = vmax.f32 %v12095_v5, 0.0  ;;  %v12179_v27 = vmax.f32 %v16201_v0, 0.0  ;;  %12351 = vst [vmem:[#allocation3 + $0x30] sm:$0xe] %v12350_v15  ;;  %v12248_v43 = vmax.f32 %v12244_v40, 0.0  ;;  %v16654_v36 = vrot.slane %v16038_v63, 6  ;;  %14825 = vmatprep.subr.bf16.mxu1 %v15048_v44 }
 0x78d   :  { %v12105_v59 = vmax.f32 %v12097_v56, 0.0  ;;  %v12182_v41 = vmax.f32 %v12174_v11, 0.0  ;;  %v12242_v3 = vadd.f32 %v16057_v17, %v11723_v25  ;;  %v16655_v31 = vrot.slane %v16047_v38, 6  ;;  %v15049_v19 = vld [vmem:[#allocation11 + $0x18] sm:$0xff]  }
 0x78e   :  { %v12107_v55 = vpack.c.bf16 %v12103_v10, %v12099_v4  ;;  %v12168_v42 = vadd.f32 %v16654_v36, %v11723_v25  ;;  %v12241_v47 = vadd.f32 %v16060_v22, %v16167_v32  ;;  %v15047_v4 = vld [vmem:[#allocation11 + $0x58] sm:$0xff]   ;;  %v12252_v63 = vpack.c.bf16 %v12248_v43, %v12248_v43  ;;  %v12409_v43 = vld [vmem:[#allocation3 + $0x50] sm:$0x3]  ;;  %v12460_v36 = vld [vmem:[#allocation3 + $0x50] sm:$0xe0] }
 0x78f   :  { %v12109_v52 = vpack.c.bf16 %v12105_v59, %v12101_v48  ;;  %v12167_v33 = vadd.f32 %v16655_v31, %v16167_v32  ;;  %v12186_v16 = vpack.c.bf16 %v12182_v41, %v12178_v46  ;;  %v12403_v25 = vld [vmem:[#allocation3 + $0x40] sm:$0x3]  ;;  %v12454_v0 = vld [vmem:[#allocation3 + $0x40] sm:$0xe0]  ;;  %v12246_v38 = vadd.f32 %v12242_v3, %v16119_v53  ;;  %14791 = vmatprep.subr.bf16.mxu0 %v15047_v4  ;;  %v12397_v41 = vld [vmem:[#allocation3 + $0x30] sm:$0x80] }
 0x790   :  { %v12336_v5 = vrot.slane %v12107_v55, 2  ;;  %v12176_v48 = vadd.f32 %v12168_v42, %v16119_v53  ;;  %v12245_v22 = vadd.f32 %v12241_v47, %v16123_v20  ;;  %v15050_v32 = vld [vmem:[#allocation11 + $0x98] sm:$0xff]   ;;  %v12446_v28 = vrot.slane %v12252_v63, 4  ;;  %14792 = vmatpush3.bf16.msra.mxu0 %v15049_v19  ;;  %v12394_v3 = vld [vmem:[#allocation3 + $0x28] sm:$0x80] }
 0x791   :  { %v12338_v17 = vrot.slane %v12109_v52, 2  ;;  %v12175_v56 = vadd.f32 %v12167_v33, %v16123_v20  ;;  %v12383_v51 = vrot.slane %v12186_v16, 3  ;;  %v12250_v40 = vmax.f32 %v12246_v38, 0.0  ;;  %14826 = vmatpush3.bf16.msra.mxu1 %v15050_v32  ;;  %v12457_v4 = vld [vmem:[#allocation3 + $0x48] sm:$0xe0] }
 0x792   :  { %v12347_v46 = vsel %vm15749_vm2, %v12336_v5, %v12346_v37  ;;  %v12184_v10 = vmax.f32 %v12176_v48, 0.0  ;;  %v12249_v15 = vmax.f32 %v12245_v22, 0.0  ;;  %v12455_v55 = vsel %vm16657_vm3, %v12446_v28, %v12454_v0  ;;  %v12412_v22 = vld [vmem:[#allocation3 + $0x58] sm:$0x3]  ;;  %v15051_v32 = vld [vmem:[#allocation11 + $0x60] sm:$0xff]  }
 0x793   :  { %12348 = vst [vmem:[#allocation3 + $0x28] sm:$0xe] %v12347_v46  ;;  %v12353_v11 = vsel %vm15749_vm2, %v12338_v17, %v12352_v60  ;;  %v12183_v1 = vmax.f32 %v12175_v56, 0.0  ;;  %v12392_v59 = vsel %vm15688_vm13, %v12383_v51, %v12391_v29  ;;  %v12404_v35 = vsel %vm16656_vm7, %v12383_v51, %v12403_v25  ;;  %12456 = vst [vmem:[#allocation3 + $0x40] sm:$0xe0] %v12455_v55  ;;  %v15052_v51 = vld [vmem:[#allocation11 + $0xe0] sm:$0xff]  }
 0x794   :  { %12354 = vst [vmem:[#allocation3 + $0x38] sm:$0xe] %v12353_v11  ;;  %v12188_v37 = vpack.c.bf16 %v12184_v10, %v12180_v49  ;;  %12393 = vst [vmem:[#allocation3 + $0x20] sm:$0x80] %v12392_v59  ;;  %v12254_v24 = vpack.c.bf16 %v12250_v40, %v12250_v40  ;;  %v12253_v52 = vpack.c.bf16 %v12249_v15, %v12249_v15  ;;  %v16658_v31 = vrot.slane %v16049_v8, 6  ;;  %v15053_v28 = vld [vmem:[#allocation11 + $0x20] sm:$0xff]  }
 0x795   :  { %12405 = vst [vmem:[#allocation3 + $0x40] sm:$0x3] %v12404_v35  ;;  %v12187_v42 = vpack.c.bf16 %v12183_v1, %v12179_v27  ;;  %v12173_v47 = vadd.f32 %v16194_v6, %v16127_v45  ;;  %v12406_v49 = vld [vmem:[#allocation3 + $0x48] sm:$0x3]  ;;  %v12243_v44 = vadd.f32 %v16063_v39, %v16171_v26  ;;  %v12400_v56 = vld [vmem:[#allocation3 + $0x38] sm:$0x80]  ;;  %14793 = vmatprep.subr.bf16.mxu0 %v15051_v32 }
 0x796   :  { %v12169_v33 = vadd.f32 %v16658_v31, %v16171_v26  ;;  %v12385_v2 = vrot.slane %v12188_v37, 3  ;;  %v12448_v5 = vrot.slane %v12254_v24, 4  ;;  %v12447_v16 = vrot.slane %v12253_v52, 4  ;;  %v12463_v46 = vld [vmem:[#allocation3 + $0x58] sm:$0xe0]  ;;  %14827 = vmatprep.subr.bf16.mxu1 %v15052_v51  ;;  %14794 = vmatpush3.bf16.msra.mxu0 %v15053_v28  ;;  %v15054_v40 = vld [vmem:[#allocation11 + $0xa0] sm:$0xff]  }
 0x797   :  { %v12384_v60 = vrot.slane %v12187_v42, 3  ;;  %v12247_v29 = vadd.f32 %v12243_v44, %v16127_v45  ;;  %v12181_v19 = vmax.f32 %v12173_v47, 0.0  ;;  %v15055_v35 = vld [vmem:[#allocation11 + $0x68] sm:$0xff]   ;;  %14828 = vmatpush3.bf16.msra.mxu1 %v15054_v40  ;;  %v15059_v24 = vld [vmem:[#allocation11 + $0x70] sm:$0xff]   ;;  %v15065_v42 = vld [vmem:[#allocation11 + $0x38] sm:$0xff]   ;;  %vm16659_vm2 = vcmask 1042432  }
 0x798   :  { %v12177_v27 = vadd.f32 %v12169_v33, %v16127_v45  ;;  %v12398_v63 = vsel %vm15688_vm13, %v12385_v2, %v12397_v41  ;;  %v12410_v8 = vsel %vm16656_vm7, %v12385_v2, %v12409_v43  ;;  %v12461_v6 = vsel %vm16657_vm3, %v12448_v5, %v12460_v36  ;;  %v15056_v55 = vld [vmem:[#allocation11 + $0xe8] sm:$0xff]   ;;  %14795 = vmatprep.subr.bf16.mxu0 %v15055_v35  ;;  %v15061_v43 = vld [vmem:[#allocation11 + $0x30] sm:$0xff]   ;;  %v15064_v36 = vld [vmem:[#allocation11 + $0xf8] sm:$0xff]  }
 0x799   :  { %12399 = vst [vmem:[#allocation3 + $0x30] sm:$0x80] %v12398_v63  ;;  %12411 = vst [vmem:[#allocation3 + $0x50] sm:$0x3] %v12410_v8  ;;  %v12395_v39 = vsel %vm15688_vm13, %v12384_v60, %v12394_v3  ;;  %v12407_v26 = vsel %vm16656_vm7, %v12384_v60, %v12406_v49  ;;  %v12458_v48 = vsel %vm16657_vm3, %v12447_v16, %v12457_v4  ;;  %v12251_v25 = vmax.f32 %v12247_v29, 0.0  ;;  %v15057_v37 = vld [vmem:[#allocation11 + $0x28] sm:$0xff]  }
 0x79a   :  { %12462 = vst [vmem:[#allocation3 + $0x50] sm:$0xe0] %v12461_v6  ;;  %12396 = vst [vmem:[#allocation3 + $0x28] sm:$0x80] %v12395_v39  ;;  %v12185_v17 = vmax.f32 %v12177_v27, 0.0  ;;  %v15058_v41 = vld [vmem:[#allocation11 + $0xa8] sm:$0xff]   ;;  %14829 = vmatprep.subr.bf16.mxu1 %v15056_v55  ;;  %14796 = vmatpush3.bf16.msra.mxu0 %v15057_v37 }
 0x79b   :  { %12408 = vst [vmem:[#allocation3 + $0x48] sm:$0x3] %v12407_v26  ;;  %12459 = vst [vmem:[#allocation3 + $0x48] sm:$0xe0] %v12458_v48  ;;  %v12255_v38 = vpack.c.bf16 %v12251_v25, %v12251_v25  ;;  %14830 = vmatpush3.bf16.msra.mxu1 %v15058_v41  ;;  %14797 = vmatprep.subr.bf16.mxu0 %v15059_v24  ;;  %v15066_v52 = vld [vmem:[#allocation11 + $0xb8] sm:$0xff]  }
 0x79c   :  { %v12189_v0 = vpack.c.bf16 %v12185_v17, %v12181_v19  ;;  %14831 = vmatprep.subr.bf16.mxu1 %v15060_v58  ;;  %v12313_v58 = vld [vmem:[#allocation3 + $0x10] sm:$0xc0]  ;;  %vm16660_vm10 = vmmov %vm16659_vm2 }
 0x79d   :  { %v12449_v11 = vrot.slane %v12255_v38, 4 }
 0x79e   :  { %v12386_v10 = vrot.slane %v12189_v0, 3  ;;  %14798 = vmatpush3.bf16.msra.mxu0 %v15061_v43  ;;  %v12325_v43 = vld [vmem:[#allocation3 + $0x30] sm:$0x1] }
 0x79f   :  { %v12464_v59 = vsel %vm16657_vm3, %v12449_v11, %v12463_v46  ;;  %14832 = vmatpush3.bf16.msra.mxu1 %v15062_v21  ;;  %14799 = vmatprep.subr.bf16.mxu0 %v15063_v12  ;;  %v12310_v21 = vld [vmem:[#allocation3 + $0x8] sm:$0xc0] }
 0x7a0   :  { %v12401_v1 = vsel %vm15688_vm13, %v12386_v10, %v12400_v56  ;;  %v12413_v15 = vsel %vm16656_vm7, %v12386_v10, %v12412_v22  ;;  %12465 = vst [vmem:[#allocation3 + $0x58] sm:$0xe0] %v12464_v59  ;;  %14833 = vmatprep.subr.bf16.mxu1 %v15064_v36  ;;  %vm12190_vm13 = vcmask 1045504   ;;  %vm13048_vm7 = vcmask 1043456  }
 0x7a1   :  { %12402 = vst [vmem:[#allocation3 + $0x38] sm:$0x80] %v12401_v1  ;;  %12414 = vst [vmem:[#allocation3 + $0x58] sm:$0x3] %v12413_v15  ;;  %v12307_v1 = vld [vmem:[#allocation3] sm:$0xc0] }
 0x7a2   :  { %14800 = vmatpush3.bf16.msra.mxu0 %v15065_v42  ;;  %v12319_v15 = vld [vmem:[#allocation3 + $0x20] sm:$0x1] }
 0x7a3   :  { %14834 = vmatpush3.bf16.msra.mxu1 %v15066_v52 }
 0x7fb   :  { %v11815_v3 = vpop.f32.mrb[40].mxu0 }
 0x7fc   :  { %v12038_v31 = vrot.slane %v11815_v3, 2  ;;  %v16261_v33 = vpop.f32.mrb[40].mxu1  ;;  %v16263_v47 = vpop.f32.mrb[41].mxu0  ;;  %v11944_v2 = vrot.slane %v11815_v3, 5 }
 0x7fd   :  { %v11950_v49 = vrot.slane %v16261_v33, 5  ;;  %v12040_v4 = vrot.slane %v16261_v33, 2  ;;  %v12039_v44 = vrot.slane %v16263_v47, 2  ;;  %v16268_v5 = vpop.f32.mrb[41].mxu1  ;;  %v16270_v60 = vpop.f32.mrb[42].mxu0  ;;  %v11947_v63 = vrot.slane %v16263_v47, 5 }
 0x7fe   :  { %v12046_v16 = vadd.f32 %v12038_v31, %v16083_v7  ;;  %v12050_v27 = vadd.f32 %v12038_v31, %v16091_v30  ;;  %v12041_v8 = vrot.slane %v16268_v5, 2  ;;  %v16276_v29 = vpop.f32.mrb[42].mxu1  ;;  %v16278_v6 = vpop.f32.mrb[43].mxu0  ;;  %v11945_v42 = vrot.slane %v16270_v60, 5 }
 0x7ff   :  { %v12048_v39 = vadd.f32 %v12040_v4, %v16085_v54  ;;  %v12052_v26 = vadd.f32 %v12040_v4, %v16093_v23  ;;  %v12047_v48 = vadd.f32 %v12039_v44, %v16087_v14  ;;  %v12051_v19 = vadd.f32 %v12039_v44, %v16095_v57  ;;  %v16284_v17 = vpop.f32.mrb[43].mxu1  ;;  %v12322_v44 = vld [vmem:[#allocation3 + $0x28] sm:$0x1] }
 0x800   :  { %v12054_v25 = vadd.f32 %v12046_v16, %v16115_v18  ;;  %v12058_v0 = vadd.f32 %v12050_v27, %v16115_v18  ;;  %v12049_v38 = vadd.f32 %v12041_v8, %v16089_v9  ;;  %v12053_v56 = vadd.f32 %v12041_v8, %v16097_v62 }
 0x801   :  { %v12056_v22 = vadd.f32 %v12048_v39, %v16119_v53  ;;  %v12060_v32 = vadd.f32 %v12052_v26, %v16119_v53  ;;  %v12055_v46 = vadd.f32 %v12047_v48, %v16123_v20  ;;  %v12059_v51 = vadd.f32 %v12051_v19, %v16123_v20  ;;  %v12316_v19 = vld [vmem:[#allocation3 + $0x18] sm:$0xc0] }
 0x802   :  { %v12062_v28 = vmax.f32 %v12054_v25, 0.0  ;;  %v12066_v10 = vmax.f32 %v12058_v0, 0.0  ;;  %v12057_v11 = vadd.f32 %v12049_v38, %v16127_v45  ;;  %v12061_v40 = vadd.f32 %v12053_v56, %v16127_v45 }
 0x803   :  { %v12064_v59 = vmax.f32 %v12056_v22, 0.0  ;;  %v12068_v35 = vmax.f32 %v12060_v32, 0.0  ;;  %v12063_v55 = vmax.f32 %v12055_v46, 0.0  ;;  %v12067_v37 = vmax.f32 %v12059_v51, 0.0  ;;  %v16296_v41 = vpop.f32.mrb[44].mxu0 }
 0x804   :  { %v12070_v24 = vpack.c.bf16 %v12066_v10, %v12062_v28  ;;  %v12065_v12 = vmax.f32 %v12057_v11, 0.0  ;;  %v12069_v36 = vmax.f32 %v12061_v40, 0.0  ;;  %v16299_v52 = vpop.f32.mrb[44].mxu1  ;;  %v16301_v3 = vpop.f32.mrb[45].mxu0  ;;  %v11953_v16 = vrot.slane %v16268_v5, 5 }
 0x805   :  { %v12072_v31 = vpack.c.bf16 %v12068_v35, %v12064_v59  ;;  %v12071_v4 = vpack.c.bf16 %v12067_v37, %v12063_v55  ;;  %v11951_v27 = vrot.slane %v16276_v29, 5  ;;  %v16305_v8 = vpop.f32.mrb[45].mxu1  ;;  %v11829_v39 = vpop.f32.mrb[46].mxu0  ;;  %v11946_v25 = vsel %vm16659_vm2, %v11944_v2, %v11945_v42  ;;  %v12328_v46 = vld [vmem:[#allocation3 + $0x38] sm:$0x1] }
 0x806   :  { %v12299_v26 = vrot.slane %v12070_v24, 5  ;;  %v12073_v48 = vpack.c.bf16 %v12069_v36, %v12065_v12  ;;  %v12191_v0 = vrot.slane %v16270_v60, 2  ;;  %v11931_v38 = vpop.f32.mrb[46].mxu1  ;;  %v11830_v56 = vpop.f32.mrb[47].mxu0  ;;  %v11960_v51 = vadd.f32 %v11946_v25, %v16083_v7  ;;  %v12262_v12 = vld [vmem:[#allocation3 + $0x10] sm:$0x7] }
 0x807   :  { %v12301_v22 = vrot.slane %v12072_v31, 5  ;;  %v12300_v32 = vrot.slane %v12071_v4, 5  ;;  %v11952_v5 = vsel %vm16660_vm10, %v11950_v49, %v11951_v27  ;;  %v11932_v28 = vpop.f32.mrb[47].mxu1  ;;  %v12197_v35 = vrot.slane %v16276_v29, 2  ;;  %v16663_v25 = vld [vmem:[#allocation20_spill] sm:$0xff] }
 0x808   :  { %v12308_v10 = vsel %vm15893_vm12, %v12299_v26, %v12307_v1  ;;  %v12320_v2 = vsel %vm15870_vm4, %v12299_v26, %v12319_v15  ;;  %v12302_v11 = vrot.slane %v12073_v48, 5  ;;  %v11962_v60 = vadd.f32 %v11952_v5, %v16085_v54 }
 0x809   :  { %12309 = vst [vmem:[#allocation3] sm:$0xc0] %v12308_v10  ;;  %12321 = vst [vmem:[#allocation3 + $0x20] sm:$0x1] %v12320_v2  ;;  %v12314_v40 = vsel %vm15893_vm12, %v12301_v22, %v12313_v58  ;;  %v12326_v7 = vsel %vm15870_vm4, %v12301_v22, %v12325_v43  ;;  %v12311_v33 = vsel %vm15893_vm12, %v12300_v32, %v12310_v21  ;;  %v11948_v55 = vrot.slane %v16278_v6, 5 }
 0x80a   :  { %v12323_v49 = vsel %vm15870_vm4, %v12300_v32, %v12322_v44  ;;  %12315 = vst [vmem:[#allocation3 + $0x10] sm:$0xc0] %v12314_v40  ;;  %12327 = vst [vmem:[#allocation3 + $0x30] sm:$0x1] %v12326_v7  ;;  %v12317_v54 = vsel %vm15893_vm12, %v12302_v11, %v12316_v19  ;;  %v12329_v1 = vsel %vm15870_vm4, %v12302_v11, %v12328_v46  ;;  %v12194_v37 = vrot.slane %v16278_v6, 2 }
 0x80b   :  { %12312 = vst [vmem:[#allocation3 + $0x8] sm:$0xc0] %v12311_v33  ;;  %12324 = vst [vmem:[#allocation3 + $0x28] sm:$0x1] %v12323_v49  ;;  %v11985_v15 = vadd.f32 %v16115_v18, %v11960_v51  ;;  %v11987_v59 = vadd.f32 %v16119_v53, %v11962_v60  ;;  %v11954_v24 = vrot.slane %v16284_v17, 5  ;;  %v12114_v43 = vrot.slane %v16296_v41, 5 }
 0x80c   :  { %12318 = vst [vmem:[#allocation3 + $0x18] sm:$0xc0] %v12317_v54  ;;  %12330 = vst [vmem:[#allocation3 + $0x38] sm:$0x1] %v12329_v1  ;;  %v12192_v50 = vrot.slane %v16296_v41, 2  ;;  %v12116_v42 = vrot.slane %v16299_v52, 5 }
 0x80d   :  { %v11989_v58 = vmax.f32 %v11985_v15, 0.0  ;;  %v11991_v13 = vmax.f32 %v11987_v59, 0.0  ;;  %v12256_v21 = vld [vmem:[#allocation3] sm:$0x7]  ;;  %vm16661_vm4 = vmmov %vm16659_vm2  ;;  %v12198_v31 = vrot.slane %v16299_v52, 2  ;;  %v12122_v39 = vadd.f32 %v12114_v43, %v16091_v30 }
 0x80e   :  { %v11949_v36 = vsel %vm16661_vm4, %v11947_v63, %v11948_v55  ;;  %vm16662_vm12 = vmmov %vm16659_vm2  ;;  %v12126_v47 = vadd.f32 %v12114_v43, %v16099_v61  ;;  %v12193_v63 = vsel %vm12190_vm13, %v12191_v0, %v12192_v50  ;;  %v12259_v32 = vld [vmem:[#allocation3 + $0x8] sm:$0x7]  ;;  %v12265_v46 = vld [vmem:[#allocation3 + $0x18] sm:$0x7]  ;;  %v12115_v49 = vrot.slane %v16301_v3, 5 }
 0x80f   :  { %v11955_v29 = vsel %vm16662_vm12, %v11953_v16, %v11954_v24  ;;  %v11993_v4 = vpack.c.bf16 %v11989_v58, %v11989_v58  ;;  %v11995_v44 = vpack.c.bf16 %v11991_v13, %v11991_v13  ;;  %v11961_v27 = vadd.f32 %v11949_v36, %v16087_v14  ;;  %v12367_v15 = vld [vmem:[#allocation3 + $0x20] sm:$0x70]  ;;  %v12373_v50 = vld [vmem:[#allocation3 + $0x30] sm:$0x70] }
 0x810   :  { %v11963_v41 = vadd.f32 %v11955_v29, %v16089_v9  ;;  %v12124_v16 = vadd.f32 %v12116_v42, %v16093_v23  ;;  %v12130_v9 = vadd.f32 %v12122_v39, %v16115_v18  ;;  %v12134_v30 = vadd.f32 %v12126_v47, %v16115_v18  ;;  %v12436_v39 = vld [vmem:[#allocation3 + $0x50] sm:$0x1c] }
 0x811   :  { %v12257_v26 = vsel %vm15839_vm5, %v11993_v4, %v12256_v21  ;;  %v12263_v52 = vsel %vm15839_vm5, %v11995_v44, %v12262_v12  ;;  %v11986_v48 = vadd.f32 %v16123_v20, %v11961_v27  ;;  %v12207_v19 = vadd.f32 %v12193_v63, %v16099_v61  ;;  %v16666_v21 = vld [vmem:[#allocation21_spill] sm:$0xff]  ;;  %v16668_v63 = vld [vmem:[#allocation22_spill] sm:$0xff] }
 0x812   :  { %v11988_v14 = vadd.f32 %v16127_v45, %v11963_v41  ;;  %12258 = vst [vmem:[#allocation3] sm:$0x7] %v12257_v26  ;;  %12264 = vst [vmem:[#allocation3 + $0x10] sm:$0x7] %v12263_v52  ;;  %v12128_v23 = vadd.f32 %v12116_v42, %v16663_v25  ;;  %v12132_v56 = vadd.f32 %v12124_v16, %v16119_v53  ;;  %v12138_v51 = vmax.f32 %v12130_v9, 0.0 }
 0x813   :  { %v11990_v0 = vmax.f32 %v11986_v48, 0.0  ;;  %v12199_v22 = vsel %vm12190_vm13, %v12197_v35, %v12198_v31  ;;  %v12142_v5 = vmax.f32 %v12134_v30, 0.0  ;;  %v12211_v28 = vadd.f32 %v12207_v19, %v16115_v18 }
 0x814   :  { %v11992_v38 = vmax.f32 %v11988_v14, 0.0  ;;  %v12136_v10 = vadd.f32 %v12128_v23, %v16119_v53  ;;  %v12140_v60 = vmax.f32 %v12132_v56, 0.0  ;;  %v12209_v61 = vadd.f32 %v12199_v22, %v16663_v25  ;;  %v12370_v22 = vld [vmem:[#allocation3 + $0x28] sm:$0x70] }
 0x815   :  { %v11994_v2 = vpack.c.bf16 %v11990_v0, %v11990_v0  ;;  %v12146_v40 = vpack.c.bf16 %v12142_v5, %v12138_v51  ;;  %v12215_v7 = vmax.f32 %v12211_v28, 0.0  ;;  %v12195_v59 = vrot.slane %v16301_v3, 2  ;;  %v12433_v28 = vld [vmem:[#allocation3 + $0x48] sm:$0x1c] }
 0x816   :  { %v11996_v11 = vpack.c.bf16 %v11992_v38, %v11992_v38  ;;  %v12144_v33 = vmax.f32 %v12136_v10, 0.0  ;;  %v12213_v18 = vadd.f32 %v12209_v61, %v16119_v53  ;;  %v12123_v58 = vadd.f32 %v12115_v49, %v16095_v57  ;;  %v12376_v61 = vld [vmem:[#allocation3 + $0x38] sm:$0x70] }
 0x817   :  { %v12260_v54 = vsel %vm15839_vm5, %v11994_v2, %v12259_v32  ;;  %v12219_v35 = vpack.c.bf16 %v12215_v7, %v12215_v7  ;;  %v12359_v55 = vrot.slane %v12146_v40, 6  ;;  %v12127_v53 = vadd.f32 %v12115_v49, %v16666_v21 }
 0x818   :  { %v12266_v1 = vsel %vm15839_vm5, %v11996_v11, %v12265_v46  ;;  %12261 = vst [vmem:[#allocation3 + $0x8] sm:$0x7] %v12260_v54  ;;  %v12148_v24 = vpack.c.bf16 %v12144_v33, %v12140_v60  ;;  %v12217_v43 = vmax.f32 %v12213_v18, 0.0  ;;  %v12196_v3 = vsel %vm12190_vm13, %v12194_v37, %v12195_v59 }
 0x819   :  { %12267 = vst [vmem:[#allocation3 + $0x18] sm:$0x7] %v12266_v1  ;;  %v12117_v12 = vrot.slane %v16305_v8, 5  ;;  %v12368_v57 = vsel %vm15849_vm6, %v12359_v55, %v12367_v15  ;;  %v12419_v29 = vrot.slane %v12219_v35, 7  ;;  %v12131_v31 = vadd.f32 %v12123_v58, %v16123_v20  ;;  %v12468_v46 = vld [vmem:[#allocation3 + $0x10] sm:$0xff] }
 0x81a   :  { %v12361_v42 = vrot.slane %v12148_v24, 6  ;;  %12369 = vst [vmem:[#allocation3 + $0x20] sm:$0x70] %v12368_v57  ;;  %v12221_v4 = vpack.c.bf16 %v12217_v43, %v12217_v43  ;;  %v12135_v44 = vadd.f32 %v12127_v53, %v16123_v20  ;;  %v12208_v27 = vadd.f32 %v12196_v3, %v16666_v21  ;;  %v12439_v1 = vld [vmem:[#allocation3 + $0x58] sm:$0x1c] }
 0x81b   :  { %v12125_v41 = vadd.f32 %v12117_v12, %v16097_v62  ;;  %v12431_v6 = vsel %vm16375_vm8, %v12419_v29, %v12430_v34  ;;  %v12139_v47 = vmax.f32 %v12131_v31, 0.0  ;;  %v12129_v16 = vadd.f32 %v12117_v12, %v16668_v63 }
 0x81c   :  { %v12374_v37 = vsel %vm15849_vm6, %v12361_v42, %v12373_v50  ;;  %12432 = vst [vmem:[#allocation3 + $0x40] sm:$0x1c] %v12431_v6  ;;  %v12421_v26 = vrot.slane %v12221_v4, 7  ;;  %v12143_v52 = vmax.f32 %v12135_v44, 0.0  ;;  %v12212_v48 = vadd.f32 %v12208_v27, %v16123_v20  ;;  %v14769_v50 = vld [vmem:[#allocation12] ss:$0 sm:$0xff] }
 0x81d   :  { %12375 = vst [vmem:[#allocation3 + $0x30] sm:$0x70] %v12374_v37  ;;  %v12133_v14 = vadd.f32 %v12125_v41, %v16127_v45  ;;  %v12200_v62 = vrot.slane %v16284_v17, 2  ;;  %v12137_v9 = vadd.f32 %v12129_v16, %v16127_v45  ;;  %v12201_v30 = vrot.slane %v16305_v8, 2  ;;  %v12466_v17 = vld [vmem:[#allocation3] sm:$0xff]  ;;  %12860 = vrot.lane.b32.xlu0 %v14769_v50, %s15269_s0  ;;  %12874 = vrot.lane.b32.xlu1 %v14769_v50, %s15263_s27 }
 0x81e   :  { %v12437_v19 = vsel %vm16375_vm8, %v12421_v26, %v12436_v39  ;;  %v12147_v25 = vpack.c.bf16 %v12143_v52, %v12139_v47  ;;  %v12216_v23 = vmax.f32 %v12212_v48, 0.0  ;;  %vm16669_vm5 = vcmask 1041408  }
 0x81f   :  { %v12141_v0 = vmax.f32 %v12133_v14, 0.0  ;;  %v12467_v38 = vld [vmem:[#allocation3 + $0x8] sm:$0xff]  ;;  %12438 = vst [vmem:[#allocation3 + $0x50] sm:$0x1c] %v12437_v19  ;;  %v12145_v32 = vmax.f32 %v12137_v9, 0.0  ;;  %v12202_v20 = vsel %vm12190_vm13, %v12200_v62, %v12201_v30  ;;  %vm16671_vm15 = vmmov %vm16669_vm5  ;;  %vm13073_vm10 = vcmask 261120  }
 0x820   :  { %v12469_v56 = vld [vmem:[#allocation3 + $0x18] sm:$0xff]  ;;  %12766 = vmatprep.mubr.bf16.mxu0 %v12467_v38  ;;  %v12220_v51 = vpack.c.bf16 %v12216_v23, %v12216_v23  ;;  %v12360_v5 = vrot.slane %v12147_v25, 6  ;;  %v12210_v8 = vadd.f32 %v12202_v20, %v16668_v63  ;;  %vm16672_vm0 = vmmov %vm16669_vm5  ;;  %vm13075_vm4 = vcmask 523264  }
 0x821   :  { %12823 = vmatprep.mubr.bf16.mxu1 %v12469_v56  ;;  %12767 = vmatmul.mubr.bf16.vlgmr.msra.gmra.mrb[48].mxu0 %v12466_v17  ;;  %v12149_v10 = vpack.c.bf16 %v12145_v32, %v12141_v0  ;;  %vm16673_vm9 = vmmov %vm16672_vm0  ;;  %vm13077_vm12 = vcmask 785408  }
 0x822   :  { %12824 = vmatmul.mubr.bf16.vlgmr.msra.gmra.mrb[48].mxu1 %v12468_v46  ;;  %v12371_v2 = vsel %vm15849_vm6, %v12360_v5, %v12370_v22  ;;  %v12420_v11 = vrot.slane %v12220_v51, 7  ;;  %v12214_v60 = vadd.f32 %v12210_v8, %v16127_v45  ;;  %v12470_v45 = vld [vmem:[#allocation3 + $0x20] sm:$0xff]  ;;  %vm16674_vm3 = vmmov %vm16672_vm0 }
 0x823   :  { %12372 = vst [vmem:[#allocation3 + $0x28] sm:$0x70] %v12371_v2  ;;  %v12362_v40 = vrot.slane %v12149_v10, 6  ;;  %v12474_v34 = vld [vmem:[#allocation3 + $0x40] sm:$0xff]  ;;  %vm16676_vm2 = vmmov %vm16672_vm0 }
 0x824   :  { %v12434_v7 = vsel %vm16375_vm8, %v12420_v11, %v12433_v28  ;;  %v12218_v33 = vmax.f32 %v12214_v60, 0.0  ;;  %v12472_v24 = vld [vmem:[#allocation3 + $0x30] sm:$0xff] }
 0x825   :  { %12435 = vst [vmem:[#allocation3 + $0x48] sm:$0x1c] %v12434_v7  ;;  %v12377_v49 = vsel %vm15849_vm6, %v12362_v40, %v12376_v61  ;;  %vm16670_vm6 = vmmov %vm16669_vm5 }
 0x826   :  { %v12222_v54 = vpack.c.bf16 %v12218_v33, %v12218_v33  ;;  %12378 = vst [vmem:[#allocation3 + $0x38] sm:$0x70] %v12377_v49  ;;  %v12476_v43 = vld [vmem:[#allocation3 + $0x50] sm:$0xff] }
 0x828   :  { %v12422_v15 = vrot.slane %v12222_v54, 7 }
 0x82a   :  { %v12440_v18 = vsel %vm16375_vm8, %v12422_v15, %v12439_v1  ;;  %v12471_v59 = vld [vmem:[#allocation3 + $0x28] sm:$0xff] }
 0x82b   :  { %12441 = vst [vmem:[#allocation3 + $0x58] sm:$0x1c] %v12440_v18  ;;  %12774 = vmatprep.mubr.bf16.mxu0 %v12471_v59 }
 0x82c   :  { %12775 = vmatmul.mubr.bf16.gmra.mrb[52].mxu0 %v12470_v45  ;;  %v12475_v35 = vld [vmem:[#allocation3 + $0x48] sm:$0xff] }
 0x82d   :  { %v12473_v55 = vld [vmem:[#allocation3 + $0x38] sm:$0xff]  ;;  %12782 = vmatprep.mubr.bf16.mxu0 %v12475_v35 }
 0x82e   :  { %12831 = vmatprep.mubr.bf16.mxu1 %v12473_v55 }
 0x82f   :  { %12832 = vmatmul.mubr.bf16.gmra.mrb[52].mxu1 %v12472_v24 }
 0x832   :  { %v12477_v58 = vld [vmem:[#allocation3 + $0x58] sm:$0xff] }
 0x833   :  { %12839 = vmatprep.mubr.bf16.mxu1 %v12477_v58 }
 0x834   :  { %12783 = vmatmul.mubr.bf16.gmra.mrb[56].mxu0 %v12474_v34 }
 0x837   :  { %12840 = vmatmul.mubr.bf16.gmra.mrb[56].mxu1 %v12476_v43 }
 0x8f4   :  { %v14801_v13 = vpop.f32.mrb[48].mxu0 }
 0x8f5   :  { %v14835_v21 = vpop.f32.mrb[48].mxu1  ;;  %v14802_v53 = vpop.f32.mrb[49].mxu0 }
 0x8f6   :  { %v14836_v3 = vpop.f32.mrb[49].mxu1  ;;  %v14803_v12 = vadd.f32 %v14802_v53, %v14801_v13  ;;  %v14804_v57 = vpop.f32.mrb[50].mxu0 }
 0x8f7   :  { %v14837_v36 = vadd.f32 %v14836_v3, %v14835_v21  ;;  %v14838_v29 = vpop.f32.mrb[50].mxu1  ;;  %v14805_v42 = vpop.f32.mrb[51].mxu0 }
 0x8f8   :  { %v14839_v31 = vpop.f32.mrb[51].mxu1  ;;  %v14806_v44 = vadd.f32 %v14805_v42, %v14804_v57  ;;  %v16471_v53 = vpop.permute.xlu0 %12860 }
 0x8f9   :  { %v16415_v4 = vadd.f32 %v14837_v36, %v14803_v12  ;;  %v14840_v27 = vadd.f32 %v14839_v31, %v14838_v29  ;;  %v16473_v3 = vpop.permute.xlu1 %12874 }
 0x8fb   :  { %v16417_v41 = vadd.f32 %v14840_v27, %v14806_v44  ;;  %v12879_v6 = vrot.slane %v16415_v4, 2  ;;  %v12867_v37 = vrot.slane %v16415_v4, 6  ;;  %v12934_v63 = vrot.slane %v16415_v4, 7 }
 0x8fd   :  { %12880 = vrot.lane.b32.xlu0 %v12879_v6, %s15263_s27  ;;  %v12868_v39 = vrot.slane %v16417_v41, 6  ;;  %v12903_v14 = vrot.slane %v16417_v41, 2 }
 0x8ff   :  { %v12869_v47 = vsel %vm16669_vm5, %v12867_v37, %v12868_v39  ;;  %v14807_v16 = vpop.f32.mrb[52].mxu0  ;;  %v12904_v28 = vsel %vm12190_vm13, %v12879_v6, %v12903_v14 }
 0x900   :  { %12870 = vrot.lane.b32.xlu1 %v12869_v47, %s15263_s27  ;;  %v14808_v26 = vpop.f32.mrb[53].mxu0 }
 0x901   :  { %12935 = vrot.lane.b32.xlu0 %v12934_v63, %s15263_s27  ;;  %v14809_v52 = vadd.f32 %v14808_v26, %v14807_v16  ;;  %v14810_v48 = vpop.f32.mrb[54].mxu0 }
 0x902   :  { %v14841_v62 = vpop.f32.mrb[52].mxu1  ;;  %v14811_v9 = vpop.f32.mrb[55].mxu0 }
 0x903   :  { %v14842_v30 = vpop.f32.mrb[53].mxu1  ;;  %v14812_v19 = vadd.f32 %v14811_v9, %v14810_v48 }
 0x904   :  { %v14843_v25 = vadd.f32 %v14842_v30, %v14841_v62  ;;  %v14844_v23 = vpop.f32.mrb[54].mxu1 }
 0x905   :  { %12907 = vrot.lane.b32.xlu0 %v12903_v14, %s15263_s27  ;;  %v14845_v0 = vpop.f32.mrb[55].mxu1 }
 0x906   :  { %v16429_v38 = vadd.f32 %v14843_v25, %v14809_v52  ;;  %v14846_v56 = vadd.f32 %v14845_v0, %v14844_v23 }
 0x907   :  { %v14813_v22 = vpop.f32.mrb[56].mxu0 }
 0x908   :  { %v16432_v32 = vadd.f32 %v14846_v56, %v14812_v19  ;;  %v12889_v20 = vrot.slane %v16429_v38, 6  ;;  %v14814_v17 = vpop.f32.mrb[57].mxu0  ;;  %v12850_v7 = vrot.slane %v16429_v38, 1  ;;  %v12926_v54 = vrot.slane %v16429_v38, 2 }
 0x909   :  { %12891 = vrot.lane.b32.xlu0 %v12868_v39, %s15263_s27  ;;  %v14815_v46 = vadd.f32 %v14814_v17, %v14813_v22  ;;  %v14816_v51 = vpop.f32.mrb[58].mxu0 }
 0x90a   :  { %v14847_v5 = vpop.f32.mrb[56].mxu1  ;;  %12917 = vrot.lane.b32.xlu1 %v12889_v20, %s15263_s27  ;;  %v14817_v8 = vpop.f32.mrb[59].mxu0  ;;  %v12890_v40 = vsel %vm16670_vm6, %v12868_v39, %v12889_v20  ;;  %v12960_v15 = vrot.slane %v16432_v32, 2  ;;  %v12927_v18 = vsel %vm12190_vm13, %v12903_v14, %v12926_v54  ;;  %v12951_v58 = vrot.slane %v16432_v32, 6 }
 0x90b   :  { %v14848_v10 = vpop.f32.mrb[57].mxu1  ;;  %v14818_v2 = vadd.f32 %v14817_v8, %v14816_v51  ;;  %v13015_v21 = vrot.slane %v16432_v32, 7 }
 0x90c   :  { %v14849_v11 = vadd.f32 %v14848_v10, %v14847_v5  ;;  %v14850_v60 = vpop.f32.mrb[58].mxu1 }
 0x90d   :  { %12905 = vrot.lane.b32.xlu0 %v12904_v28, %s15263_s27  ;;  %v14851_v61 = vpop.f32.mrb[59].mxu1 }
 0x90e   :  { %v16440_v33 = vadd.f32 %v14849_v11, %v14815_v46  ;;  %v14852_v49 = vadd.f32 %v14851_v61, %v14850_v60  ;;  %12893 = vrot.lane.b32.xlu1 %v12890_v40, %s15263_s27 }
 0x910   :  { %v16445_v1 = vadd.f32 %v14852_v49, %v14818_v2  ;;  %v12952_v59 = vrot.slane %v16440_v33, 6  ;;  %v12984_v45 = vrot.slane %v16440_v33, 2 }
 0x911   :  { %12851 = vrot.lane.b32.xlu0 %v12850_v7, %s15263_s27 }
 0x912   :  { %12961 = vrot.lane.b32.xlu1 %v12960_v15, %s15263_s27  ;;  %v12970_v35 = vrot.slane %v16445_v1, 6  ;;  %v12985_v55 = vsel %vm12190_vm13, %v12960_v15, %v12984_v45  ;;  %v12953_v34 = vsel %vm16672_vm0, %v12951_v58, %v12952_v59  ;;  %v12942_v43 = vrot.slane %v16445_v1, 1 }
 0x913   :  { %v13007_v50 = vrot.slane %v16445_v1, 2 }
 0x914   :  { %v12971_v24 = vsel %vm16671_vm15, %v12952_v59, %v12970_v35 }
 0x915   :  { %12928 = vrot.lane.b32.xlu0 %v12927_v18, %s15263_s27  ;;  %v13008_v13 = vsel %vm12190_vm13, %v12984_v45, %v13007_v50  ;;  %vm16675_vm13 = vmmov %vm16672_vm0 }
 0x916   :  { %12972 = vrot.lane.b32.xlu1 %v12952_v59, %s15263_s27 }
 0x919   :  { %12988 = vrot.lane.b32.xlu0 %v12984_v45, %s15263_s27 }
 0x91a   :  { %12986 = vrot.lane.b32.xlu1 %v12985_v55, %s15263_s27 }
 0x91d   :  { %12974 = vrot.lane.b32.xlu0 %v12971_v24, %s15263_s27 }
 0x91e   :  { %12998 = vrot.lane.b32.xlu1 %v12970_v35, %s15263_s27 }
 0x921   :  { %12954 = vrot.lane.b32.xlu0 %v12953_v34, %s15263_s27 }
 0x922   :  { %12943 = vrot.lane.b32.xlu1 %v12942_v43, %s15263_s27 }
 0x926   :  { %13009 = vrot.lane.b32.xlu1 %v13008_v13, %s15263_s27 }
 0x92a   :  { %13016 = vrot.lane.b32.xlu1 %v13015_v21, %s15263_s27  ;;  %s15270_s27 = smov 96  }
 0x96f   :  { %v12881_v12 = vpop.permute.xlu0 %12880 }
 0x970   :  { %v12883_v36 = vadd.f32 %v12881_v12, %v16415_v4  ;;  %v12884_v57 = vadd.f32 %v12881_v12, %v16417_v41 }
 0x972   :  { %v12885_v29 = vadd.f32 %v12883_v36, %v16471_v53  ;;  %v12886_v42 = vadd.f32 %v12884_v57, %v16471_v53  ;;  %v12871_v31 = vpop.permute.xlu1 %12870 }
 0x973   :  { %v12936_v44 = vpop.permute.xlu0 %12935  ;;  %v12873_v6 = vadd.f32 %v12871_v31, %v16415_v4 }
 0x974   :  { %15067 = vtanh.f32 %v12885_v29  ;;  %v12938_v27 = vadd.f32 %v12936_v44, %v16429_v38 }
 0x975   :  { %15069 = vtanh.f32 %v12886_v42  ;;  %v12877_v47 = vadd.f32 %v16473_v3, %v12873_v6 }
 0x976   :  { %v12939_v37 = vadd.f32 %v12938_v27, %v16473_v3 }
 0x977   :  { %v12908_v39 = vpop.permute.xlu0 %12907 }
 0x978   :  { %15071 = vtanh.f32 %v12939_v37  ;;  %v12912_v63 = vadd.f32 %v12908_v39, %v16429_v38 }
 0x979   :  { %15073 = vtanh.f32 %v12877_v47 }
 0x97a   :  { %v12914_v52 = vadd.f32 %v12912_v63, %v16471_v53 }
 0x97b   :  { %v12892_v16 = vpop.permute.xlu0 %12891 }
 0x97c   :  { %v12918_v48 = vpop.permute.xlu1 %12917  ;;  %v12897_v25 = vadd.f32 %v12892_v16, %v16415_v4  ;;  %15075 = vtanh.f32 %v12914_v52 }
 0x97d   :  { %v12920_v62 = vadd.f32 %v12918_v48, %v16417_v41  ;;  %v12921_v9 = vadd.f32 %v12918_v48, %v16429_v38 }
 0x97e   :  { %v15068_v26 = vpop.eup %15067  ;;  %v12899_v10 = vadd.f32 %v12897_v25, %v16473_v3 }
 0x97f   :  { %v15070_v14 = vpop.eup %15069  ;;  %v12906_v30 = vpop.permute.xlu0 %12905  ;;  %v13032_v19 = vrot.slane %v15068_v26, 6  ;;  %v12922_v56 = vadd.f32 %v12920_v62, %v16473_v3  ;;  %v12923_v22 = vadd.f32 %v12921_v9, %v16473_v3 }
 0x980   :  { %v12911_v23 = vadd.f32 %v12906_v30, %v16417_v41  ;;  %v13033_v0 = vrot.slane %v15070_v14, 6  ;;  %v12894_v17 = vpop.permute.xlu1 %12893 }
 0x981   :  { %15077 = vtanh.f32 %v12922_v56  ;;  %v12898_v5 = vadd.f32 %v12894_v17, %v16417_v41 }
 0x982   :  { %v15072_v20 = vpop.eup %15071  ;;  %v12913_v46 = vadd.f32 %v12911_v23, %v16471_v53  ;;  %v13034_v51 = vsel %vm16673_vm9, %v13032_v19, %v13033_v0  ;;  %15079 = vtanh.f32 %v12923_v22 }
 0x983   :  { %13035 = vrot.lane.b32.xlu0 %v13034_v51, %s15269_s0  ;;  %v12852_v8 = vpop.permute.xlu0 %12851  ;;  %v13069_v28 = vrot.slane %v15072_v20, 2  ;;  %v12900_v11 = vadd.f32 %v12898_v5, %v16473_v3  ;;  %v15074_v49 = vpop.eup %15073 }
 0x984   :  { %v12854_v2 = vadd.f32 %v12852_v8, %v16415_v4  ;;  %15081 = vtanh.f32 %v12913_v46  ;;  %v12962_v60 = vpop.permute.xlu1 %12961 }
 0x985   :  { %13070 = vrot.lane.b32.xlu1 %v13069_v28, %s15269_s0  ;;  %v12964_v40 = vadd.f32 %v12962_v60, %v16432_v32  ;;  %v12965_v41 = vadd.f32 %v12962_v60, %v16440_v33  ;;  %15083 = vtanh.f32 %v12899_v10 }
 0x986   :  { %v12863_v61 = vadd.f32 %v16471_v53, %v12854_v2  ;;  %15085 = vtanh.f32 %v12900_v11  ;;  %v15076_v35 = vpop.eup %15075 }
 0x987   :  { %v12929_v7 = vpop.permute.xlu0 %12928  ;;  %v12966_v4 = vadd.f32 %v12964_v40, %v16471_v53  ;;  %v12967_v15 = vadd.f32 %v12965_v41, %v16471_v53  ;;  %v13050_v21 = vrot.slane %v15076_v35, 4 }
 0x988   :  { %v12931_v54 = vadd.f32 %v12929_v7, %v16429_v38  ;;  %15087 = vtanh.f32 %v12863_v61  ;;  %v12973_v18 = vpop.permute.xlu1 %12972 }
 0x989   :  { %13027 = vrot.lane.b32.xlu1 %v15074_v49, %s15270_s27  ;;  %15089 = vtanh.f32 %v12966_v4  ;;  %v12978_v48 = vadd.f32 %v12973_v18, %v16432_v32 }
 0x98a   :  { %v12932_v59 = vadd.f32 %v12931_v54, %v16471_v53  ;;  %15091 = vtanh.f32 %v12967_v15 }
 0x98b   :  { %v12989_v45 = vpop.permute.xlu0 %12988  ;;  %v15078_v55 = vpop.eup %15077  ;;  %v12980_v20 = vadd.f32 %v12978_v48, %v16473_v3 }
 0x98c   :  { %15093 = vtanh.f32 %v12932_v59  ;;  %v15080_v24 = vpop.eup %15079  ;;  %v12987_v38 = vpop.permute.xlu1 %12986  ;;  %v12993_v58 = vadd.f32 %v12989_v45, %v16445_v1  ;;  %v13057_v34 = vrot.slane %v15078_v55, 4 }
 0x98d   :  { %v13058_v50 = vrot.slane %v15080_v24, 4  ;;  %v12992_v29 = vadd.f32 %v12987_v38, %v16440_v33 }
 0x98e   :  { %v15082_v43 = vpop.eup %15081  ;;  %v12995_v42 = vadd.f32 %v12993_v58, %v16471_v53 }
 0x98f   :  { %v12975_v13 = vpop.permute.xlu0 %12974  ;;  %v13049_v12 = vrot.slane %v15082_v43, 4  ;;  %v13059_v36 = vsel %vm13048_vm7, %v13057_v34, %v13058_v50  ;;  %v15084_v57 = vpop.eup %15083  ;;  %v12994_v19 = vadd.f32 %v12992_v29, %v16471_v53 }
 0x990   :  { %v12999_v31 = vpop.permute.xlu1 %12998  ;;  %13060 = vrot.lane.b32.xlu1 %v13059_v36, %s15270_s27  ;;  %v15086_v27 = vpop.eup %15085  ;;  %v12979_v63 = vadd.f32 %v12975_v13, %v16440_v33  ;;  %v13040_v52 = vrot.slane %v15084_v57, 6  ;;  %15095 = vtanh.f32 %v12995_v42 }
 0x991   :  { %v13051_v44 = vsel %vm13048_vm7, %v13049_v12, %v13050_v21  ;;  %v13001_v6 = vadd.f32 %v12999_v31, %v16440_v33  ;;  %v13002_v37 = vadd.f32 %v12999_v31, %v16445_v1  ;;  %v13041_v30 = vrot.slane %v15086_v27, 6 }
 0x992   :  { %13052 = vrot.lane.b32.xlu0 %v13051_v44, %s15270_s27  ;;  %v15088_v47 = vpop.eup %15087  ;;  %v12981_v56 = vadd.f32 %v12979_v63, %v16473_v3 }
 0x993   :  { %v12955_v39 = vpop.permute.xlu0 %12954  ;;  %v15090_v26 = vpop.eup %15089  ;;  %v13003_v14 = vadd.f32 %v13001_v6, %v16473_v3  ;;  %v13004_v62 = vadd.f32 %v13002_v37, %v16473_v3  ;;  %v13042_v51 = vsel %vm16674_vm3, %v13040_v52, %v13041_v30 }
 0x994   :  { %v12957_v16 = vadd.f32 %v12955_v39, %v16432_v32  ;;  %v15092_v9 = vpop.eup %15091  ;;  %v12944_v25 = vpop.permute.xlu1 %12943  ;;  %v13104_v5 = vrot.slane %v15090_v26, 6 }
 0x995   :  { %15097 = vtanh.f32 %v13003_v14  ;;  %v12946_v33 = vadd.f32 %v12944_v25, %v16432_v32  ;;  %v13105_v8 = vrot.slane %v15092_v9, 6 }
 0x996   :  { %v12958_v23 = vadd.f32 %v12957_v16, %v16473_v3  ;;  %v15094_v0 = vpop.eup %15093  ;;  %13023 = vrot.lane.b32.xlu0 %v15088_v47, %s15270_s27  ;;  %15099 = vtanh.f32 %v13004_v62 }
 0x997   :  { %v13064_v22 = vrot.slane %v15094_v0, 2  ;;  %v12947_v17 = vadd.f32 %v12946_v33, %v16471_v53  ;;  %v13106_v2 = vsel %vm16675_vm13, %v13104_v5, %v13105_v8 }
 0x998   :  { %15101 = vtanh.f32 %v12958_v23  ;;  %v13010_v46 = vpop.permute.xlu1 %13009 }
 0x999   :  { %15103 = vtanh.f32 %v12994_v19  ;;  %13065 = vrot.lane.b32.xlu1 %v13064_v22, %s15269_s0  ;;  %v13012_v32 = vadd.f32 %v13010_v46, %v16445_v1 }
 0x99a   :  { %15105 = vtanh.f32 %v12947_v17  ;;  %13043 = vrot.lane.b32.xlu0 %v13042_v51, %s15269_s0  ;;  %v15096_v60 = vpop.eup %15095 }
 0x99b   :  { %15107 = vtanh.f32 %v12981_v56  ;;  %v13013_v28 = vadd.f32 %v13012_v32, %v16471_v53  ;;  %v13121_v15 = vrot.slane %v15096_v60, 4 }
 0x99c   :  { %15109 = vtanh.f32 %v12980_v20  ;;  %v13017_v10 = vpop.permute.xlu1 %13016 }
 0x99d   :  { %15111 = vtanh.f32 %v13013_v28  ;;  %v13019_v11 = vadd.f32 %v13017_v10, %v16445_v1 }
 0x99e   :  { %13107 = vrot.lane.b32.xlu0 %v13106_v2, %s15269_s0 }
 0x99f   :  { %v15098_v61 = vpop.eup %15097  ;;  %v13020_v40 = vadd.f32 %v13019_v11, %v16473_v3 }
 0x9a0   :  { %v15100_v41 = vpop.eup %15099  ;;  %v13128_v49 = vrot.slane %v15098_v61, 4 }
 0x9a1   :  { %15113 = vtanh.f32 %v13020_v40  ;;  %v13129_v54 = vrot.slane %v15100_v41, 4 }
 0x9a2   :  { %v15102_v7 = vpop.eup %15101 }
 0x9a3   :  { %v15104_v4 = vpop.eup %15103  ;;  %13099 = vrot.lane.b32.xlu1 %v15102_v7, %s15270_s27  ;;  %v13130_v59 = vsel %vm13048_vm7, %v13128_v49, %v13129_v54 }
 0x9a4   :  { %v15106_v53 = vpop.eup %15105  ;;  %v13120_v1 = vrot.slane %v15104_v4, 4 }
 0x9a5   :  { %v15108_v18 = vpop.eup %15107  ;;  %13095 = vrot.lane.b32.xlu0 %v15106_v53, %s15270_s27 }
 0x9a6   :  { %v15110_v45 = vpop.eup %15109  ;;  %v13113_v35 = vrot.slane %v15108_v18, 6  ;;  %v13122_v55 = vsel %vm13048_vm7, %v13120_v1, %v13121_v15 }
 0x9a7   :  { %13131 = vrot.lane.b32.xlu1 %v13130_v59, %s15270_s27  ;;  %v15112_v3 = vpop.eup %15111  ;;  %v13112_v38 = vrot.slane %v15110_v45, 6 }
 0x9a8   :  { %v13135_v24 = vrot.slane %v15112_v3, 2 }
 0x9a9   :  { %13123 = vrot.lane.b32.xlu0 %v13122_v55, %s15270_s27  ;;  %v13114_v34 = vsel %vm16676_vm2, %v13112_v38, %v13113_v35 }
 0x9ab   :  { %13136 = vrot.lane.b32.xlu1 %v13135_v24, %s15269_s0  ;;  %v15114_v58 = vpop.eup %15113 }
 0x9ac   :  { %v13140_v43 = vrot.slane %v15114_v58, 2 }
 0x9ad   :  { %13115 = vrot.lane.b32.xlu0 %v13114_v34, %s15269_s0 }
 0x9af   :  { %13141 = vrot.lane.b32.xlu1 %v13140_v43, %s15269_s0 }
 0x9f5   :  { %v13036_v13 = vpop.permute.xlu0 %13035 }
 0x9f7   :  { %v13071_v50 = vpop.permute.xlu1 %13070 }
 0x9fb   :  { %v13028_v21 = vpop.permute.xlu1 %13027 }
 0xa02   :  { %v13061_v36 = vpop.permute.xlu1 %13060 }
 0xa04   :  { %v13053_v12 = vpop.permute.xlu0 %13052 }
 0xa05   :  { %v13079_v42 = vsel %vm13073_vm10, %v13053_v12, %v13061_v36 }
 0xa08   :  { %v13024_v57 = vpop.permute.xlu0 %13023 }
 0xa09   :  { %v13074_v29 = vsel %vm13073_vm10, %v13024_v57, %v13028_v21 }
 0xa0a   :  { %v13076_v6 = vsel %vm13075_vm4, %v13074_v29, %v13036_v13 }
 0xa0b   :  { %v13066_v31 = vpop.permute.xlu1 %13065 }
 0xa0c   :  { %v13080_v44 = vsel %vm13075_vm4, %v13079_v42, %v13066_v31  ;;  %v13044_v27 = vpop.permute.xlu0 %13043 }
 0xa0d   :  { %v13078_v37 = vsel %vm13077_vm12, %v13076_v6, %v13044_v27  ;;  %v13081_v39 = vsel %vm13077_vm12, %v13080_v44, %v13071_v50 }
 0xa0e   :  { %v13084_v47 = vcombine.low %v13078_v37, %v13081_v39  ;;  %v13085_v63 = vcombine.high %v13078_v37, %v13081_v39 }
 0xa10   :  { %v14770_v16 = vrot.slane %v13084_v47, 9  ;;  %v13090_v26 = vrot.slane %v13085_v63, 5  ;;  %v13108_v52 = vpop.permute.xlu0 %13107 }
 0xa12   :  { %v13091_v14 = vsel %vm15903_vm14, %v14770_v16, %v13090_v26 }
 0xa13   :  { %13093 = vst [vmem:[%s16576_s7] sm:$0xff] %v13091_v14 }
 0xa15   :  { %v13100_v62 = vpop.permute.xlu1 %13099 }
 0xa17   :  { %v13096_v9 = vpop.permute.xlu0 %13095 }
 0xa18   :  { %v13144_v23 = vsel %vm13073_vm10, %v13096_v9, %v13100_v62 }
 0xa19   :  { %v13132_v30 = vpop.permute.xlu1 %13131  ;;  %v13145_v56 = vsel %vm13075_vm4, %v13144_v23, %v13108_v52 }
 0xa1b   :  { %v13124_v19 = vpop.permute.xlu0 %13123 }
 0xa1c   :  { %v13147_v33 = vsel %vm13073_vm10, %v13124_v19, %v13132_v30 }
 0xa1d   :  { %v13137_v25 = vpop.permute.xlu1 %13136 }
 0xa1e   :  { %v13148_v22 = vsel %vm13075_vm4, %v13147_v33, %v13137_v25 }
 0xa1f   :  { %v13116_v0 = vpop.permute.xlu0 %13115 }
 0xa20   :  { %v13146_v17 = vsel %vm13077_vm12, %v13145_v56, %v13116_v0 }
 0xa21   :  { %v13142_v20 = vpop.permute.xlu1 %13141 }
 0xa22   :  { %v13149_v46 = vsel %vm13077_vm12, %v13148_v22, %v13142_v20 }
 0xa23   :  { %v13152_v51 = vcombine.low %v13146_v17, %v13149_v46  ;;  %v13153_v5 = vcombine.high %v13146_v17, %v13149_v46 }
 0xa25   :  { %v14771_v8 = vrot.slane %v13152_v51, 9  ;;  %v13156_v32 = vrot.slane %v13153_v5, 5 }
 0xa27   :  { %v13157_v28 = vsel %vm15903_vm14, %v14771_v8, %v13156_v32 }
 0xa28   :  { %14772 = vst [vmem:[%s16576_s7 + $0x8] sm:$0xff] %v13157_v28 }
 0xa29   :  { %13165 = vsyncpa [#allocation5], 1 }
 0xa2a   :  { %13166 = vsyncpa [#allocation7], 1 }
 0xa2b   :  { %13167 = vsyncpa [#allocation10], 1 }
 0xa2c   :  { %13168 = vsyncpa [#allocation13], 1 }

</bundles_post_ra>
